<compile_context>
chip_gen: v7x
topology: tpu7x:2x2x1
jax: 0.10.0
libtpu: 0.0.40
codegen_flags: <defaults>
</compile_context>

<pallas_src>
import math
from functools import partial

import jax
import jax.numpy as jnp
from jax import lax
from jax.experimental import pallas as pl
from jax.experimental.pallas import tpu as pltpu

# MXU input dtype (fp32 accumulation everywhere).
MM_DTYPE = jnp.bfloat16


def _mm(a, b):
    return jnp.dot(a.astype(MM_DTYPE), b.astype(MM_DTYPE),
                   preferred_element_type=jnp.float32)


def _layer_norm(x, gamma, beta, eps=1e-5):
    mu = jnp.mean(x, axis=-1, keepdims=True)
    var = jnp.mean(jnp.square(x - mu), axis=-1, keepdims=True)
    return (x - mu) * lax.rsqrt(var + eps) * gamma + beta


# --------------------------------------------------------------------------
# The single fused forward kernel.  `S` is the conv output length.
# Activations are kept 2-D with batch folded into rows:
#   time-major  rows (row = t*B + b) for the conv + GRU scans,
#   batch-major rows (row = b*S + t) for the transformer part.
# --------------------------------------------------------------------------
def make_forward_kernel(cfg, B, S):
    K = cfg["kernel_size"]
    H = cfg["gru_hidden_dim"]
    D = cfg["d_model"]
    nhead = cfg["nhead"]
    n_gru = cfg["num_gru_layers"]
    n_tfm = cfg["num_transformer_layers"]
    dh = D // nhead
    scale = 1.0 / math.sqrt(dh)

    def kernel(*refs):
        it = iter(refs)
        x_ref = next(it)            # (Sp*B, Cin)  time-major, zero padded
        conv_w_ref = next(it)       # (K, Cin, Cc)
        conv_b_ref = next(it)       # (1, Cc)
        gru_refs = [dict(wih=next(it), whh=next(it), bih=next(it), bhh=next(it))
                    for _ in range(n_gru)]
        proj_w_ref = next(it)       # (H, D)
        proj_b_ref = next(it)       # (1, D)
        pe_ref = next(it)           # (B*S, D)  batch-major
        tfm_refs = [dict(wqkv=next(it), bqkv=next(it), wo=next(it), bo=next(it),
                         ln1=next(it), w1=next(it), b1=next(it),
                         w2=next(it), b2=next(it), ln2=next(it))
                    for _ in range(n_tfm)]
        out_w_ref = next(it)        # (D, O)
        out_b_ref = next(it)        # (1, O)
        o_ref = next(it)            # (B, O)

        # ---- Conv1d + ReLU, batch folded into rows (row = t*B + b) ----------
        x = x_ref[...]                                           # (Sp*B, Cin)
        acc = jnp.zeros((S * B, conv_w_ref.shape[2]), jnp.float32)
        for k in range(K):                                       # K unrolled
            acc = acc + _mm(x[k * B:(k + S) * B, :], conv_w_ref[k])
        seq_tm = jnp.maximum(acc + conv_b_ref[...], 0.0)         # (S*B, Cc)

        # ---- GRU stack: fused gates, hoisted input projection, static scan --
        hs = None
        for li, p in enumerate(gru_refs):
            xg = _mm(seq_tm, p["wih"][...]) + p["bih"][...]      # (S*B, 3H)
            whh = p["whh"][...].astype(MM_DTYPE)                 # cast once
            bhh = p["bhh"][...]
            h = jnp.zeros((B, H), jnp.float32)
            hs = []
            for t in range(S):                                   # static unroll
                hg = jnp.dot(h.astype(MM_DTYPE), whh,
                             preferred_element_type=jnp.float32) + bhh
                xg_t = xg[t * B:(t + 1) * B, :]
                r = jax.nn.sigmoid(xg_t[:, 0 * H:1 * H] + hg[:, 0 * H:1 * H])
                z = jax.nn.sigmoid(xg_t[:, 1 * H:2 * H] + hg[:, 1 * H:2 * H])
                n = jnp.tanh(xg_t[:, 2 * H:3 * H] + r * hg[:, 2 * H:3 * H])
                h = (1.0 - z) * n + z * h
                hs.append(h)
            if li + 1 < n_gru:
                seq_tm = jnp.concatenate(hs, axis=0)             # (S*B, H)
            # inter-layer dropout = identity (eval mode)

        # ---- reorder GRU output to batch-major rows (row = b*S + t) ---------
        x_bm = jnp.concatenate(
            [jnp.concatenate([hs[t][b:b + 1, :] for t in range(S)], axis=0)
             for b in range(B)], axis=0)                         # (B*S, H)

        # ---- projection Linear + positional encoding (dropout = identity) ---
        xt = _mm(x_bm, proj_w_ref[...]) + proj_b_ref[...] + pe_ref[...]  # (B*S, D)

        # ---- Transformer encoder layers (post-norm, ReLU FFN, no mask) ------
        for p in tfm_refs:
            wo = p["wo"][...]
            qkv = _mm(xt, p["wqkv"][...]) + p["bqkv"][...]       # (B*S, 3D)
            attn_rows = []
            for b in range(B):                                   # per-batch softmax
                rs = slice(b * S, (b + 1) * S)
                q = qkv[rs, 0 * D:1 * D] * scale
                kk = qkv[rs, 1 * D:2 * D]
                v = qkv[rs, 2 * D:3 * D]
                attn_b = jnp.zeros((S, D), jnp.float32)
                for hd in range(nhead):                          # no head concat
                    cs = slice(hd * dh, (hd + 1) * dh)
                    s = _mm(q[:, cs], kk[:, cs].T)               # (S, S)
                    pmat = jax.nn.softmax(s, axis=-1)
                    attn_b = attn_b + _mm(_mm(pmat, v[:, cs]), wo[cs, :])
                attn_rows.append(attn_b)
            attn = jnp.concatenate(attn_rows, axis=0) + p["bo"][...]
            ln1 = p["ln1"][...]
            x1 = _layer_norm(xt + attn, ln1[0], ln1[1])
            hid = jnp.maximum(_mm(x1, p["w1"][...]) + p["b1"][...], 0.0)
            ffn = _mm(hid, p["w2"][...]) + p["b2"][...]
            ln2 = p["ln2"][...]
            xt = _layer_norm(x1 + ffn, ln2[0], ln2[1])

        # ---- final Linear on the last timestep of each batch element --------
        last = jnp.concatenate(
            [xt[b * S + S - 1:b * S + S, :] for b in range(B)], axis=0)  # (B, D)
        o_ref[...] = _mm(last, out_w_ref[...]) + out_b_ref[...]

    return kernel


# --------------------------------------------------------------------------
# Glue: positional encoding, parameter init, forward wrapper.
# --------------------------------------------------------------------------
def make_positional_encoding(seq_len, d_model):
    position = jnp.arange(seq_len, dtype=jnp.float32)[:, None]
    div_term = jnp.exp(jnp.arange(0, d_model, 2, dtype=jnp.float32)
                       * (-math.log(10000.0) / d_model))
    pe = jnp.zeros((seq_len, d_model), jnp.float32)
    pe = pe.at[:, 0::2].set(jnp.sin(position * div_term))
    pe = pe.at[:, 1::2].set(jnp.cos(position * div_term))
    return pe


def init_params(key, cfg):
    Cin, Cc, K = cfg["input_dim"], cfg["cnn_out_channels"], cfg["kernel_size"]
    H, D, Dh, O = (cfg["gru_hidden_dim"], cfg["d_model"], cfg["d_hid"],
                   cfg["output_len"])
    keys = iter(jax.random.split(key, 128))

    def u(shape, fan_in):
        bound = 1.0 / math.sqrt(fan_in)
        return jax.random.uniform(next(keys), shape, jnp.float32, -bound, bound)

    def ln_params():
        return jnp.concatenate([jnp.ones((1, 1, D), jnp.float32),
                                jnp.zeros((1, 1, D), jnp.float32)], axis=0)

    params = {
        "conv_w": u((K, Cin, Cc), Cin * K),
        "conv_b": u((1, Cc), Cin * K),
        "gru": [],
        # projection is nn.Identity when gru_hidden_dim == d_model
        "proj_w": (jnp.eye(H, D, dtype=jnp.float32) if H == D else u((H, D), H)),
        "proj_b": (jnp.zeros((1, D), jnp.float32) if H == D else u((1, D), H)),
        "tfm": [],
        "out_w": u((D, O), D),
        "out_b": u((1, O), D),
    }
    for layer in range(cfg["num_gru_layers"]):
        cin_l = Cc if layer == 0 else H
        params["gru"].append({
            "wih": u((cin_l, 3 * H), H),   # gate order [r | z | n], fused
            "whh": u((H, 3 * H), H),
            "bih": u((1, 3 * H), H),
            "bhh": u((1, 3 * H), H),
        })
    for _ in range(cfg["num_transformer_layers"]):
        params["tfm"].append({
            "wqkv": u((D, 3 * D), D), "bqkv": u((1, 3 * D), D),
            "wo": u((D, D), D), "bo": u((1, D), D),
            "ln1": ln_params(),
            "w1": u((D, Dh), D), "b1": u((1, Dh), D),
            "w2": u((Dh, D), Dh), "b2": u((1, D), Dh),
            "ln2": ln_params(),
        })
    return params


def model_forward(src, params, cfg):
    """src: (B, S, input_dim) -> (B, output_len).  Whole forward = 1 pallas_call."""
    B, S, Cin = src.shape
    K = cfg["kernel_size"]
    pad = (K - 1) // 2
    S_out = S + 2 * pad - (K - 1)          # conv output length (== S for odd K)
    D = cfg["d_model"]

    # Time-major, zero-padded conv input with batch folded into rows (row = t*B+b).
    x_tm = jnp.transpose(src, (1, 0, 2))                       # (S, B, Cin)
    x_tm = jnp.pad(x_tm, ((pad, pad), (0, 0), (0, 0)))         # (Sp, B, Cin)
    x_flat = x_tm.reshape((S + 2 * pad) * B, Cin)

    # Positional encoding pre-tiled to batch-major rows (row = b*S + t).
    pe_bm = jnp.tile(make_positional_encoding(S_out, D), (B, 1))

    args = [x_flat, params["conv_w"], params["conv_b"]]
    for g in params["gru"]:
        args += [g["wih"], g["whh"], g["bih"], g["bhh"]]
    args += [params["proj_w"], params["proj_b"], pe_bm]
    for t in params["tfm"]:
        args += [t["wqkv"], t["bqkv"], t["wo"], t["bo"], t["ln1"],
                 t["w1"], t["b1"], t["w2"], t["b2"], t["ln2"]]
    args += [params["out_w"], params["out_b"]]

    vmem = pl.BlockSpec(memory_space=pltpu.MemorySpace.VMEM)
    # TODO(synk): on v7x (2 TensorCores/chip) the batch could be split across
    # cores via pl.core_map(pltpu.create_tensorcore_mesh(...)); a single core
    # is already optimal on v5e/v6e at this size.
    return pl.pallas_call(
        make_forward_kernel(cfg, B, S_out),
        out_shape=jax.ShapeDtypeStruct((B, cfg["output_len"]), jnp.float32),
        in_specs=[vmem] * len(args),
        out_specs=vmem,
    )(*args)


if __name__ == "__main__":
    cfg = dict(input_dim=8, cnn_out_channels=16, kernel_size=3, gru_hidden_dim=24,
               num_gru_layers=2, d_model=32, nhead=4, d_hid=64,
               num_transformer_layers=2, output_len=4, dropout=0.2)
    B, S = 2, 16

    key = jax.random.PRNGKey(0)
    k_src, k_par = jax.random.split(key)
    src = jax.random.normal(k_src, (B, S, cfg["input_dim"]), jnp.float32)
    params = init_params(k_par, cfg)

    fwd = jax.jit(partial(model_forward, cfg=cfg))
    out = jax.block_until_ready(fwd(src, params))

    assert out.shape == (B, cfg["output_len"]), out.shape
    assert bool(jnp.all(jnp.isfinite(out)))
    print("KERNEL_OK")
</pallas_src>

<mosaic_0001>
module attributes {stable_mosaic.version = 11 : i64} {
  func.func @kernel(%arg0: memref<36x8xf32, #tpu.memory_space<vmem>>, %arg1: memref<3x8x16xf32, #tpu.memory_space<vmem>>, %arg2: memref<1x16xf32, #tpu.memory_space<vmem>>, %arg3: memref<16x72xf32, #tpu.memory_space<vmem>>, %arg4: memref<24x72xf32, #tpu.memory_space<vmem>>, %arg5: memref<1x72xf32, #tpu.memory_space<vmem>>, %arg6: memref<1x72xf32, #tpu.memory_space<vmem>>, %arg7: memref<24x72xf32, #tpu.memory_space<vmem>>, %arg8: memref<24x72xf32, #tpu.memory_space<vmem>>, %arg9: memref<1x72xf32, #tpu.memory_space<vmem>>, %arg10: memref<1x72xf32, #tpu.memory_space<vmem>>, %arg11: memref<24x32xf32, #tpu.memory_space<vmem>>, %arg12: memref<1x32xf32, #tpu.memory_space<vmem>>, %arg13: memref<32x32xf32, #tpu.memory_space<vmem>>, %arg14: memref<32x96xf32, #tpu.memory_space<vmem>>, %arg15: memref<1x96xf32, #tpu.memory_space<vmem>>, %arg16: memref<32x32xf32, #tpu.memory_space<vmem>>, %arg17: memref<1x32xf32, #tpu.memory_space<vmem>>, %arg18: memref<2x1x32xf32, #tpu.memory_space<vmem>>, %arg19: memref<32x64xf32, #tpu.memory_space<vmem>>, %arg20: memref<1x64xf32, #tpu.memory_space<vmem>>, %arg21: memref<64x32xf32, #tpu.memory_space<vmem>>, %arg22: memref<1x32xf32, #tpu.memory_space<vmem>>, %arg23: memref<2x1x32xf32, #tpu.memory_space<vmem>>, %arg24: memref<32x96xf32, #tpu.memory_space<vmem>>, %arg25: memref<1x96xf32, #tpu.memory_space<vmem>>, %arg26: memref<32x32xf32, #tpu.memory_space<vmem>>, %arg27: memref<1x32xf32, #tpu.memory_space<vmem>>, %arg28: memref<2x1x32xf32, #tpu.memory_space<vmem>>, %arg29: memref<32x64xf32, #tpu.memory_space<vmem>>, %arg30: memref<1x64xf32, #tpu.memory_space<vmem>>, %arg31: memref<64x32xf32, #tpu.memory_space<vmem>>, %arg32: memref<1x32xf32, #tpu.memory_space<vmem>>, %arg33: memref<2x1x32xf32, #tpu.memory_space<vmem>>, %arg34: memref<32x4xf32, #tpu.memory_space<vmem>>, %arg35: memref<1x4xf32, #tpu.memory_space<vmem>>, %arg36: memref<2x4xf32, #tpu.memory_space<vmem>>) attributes {dimension_semantics = [], scalar_prefetch = 0 : i64, scratch_operands = 0 : i64, tpu.core_type = #tpu.core_type<tc>} {
    %c0 = arith.constant 0 : index
    %c0_0 = arith.constant 0 : index
    %0 = vector.load %arg0[%c0, %c0_0] : memref<36x8xf32, #tpu.memory_space<vmem>>, vector<36x8xf32>
    %cst = arith.constant 0.000000e+00 : f32
    %1 = vector.broadcast %cst : f32 to vector<32x16xf32>
    %2 = vector.extract_strided_slice %0 {offsets = [0, 0], sizes = [32, 8], strides = [1, 1]} : vector<36x8xf32> to vector<32x8xf32>
    %c0_1 = arith.constant 0 : index
    %c0_2 = arith.constant 0 : index
    %c0_3 = arith.constant 0 : index
    %3 = vector.load %arg1[%c0_1, %c0_2, %c0_3] : memref<3x8x16xf32, #tpu.memory_space<vmem>>, vector<1x8x16xf32>
    %4 = vector.shape_cast %3 : vector<1x8x16xf32> to vector<8x16xf32>
    %5 = arith.truncf %2 : vector<32x8xf32> to vector<32x8xbf16>
    %6 = arith.truncf %4 : vector<8x16xf32> to vector<8x16xbf16>
    %cst_4 = arith.constant dense<0.000000e+00> : vector<32x16xf32>
    %7 = tpu.matmul %5, %6, %cst_4 {dimension_numbers = #tpu.dot_dimension_numbers<[1], [0], [0], [1], [0, 0, 1, 1], [], []>} : vector<32x8xbf16>, vector<8x16xbf16>, vector<32x16xf32> -> vector<32x16xf32>
    %8 = arith.addf %1, %7 : vector<32x16xf32>
    %9 = vector.extract_strided_slice %0 {offsets = [2, 0], sizes = [32, 8], strides = [1, 1]} : vector<36x8xf32> to vector<32x8xf32>
    %c1 = arith.constant 1 : index
    %c0_5 = arith.constant 0 : index
    %c0_6 = arith.constant 0 : index
    %10 = vector.load %arg1[%c1, %c0_5, %c0_6] : memref<3x8x16xf32, #tpu.memory_space<vmem>>, vector<1x8x16xf32>
    %11 = vector.shape_cast %10 : vector<1x8x16xf32> to vector<8x16xf32>
    %12 = arith.truncf %9 : vector<32x8xf32> to vector<32x8xbf16>
    %13 = arith.truncf %11 : vector<8x16xf32> to vector<8x16xbf16>
    %cst_7 = arith.constant dense<0.000000e+00> : vector<32x16xf32>
    %14 = tpu.matmul %12, %13, %cst_7 {dimension_numbers = #tpu.dot_dimension_numbers<[1], [0], [0], [1], [0, 0, 1, 1], [], []>} : vector<32x8xbf16>, vector<8x16xbf16>, vector<32x16xf32> -> vector<32x16xf32>
    %15 = arith.addf %8, %14 : vector<32x16xf32>
    %16 = vector.extract_strided_slice %0 {offsets = [4, 0], sizes = [32, 8], strides = [1, 1]} : vector<36x8xf32> to vector<32x8xf32>
    %c2 = arith.constant 2 : index
    %c0_8 = arith.constant 0 : index
    %c0_9 = arith.constant 0 : index
    %17 = vector.load %arg1[%c2, %c0_8, %c0_9] : memref<3x8x16xf32, #tpu.memory_space<vmem>>, vector<1x8x16xf32>
    %18 = vector.shape_cast %17 : vector<1x8x16xf32> to vector<8x16xf32>
    %19 = arith.truncf %16 : vector<32x8xf32> to vector<32x8xbf16>
    %20 = arith.truncf %18 : vector<8x16xf32> to vector<8x16xbf16>
    %cst_10 = arith.constant dense<0.000000e+00> : vector<32x16xf32>
    %21 = tpu.matmul %19, %20, %cst_10 {dimension_numbers = #tpu.dot_dimension_numbers<[1], [0], [0], [1], [0, 0, 1, 1], [], []>} : vector<32x8xbf16>, vector<8x16xbf16>, vector<32x16xf32> -> vector<32x16xf32>
    %22 = arith.addf %15, %21 : vector<32x16xf32>
    %c0_11 = arith.constant 0 : index
    %c0_12 = arith.constant 0 : index
    %23 = vector.load %arg2[%c0_11, %c0_12] : memref<1x16xf32, #tpu.memory_space<vmem>>, vector<1x16xf32>
    %24 = vector.broadcast %23 : vector<1x16xf32> to vector<32x16xf32>
    %25 = arith.addf %22, %24 : vector<32x16xf32>
    %cst_13 = arith.constant 0.000000e+00 : f32
    %26 = vector.broadcast %cst_13 : f32 to vector<32x16xf32>
    %27 = arith.maximumf %25, %26 : vector<32x16xf32>
    %c0_14 = arith.constant 0 : index
    %c0_15 = arith.constant 0 : index
    %28 = vector.load %arg3[%c0_14, %c0_15] : memref<16x72xf32, #tpu.memory_space<vmem>>, vector<16x72xf32>
    %29 = arith.truncf %27 : vector<32x16xf32> to vector<32x16xbf16>
    %30 = arith.truncf %28 : vector<16x72xf32> to vector<16x72xbf16>
    %cst_16 = arith.constant dense<0.000000e+00> : vector<32x72xf32>
    %31 = tpu.matmul %29, %30, %cst_16 {dimension_numbers = #tpu.dot_dimension_numbers<[1], [0], [0], [1], [0, 0, 1, 1], [], []>} : vector<32x16xbf16>, vector<16x72xbf16>, vector<32x72xf32> -> vector<32x72xf32>
    %c0_17 = arith.constant 0 : index
    %c0_18 = arith.constant 0 : index
    %32 = vector.load %arg5[%c0_17, %c0_18] : memref<1x72xf32, #tpu.memory_space<vmem>>, vector<1x72xf32>
    %33 = vector.broadcast %32 : vector<1x72xf32> to vector<32x72xf32>
    %34 = arith.addf %31, %33 : vector<32x72xf32>
    %c0_19 = arith.constant 0 : index
    %c0_20 = arith.constant 0 : index
    %35 = vector.load %arg4[%c0_19, %c0_20] : memref<24x72xf32, #tpu.memory_space<vmem>>, vector<24x72xf32>
    %36 = arith.truncf %35 : vector<24x72xf32> to vector<24x72xbf16>
    %c0_21 = arith.constant 0 : index
    %c0_22 = arith.constant 0 : index
    %37 = vector.load %arg6[%c0_21, %c0_22] : memref<1x72xf32, #tpu.memory_space<vmem>>, vector<1x72xf32>
    %cst_23 = arith.constant 0.000000e+00 : f32
    %38 = vector.broadcast %cst_23 : f32 to vector<2x24xf32>
    %39 = arith.truncf %38 : vector<2x24xf32> to vector<2x24xbf16>
    %cst_24 = arith.constant dense<0.000000e+00> : vector<2x72xf32>
    %40 = tpu.matmul %39, %36, %cst_24 {dimension_numbers = #tpu.dot_dimension_numbers<[1], [0], [0], [1], [0, 0, 1, 1], [], []>} : vector<2x24xbf16>, vector<24x72xbf16>, vector<2x72xf32> -> vector<2x72xf32>
    %41 = vector.broadcast %37 : vector<1x72xf32> to vector<2x72xf32>
    %42 = arith.addf %40, %41 : vector<2x72xf32>
    %43 = vector.extract_strided_slice %34 {offsets = [0, 0], sizes = [2, 72], strides = [1, 1]} : vector<32x72xf32> to vector<2x72xf32>
    %44 = vector.extract_strided_slice %43 {offsets = [0, 0], sizes = [2, 24], strides = [1, 1]} : vector<2x72xf32> to vector<2x24xf32>
    %45 = vector.extract_strided_slice %42 {offsets = [0, 0], sizes = [2, 24], strides = [1, 1]} : vector<2x72xf32> to vector<2x24xf32>
    %46 = arith.addf %44, %45 : vector<2x24xf32>
    %47 = arith.negf %46 : vector<2x24xf32>
    %48 = math.exp %47 : vector<2x24xf32>
    %cst_25 = arith.constant 1.000000e+00 : f32
    %49 = vector.broadcast %cst_25 : f32 to vector<2x24xf32>
    %50 = arith.addf %49, %48 : vector<2x24xf32>
    %51 = arith.divf %49, %50 : vector<2x24xf32>
    %52 = vector.extract_strided_slice %43 {offsets = [0, 24], sizes = [2, 24], strides = [1, 1]} : vector<2x72xf32> to vector<2x24xf32>
    %53 = vector.extract_strided_slice %42 {offsets = [0, 24], sizes = [2, 24], strides = [1, 1]} : vector<2x72xf32> to vector<2x24xf32>
    %54 = arith.addf %52, %53 : vector<2x24xf32>
    %55 = arith.negf %54 : vector<2x24xf32>
    %56 = math.exp %55 : vector<2x24xf32>
    %cst_26 = arith.constant 1.000000e+00 : f32
    %57 = vector.broadcast %cst_26 : f32 to vector<2x24xf32>
    %58 = arith.addf %57, %56 : vector<2x24xf32>
    %59 = arith.divf %57, %58 : vector<2x24xf32>
    %60 = vector.extract_strided_slice %43 {offsets = [0, 48], sizes = [2, 24], strides = [1, 1]} : vector<2x72xf32> to vector<2x24xf32>
    %61 = vector.extract_strided_slice %42 {offsets = [0, 48], sizes = [2, 24], strides = [1, 1]} : vector<2x72xf32> to vector<2x24xf32>
    %62 = arith.mulf %51, %61 : vector<2x24xf32>
    %63 = arith.addf %60, %62 : vector<2x24xf32>
    %64 = math.tanh %63 : vector<2x24xf32>
    %cst_27 = arith.constant 1.000000e+00 : f32
    %65 = vector.broadcast %cst_27 : f32 to vector<2x24xf32>
    %66 = arith.subf %65, %59 : vector<2x24xf32>
    %67 = arith.mulf %66, %64 : vector<2x24xf32>
    %68 = arith.mulf %59, %38 : vector<2x24xf32>
    %69 = arith.addf %67, %68 : vector<2x24xf32>
    %70 = arith.truncf %69 : vector<2x24xf32> to vector<2x24xbf16>
    %cst_28 = arith.constant dense<0.000000e+00> : vector<2x72xf32>
    %71 = tpu.matmul %70, %36, %cst_28 {dimension_numbers = #tpu.dot_dimension_numbers<[1], [0], [0], [1], [0, 0, 1, 1], [], []>} : vector<2x24xbf16>, vector<24x72xbf16>, vector<2x72xf32> -> vector<2x72xf32>
    %72 = vector.broadcast %37 : vector<1x72xf32> to vector<2x72xf32>
    %73 = arith.addf %71, %72 : vector<2x72xf32>
    %74 = vector.extract_strided_slice %34 {offsets = [2, 0], sizes = [2, 72], strides = [1, 1]} : vector<32x72xf32> to vector<2x72xf32>
    %75 = vector.extract_strided_slice %74 {offsets = [0, 0], sizes = [2, 24], strides = [1, 1]} : vector<2x72xf32> to vector<2x24xf32>
    %76 = vector.extract_strided_slice %73 {offsets = [0, 0], sizes = [2, 24], strides = [1, 1]} : vector<2x72xf32> to vector<2x24xf32>
    %77 = arith.addf %75, %76 : vector<2x24xf32>
    %78 = arith.negf %77 : vector<2x24xf32>
    %79 = math.exp %78 : vector<2x24xf32>
    %cst_29 = arith.constant 1.000000e+00 : f32
    %80 = vector.broadcast %cst_29 : f32 to vector<2x24xf32>
    %81 = arith.addf %80, %79 : vector<2x24xf32>
    %82 = arith.divf %80, %81 : vector<2x24xf32>
    %83 = vector.extract_strided_slice %74 {offsets = [0, 24], sizes = [2, 24], strides = [1, 1]} : vector<2x72xf32> to vector<2x24xf32>
    %84 = vector.extract_strided_slice %73 {offsets = [0, 24], sizes = [2, 24], strides = [1, 1]} : vector<2x72xf32> to vector<2x24xf32>
    %85 = arith.addf %83, %84 : vector<2x24xf32>
    %86 = arith.negf %85 : vector<2x24xf32>
    %87 = math.exp %86 : vector<2x24xf32>
    %cst_30 = arith.constant 1.000000e+00 : f32
    %88 = vector.broadcast %cst_30 : f32 to vector<2x24xf32>
    %89 = arith.addf %88, %87 : vector<2x24xf32>
    %90 = arith.divf %88, %89 : vector<2x24xf32>
    %91 = vector.extract_strided_slice %74 {offsets = [0, 48], sizes = [2, 24], strides = [1, 1]} : vector<2x72xf32> to vector<2x24xf32>
    %92 = vector.extract_strided_slice %73 {offsets = [0, 48], sizes = [2, 24], strides = [1, 1]} : vector<2x72xf32> to vector<2x24xf32>
    %93 = arith.mulf %82, %92 : vector<2x24xf32>
    %94 = arith.addf %91, %93 : vector<2x24xf32>
    %95 = math.tanh %94 : vector<2x24xf32>
    %cst_31 = arith.constant 1.000000e+00 : f32
    %96 = vector.broadcast %cst_31 : f32 to vector<2x24xf32>
    %97 = arith.subf %96, %90 : vector<2x24xf32>
    %98 = arith.mulf %97, %95 : vector<2x24xf32>
    %99 = arith.mulf %90, %69 : vector<2x24xf32>
    %100 = arith.addf %98, %99 : vector<2x24xf32>
    %101 = arith.truncf %100 : vector<2x24xf32> to vector<2x24xbf16>
    %cst_32 = arith.constant dense<0.000000e+00> : vector<2x72xf32>
    %102 = tpu.matmul %101, %36, %cst_32 {dimension_numbers = #tpu.dot_dimension_numbers<[1], [0], [0], [1], [0, 0, 1, 1], [], []>} : vector<2x24xbf16>, vector<24x72xbf16>, vector<2x72xf32> -> vector<2x72xf32>
    %103 = vector.broadcast %37 : vector<1x72xf32> to vector<2x72xf32>
    %104 = arith.addf %102, %103 : vector<2x72xf32>
    %105 = vector.extract_strided_slice %34 {offsets = [4, 0], sizes = [2, 72], strides = [1, 1]} : vector<32x72xf32> to vector<2x72xf32>
    %106 = vector.extract_strided_slice %105 {offsets = [0, 0], sizes = [2, 24], strides = [1, 1]} : vector<2x72xf32> to vector<2x24xf32>
    %107 = vector.extract_strided_slice %104 {offsets = [0, 0], sizes = [2, 24], strides = [1, 1]} : vector<2x72xf32> to vector<2x24xf32>
    %108 = arith.addf %106, %107 : vector<2x24xf32>
    %109 = arith.negf %108 : vector<2x24xf32>
    %110 = math.exp %109 : vector<2x24xf32>
    %cst_33 = arith.constant 1.000000e+00 : f32
    %111 = vector.broadcast %cst_33 : f32 to vector<2x24xf32>
    %112 = arith.addf %111, %110 : vector<2x24xf32>
    %113 = arith.divf %111, %112 : vector<2x24xf32>
    %114 = vector.extract_strided_slice %105 {offsets = [0, 24], sizes = [2, 24], strides = [1, 1]} : vector<2x72xf32> to vector<2x24xf32>
    %115 = vector.extract_strided_slice %104 {offsets = [0, 24], sizes = [2, 24], strides = [1, 1]} : vector<2x72xf32> to vector<2x24xf32>
    %116 = arith.addf %114, %115 : vector<2x24xf32>
    %117 = arith.negf %116 : vector<2x24xf32>
    %118 = math.exp %117 : vector<2x24xf32>
    %cst_34 = arith.constant 1.000000e+00 : f32
    %119 = vector.broadcast %cst_34 : f32 to vector<2x24xf32>
    %120 = arith.addf %119, %118 : vector<2x24xf32>
    %121 = arith.divf %119, %120 : vector<2x24xf32>
    %122 = vector.extract_strided_slice %105 {offsets = [0, 48], sizes = [2, 24], strides = [1, 1]} : vector<2x72xf32> to vector<2x24xf32>
    %123 = vector.extract_strided_slice %104 {offsets = [0, 48], sizes = [2, 24], strides = [1, 1]} : vector<2x72xf32> to vector<2x24xf32>
    %124 = arith.mulf %113, %123 : vector<2x24xf32>
    %125 = arith.addf %122, %124 : vector<2x24xf32>
    %126 = math.tanh %125 : vector<2x24xf32>
    %cst_35 = arith.constant 1.000000e+00 : f32
    %127 = vector.broadcast %cst_35 : f32 to vector<2x24xf32>
    %128 = arith.subf %127, %121 : vector<2x24xf32>
    %129 = arith.mulf %128, %126 : vector<2x24xf32>
    %130 = arith.mulf %121, %100 : vector<2x24xf32>
    %131 = arith.addf %129, %130 : vector<2x24xf32>
    %132 = arith.truncf %131 : vector<2x24xf32> to vector<2x24xbf16>
    %cst_36 = arith.constant dense<0.000000e+00> : vector<2x72xf32>
    %133 = tpu.matmul %132, %36, %cst_36 {dimension_numbers = #tpu.dot_dimension_numbers<[1], [0], [0], [1], [0, 0, 1, 1], [], []>} : vector<2x24xbf16>, vector<24x72xbf16>, vector<2x72xf32> -> vector<2x72xf32>
    %134 = vector.broadcast %37 : vector<1x72xf32> to vector<2x72xf32>
    %135 = arith.addf %133, %134 : vector<2x72xf32>
    %136 = vector.extract_strided_slice %34 {offsets = [6, 0], sizes = [2, 72], strides = [1, 1]} : vector<32x72xf32> to vector<2x72xf32>
    %137 = vector.extract_strided_slice %136 {offsets = [0, 0], sizes = [2, 24], strides = [1, 1]} : vector<2x72xf32> to vector<2x24xf32>
    %138 = vector.extract_strided_slice %135 {offsets = [0, 0], sizes = [2, 24], strides = [1, 1]} : vector<2x72xf32> to vector<2x24xf32>
    %139 = arith.addf %137, %138 : vector<2x24xf32>
    %140 = arith.negf %139 : vector<2x24xf32>
    %141 = math.exp %140 : vector<2x24xf32>
    %cst_37 = arith.constant 1.000000e+00 : f32
    %142 = vector.broadcast %cst_37 : f32 to vector<2x24xf32>
    %143 = arith.addf %142, %141 : vector<2x24xf32>
    %144 = arith.divf %142, %143 : vector<2x24xf32>
    %145 = vector.extract_strided_slice %136 {offsets = [0, 24], sizes = [2, 24], strides = [1, 1]} : vector<2x72xf32> to vector<2x24xf32>
    %146 = vector.extract_strided_slice %135 {offsets = [0, 24], sizes = [2, 24], strides = [1, 1]} : vector<2x72xf32> to vector<2x24xf32>
    %147 = arith.addf %145, %146 : vector<2x24xf32>
    %148 = arith.negf %147 : vector<2x24xf32>
    %149 = math.exp %148 : vector<2x24xf32>
    %cst_38 = arith.constant 1.000000e+00 : f32
    %150 = vector.broadcast %cst_38 : f32 to vector<2x24xf32>
    %151 = arith.addf %150, %149 : vector<2x24xf32>
    %152 = arith.divf %150, %151 : vector<2x24xf32>
    %153 = vector.extract_strided_slice %136 {offsets = [0, 48], sizes = [2, 24], strides = [1, 1]} : vector<2x72xf32> to vector<2x24xf32>
    %154 = vector.extract_strided_slice %135 {offsets = [0, 48], sizes = [2, 24], strides = [1, 1]} : vector<2x72xf32> to vector<2x24xf32>
    %155 = arith.mulf %144, %154 : vector<2x24xf32>
    %156 = arith.addf %153, %155 : vector<2x24xf32>
    %157 = math.tanh %156 : vector<2x24xf32>
    %cst_39 = arith.constant 1.000000e+00 : f32
    %158 = vector.broadcast %cst_39 : f32 to vector<2x24xf32>
    %159 = arith.subf %158, %152 : vector<2x24xf32>
    %160 = arith.mulf %159, %157 : vector<2x24xf32>
    %161 = arith.mulf %152, %131 : vector<2x24xf32>
    %162 = arith.addf %160, %161 : vector<2x24xf32>
    %163 = arith.truncf %162 : vector<2x24xf32> to vector<2x24xbf16>
    %cst_40 = arith.constant dense<0.000000e+00> : vector<2x72xf32>
    %164 = tpu.matmul %163, %36, %cst_40 {dimension_numbers = #tpu.dot_dimension_numbers<[1], [0], [0], [1], [0, 0, 1, 1], [], []>} : vector<2x24xbf16>, vector<24x72xbf16>, vector<2x72xf32> -> vector<2x72xf32>
    %165 = vector.broadcast %37 : vector<1x72xf32> to vector<2x72xf32>
    %166 = arith.addf %164, %165 : vector<2x72xf32>
    %167 = vector.extract_strided_slice %34 {offsets = [8, 0], sizes = [2, 72], strides = [1, 1]} : vector<32x72xf32> to vector<2x72xf32>
    %168 = vector.extract_strided_slice %167 {offsets = [0, 0], sizes = [2, 24], strides = [1, 1]} : vector<2x72xf32> to vector<2x24xf32>
    %169 = vector.extract_strided_slice %166 {offsets = [0, 0], sizes = [2, 24], strides = [1, 1]} : vector<2x72xf32> to vector<2x24xf32>
    %170 = arith.addf %168, %169 : vector<2x24xf32>
    %171 = arith.negf %170 : vector<2x24xf32>
    %172 = math.exp %171 : vector<2x24xf32>
    %cst_41 = arith.constant 1.000000e+00 : f32
    %173 = vector.broadcast %cst_41 : f32 to vector<2x24xf32>
    %174 = arith.addf %173, %172 : vector<2x24xf32>
    %175 = arith.divf %173, %174 : vector<2x24xf32>
    %176 = vector.extract_strided_slice %167 {offsets = [0, 24], sizes = [2, 24], strides = [1, 1]} : vector<2x72xf32> to vector<2x24xf32>
    %177 = vector.extract_strided_slice %166 {offsets = [0, 24], sizes = [2, 24], strides = [1, 1]} : vector<2x72xf32> to vector<2x24xf32>
    %178 = arith.addf %176, %177 : vector<2x24xf32>
    %179 = arith.negf %178 : vector<2x24xf32>
    %180 = math.exp %179 : vector<2x24xf32>
    %cst_42 = arith.constant 1.000000e+00 : f32
    %181 = vector.broadcast %cst_42 : f32 to vector<2x24xf32>
    %182 = arith.addf %181, %180 : vector<2x24xf32>
    %183 = arith.divf %181, %182 : vector<2x24xf32>
    %184 = vector.extract_strided_slice %167 {offsets = [0, 48], sizes = [2, 24], strides = [1, 1]} : vector<2x72xf32> to vector<2x24xf32>
    %185 = vector.extract_strided_slice %166 {offsets = [0, 48], sizes = [2, 24], strides = [1, 1]} : vector<2x72xf32> to vector<2x24xf32>
    %186 = arith.mulf %175, %185 : vector<2x24xf32>
    %187 = arith.addf %184, %186 : vector<2x24xf32>
    %188 = math.tanh %187 : vector<2x24xf32>
    %cst_43 = arith.constant 1.000000e+00 : f32
    %189 = vector.broadcast %cst_43 : f32 to vector<2x24xf32>
    %190 = arith.subf %189, %183 : vector<2x24xf32>
    %191 = arith.mulf %190, %188 : vector<2x24xf32>
    %192 = arith.mulf %183, %162 : vector<2x24xf32>
    %193 = arith.addf %191, %192 : vector<2x24xf32>
    %194 = arith.truncf %193 : vector<2x24xf32> to vector<2x24xbf16>
    %cst_44 = arith.constant dense<0.000000e+00> : vector<2x72xf32>
    %195 = tpu.matmul %194, %36, %cst_44 {dimension_numbers = #tpu.dot_dimension_numbers<[1], [0], [0], [1], [0, 0, 1, 1], [], []>} : vector<2x24xbf16>, vector<24x72xbf16>, vector<2x72xf32> -> vector<2x72xf32>
    %196 = vector.broadcast %37 : vector<1x72xf32> to vector<2x72xf32>
    %197 = arith.addf %195, %196 : vector<2x72xf32>
    %198 = vector.extract_strided_slice %34 {offsets = [10, 0], sizes = [2, 72], strides = [1, 1]} : vector<32x72xf32> to vector<2x72xf32>
    %199 = vector.extract_strided_slice %198 {offsets = [0, 0], sizes = [2, 24], strides = [1, 1]} : vector<2x72xf32> to vector<2x24xf32>
    %200 = vector.extract_strided_slice %197 {offsets = [0, 0], sizes = [2, 24], strides = [1, 1]} : vector<2x72xf32> to vector<2x24xf32>
    %201 = arith.addf %199, %200 : vector<2x24xf32>
    %202 = arith.negf %201 : vector<2x24xf32>
    %203 = math.exp %202 : vector<2x24xf32>
    %cst_45 = arith.constant 1.000000e+00 : f32
    %204 = vector.broadcast %cst_45 : f32 to vector<2x24xf32>
    %205 = arith.addf %204, %203 : vector<2x24xf32>
    %206 = arith.divf %204, %205 : vector<2x24xf32>
    %207 = vector.extract_strided_slice %198 {offsets = [0, 24], sizes = [2, 24], strides = [1, 1]} : vector<2x72xf32> to vector<2x24xf32>
    %208 = vector.extract_strided_slice %197 {offsets = [0, 24], sizes = [2, 24], strides = [1, 1]} : vector<2x72xf32> to vector<2x24xf32>
    %209 = arith.addf %207, %208 : vector<2x24xf32>
    %210 = arith.negf %209 : vector<2x24xf32>
    %211 = math.exp %210 : vector<2x24xf32>
    %cst_46 = arith.constant 1.000000e+00 : f32
    %212 = vector.broadcast %cst_46 : f32 to vector<2x24xf32>
    %213 = arith.addf %212, %211 : vector<2x24xf32>
    %214 = arith.divf %212, %213 : vector<2x24xf32>
    %215 = vector.extract_strided_slice %198 {offsets = [0, 48], sizes = [2, 24], strides = [1, 1]} : vector<2x72xf32> to vector<2x24xf32>
    %216 = vector.extract_strided_slice %197 {offsets = [0, 48], sizes = [2, 24], strides = [1, 1]} : vector<2x72xf32> to vector<2x24xf32>
    %217 = arith.mulf %206, %216 : vector<2x24xf32>
    %218 = arith.addf %215, %217 : vector<2x24xf32>
    %219 = math.tanh %218 : vector<2x24xf32>
    %cst_47 = arith.constant 1.000000e+00 : f32
    %220 = vector.broadcast %cst_47 : f32 to vector<2x24xf32>
    %221 = arith.subf %220, %214 : vector<2x24xf32>
    %222 = arith.mulf %221, %219 : vector<2x24xf32>
    %223 = arith.mulf %214, %193 : vector<2x24xf32>
    %224 = arith.addf %222, %223 : vector<2x24xf32>
    %225 = arith.truncf %224 : vector<2x24xf32> to vector<2x24xbf16>
    %cst_48 = arith.constant dense<0.000000e+00> : vector<2x72xf32>
    %226 = tpu.matmul %225, %36, %cst_48 {dimension_numbers = #tpu.dot_dimension_numbers<[1], [0], [0], [1], [0, 0, 1, 1], [], []>} : vector<2x24xbf16>, vector<24x72xbf16>, vector<2x72xf32> -> vector<2x72xf32>
    %227 = vector.broadcast %37 : vector<1x72xf32> to vector<2x72xf32>
    %228 = arith.addf %226, %227 : vector<2x72xf32>
    %229 = vector.extract_strided_slice %34 {offsets = [12, 0], sizes = [2, 72], strides = [1, 1]} : vector<32x72xf32> to vector<2x72xf32>
    %230 = vector.extract_strided_slice %229 {offsets = [0, 0], sizes = [2, 24], strides = [1, 1]} : vector<2x72xf32> to vector<2x24xf32>
    %231 = vector.extract_strided_slice %228 {offsets = [0, 0], sizes = [2, 24], strides = [1, 1]} : vector<2x72xf32> to vector<2x24xf32>
    %232 = arith.addf %230, %231 : vector<2x24xf32>
    %233 = arith.negf %232 : vector<2x24xf32>
    %234 = math.exp %233 : vector<2x24xf32>
    %cst_49 = arith.constant 1.000000e+00 : f32
    %235 = vector.broadcast %cst_49 : f32 to vector<2x24xf32>
    %236 = arith.addf %235, %234 : vector<2x24xf32>
    %237 = arith.divf %235, %236 : vector<2x24xf32>
    %238 = vector.extract_strided_slice %229 {offsets = [0, 24], sizes = [2, 24], strides = [1, 1]} : vector<2x72xf32> to vector<2x24xf32>
    %239 = vector.extract_strided_slice %228 {offsets = [0, 24], sizes = [2, 24], strides = [1, 1]} : vector<2x72xf32> to vector<2x24xf32>
    %240 = arith.addf %238, %239 : vector<2x24xf32>
    %241 = arith.negf %240 : vector<2x24xf32>
    %242 = math.exp %241 : vector<2x24xf32>
    %cst_50 = arith.constant 1.000000e+00 : f32
    %243 = vector.broadcast %cst_50 : f32 to vector<2x24xf32>
    %244 = arith.addf %243, %242 : vector<2x24xf32>
    %245 = arith.divf %243, %244 : vector<2x24xf32>
    %246 = vector.extract_strided_slice %229 {offsets = [0, 48], sizes = [2, 24], strides = [1, 1]} : vector<2x72xf32> to vector<2x24xf32>
    %247 = vector.extract_strided_slice %228 {offsets = [0, 48], sizes = [2, 24], strides = [1, 1]} : vector<2x72xf32> to vector<2x24xf32>
    %248 = arith.mulf %237, %247 : vector<2x24xf32>
    %249 = arith.addf %246, %248 : vector<2x24xf32>
    %250 = math.tanh %249 : vector<2x24xf32>
    %cst_51 = arith.constant 1.000000e+00 : f32
    %251 = vector.broadcast %cst_51 : f32 to vector<2x24xf32>
    %252 = arith.subf %251, %245 : vector<2x24xf32>
    %253 = arith.mulf %252, %250 : vector<2x24xf32>
    %254 = arith.mulf %245, %224 : vector<2x24xf32>
    %255 = arith.addf %253, %254 : vector<2x24xf32>
    %256 = arith.truncf %255 : vector<2x24xf32> to vector<2x24xbf16>
    %cst_52 = arith.constant dense<0.000000e+00> : vector<2x72xf32>
    %257 = tpu.matmul %256, %36, %cst_52 {dimension_numbers = #tpu.dot_dimension_numbers<[1], [0], [0], [1], [0, 0, 1, 1], [], []>} : vector<2x24xbf16>, vector<24x72xbf16>, vector<2x72xf32> -> vector<2x72xf32>
    %258 = vector.broadcast %37 : vector<1x72xf32> to vector<2x72xf32>
    %259 = arith.addf %257, %258 : vector<2x72xf32>
    %260 = vector.extract_strided_slice %34 {offsets = [14, 0], sizes = [2, 72], strides = [1, 1]} : vector<32x72xf32> to vector<2x72xf32>
    %261 = vector.extract_strided_slice %260 {offsets = [0, 0], sizes = [2, 24], strides = [1, 1]} : vector<2x72xf32> to vector<2x24xf32>
    %262 = vector.extract_strided_slice %259 {offsets = [0, 0], sizes = [2, 24], strides = [1, 1]} : vector<2x72xf32> to vector<2x24xf32>
    %263 = arith.addf %261, %262 : vector<2x24xf32>
    %264 = arith.negf %263 : vector<2x24xf32>
    %265 = math.exp %264 : vector<2x24xf32>
    %cst_53 = arith.constant 1.000000e+00 : f32
    %266 = vector.broadcast %cst_53 : f32 to vector<2x24xf32>
    %267 = arith.addf %266, %265 : vector<2x24xf32>
    %268 = arith.divf %266, %267 : vector<2x24xf32>
    %269 = vector.extract_strided_slice %260 {offsets = [0, 24], sizes = [2, 24], strides = [1, 1]} : vector<2x72xf32> to vector<2x24xf32>
    %270 = vector.extract_strided_slice %259 {offsets = [0, 24], sizes = [2, 24], strides = [1, 1]} : vector<2x72xf32> to vector<2x24xf32>
    %271 = arith.addf %269, %270 : vector<2x24xf32>
    %272 = arith.negf %271 : vector<2x24xf32>
    %273 = math.exp %272 : vector<2x24xf32>
    %cst_54 = arith.constant 1.000000e+00 : f32
    %274 = vector.broadcast %cst_54 : f32 to vector<2x24xf32>
    %275 = arith.addf %274, %273 : vector<2x24xf32>
    %276 = arith.divf %274, %275 : vector<2x24xf32>
    %277 = vector.extract_strided_slice %260 {offsets = [0, 48], sizes = [2, 24], strides = [1, 1]} : vector<2x72xf32> to vector<2x24xf32>
    %278 = vector.extract_strided_slice %259 {offsets = [0, 48], sizes = [2, 24], strides = [1, 1]} : vector<2x72xf32> to vector<2x24xf32>
    %279 = arith.mulf %268, %278 : vector<2x24xf32>
    %280 = arith.addf %277, %279 : vector<2x24xf32>
    %281 = math.tanh %280 : vector<2x24xf32>
    %cst_55 = arith.constant 1.000000e+00 : f32
    %282 = vector.broadcast %cst_55 : f32 to vector<2x24xf32>
    %283 = arith.subf %282, %276 : vector<2x24xf32>
    %284 = arith.mulf %283, %281 : vector<2x24xf32>
    %285 = arith.mulf %276, %255 : vector<2x24xf32>
    %286 = arith.addf %284, %285 : vector<2x24xf32>
    %287 = arith.truncf %286 : vector<2x24xf32> to vector<2x24xbf16>
    %cst_56 = arith.constant dense<0.000000e+00> : vector<2x72xf32>
    %288 = tpu.matmul %287, %36, %cst_56 {dimension_numbers = #tpu.dot_dimension_numbers<[1], [0], [0], [1], [0, 0, 1, 1], [], []>} : vector<2x24xbf16>, vector<24x72xbf16>, vector<2x72xf32> -> vector<2x72xf32>
    %289 = vector.broadcast %37 : vector<1x72xf32> to vector<2x72xf32>
    %290 = arith.addf %288, %289 : vector<2x72xf32>
    %291 = vector.extract_strided_slice %34 {offsets = [16, 0], sizes = [2, 72], strides = [1, 1]} : vector<32x72xf32> to vector<2x72xf32>
    %292 = vector.extract_strided_slice %291 {offsets = [0, 0], sizes = [2, 24], strides = [1, 1]} : vector<2x72xf32> to vector<2x24xf32>
    %293 = vector.extract_strided_slice %290 {offsets = [0, 0], sizes = [2, 24], strides = [1, 1]} : vector<2x72xf32> to vector<2x24xf32>
    %294 = arith.addf %292, %293 : vector<2x24xf32>
    %295 = arith.negf %294 : vector<2x24xf32>
    %296 = math.exp %295 : vector<2x24xf32>
    %cst_57 = arith.constant 1.000000e+00 : f32
    %297 = vector.broadcast %cst_57 : f32 to vector<2x24xf32>
    %298 = arith.addf %297, %296 : vector<2x24xf32>
    %299 = arith.divf %297, %298 : vector<2x24xf32>
    %300 = vector.extract_strided_slice %291 {offsets = [0, 24], sizes = [2, 24], strides = [1, 1]} : vector<2x72xf32> to vector<2x24xf32>
    %301 = vector.extract_strided_slice %290 {offsets = [0, 24], sizes = [2, 24], strides = [1, 1]} : vector<2x72xf32> to vector<2x24xf32>
    %302 = arith.addf %300, %301 : vector<2x24xf32>
    %303 = arith.negf %302 : vector<2x24xf32>
    %304 = math.exp %303 : vector<2x24xf32>
    %cst_58 = arith.constant 1.000000e+00 : f32
    %305 = vector.broadcast %cst_58 : f32 to vector<2x24xf32>
    %306 = arith.addf %305, %304 : vector<2x24xf32>
    %307 = arith.divf %305, %306 : vector<2x24xf32>
    %308 = vector.extract_strided_slice %291 {offsets = [0, 48], sizes = [2, 24], strides = [1, 1]} : vector<2x72xf32> to vector<2x24xf32>
    %309 = vector.extract_strided_slice %290 {offsets = [0, 48], sizes = [2, 24], strides = [1, 1]} : vector<2x72xf32> to vector<2x24xf32>
    %310 = arith.mulf %299, %309 : vector<2x24xf32>
    %311 = arith.addf %308, %310 : vector<2x24xf32>
    %312 = math.tanh %311 : vector<2x24xf32>
    %cst_59 = arith.constant 1.000000e+00 : f32
    %313 = vector.broadcast %cst_59 : f32 to vector<2x24xf32>
    %314 = arith.subf %313, %307 : vector<2x24xf32>
    %315 = arith.mulf %314, %312 : vector<2x24xf32>
    %316 = arith.mulf %307, %286 : vector<2x24xf32>
    %317 = arith.addf %315, %316 : vector<2x24xf32>
    %318 = arith.truncf %317 : vector<2x24xf32> to vector<2x24xbf16>
    %cst_60 = arith.constant dense<0.000000e+00> : vector<2x72xf32>
    %319 = tpu.matmul %318, %36, %cst_60 {dimension_numbers = #tpu.dot_dimension_numbers<[1], [0], [0], [1], [0, 0, 1, 1], [], []>} : vector<2x24xbf16>, vector<24x72xbf16>, vector<2x72xf32> -> vector<2x72xf32>
    %320 = vector.broadcast %37 : vector<1x72xf32> to vector<2x72xf32>
    %321 = arith.addf %319, %320 : vector<2x72xf32>
    %322 = vector.extract_strided_slice %34 {offsets = [18, 0], sizes = [2, 72], strides = [1, 1]} : vector<32x72xf32> to vector<2x72xf32>
    %323 = vector.extract_strided_slice %322 {offsets = [0, 0], sizes = [2, 24], strides = [1, 1]} : vector<2x72xf32> to vector<2x24xf32>
    %324 = vector.extract_strided_slice %321 {offsets = [0, 0], sizes = [2, 24], strides = [1, 1]} : vector<2x72xf32> to vector<2x24xf32>
    %325 = arith.addf %323, %324 : vector<2x24xf32>
    %326 = arith.negf %325 : vector<2x24xf32>
    %327 = math.exp %326 : vector<2x24xf32>
    %cst_61 = arith.constant 1.000000e+00 : f32
    %328 = vector.broadcast %cst_61 : f32 to vector<2x24xf32>
    %329 = arith.addf %328, %327 : vector<2x24xf32>
    %330 = arith.divf %328, %329 : vector<2x24xf32>
    %331 = vector.extract_strided_slice %322 {offsets = [0, 24], sizes = [2, 24], strides = [1, 1]} : vector<2x72xf32> to vector<2x24xf32>
    %332 = vector.extract_strided_slice %321 {offsets = [0, 24], sizes = [2, 24], strides = [1, 1]} : vector<2x72xf32> to vector<2x24xf32>
    %333 = arith.addf %331, %332 : vector<2x24xf32>
    %334 = arith.negf %333 : vector<2x24xf32>
    %335 = math.exp %334 : vector<2x24xf32>
    %cst_62 = arith.constant 1.000000e+00 : f32
    %336 = vector.broadcast %cst_62 : f32 to vector<2x24xf32>
    %337 = arith.addf %336, %335 : vector<2x24xf32>
    %338 = arith.divf %336, %337 : vector<2x24xf32>
    %339 = vector.extract_strided_slice %322 {offsets = [0, 48], sizes = [2, 24], strides = [1, 1]} : vector<2x72xf32> to vector<2x24xf32>
    %340 = vector.extract_strided_slice %321 {offsets = [0, 48], sizes = [2, 24], strides = [1, 1]} : vector<2x72xf32> to vector<2x24xf32>
    %341 = arith.mulf %330, %340 : vector<2x24xf32>
    %342 = arith.addf %339, %341 : vector<2x24xf32>
    %343 = math.tanh %342 : vector<2x24xf32>
    %cst_63 = arith.constant 1.000000e+00 : f32
    %344 = vector.broadcast %cst_63 : f32 to vector<2x24xf32>
    %345 = arith.subf %344, %338 : vector<2x24xf32>
    %346 = arith.mulf %345, %343 : vector<2x24xf32>
    %347 = arith.mulf %338, %317 : vector<2x24xf32>
    %348 = arith.addf %346, %347 : vector<2x24xf32>
    %349 = arith.truncf %348 : vector<2x24xf32> to vector<2x24xbf16>
    %cst_64 = arith.constant dense<0.000000e+00> : vector<2x72xf32>
    %350 = tpu.matmul %349, %36, %cst_64 {dimension_numbers = #tpu.dot_dimension_numbers<[1], [0], [0], [1], [0, 0, 1, 1], [], []>} : vector<2x24xbf16>, vector<24x72xbf16>, vector<2x72xf32> -> vector<2x72xf32>
    %351 = vector.broadcast %37 : vector<1x72xf32> to vector<2x72xf32>
    %352 = arith.addf %350, %351 : vector<2x72xf32>
    %353 = vector.extract_strided_slice %34 {offsets = [20, 0], sizes = [2, 72], strides = [1, 1]} : vector<32x72xf32> to vector<2x72xf32>
    %354 = vector.extract_strided_slice %353 {offsets = [0, 0], sizes = [2, 24], strides = [1, 1]} : vector<2x72xf32> to vector<2x24xf32>
    %355 = vector.extract_strided_slice %352 {offsets = [0, 0], sizes = [2, 24], strides = [1, 1]} : vector<2x72xf32> to vector<2x24xf32>
    %356 = arith.addf %354, %355 : vector<2x24xf32>
    %357 = arith.negf %356 : vector<2x24xf32>
    %358 = math.exp %357 : vector<2x24xf32>
    %cst_65 = arith.constant 1.000000e+00 : f32
    %359 = vector.broadcast %cst_65 : f32 to vector<2x24xf32>
    %360 = arith.addf %359, %358 : vector<2x24xf32>
    %361 = arith.divf %359, %360 : vector<2x24xf32>
    %362 = vector.extract_strided_slice %353 {offsets = [0, 24], sizes = [2, 24], strides = [1, 1]} : vector<2x72xf32> to vector<2x24xf32>
    %363 = vector.extract_strided_slice %352 {offsets = [0, 24], sizes = [2, 24], strides = [1, 1]} : vector<2x72xf32> to vector<2x24xf32>
    %364 = arith.addf %362, %363 : vector<2x24xf32>
    %365 = arith.negf %364 : vector<2x24xf32>
    %366 = math.exp %365 : vector<2x24xf32>
    %cst_66 = arith.constant 1.000000e+00 : f32
    %367 = vector.broadcast %cst_66 : f32 to vector<2x24xf32>
    %368 = arith.addf %367, %366 : vector<2x24xf32>
    %369 = arith.divf %367, %368 : vector<2x24xf32>
    %370 = vector.extract_strided_slice %353 {offsets = [0, 48], sizes = [2, 24], strides = [1, 1]} : vector<2x72xf32> to vector<2x24xf32>
    %371 = vector.extract_strided_slice %352 {offsets = [0, 48], sizes = [2, 24], strides = [1, 1]} : vector<2x72xf32> to vector<2x24xf32>
    %372 = arith.mulf %361, %371 : vector<2x24xf32>
    %373 = arith.addf %370, %372 : vector<2x24xf32>
    %374 = math.tanh %373 : vector<2x24xf32>
    %cst_67 = arith.constant 1.000000e+00 : f32
    %375 = vector.broadcast %cst_67 : f32 to vector<2x24xf32>
    %376 = arith.subf %375, %369 : vector<2x24xf32>
    %377 = arith.mulf %376, %374 : vector<2x24xf32>
    %378 = arith.mulf %369, %348 : vector<2x24xf32>
    %379 = arith.addf %377, %378 : vector<2x24xf32>
    %380 = arith.truncf %379 : vector<2x24xf32> to vector<2x24xbf16>
    %cst_68 = arith.constant dense<0.000000e+00> : vector<2x72xf32>
    %381 = tpu.matmul %380, %36, %cst_68 {dimension_numbers = #tpu.dot_dimension_numbers<[1], [0], [0], [1], [0, 0, 1, 1], [], []>} : vector<2x24xbf16>, vector<24x72xbf16>, vector<2x72xf32> -> vector<2x72xf32>
    %382 = vector.broadcast %37 : vector<1x72xf32> to vector<2x72xf32>
    %383 = arith.addf %381, %382 : vector<2x72xf32>
    %384 = vector.extract_strided_slice %34 {offsets = [22, 0], sizes = [2, 72], strides = [1, 1]} : vector<32x72xf32> to vector<2x72xf32>
    %385 = vector.extract_strided_slice %384 {offsets = [0, 0], sizes = [2, 24], strides = [1, 1]} : vector<2x72xf32> to vector<2x24xf32>
    %386 = vector.extract_strided_slice %383 {offsets = [0, 0], sizes = [2, 24], strides = [1, 1]} : vector<2x72xf32> to vector<2x24xf32>
    %387 = arith.addf %385, %386 : vector<2x24xf32>
    %388 = arith.negf %387 : vector<2x24xf32>
    %389 = math.exp %388 : vector<2x24xf32>
    %cst_69 = arith.constant 1.000000e+00 : f32
    %390 = vector.broadcast %cst_69 : f32 to vector<2x24xf32>
    %391 = arith.addf %390, %389 : vector<2x24xf32>
    %392 = arith.divf %390, %391 : vector<2x24xf32>
    %393 = vector.extract_strided_slice %384 {offsets = [0, 24], sizes = [2, 24], strides = [1, 1]} : vector<2x72xf32> to vector<2x24xf32>
    %394 = vector.extract_strided_slice %383 {offsets = [0, 24], sizes = [2, 24], strides = [1, 1]} : vector<2x72xf32> to vector<2x24xf32>
    %395 = arith.addf %393, %394 : vector<2x24xf32>
    %396 = arith.negf %395 : vector<2x24xf32>
    %397 = math.exp %396 : vector<2x24xf32>
    %cst_70 = arith.constant 1.000000e+00 : f32
    %398 = vector.broadcast %cst_70 : f32 to vector<2x24xf32>
    %399 = arith.addf %398, %397 : vector<2x24xf32>
    %400 = arith.divf %398, %399 : vector<2x24xf32>
    %401 = vector.extract_strided_slice %384 {offsets = [0, 48], sizes = [2, 24], strides = [1, 1]} : vector<2x72xf32> to vector<2x24xf32>
    %402 = vector.extract_strided_slice %383 {offsets = [0, 48], sizes = [2, 24], strides = [1, 1]} : vector<2x72xf32> to vector<2x24xf32>
    %403 = arith.mulf %392, %402 : vector<2x24xf32>
    %404 = arith.addf %401, %403 : vector<2x24xf32>
    %405 = math.tanh %404 : vector<2x24xf32>
    %cst_71 = arith.constant 1.000000e+00 : f32
    %406 = vector.broadcast %cst_71 : f32 to vector<2x24xf32>
    %407 = arith.subf %406, %400 : vector<2x24xf32>
    %408 = arith.mulf %407, %405 : vector<2x24xf32>
    %409 = arith.mulf %400, %379 : vector<2x24xf32>
    %410 = arith.addf %408, %409 : vector<2x24xf32>
    %411 = arith.truncf %410 : vector<2x24xf32> to vector<2x24xbf16>
    %cst_72 = arith.constant dense<0.000000e+00> : vector<2x72xf32>
    %412 = tpu.matmul %411, %36, %cst_72 {dimension_numbers = #tpu.dot_dimension_numbers<[1], [0], [0], [1], [0, 0, 1, 1], [], []>} : vector<2x24xbf16>, vector<24x72xbf16>, vector<2x72xf32> -> vector<2x72xf32>
    %413 = vector.broadcast %37 : vector<1x72xf32> to vector<2x72xf32>
    %414 = arith.addf %412, %413 : vector<2x72xf32>
    %415 = vector.extract_strided_slice %34 {offsets = [24, 0], sizes = [2, 72], strides = [1, 1]} : vector<32x72xf32> to vector<2x72xf32>
    %416 = vector.extract_strided_slice %415 {offsets = [0, 0], sizes = [2, 24], strides = [1, 1]} : vector<2x72xf32> to vector<2x24xf32>
    %417 = vector.extract_strided_slice %414 {offsets = [0, 0], sizes = [2, 24], strides = [1, 1]} : vector<2x72xf32> to vector<2x24xf32>
    %418 = arith.addf %416, %417 : vector<2x24xf32>
    %419 = arith.negf %418 : vector<2x24xf32>
    %420 = math.exp %419 : vector<2x24xf32>
    %cst_73 = arith.constant 1.000000e+00 : f32
    %421 = vector.broadcast %cst_73 : f32 to vector<2x24xf32>
    %422 = arith.addf %421, %420 : vector<2x24xf32>
    %423 = arith.divf %421, %422 : vector<2x24xf32>
    %424 = vector.extract_strided_slice %415 {offsets = [0, 24], sizes = [2, 24], strides = [1, 1]} : vector<2x72xf32> to vector<2x24xf32>
    %425 = vector.extract_strided_slice %414 {offsets = [0, 24], sizes = [2, 24], strides = [1, 1]} : vector<2x72xf32> to vector<2x24xf32>
    %426 = arith.addf %424, %425 : vector<2x24xf32>
    %427 = arith.negf %426 : vector<2x24xf32>
    %428 = math.exp %427 : vector<2x24xf32>
    %cst_74 = arith.constant 1.000000e+00 : f32
    %429 = vector.broadcast %cst_74 : f32 to vector<2x24xf32>
    %430 = arith.addf %429, %428 : vector<2x24xf32>
    %431 = arith.divf %429, %430 : vector<2x24xf32>
    %432 = vector.extract_strided_slice %415 {offsets = [0, 48], sizes = [2, 24], strides = [1, 1]} : vector<2x72xf32> to vector<2x24xf32>
    %433 = vector.extract_strided_slice %414 {offsets = [0, 48], sizes = [2, 24], strides = [1, 1]} : vector<2x72xf32> to vector<2x24xf32>
    %434 = arith.mulf %423, %433 : vector<2x24xf32>
    %435 = arith.addf %432, %434 : vector<2x24xf32>
    %436 = math.tanh %435 : vector<2x24xf32>
    %cst_75 = arith.constant 1.000000e+00 : f32
    %437 = vector.broadcast %cst_75 : f32 to vector<2x24xf32>
    %438 = arith.subf %437, %431 : vector<2x24xf32>
    %439 = arith.mulf %438, %436 : vector<2x24xf32>
    %440 = arith.mulf %431, %410 : vector<2x24xf32>
    %441 = arith.addf %439, %440 : vector<2x24xf32>
    %442 = arith.truncf %441 : vector<2x24xf32> to vector<2x24xbf16>
    %cst_76 = arith.constant dense<0.000000e+00> : vector<2x72xf32>
    %443 = tpu.matmul %442, %36, %cst_76 {dimension_numbers = #tpu.dot_dimension_numbers<[1], [0], [0], [1], [0, 0, 1, 1], [], []>} : vector<2x24xbf16>, vector<24x72xbf16>, vector<2x72xf32> -> vector<2x72xf32>
    %444 = vector.broadcast %37 : vector<1x72xf32> to vector<2x72xf32>
    %445 = arith.addf %443, %444 : vector<2x72xf32>
    %446 = vector.extract_strided_slice %34 {offsets = [26, 0], sizes = [2, 72], strides = [1, 1]} : vector<32x72xf32> to vector<2x72xf32>
    %447 = vector.extract_strided_slice %446 {offsets = [0, 0], sizes = [2, 24], strides = [1, 1]} : vector<2x72xf32> to vector<2x24xf32>
    %448 = vector.extract_strided_slice %445 {offsets = [0, 0], sizes = [2, 24], strides = [1, 1]} : vector<2x72xf32> to vector<2x24xf32>
    %449 = arith.addf %447, %448 : vector<2x24xf32>
    %450 = arith.negf %449 : vector<2x24xf32>
    %451 = math.exp %450 : vector<2x24xf32>
    %cst_77 = arith.constant 1.000000e+00 : f32
    %452 = vector.broadcast %cst_77 : f32 to vector<2x24xf32>
    %453 = arith.addf %452, %451 : vector<2x24xf32>
    %454 = arith.divf %452, %453 : vector<2x24xf32>
    %455 = vector.extract_strided_slice %446 {offsets = [0, 24], sizes = [2, 24], strides = [1, 1]} : vector<2x72xf32> to vector<2x24xf32>
    %456 = vector.extract_strided_slice %445 {offsets = [0, 24], sizes = [2, 24], strides = [1, 1]} : vector<2x72xf32> to vector<2x24xf32>
    %457 = arith.addf %455, %456 : vector<2x24xf32>
    %458 = arith.negf %457 : vector<2x24xf32>
    %459 = math.exp %458 : vector<2x24xf32>
    %cst_78 = arith.constant 1.000000e+00 : f32
    %460 = vector.broadcast %cst_78 : f32 to vector<2x24xf32>
    %461 = arith.addf %460, %459 : vector<2x24xf32>
    %462 = arith.divf %460, %461 : vector<2x24xf32>
    %463 = vector.extract_strided_slice %446 {offsets = [0, 48], sizes = [2, 24], strides = [1, 1]} : vector<2x72xf32> to vector<2x24xf32>
    %464 = vector.extract_strided_slice %445 {offsets = [0, 48], sizes = [2, 24], strides = [1, 1]} : vector<2x72xf32> to vector<2x24xf32>
    %465 = arith.mulf %454, %464 : vector<2x24xf32>
    %466 = arith.addf %463, %465 : vector<2x24xf32>
    %467 = math.tanh %466 : vector<2x24xf32>
    %cst_79 = arith.constant 1.000000e+00 : f32
    %468 = vector.broadcast %cst_79 : f32 to vector<2x24xf32>
    %469 = arith.subf %468, %462 : vector<2x24xf32>
    %470 = arith.mulf %469, %467 : vector<2x24xf32>
    %471 = arith.mulf %462, %441 : vector<2x24xf32>
    %472 = arith.addf %470, %471 : vector<2x24xf32>
    %473 = arith.truncf %472 : vector<2x24xf32> to vector<2x24xbf16>
    %cst_80 = arith.constant dense<0.000000e+00> : vector<2x72xf32>
    %474 = tpu.matmul %473, %36, %cst_80 {dimension_numbers = #tpu.dot_dimension_numbers<[1], [0], [0], [1], [0, 0, 1, 1], [], []>} : vector<2x24xbf16>, vector<24x72xbf16>, vector<2x72xf32> -> vector<2x72xf32>
    %475 = vector.broadcast %37 : vector<1x72xf32> to vector<2x72xf32>
    %476 = arith.addf %474, %475 : vector<2x72xf32>
    %477 = vector.extract_strided_slice %34 {offsets = [28, 0], sizes = [2, 72], strides = [1, 1]} : vector<32x72xf32> to vector<2x72xf32>
    %478 = vector.extract_strided_slice %477 {offsets = [0, 0], sizes = [2, 24], strides = [1, 1]} : vector<2x72xf32> to vector<2x24xf32>
    %479 = vector.extract_strided_slice %476 {offsets = [0, 0], sizes = [2, 24], strides = [1, 1]} : vector<2x72xf32> to vector<2x24xf32>
    %480 = arith.addf %478, %479 : vector<2x24xf32>
    %481 = arith.negf %480 : vector<2x24xf32>
    %482 = math.exp %481 : vector<2x24xf32>
    %cst_81 = arith.constant 1.000000e+00 : f32
    %483 = vector.broadcast %cst_81 : f32 to vector<2x24xf32>
    %484 = arith.addf %483, %482 : vector<2x24xf32>
    %485 = arith.divf %483, %484 : vector<2x24xf32>
    %486 = vector.extract_strided_slice %477 {offsets = [0, 24], sizes = [2, 24], strides = [1, 1]} : vector<2x72xf32> to vector<2x24xf32>
    %487 = vector.extract_strided_slice %476 {offsets = [0, 24], sizes = [2, 24], strides = [1, 1]} : vector<2x72xf32> to vector<2x24xf32>
    %488 = arith.addf %486, %487 : vector<2x24xf32>
    %489 = arith.negf %488 : vector<2x24xf32>
    %490 = math.exp %489 : vector<2x24xf32>
    %cst_82 = arith.constant 1.000000e+00 : f32
    %491 = vector.broadcast %cst_82 : f32 to vector<2x24xf32>
    %492 = arith.addf %491, %490 : vector<2x24xf32>
    %493 = arith.divf %491, %492 : vector<2x24xf32>
    %494 = vector.extract_strided_slice %477 {offsets = [0, 48], sizes = [2, 24], strides = [1, 1]} : vector<2x72xf32> to vector<2x24xf32>
    %495 = vector.extract_strided_slice %476 {offsets = [0, 48], sizes = [2, 24], strides = [1, 1]} : vector<2x72xf32> to vector<2x24xf32>
    %496 = arith.mulf %485, %495 : vector<2x24xf32>
    %497 = arith.addf %494, %496 : vector<2x24xf32>
    %498 = math.tanh %497 : vector<2x24xf32>
    %cst_83 = arith.constant 1.000000e+00 : f32
    %499 = vector.broadcast %cst_83 : f32 to vector<2x24xf32>
    %500 = arith.subf %499, %493 : vector<2x24xf32>
    %501 = arith.mulf %500, %498 : vector<2x24xf32>
    %502 = arith.mulf %493, %472 : vector<2x24xf32>
    %503 = arith.addf %501, %502 : vector<2x24xf32>
    %504 = arith.truncf %503 : vector<2x24xf32> to vector<2x24xbf16>
    %cst_84 = arith.constant dense<0.000000e+00> : vector<2x72xf32>
    %505 = tpu.matmul %504, %36, %cst_84 {dimension_numbers = #tpu.dot_dimension_numbers<[1], [0], [0], [1], [0, 0, 1, 1], [], []>} : vector<2x24xbf16>, vector<24x72xbf16>, vector<2x72xf32> -> vector<2x72xf32>
    %506 = vector.broadcast %37 : vector<1x72xf32> to vector<2x72xf32>
    %507 = arith.addf %505, %506 : vector<2x72xf32>
    %508 = vector.extract_strided_slice %34 {offsets = [30, 0], sizes = [2, 72], strides = [1, 1]} : vector<32x72xf32> to vector<2x72xf32>
    %509 = vector.extract_strided_slice %508 {offsets = [0, 0], sizes = [2, 24], strides = [1, 1]} : vector<2x72xf32> to vector<2x24xf32>
    %510 = vector.extract_strided_slice %507 {offsets = [0, 0], sizes = [2, 24], strides = [1, 1]} : vector<2x72xf32> to vector<2x24xf32>
    %511 = arith.addf %509, %510 : vector<2x24xf32>
    %512 = arith.negf %511 : vector<2x24xf32>
    %513 = math.exp %512 : vector<2x24xf32>
    %cst_85 = arith.constant 1.000000e+00 : f32
    %514 = vector.broadcast %cst_85 : f32 to vector<2x24xf32>
    %515 = arith.addf %514, %513 : vector<2x24xf32>
    %516 = arith.divf %514, %515 : vector<2x24xf32>
    %517 = vector.extract_strided_slice %508 {offsets = [0, 24], sizes = [2, 24], strides = [1, 1]} : vector<2x72xf32> to vector<2x24xf32>
    %518 = vector.extract_strided_slice %507 {offsets = [0, 24], sizes = [2, 24], strides = [1, 1]} : vector<2x72xf32> to vector<2x24xf32>
    %519 = arith.addf %517, %518 : vector<2x24xf32>
    %520 = arith.negf %519 : vector<2x24xf32>
    %521 = math.exp %520 : vector<2x24xf32>
    %cst_86 = arith.constant 1.000000e+00 : f32
    %522 = vector.broadcast %cst_86 : f32 to vector<2x24xf32>
    %523 = arith.addf %522, %521 : vector<2x24xf32>
    %524 = arith.divf %522, %523 : vector<2x24xf32>
    %525 = vector.extract_strided_slice %508 {offsets = [0, 48], sizes = [2, 24], strides = [1, 1]} : vector<2x72xf32> to vector<2x24xf32>
    %526 = vector.extract_strided_slice %507 {offsets = [0, 48], sizes = [2, 24], strides = [1, 1]} : vector<2x72xf32> to vector<2x24xf32>
    %527 = arith.mulf %516, %526 : vector<2x24xf32>
    %528 = arith.addf %525, %527 : vector<2x24xf32>
    %529 = math.tanh %528 : vector<2x24xf32>
    %cst_87 = arith.constant 1.000000e+00 : f32
    %530 = vector.broadcast %cst_87 : f32 to vector<2x24xf32>
    %531 = arith.subf %530, %524 : vector<2x24xf32>
    %532 = arith.mulf %531, %529 : vector<2x24xf32>
    %533 = arith.mulf %524, %503 : vector<2x24xf32>
    %534 = arith.addf %532, %533 : vector<2x24xf32>
    %535 = tpu.concatenate %69, %100, %131, %162, %193, %224, %255, %286, %317, %348, %379, %410, %441, %472, %503, %534 in 0 : vector<2x24xf32>, vector<2x24xf32>, vector<2x24xf32>, vector<2x24xf32>, vector<2x24xf32>, vector<2x24xf32>, vector<2x24xf32>, vector<2x24xf32>, vector<2x24xf32>, vector<2x24xf32>, vector<2x24xf32>, vector<2x24xf32>, vector<2x24xf32>, vector<2x24xf32>, vector<2x24xf32>, vector<2x24xf32> -> vector<32x24xf32>
    %c0_88 = arith.constant 0 : index
    %c0_89 = arith.constant 0 : index
    %536 = vector.load %arg7[%c0_88, %c0_89] : memref<24x72xf32, #tpu.memory_space<vmem>>, vector<24x72xf32>
    %537 = arith.truncf %535 : vector<32x24xf32> to vector<32x24xbf16>
    %538 = arith.truncf %536 : vector<24x72xf32> to vector<24x72xbf16>
    %cst_90 = arith.constant dense<0.000000e+00> : vector<32x72xf32>
    %539 = tpu.matmul %537, %538, %cst_90 {dimension_numbers = #tpu.dot_dimension_numbers<[1], [0], [0], [1], [0, 0, 1, 1], [], []>} : vector<32x24xbf16>, vector<24x72xbf16>, vector<32x72xf32> -> vector<32x72xf32>
    %c0_91 = arith.constant 0 : index
    %c0_92 = arith.constant 0 : index
    %540 = vector.load %arg9[%c0_91, %c0_92] : memref<1x72xf32, #tpu.memory_space<vmem>>, vector<1x72xf32>
    %541 = vector.broadcast %540 : vector<1x72xf32> to vector<32x72xf32>
    %542 = arith.addf %539, %541 : vector<32x72xf32>
    %c0_93 = arith.constant 0 : index
    %c0_94 = arith.constant 0 : index
    %543 = vector.load %arg8[%c0_93, %c0_94] : memref<24x72xf32, #tpu.memory_space<vmem>>, vector<24x72xf32>
    %544 = arith.truncf %543 : vector<24x72xf32> to vector<24x72xbf16>
    %c0_95 = arith.constant 0 : index
    %c0_96 = arith.constant 0 : index
    %545 = vector.load %arg10[%c0_95, %c0_96] : memref<1x72xf32, #tpu.memory_space<vmem>>, vector<1x72xf32>
    %cst_97 = arith.constant 0.000000e+00 : f32
    %546 = vector.broadcast %cst_97 : f32 to vector<2x24xf32>
    %547 = arith.truncf %546 : vector<2x24xf32> to vector<2x24xbf16>
    %cst_98 = arith.constant dense<0.000000e+00> : vector<2x72xf32>
    %548 = tpu.matmul %547, %544, %cst_98 {dimension_numbers = #tpu.dot_dimension_numbers<[1], [0], [0], [1], [0, 0, 1, 1], [], []>} : vector<2x24xbf16>, vector<24x72xbf16>, vector<2x72xf32> -> vector<2x72xf32>
    %549 = vector.broadcast %545 : vector<1x72xf32> to vector<2x72xf32>
    %550 = arith.addf %548, %549 : vector<2x72xf32>
    %551 = vector.extract_strided_slice %542 {offsets = [0, 0], sizes = [2, 72], strides = [1, 1]} : vector<32x72xf32> to vector<2x72xf32>
    %552 = vector.extract_strided_slice %551 {offsets = [0, 0], sizes = [2, 24], strides = [1, 1]} : vector<2x72xf32> to vector<2x24xf32>
    %553 = vector.extract_strided_slice %550 {offsets = [0, 0], sizes = [2, 24], strides = [1, 1]} : vector<2x72xf32> to vector<2x24xf32>
    %554 = arith.addf %552, %553 : vector<2x24xf32>
    %555 = arith.negf %554 : vector<2x24xf32>
    %556 = math.exp %555 : vector<2x24xf32>
    %cst_99 = arith.constant 1.000000e+00 : f32
    %557 = vector.broadcast %cst_99 : f32 to vector<2x24xf32>
    %558 = arith.addf %557, %556 : vector<2x24xf32>
    %559 = arith.divf %557, %558 : vector<2x24xf32>
    %560 = vector.extract_strided_slice %551 {offsets = [0, 24], sizes = [2, 24], strides = [1, 1]} : vector<2x72xf32> to vector<2x24xf32>
    %561 = vector.extract_strided_slice %550 {offsets = [0, 24], sizes = [2, 24], strides = [1, 1]} : vector<2x72xf32> to vector<2x24xf32>
    %562 = arith.addf %560, %561 : vector<2x24xf32>
    %563 = arith.negf %562 : vector<2x24xf32>
    %564 = math.exp %563 : vector<2x24xf32>
    %cst_100 = arith.constant 1.000000e+00 : f32
    %565 = vector.broadcast %cst_100 : f32 to vector<2x24xf32>
    %566 = arith.addf %565, %564 : vector<2x24xf32>
    %567 = arith.divf %565, %566 : vector<2x24xf32>
    %568 = vector.extract_strided_slice %551 {offsets = [0, 48], sizes = [2, 24], strides = [1, 1]} : vector<2x72xf32> to vector<2x24xf32>
    %569 = vector.extract_strided_slice %550 {offsets = [0, 48], sizes = [2, 24], strides = [1, 1]} : vector<2x72xf32> to vector<2x24xf32>
    %570 = arith.mulf %559, %569 : vector<2x24xf32>
    %571 = arith.addf %568, %570 : vector<2x24xf32>
    %572 = math.tanh %571 : vector<2x24xf32>
    %cst_101 = arith.constant 1.000000e+00 : f32
    %573 = vector.broadcast %cst_101 : f32 to vector<2x24xf32>
    %574 = arith.subf %573, %567 : vector<2x24xf32>
    %575 = arith.mulf %574, %572 : vector<2x24xf32>
    %576 = arith.mulf %567, %546 : vector<2x24xf32>
    %577 = arith.addf %575, %576 : vector<2x24xf32>
    %578 = arith.truncf %577 : vector<2x24xf32> to vector<2x24xbf16>
    %cst_102 = arith.constant dense<0.000000e+00> : vector<2x72xf32>
    %579 = tpu.matmul %578, %544, %cst_102 {dimension_numbers = #tpu.dot_dimension_numbers<[1], [0], [0], [1], [0, 0, 1, 1], [], []>} : vector<2x24xbf16>, vector<24x72xbf16>, vector<2x72xf32> -> vector<2x72xf32>
    %580 = vector.broadcast %545 : vector<1x72xf32> to vector<2x72xf32>
    %581 = arith.addf %579, %580 : vector<2x72xf32>
    %582 = vector.extract_strided_slice %542 {offsets = [2, 0], sizes = [2, 72], strides = [1, 1]} : vector<32x72xf32> to vector<2x72xf32>
    %583 = vector.extract_strided_slice %582 {offsets = [0, 0], sizes = [2, 24], strides = [1, 1]} : vector<2x72xf32> to vector<2x24xf32>
    %584 = vector.extract_strided_slice %581 {offsets = [0, 0], sizes = [2, 24], strides = [1, 1]} : vector<2x72xf32> to vector<2x24xf32>
    %585 = arith.addf %583, %584 : vector<2x24xf32>
    %586 = arith.negf %585 : vector<2x24xf32>
    %587 = math.exp %586 : vector<2x24xf32>
    %cst_103 = arith.constant 1.000000e+00 : f32
    %588 = vector.broadcast %cst_103 : f32 to vector<2x24xf32>
    %589 = arith.addf %588, %587 : vector<2x24xf32>
    %590 = arith.divf %588, %589 : vector<2x24xf32>
    %591 = vector.extract_strided_slice %582 {offsets = [0, 24], sizes = [2, 24], strides = [1, 1]} : vector<2x72xf32> to vector<2x24xf32>
    %592 = vector.extract_strided_slice %581 {offsets = [0, 24], sizes = [2, 24], strides = [1, 1]} : vector<2x72xf32> to vector<2x24xf32>
    %593 = arith.addf %591, %592 : vector<2x24xf32>
    %594 = arith.negf %593 : vector<2x24xf32>
    %595 = math.exp %594 : vector<2x24xf32>
    %cst_104 = arith.constant 1.000000e+00 : f32
    %596 = vector.broadcast %cst_104 : f32 to vector<2x24xf32>
    %597 = arith.addf %596, %595 : vector<2x24xf32>
    %598 = arith.divf %596, %597 : vector<2x24xf32>
    %599 = vector.extract_strided_slice %582 {offsets = [0, 48], sizes = [2, 24], strides = [1, 1]} : vector<2x72xf32> to vector<2x24xf32>
    %600 = vector.extract_strided_slice %581 {offsets = [0, 48], sizes = [2, 24], strides = [1, 1]} : vector<2x72xf32> to vector<2x24xf32>
    %601 = arith.mulf %590, %600 : vector<2x24xf32>
    %602 = arith.addf %599, %601 : vector<2x24xf32>
    %603 = math.tanh %602 : vector<2x24xf32>
    %cst_105 = arith.constant 1.000000e+00 : f32
    %604 = vector.broadcast %cst_105 : f32 to vector<2x24xf32>
    %605 = arith.subf %604, %598 : vector<2x24xf32>
    %606 = arith.mulf %605, %603 : vector<2x24xf32>
    %607 = arith.mulf %598, %577 : vector<2x24xf32>
    %608 = arith.addf %606, %607 : vector<2x24xf32>
    %609 = arith.truncf %608 : vector<2x24xf32> to vector<2x24xbf16>
    %cst_106 = arith.constant dense<0.000000e+00> : vector<2x72xf32>
    %610 = tpu.matmul %609, %544, %cst_106 {dimension_numbers = #tpu.dot_dimension_numbers<[1], [0], [0], [1], [0, 0, 1, 1], [], []>} : vector<2x24xbf16>, vector<24x72xbf16>, vector<2x72xf32> -> vector<2x72xf32>
    %611 = vector.broadcast %545 : vector<1x72xf32> to vector<2x72xf32>
    %612 = arith.addf %610, %611 : vector<2x72xf32>
    %613 = vector.extract_strided_slice %542 {offsets = [4, 0], sizes = [2, 72], strides = [1, 1]} : vector<32x72xf32> to vector<2x72xf32>
    %614 = vector.extract_strided_slice %613 {offsets = [0, 0], sizes = [2, 24], strides = [1, 1]} : vector<2x72xf32> to vector<2x24xf32>
    %615 = vector.extract_strided_slice %612 {offsets = [0, 0], sizes = [2, 24], strides = [1, 1]} : vector<2x72xf32> to vector<2x24xf32>
    %616 = arith.addf %614, %615 : vector<2x24xf32>
    %617 = arith.negf %616 : vector<2x24xf32>
    %618 = math.exp %617 : vector<2x24xf32>
    %cst_107 = arith.constant 1.000000e+00 : f32
    %619 = vector.broadcast %cst_107 : f32 to vector<2x24xf32>
    %620 = arith.addf %619, %618 : vector<2x24xf32>
    %621 = arith.divf %619, %620 : vector<2x24xf32>
    %622 = vector.extract_strided_slice %613 {offsets = [0, 24], sizes = [2, 24], strides = [1, 1]} : vector<2x72xf32> to vector<2x24xf32>
    %623 = vector.extract_strided_slice %612 {offsets = [0, 24], sizes = [2, 24], strides = [1, 1]} : vector<2x72xf32> to vector<2x24xf32>
    %624 = arith.addf %622, %623 : vector<2x24xf32>
    %625 = arith.negf %624 : vector<2x24xf32>
    %626 = math.exp %625 : vector<2x24xf32>
    %cst_108 = arith.constant 1.000000e+00 : f32
    %627 = vector.broadcast %cst_108 : f32 to vector<2x24xf32>
    %628 = arith.addf %627, %626 : vector<2x24xf32>
    %629 = arith.divf %627, %628 : vector<2x24xf32>
    %630 = vector.extract_strided_slice %613 {offsets = [0, 48], sizes = [2, 24], strides = [1, 1]} : vector<2x72xf32> to vector<2x24xf32>
    %631 = vector.extract_strided_slice %612 {offsets = [0, 48], sizes = [2, 24], strides = [1, 1]} : vector<2x72xf32> to vector<2x24xf32>
    %632 = arith.mulf %621, %631 : vector<2x24xf32>
    %633 = arith.addf %630, %632 : vector<2x24xf32>
    %634 = math.tanh %633 : vector<2x24xf32>
    %cst_109 = arith.constant 1.000000e+00 : f32
    %635 = vector.broadcast %cst_109 : f32 to vector<2x24xf32>
    %636 = arith.subf %635, %629 : vector<2x24xf32>
    %637 = arith.mulf %636, %634 : vector<2x24xf32>
    %638 = arith.mulf %629, %608 : vector<2x24xf32>
    %639 = arith.addf %637, %638 : vector<2x24xf32>
    %640 = arith.truncf %639 : vector<2x24xf32> to vector<2x24xbf16>
    %cst_110 = arith.constant dense<0.000000e+00> : vector<2x72xf32>
    %641 = tpu.matmul %640, %544, %cst_110 {dimension_numbers = #tpu.dot_dimension_numbers<[1], [0], [0], [1], [0, 0, 1, 1], [], []>} : vector<2x24xbf16>, vector<24x72xbf16>, vector<2x72xf32> -> vector<2x72xf32>
    %642 = vector.broadcast %545 : vector<1x72xf32> to vector<2x72xf32>
    %643 = arith.addf %641, %642 : vector<2x72xf32>
    %644 = vector.extract_strided_slice %542 {offsets = [6, 0], sizes = [2, 72], strides = [1, 1]} : vector<32x72xf32> to vector<2x72xf32>
    %645 = vector.extract_strided_slice %644 {offsets = [0, 0], sizes = [2, 24], strides = [1, 1]} : vector<2x72xf32> to vector<2x24xf32>
    %646 = vector.extract_strided_slice %643 {offsets = [0, 0], sizes = [2, 24], strides = [1, 1]} : vector<2x72xf32> to vector<2x24xf32>
    %647 = arith.addf %645, %646 : vector<2x24xf32>
    %648 = arith.negf %647 : vector<2x24xf32>
    %649 = math.exp %648 : vector<2x24xf32>
    %cst_111 = arith.constant 1.000000e+00 : f32
    %650 = vector.broadcast %cst_111 : f32 to vector<2x24xf32>
    %651 = arith.addf %650, %649 : vector<2x24xf32>
    %652 = arith.divf %650, %651 : vector<2x24xf32>
    %653 = vector.extract_strided_slice %644 {offsets = [0, 24], sizes = [2, 24], strides = [1, 1]} : vector<2x72xf32> to vector<2x24xf32>
    %654 = vector.extract_strided_slice %643 {offsets = [0, 24], sizes = [2, 24], strides = [1, 1]} : vector<2x72xf32> to vector<2x24xf32>
    %655 = arith.addf %653, %654 : vector<2x24xf32>
    %656 = arith.negf %655 : vector<2x24xf32>
    %657 = math.exp %656 : vector<2x24xf32>
    %cst_112 = arith.constant 1.000000e+00 : f32
    %658 = vector.broadcast %cst_112 : f32 to vector<2x24xf32>
    %659 = arith.addf %658, %657 : vector<2x24xf32>
    %660 = arith.divf %658, %659 : vector<2x24xf32>
    %661 = vector.extract_strided_slice %644 {offsets = [0, 48], sizes = [2, 24], strides = [1, 1]} : vector<2x72xf32> to vector<2x24xf32>
    %662 = vector.extract_strided_slice %643 {offsets = [0, 48], sizes = [2, 24], strides = [1, 1]} : vector<2x72xf32> to vector<2x24xf32>
    %663 = arith.mulf %652, %662 : vector<2x24xf32>
    %664 = arith.addf %661, %663 : vector<2x24xf32>
    %665 = math.tanh %664 : vector<2x24xf32>
    %cst_113 = arith.constant 1.000000e+00 : f32
    %666 = vector.broadcast %cst_113 : f32 to vector<2x24xf32>
    %667 = arith.subf %666, %660 : vector<2x24xf32>
    %668 = arith.mulf %667, %665 : vector<2x24xf32>
    %669 = arith.mulf %660, %639 : vector<2x24xf32>
    %670 = arith.addf %668, %669 : vector<2x24xf32>
    %671 = arith.truncf %670 : vector<2x24xf32> to vector<2x24xbf16>
    %cst_114 = arith.constant dense<0.000000e+00> : vector<2x72xf32>
    %672 = tpu.matmul %671, %544, %cst_114 {dimension_numbers = #tpu.dot_dimension_numbers<[1], [0], [0], [1], [0, 0, 1, 1], [], []>} : vector<2x24xbf16>, vector<24x72xbf16>, vector<2x72xf32> -> vector<2x72xf32>
    %673 = vector.broadcast %545 : vector<1x72xf32> to vector<2x72xf32>
    %674 = arith.addf %672, %673 : vector<2x72xf32>
    %675 = vector.extract_strided_slice %542 {offsets = [8, 0], sizes = [2, 72], strides = [1, 1]} : vector<32x72xf32> to vector<2x72xf32>
    %676 = vector.extract_strided_slice %675 {offsets = [0, 0], sizes = [2, 24], strides = [1, 1]} : vector<2x72xf32> to vector<2x24xf32>
    %677 = vector.extract_strided_slice %674 {offsets = [0, 0], sizes = [2, 24], strides = [1, 1]} : vector<2x72xf32> to vector<2x24xf32>
    %678 = arith.addf %676, %677 : vector<2x24xf32>
    %679 = arith.negf %678 : vector<2x24xf32>
    %680 = math.exp %679 : vector<2x24xf32>
    %cst_115 = arith.constant 1.000000e+00 : f32
    %681 = vector.broadcast %cst_115 : f32 to vector<2x24xf32>
    %682 = arith.addf %681, %680 : vector<2x24xf32>
    %683 = arith.divf %681, %682 : vector<2x24xf32>
    %684 = vector.extract_strided_slice %675 {offsets = [0, 24], sizes = [2, 24], strides = [1, 1]} : vector<2x72xf32> to vector<2x24xf32>
    %685 = vector.extract_strided_slice %674 {offsets = [0, 24], sizes = [2, 24], strides = [1, 1]} : vector<2x72xf32> to vector<2x24xf32>
    %686 = arith.addf %684, %685 : vector<2x24xf32>
    %687 = arith.negf %686 : vector<2x24xf32>
    %688 = math.exp %687 : vector<2x24xf32>
    %cst_116 = arith.constant 1.000000e+00 : f32
    %689 = vector.broadcast %cst_116 : f32 to vector<2x24xf32>
    %690 = arith.addf %689, %688 : vector<2x24xf32>
    %691 = arith.divf %689, %690 : vector<2x24xf32>
    %692 = vector.extract_strided_slice %675 {offsets = [0, 48], sizes = [2, 24], strides = [1, 1]} : vector<2x72xf32> to vector<2x24xf32>
    %693 = vector.extract_strided_slice %674 {offsets = [0, 48], sizes = [2, 24], strides = [1, 1]} : vector<2x72xf32> to vector<2x24xf32>
    %694 = arith.mulf %683, %693 : vector<2x24xf32>
    %695 = arith.addf %692, %694 : vector<2x24xf32>
    %696 = math.tanh %695 : vector<2x24xf32>
    %cst_117 = arith.constant 1.000000e+00 : f32
    %697 = vector.broadcast %cst_117 : f32 to vector<2x24xf32>
    %698 = arith.subf %697, %691 : vector<2x24xf32>
    %699 = arith.mulf %698, %696 : vector<2x24xf32>
    %700 = arith.mulf %691, %670 : vector<2x24xf32>
    %701 = arith.addf %699, %700 : vector<2x24xf32>
    %702 = arith.truncf %701 : vector<2x24xf32> to vector<2x24xbf16>
    %cst_118 = arith.constant dense<0.000000e+00> : vector<2x72xf32>
    %703 = tpu.matmul %702, %544, %cst_118 {dimension_numbers = #tpu.dot_dimension_numbers<[1], [0], [0], [1], [0, 0, 1, 1], [], []>} : vector<2x24xbf16>, vector<24x72xbf16>, vector<2x72xf32> -> vector<2x72xf32>
    %704 = vector.broadcast %545 : vector<1x72xf32> to vector<2x72xf32>
    %705 = arith.addf %703, %704 : vector<2x72xf32>
    %706 = vector.extract_strided_slice %542 {offsets = [10, 0], sizes = [2, 72], strides = [1, 1]} : vector<32x72xf32> to vector<2x72xf32>
    %707 = vector.extract_strided_slice %706 {offsets = [0, 0], sizes = [2, 24], strides = [1, 1]} : vector<2x72xf32> to vector<2x24xf32>
    %708 = vector.extract_strided_slice %705 {offsets = [0, 0], sizes = [2, 24], strides = [1, 1]} : vector<2x72xf32> to vector<2x24xf32>
    %709 = arith.addf %707, %708 : vector<2x24xf32>
    %710 = arith.negf %709 : vector<2x24xf32>
    %711 = math.exp %710 : vector<2x24xf32>
    %cst_119 = arith.constant 1.000000e+00 : f32
    %712 = vector.broadcast %cst_119 : f32 to vector<2x24xf32>
    %713 = arith.addf %712, %711 : vector<2x24xf32>
    %714 = arith.divf %712, %713 : vector<2x24xf32>
    %715 = vector.extract_strided_slice %706 {offsets = [0, 24], sizes = [2, 24], strides = [1, 1]} : vector<2x72xf32> to vector<2x24xf32>
    %716 = vector.extract_strided_slice %705 {offsets = [0, 24], sizes = [2, 24], strides = [1, 1]} : vector<2x72xf32> to vector<2x24xf32>
    %717 = arith.addf %715, %716 : vector<2x24xf32>
    %718 = arith.negf %717 : vector<2x24xf32>
    %719 = math.exp %718 : vector<2x24xf32>
    %cst_120 = arith.constant 1.000000e+00 : f32
    %720 = vector.broadcast %cst_120 : f32 to vector<2x24xf32>
    %721 = arith.addf %720, %719 : vector<2x24xf32>
    %722 = arith.divf %720, %721 : vector<2x24xf32>
    %723 = vector.extract_strided_slice %706 {offsets = [0, 48], sizes = [2, 24], strides = [1, 1]} : vector<2x72xf32> to vector<2x24xf32>
    %724 = vector.extract_strided_slice %705 {offsets = [0, 48], sizes = [2, 24], strides = [1, 1]} : vector<2x72xf32> to vector<2x24xf32>
    %725 = arith.mulf %714, %724 : vector<2x24xf32>
    %726 = arith.addf %723, %725 : vector<2x24xf32>
    %727 = math.tanh %726 : vector<2x24xf32>
    %cst_121 = arith.constant 1.000000e+00 : f32
    %728 = vector.broadcast %cst_121 : f32 to vector<2x24xf32>
    %729 = arith.subf %728, %722 : vector<2x24xf32>
    %730 = arith.mulf %729, %727 : vector<2x24xf32>
    %731 = arith.mulf %722, %701 : vector<2x24xf32>
    %732 = arith.addf %730, %731 : vector<2x24xf32>
    %733 = arith.truncf %732 : vector<2x24xf32> to vector<2x24xbf16>
    %cst_122 = arith.constant dense<0.000000e+00> : vector<2x72xf32>
    %734 = tpu.matmul %733, %544, %cst_122 {dimension_numbers = #tpu.dot_dimension_numbers<[1], [0], [0], [1], [0, 0, 1, 1], [], []>} : vector<2x24xbf16>, vector<24x72xbf16>, vector<2x72xf32> -> vector<2x72xf32>
    %735 = vector.broadcast %545 : vector<1x72xf32> to vector<2x72xf32>
    %736 = arith.addf %734, %735 : vector<2x72xf32>
    %737 = vector.extract_strided_slice %542 {offsets = [12, 0], sizes = [2, 72], strides = [1, 1]} : vector<32x72xf32> to vector<2x72xf32>
    %738 = vector.extract_strided_slice %737 {offsets = [0, 0], sizes = [2, 24], strides = [1, 1]} : vector<2x72xf32> to vector<2x24xf32>
    %739 = vector.extract_strided_slice %736 {offsets = [0, 0], sizes = [2, 24], strides = [1, 1]} : vector<2x72xf32> to vector<2x24xf32>
    %740 = arith.addf %738, %739 : vector<2x24xf32>
    %741 = arith.negf %740 : vector<2x24xf32>
    %742 = math.exp %741 : vector<2x24xf32>
    %cst_123 = arith.constant 1.000000e+00 : f32
    %743 = vector.broadcast %cst_123 : f32 to vector<2x24xf32>
    %744 = arith.addf %743, %742 : vector<2x24xf32>
    %745 = arith.divf %743, %744 : vector<2x24xf32>
    %746 = vector.extract_strided_slice %737 {offsets = [0, 24], sizes = [2, 24], strides = [1, 1]} : vector<2x72xf32> to vector<2x24xf32>
    %747 = vector.extract_strided_slice %736 {offsets = [0, 24], sizes = [2, 24], strides = [1, 1]} : vector<2x72xf32> to vector<2x24xf32>
    %748 = arith.addf %746, %747 : vector<2x24xf32>
    %749 = arith.negf %748 : vector<2x24xf32>
    %750 = math.exp %749 : vector<2x24xf32>
    %cst_124 = arith.constant 1.000000e+00 : f32
    %751 = vector.broadcast %cst_124 : f32 to vector<2x24xf32>
    %752 = arith.addf %751, %750 : vector<2x24xf32>
    %753 = arith.divf %751, %752 : vector<2x24xf32>
    %754 = vector.extract_strided_slice %737 {offsets = [0, 48], sizes = [2, 24], strides = [1, 1]} : vector<2x72xf32> to vector<2x24xf32>
    %755 = vector.extract_strided_slice %736 {offsets = [0, 48], sizes = [2, 24], strides = [1, 1]} : vector<2x72xf32> to vector<2x24xf32>
    %756 = arith.mulf %745, %755 : vector<2x24xf32>
    %757 = arith.addf %754, %756 : vector<2x24xf32>
    %758 = math.tanh %757 : vector<2x24xf32>
    %cst_125 = arith.constant 1.000000e+00 : f32
    %759 = vector.broadcast %cst_125 : f32 to vector<2x24xf32>
    %760 = arith.subf %759, %753 : vector<2x24xf32>
    %761 = arith.mulf %760, %758 : vector<2x24xf32>
    %762 = arith.mulf %753, %732 : vector<2x24xf32>
    %763 = arith.addf %761, %762 : vector<2x24xf32>
    %764 = arith.truncf %763 : vector<2x24xf32> to vector<2x24xbf16>
    %cst_126 = arith.constant dense<0.000000e+00> : vector<2x72xf32>
    %765 = tpu.matmul %764, %544, %cst_126 {dimension_numbers = #tpu.dot_dimension_numbers<[1], [0], [0], [1], [0, 0, 1, 1], [], []>} : vector<2x24xbf16>, vector<24x72xbf16>, vector<2x72xf32> -> vector<2x72xf32>
    %766 = vector.broadcast %545 : vector<1x72xf32> to vector<2x72xf32>
    %767 = arith.addf %765, %766 : vector<2x72xf32>
    %768 = vector.extract_strided_slice %542 {offsets = [14, 0], sizes = [2, 72], strides = [1, 1]} : vector<32x72xf32> to vector<2x72xf32>
    %769 = vector.extract_strided_slice %768 {offsets = [0, 0], sizes = [2, 24], strides = [1, 1]} : vector<2x72xf32> to vector<2x24xf32>
    %770 = vector.extract_strided_slice %767 {offsets = [0, 0], sizes = [2, 24], strides = [1, 1]} : vector<2x72xf32> to vector<2x24xf32>
    %771 = arith.addf %769, %770 : vector<2x24xf32>
    %772 = arith.negf %771 : vector<2x24xf32>
    %773 = math.exp %772 : vector<2x24xf32>
    %cst_127 = arith.constant 1.000000e+00 : f32
    %774 = vector.broadcast %cst_127 : f32 to vector<2x24xf32>
    %775 = arith.addf %774, %773 : vector<2x24xf32>
    %776 = arith.divf %774, %775 : vector<2x24xf32>
    %777 = vector.extract_strided_slice %768 {offsets = [0, 24], sizes = [2, 24], strides = [1, 1]} : vector<2x72xf32> to vector<2x24xf32>
    %778 = vector.extract_strided_slice %767 {offsets = [0, 24], sizes = [2, 24], strides = [1, 1]} : vector<2x72xf32> to vector<2x24xf32>
    %779 = arith.addf %777, %778 : vector<2x24xf32>
    %780 = arith.negf %779 : vector<2x24xf32>
    %781 = math.exp %780 : vector<2x24xf32>
    %cst_128 = arith.constant 1.000000e+00 : f32
    %782 = vector.broadcast %cst_128 : f32 to vector<2x24xf32>
    %783 = arith.addf %782, %781 : vector<2x24xf32>
    %784 = arith.divf %782, %783 : vector<2x24xf32>
    %785 = vector.extract_strided_slice %768 {offsets = [0, 48], sizes = [2, 24], strides = [1, 1]} : vector<2x72xf32> to vector<2x24xf32>
    %786 = vector.extract_strided_slice %767 {offsets = [0, 48], sizes = [2, 24], strides = [1, 1]} : vector<2x72xf32> to vector<2x24xf32>
    %787 = arith.mulf %776, %786 : vector<2x24xf32>
    %788 = arith.addf %785, %787 : vector<2x24xf32>
    %789 = math.tanh %788 : vector<2x24xf32>
    %cst_129 = arith.constant 1.000000e+00 : f32
    %790 = vector.broadcast %cst_129 : f32 to vector<2x24xf32>
    %791 = arith.subf %790, %784 : vector<2x24xf32>
    %792 = arith.mulf %791, %789 : vector<2x24xf32>
    %793 = arith.mulf %784, %763 : vector<2x24xf32>
    %794 = arith.addf %792, %793 : vector<2x24xf32>
    %795 = arith.truncf %794 : vector<2x24xf32> to vector<2x24xbf16>
    %cst_130 = arith.constant dense<0.000000e+00> : vector<2x72xf32>
    %796 = tpu.matmul %795, %544, %cst_130 {dimension_numbers = #tpu.dot_dimension_numbers<[1], [0], [0], [1], [0, 0, 1, 1], [], []>} : vector<2x24xbf16>, vector<24x72xbf16>, vector<2x72xf32> -> vector<2x72xf32>
    %797 = vector.broadcast %545 : vector<1x72xf32> to vector<2x72xf32>
    %798 = arith.addf %796, %797 : vector<2x72xf32>
    %799 = vector.extract_strided_slice %542 {offsets = [16, 0], sizes = [2, 72], strides = [1, 1]} : vector<32x72xf32> to vector<2x72xf32>
    %800 = vector.extract_strided_slice %799 {offsets = [0, 0], sizes = [2, 24], strides = [1, 1]} : vector<2x72xf32> to vector<2x24xf32>
    %801 = vector.extract_strided_slice %798 {offsets = [0, 0], sizes = [2, 24], strides = [1, 1]} : vector<2x72xf32> to vector<2x24xf32>
    %802 = arith.addf %800, %801 : vector<2x24xf32>
    %803 = arith.negf %802 : vector<2x24xf32>
    %804 = math.exp %803 : vector<2x24xf32>
    %cst_131 = arith.constant 1.000000e+00 : f32
    %805 = vector.broadcast %cst_131 : f32 to vector<2x24xf32>
    %806 = arith.addf %805, %804 : vector<2x24xf32>
    %807 = arith.divf %805, %806 : vector<2x24xf32>
    %808 = vector.extract_strided_slice %799 {offsets = [0, 24], sizes = [2, 24], strides = [1, 1]} : vector<2x72xf32> to vector<2x24xf32>
    %809 = vector.extract_strided_slice %798 {offsets = [0, 24], sizes = [2, 24], strides = [1, 1]} : vector<2x72xf32> to vector<2x24xf32>
    %810 = arith.addf %808, %809 : vector<2x24xf32>
    %811 = arith.negf %810 : vector<2x24xf32>
    %812 = math.exp %811 : vector<2x24xf32>
    %cst_132 = arith.constant 1.000000e+00 : f32
    %813 = vector.broadcast %cst_132 : f32 to vector<2x24xf32>
    %814 = arith.addf %813, %812 : vector<2x24xf32>
    %815 = arith.divf %813, %814 : vector<2x24xf32>
    %816 = vector.extract_strided_slice %799 {offsets = [0, 48], sizes = [2, 24], strides = [1, 1]} : vector<2x72xf32> to vector<2x24xf32>
    %817 = vector.extract_strided_slice %798 {offsets = [0, 48], sizes = [2, 24], strides = [1, 1]} : vector<2x72xf32> to vector<2x24xf32>
    %818 = arith.mulf %807, %817 : vector<2x24xf32>
    %819 = arith.addf %816, %818 : vector<2x24xf32>
    %820 = math.tanh %819 : vector<2x24xf32>
    %cst_133 = arith.constant 1.000000e+00 : f32
    %821 = vector.broadcast %cst_133 : f32 to vector<2x24xf32>
    %822 = arith.subf %821, %815 : vector<2x24xf32>
    %823 = arith.mulf %822, %820 : vector<2x24xf32>
    %824 = arith.mulf %815, %794 : vector<2x24xf32>
    %825 = arith.addf %823, %824 : vector<2x24xf32>
    %826 = arith.truncf %825 : vector<2x24xf32> to vector<2x24xbf16>
    %cst_134 = arith.constant dense<0.000000e+00> : vector<2x72xf32>
    %827 = tpu.matmul %826, %544, %cst_134 {dimension_numbers = #tpu.dot_dimension_numbers<[1], [0], [0], [1], [0, 0, 1, 1], [], []>} : vector<2x24xbf16>, vector<24x72xbf16>, vector<2x72xf32> -> vector<2x72xf32>
    %828 = vector.broadcast %545 : vector<1x72xf32> to vector<2x72xf32>
    %829 = arith.addf %827, %828 : vector<2x72xf32>
    %830 = vector.extract_strided_slice %542 {offsets = [18, 0], sizes = [2, 72], strides = [1, 1]} : vector<32x72xf32> to vector<2x72xf32>
    %831 = vector.extract_strided_slice %830 {offsets = [0, 0], sizes = [2, 24], strides = [1, 1]} : vector<2x72xf32> to vector<2x24xf32>
    %832 = vector.extract_strided_slice %829 {offsets = [0, 0], sizes = [2, 24], strides = [1, 1]} : vector<2x72xf32> to vector<2x24xf32>
    %833 = arith.addf %831, %832 : vector<2x24xf32>
    %834 = arith.negf %833 : vector<2x24xf32>
    %835 = math.exp %834 : vector<2x24xf32>
    %cst_135 = arith.constant 1.000000e+00 : f32
    %836 = vector.broadcast %cst_135 : f32 to vector<2x24xf32>
    %837 = arith.addf %836, %835 : vector<2x24xf32>
    %838 = arith.divf %836, %837 : vector<2x24xf32>
    %839 = vector.extract_strided_slice %830 {offsets = [0, 24], sizes = [2, 24], strides = [1, 1]} : vector<2x72xf32> to vector<2x24xf32>
    %840 = vector.extract_strided_slice %829 {offsets = [0, 24], sizes = [2, 24], strides = [1, 1]} : vector<2x72xf32> to vector<2x24xf32>
    %841 = arith.addf %839, %840 : vector<2x24xf32>
    %842 = arith.negf %841 : vector<2x24xf32>
    %843 = math.exp %842 : vector<2x24xf32>
    %cst_136 = arith.constant 1.000000e+00 : f32
    %844 = vector.broadcast %cst_136 : f32 to vector<2x24xf32>
    %845 = arith.addf %844, %843 : vector<2x24xf32>
    %846 = arith.divf %844, %845 : vector<2x24xf32>
    %847 = vector.extract_strided_slice %830 {offsets = [0, 48], sizes = [2, 24], strides = [1, 1]} : vector<2x72xf32> to vector<2x24xf32>
    %848 = vector.extract_strided_slice %829 {offsets = [0, 48], sizes = [2, 24], strides = [1, 1]} : vector<2x72xf32> to vector<2x24xf32>
    %849 = arith.mulf %838, %848 : vector<2x24xf32>
    %850 = arith.addf %847, %849 : vector<2x24xf32>
    %851 = math.tanh %850 : vector<2x24xf32>
    %cst_137 = arith.constant 1.000000e+00 : f32
    %852 = vector.broadcast %cst_137 : f32 to vector<2x24xf32>
    %853 = arith.subf %852, %846 : vector<2x24xf32>
    %854 = arith.mulf %853, %851 : vector<2x24xf32>
    %855 = arith.mulf %846, %825 : vector<2x24xf32>
    %856 = arith.addf %854, %855 : vector<2x24xf32>
    %857 = arith.truncf %856 : vector<2x24xf32> to vector<2x24xbf16>
    %cst_138 = arith.constant dense<0.000000e+00> : vector<2x72xf32>
    %858 = tpu.matmul %857, %544, %cst_138 {dimension_numbers = #tpu.dot_dimension_numbers<[1], [0], [0], [1], [0, 0, 1, 1], [], []>} : vector<2x24xbf16>, vector<24x72xbf16>, vector<2x72xf32> -> vector<2x72xf32>
    %859 = vector.broadcast %545 : vector<1x72xf32> to vector<2x72xf32>
    %860 = arith.addf %858, %859 : vector<2x72xf32>
    %861 = vector.extract_strided_slice %542 {offsets = [20, 0], sizes = [2, 72], strides = [1, 1]} : vector<32x72xf32> to vector<2x72xf32>
    %862 = vector.extract_strided_slice %861 {offsets = [0, 0], sizes = [2, 24], strides = [1, 1]} : vector<2x72xf32> to vector<2x24xf32>
    %863 = vector.extract_strided_slice %860 {offsets = [0, 0], sizes = [2, 24], strides = [1, 1]} : vector<2x72xf32> to vector<2x24xf32>
    %864 = arith.addf %862, %863 : vector<2x24xf32>
    %865 = arith.negf %864 : vector<2x24xf32>
    %866 = math.exp %865 : vector<2x24xf32>
    %cst_139 = arith.constant 1.000000e+00 : f32
    %867 = vector.broadcast %cst_139 : f32 to vector<2x24xf32>
    %868 = arith.addf %867, %866 : vector<2x24xf32>
    %869 = arith.divf %867, %868 : vector<2x24xf32>
    %870 = vector.extract_strided_slice %861 {offsets = [0, 24], sizes = [2, 24], strides = [1, 1]} : vector<2x72xf32> to vector<2x24xf32>
    %871 = vector.extract_strided_slice %860 {offsets = [0, 24], sizes = [2, 24], strides = [1, 1]} : vector<2x72xf32> to vector<2x24xf32>
    %872 = arith.addf %870, %871 : vector<2x24xf32>
    %873 = arith.negf %872 : vector<2x24xf32>
    %874 = math.exp %873 : vector<2x24xf32>
    %cst_140 = arith.constant 1.000000e+00 : f32
    %875 = vector.broadcast %cst_140 : f32 to vector<2x24xf32>
    %876 = arith.addf %875, %874 : vector<2x24xf32>
    %877 = arith.divf %875, %876 : vector<2x24xf32>
    %878 = vector.extract_strided_slice %861 {offsets = [0, 48], sizes = [2, 24], strides = [1, 1]} : vector<2x72xf32> to vector<2x24xf32>
    %879 = vector.extract_strided_slice %860 {offsets = [0, 48], sizes = [2, 24], strides = [1, 1]} : vector<2x72xf32> to vector<2x24xf32>
    %880 = arith.mulf %869, %879 : vector<2x24xf32>
    %881 = arith.addf %878, %880 : vector<2x24xf32>
    %882 = math.tanh %881 : vector<2x24xf32>
    %cst_141 = arith.constant 1.000000e+00 : f32
    %883 = vector.broadcast %cst_141 : f32 to vector<2x24xf32>
    %884 = arith.subf %883, %877 : vector<2x24xf32>
    %885 = arith.mulf %884, %882 : vector<2x24xf32>
    %886 = arith.mulf %877, %856 : vector<2x24xf32>
    %887 = arith.addf %885, %886 : vector<2x24xf32>
    %888 = arith.truncf %887 : vector<2x24xf32> to vector<2x24xbf16>
    %cst_142 = arith.constant dense<0.000000e+00> : vector<2x72xf32>
    %889 = tpu.matmul %888, %544, %cst_142 {dimension_numbers = #tpu.dot_dimension_numbers<[1], [0], [0], [1], [0, 0, 1, 1], [], []>} : vector<2x24xbf16>, vector<24x72xbf16>, vector<2x72xf32> -> vector<2x72xf32>
    %890 = vector.broadcast %545 : vector<1x72xf32> to vector<2x72xf32>
    %891 = arith.addf %889, %890 : vector<2x72xf32>
    %892 = vector.extract_strided_slice %542 {offsets = [22, 0], sizes = [2, 72], strides = [1, 1]} : vector<32x72xf32> to vector<2x72xf32>
    %893 = vector.extract_strided_slice %892 {offsets = [0, 0], sizes = [2, 24], strides = [1, 1]} : vector<2x72xf32> to vector<2x24xf32>
    %894 = vector.extract_strided_slice %891 {offsets = [0, 0], sizes = [2, 24], strides = [1, 1]} : vector<2x72xf32> to vector<2x24xf32>
    %895 = arith.addf %893, %894 : vector<2x24xf32>
    %896 = arith.negf %895 : vector<2x24xf32>
    %897 = math.exp %896 : vector<2x24xf32>
    %cst_143 = arith.constant 1.000000e+00 : f32
    %898 = vector.broadcast %cst_143 : f32 to vector<2x24xf32>
    %899 = arith.addf %898, %897 : vector<2x24xf32>
    %900 = arith.divf %898, %899 : vector<2x24xf32>
    %901 = vector.extract_strided_slice %892 {offsets = [0, 24], sizes = [2, 24], strides = [1, 1]} : vector<2x72xf32> to vector<2x24xf32>
    %902 = vector.extract_strided_slice %891 {offsets = [0, 24], sizes = [2, 24], strides = [1, 1]} : vector<2x72xf32> to vector<2x24xf32>
    %903 = arith.addf %901, %902 : vector<2x24xf32>
    %904 = arith.negf %903 : vector<2x24xf32>
    %905 = math.exp %904 : vector<2x24xf32>
    %cst_144 = arith.constant 1.000000e+00 : f32
    %906 = vector.broadcast %cst_144 : f32 to vector<2x24xf32>
    %907 = arith.addf %906, %905 : vector<2x24xf32>
    %908 = arith.divf %906, %907 : vector<2x24xf32>
    %909 = vector.extract_strided_slice %892 {offsets = [0, 48], sizes = [2, 24], strides = [1, 1]} : vector<2x72xf32> to vector<2x24xf32>
    %910 = vector.extract_strided_slice %891 {offsets = [0, 48], sizes = [2, 24], strides = [1, 1]} : vector<2x72xf32> to vector<2x24xf32>
    %911 = arith.mulf %900, %910 : vector<2x24xf32>
    %912 = arith.addf %909, %911 : vector<2x24xf32>
    %913 = math.tanh %912 : vector<2x24xf32>
    %cst_145 = arith.constant 1.000000e+00 : f32
    %914 = vector.broadcast %cst_145 : f32 to vector<2x24xf32>
    %915 = arith.subf %914, %908 : vector<2x24xf32>
    %916 = arith.mulf %915, %913 : vector<2x24xf32>
    %917 = arith.mulf %908, %887 : vector<2x24xf32>
    %918 = arith.addf %916, %917 : vector<2x24xf32>
    %919 = arith.truncf %918 : vector<2x24xf32> to vector<2x24xbf16>
    %cst_146 = arith.constant dense<0.000000e+00> : vector<2x72xf32>
    %920 = tpu.matmul %919, %544, %cst_146 {dimension_numbers = #tpu.dot_dimension_numbers<[1], [0], [0], [1], [0, 0, 1, 1], [], []>} : vector<2x24xbf16>, vector<24x72xbf16>, vector<2x72xf32> -> vector<2x72xf32>
    %921 = vector.broadcast %545 : vector<1x72xf32> to vector<2x72xf32>
    %922 = arith.addf %920, %921 : vector<2x72xf32>
    %923 = vector.extract_strided_slice %542 {offsets = [24, 0], sizes = [2, 72], strides = [1, 1]} : vector<32x72xf32> to vector<2x72xf32>
    %924 = vector.extract_strided_slice %923 {offsets = [0, 0], sizes = [2, 24], strides = [1, 1]} : vector<2x72xf32> to vector<2x24xf32>
    %925 = vector.extract_strided_slice %922 {offsets = [0, 0], sizes = [2, 24], strides = [1, 1]} : vector<2x72xf32> to vector<2x24xf32>
    %926 = arith.addf %924, %925 : vector<2x24xf32>
    %927 = arith.negf %926 : vector<2x24xf32>
    %928 = math.exp %927 : vector<2x24xf32>
    %cst_147 = arith.constant 1.000000e+00 : f32
    %929 = vector.broadcast %cst_147 : f32 to vector<2x24xf32>
    %930 = arith.addf %929, %928 : vector<2x24xf32>
    %931 = arith.divf %929, %930 : vector<2x24xf32>
    %932 = vector.extract_strided_slice %923 {offsets = [0, 24], sizes = [2, 24], strides = [1, 1]} : vector<2x72xf32> to vector<2x24xf32>
    %933 = vector.extract_strided_slice %922 {offsets = [0, 24], sizes = [2, 24], strides = [1, 1]} : vector<2x72xf32> to vector<2x24xf32>
    %934 = arith.addf %932, %933 : vector<2x24xf32>
    %935 = arith.negf %934 : vector<2x24xf32>
    %936 = math.exp %935 : vector<2x24xf32>
    %cst_148 = arith.constant 1.000000e+00 : f32
    %937 = vector.broadcast %cst_148 : f32 to vector<2x24xf32>
    %938 = arith.addf %937, %936 : vector<2x24xf32>
    %939 = arith.divf %937, %938 : vector<2x24xf32>
    %940 = vector.extract_strided_slice %923 {offsets = [0, 48], sizes = [2, 24], strides = [1, 1]} : vector<2x72xf32> to vector<2x24xf32>
    %941 = vector.extract_strided_slice %922 {offsets = [0, 48], sizes = [2, 24], strides = [1, 1]} : vector<2x72xf32> to vector<2x24xf32>
    %942 = arith.mulf %931, %941 : vector<2x24xf32>
    %943 = arith.addf %940, %942 : vector<2x24xf32>
    %944 = math.tanh %943 : vector<2x24xf32>
    %cst_149 = arith.constant 1.000000e+00 : f32
    %945 = vector.broadcast %cst_149 : f32 to vector<2x24xf32>
    %946 = arith.subf %945, %939 : vector<2x24xf32>
    %947 = arith.mulf %946, %944 : vector<2x24xf32>
    %948 = arith.mulf %939, %918 : vector<2x24xf32>
    %949 = arith.addf %947, %948 : vector<2x24xf32>
    %950 = arith.truncf %949 : vector<2x24xf32> to vector<2x24xbf16>
    %cst_150 = arith.constant dense<0.000000e+00> : vector<2x72xf32>
    %951 = tpu.matmul %950, %544, %cst_150 {dimension_numbers = #tpu.dot_dimension_numbers<[1], [0], [0], [1], [0, 0, 1, 1], [], []>} : vector<2x24xbf16>, vector<24x72xbf16>, vector<2x72xf32> -> vector<2x72xf32>
    %952 = vector.broadcast %545 : vector<1x72xf32> to vector<2x72xf32>
    %953 = arith.addf %951, %952 : vector<2x72xf32>
    %954 = vector.extract_strided_slice %542 {offsets = [26, 0], sizes = [2, 72], strides = [1, 1]} : vector<32x72xf32> to vector<2x72xf32>
    %955 = vector.extract_strided_slice %954 {offsets = [0, 0], sizes = [2, 24], strides = [1, 1]} : vector<2x72xf32> to vector<2x24xf32>
    %956 = vector.extract_strided_slice %953 {offsets = [0, 0], sizes = [2, 24], strides = [1, 1]} : vector<2x72xf32> to vector<2x24xf32>
    %957 = arith.addf %955, %956 : vector<2x24xf32>
    %958 = arith.negf %957 : vector<2x24xf32>
    %959 = math.exp %958 : vector<2x24xf32>
    %cst_151 = arith.constant 1.000000e+00 : f32
    %960 = vector.broadcast %cst_151 : f32 to vector<2x24xf32>
    %961 = arith.addf %960, %959 : vector<2x24xf32>
    %962 = arith.divf %960, %961 : vector<2x24xf32>
    %963 = vector.extract_strided_slice %954 {offsets = [0, 24], sizes = [2, 24], strides = [1, 1]} : vector<2x72xf32> to vector<2x24xf32>
    %964 = vector.extract_strided_slice %953 {offsets = [0, 24], sizes = [2, 24], strides = [1, 1]} : vector<2x72xf32> to vector<2x24xf32>
    %965 = arith.addf %963, %964 : vector<2x24xf32>
    %966 = arith.negf %965 : vector<2x24xf32>
    %967 = math.exp %966 : vector<2x24xf32>
    %cst_152 = arith.constant 1.000000e+00 : f32
    %968 = vector.broadcast %cst_152 : f32 to vector<2x24xf32>
    %969 = arith.addf %968, %967 : vector<2x24xf32>
    %970 = arith.divf %968, %969 : vector<2x24xf32>
    %971 = vector.extract_strided_slice %954 {offsets = [0, 48], sizes = [2, 24], strides = [1, 1]} : vector<2x72xf32> to vector<2x24xf32>
    %972 = vector.extract_strided_slice %953 {offsets = [0, 48], sizes = [2, 24], strides = [1, 1]} : vector<2x72xf32> to vector<2x24xf32>
    %973 = arith.mulf %962, %972 : vector<2x24xf32>
    %974 = arith.addf %971, %973 : vector<2x24xf32>
    %975 = math.tanh %974 : vector<2x24xf32>
    %cst_153 = arith.constant 1.000000e+00 : f32
    %976 = vector.broadcast %cst_153 : f32 to vector<2x24xf32>
    %977 = arith.subf %976, %970 : vector<2x24xf32>
    %978 = arith.mulf %977, %975 : vector<2x24xf32>
    %979 = arith.mulf %970, %949 : vector<2x24xf32>
    %980 = arith.addf %978, %979 : vector<2x24xf32>
    %981 = arith.truncf %980 : vector<2x24xf32> to vector<2x24xbf16>
    %cst_154 = arith.constant dense<0.000000e+00> : vector<2x72xf32>
    %982 = tpu.matmul %981, %544, %cst_154 {dimension_numbers = #tpu.dot_dimension_numbers<[1], [0], [0], [1], [0, 0, 1, 1], [], []>} : vector<2x24xbf16>, vector<24x72xbf16>, vector<2x72xf32> -> vector<2x72xf32>
    %983 = vector.broadcast %545 : vector<1x72xf32> to vector<2x72xf32>
    %984 = arith.addf %982, %983 : vector<2x72xf32>
    %985 = vector.extract_strided_slice %542 {offsets = [28, 0], sizes = [2, 72], strides = [1, 1]} : vector<32x72xf32> to vector<2x72xf32>
    %986 = vector.extract_strided_slice %985 {offsets = [0, 0], sizes = [2, 24], strides = [1, 1]} : vector<2x72xf32> to vector<2x24xf32>
    %987 = vector.extract_strided_slice %984 {offsets = [0, 0], sizes = [2, 24], strides = [1, 1]} : vector<2x72xf32> to vector<2x24xf32>
    %988 = arith.addf %986, %987 : vector<2x24xf32>
    %989 = arith.negf %988 : vector<2x24xf32>
    %990 = math.exp %989 : vector<2x24xf32>
    %cst_155 = arith.constant 1.000000e+00 : f32
    %991 = vector.broadcast %cst_155 : f32 to vector<2x24xf32>
    %992 = arith.addf %991, %990 : vector<2x24xf32>
    %993 = arith.divf %991, %992 : vector<2x24xf32>
    %994 = vector.extract_strided_slice %985 {offsets = [0, 24], sizes = [2, 24], strides = [1, 1]} : vector<2x72xf32> to vector<2x24xf32>
    %995 = vector.extract_strided_slice %984 {offsets = [0, 24], sizes = [2, 24], strides = [1, 1]} : vector<2x72xf32> to vector<2x24xf32>
    %996 = arith.addf %994, %995 : vector<2x24xf32>
    %997 = arith.negf %996 : vector<2x24xf32>
    %998 = math.exp %997 : vector<2x24xf32>
    %cst_156 = arith.constant 1.000000e+00 : f32
    %999 = vector.broadcast %cst_156 : f32 to vector<2x24xf32>
    %1000 = arith.addf %999, %998 : vector<2x24xf32>
    %1001 = arith.divf %999, %1000 : vector<2x24xf32>
    %1002 = vector.extract_strided_slice %985 {offsets = [0, 48], sizes = [2, 24], strides = [1, 1]} : vector<2x72xf32> to vector<2x24xf32>
    %1003 = vector.extract_strided_slice %984 {offsets = [0, 48], sizes = [2, 24], strides = [1, 1]} : vector<2x72xf32> to vector<2x24xf32>
    %1004 = arith.mulf %993, %1003 : vector<2x24xf32>
    %1005 = arith.addf %1002, %1004 : vector<2x24xf32>
    %1006 = math.tanh %1005 : vector<2x24xf32>
    %cst_157 = arith.constant 1.000000e+00 : f32
    %1007 = vector.broadcast %cst_157 : f32 to vector<2x24xf32>
    %1008 = arith.subf %1007, %1001 : vector<2x24xf32>
    %1009 = arith.mulf %1008, %1006 : vector<2x24xf32>
    %1010 = arith.mulf %1001, %980 : vector<2x24xf32>
    %1011 = arith.addf %1009, %1010 : vector<2x24xf32>
    %1012 = arith.truncf %1011 : vector<2x24xf32> to vector<2x24xbf16>
    %cst_158 = arith.constant dense<0.000000e+00> : vector<2x72xf32>
    %1013 = tpu.matmul %1012, %544, %cst_158 {dimension_numbers = #tpu.dot_dimension_numbers<[1], [0], [0], [1], [0, 0, 1, 1], [], []>} : vector<2x24xbf16>, vector<24x72xbf16>, vector<2x72xf32> -> vector<2x72xf32>
    %1014 = vector.broadcast %545 : vector<1x72xf32> to vector<2x72xf32>
    %1015 = arith.addf %1013, %1014 : vector<2x72xf32>
    %1016 = vector.extract_strided_slice %542 {offsets = [30, 0], sizes = [2, 72], strides = [1, 1]} : vector<32x72xf32> to vector<2x72xf32>
    %1017 = vector.extract_strided_slice %1016 {offsets = [0, 0], sizes = [2, 24], strides = [1, 1]} : vector<2x72xf32> to vector<2x24xf32>
    %1018 = vector.extract_strided_slice %1015 {offsets = [0, 0], sizes = [2, 24], strides = [1, 1]} : vector<2x72xf32> to vector<2x24xf32>
    %1019 = arith.addf %1017, %1018 : vector<2x24xf32>
    %1020 = arith.negf %1019 : vector<2x24xf32>
    %1021 = math.exp %1020 : vector<2x24xf32>
    %cst_159 = arith.constant 1.000000e+00 : f32
    %1022 = vector.broadcast %cst_159 : f32 to vector<2x24xf32>
    %1023 = arith.addf %1022, %1021 : vector<2x24xf32>
    %1024 = arith.divf %1022, %1023 : vector<2x24xf32>
    %1025 = vector.extract_strided_slice %1016 {offsets = [0, 24], sizes = [2, 24], strides = [1, 1]} : vector<2x72xf32> to vector<2x24xf32>
    %1026 = vector.extract_strided_slice %1015 {offsets = [0, 24], sizes = [2, 24], strides = [1, 1]} : vector<2x72xf32> to vector<2x24xf32>
    %1027 = arith.addf %1025, %1026 : vector<2x24xf32>
    %1028 = arith.negf %1027 : vector<2x24xf32>
    %1029 = math.exp %1028 : vector<2x24xf32>
    %cst_160 = arith.constant 1.000000e+00 : f32
    %1030 = vector.broadcast %cst_160 : f32 to vector<2x24xf32>
    %1031 = arith.addf %1030, %1029 : vector<2x24xf32>
    %1032 = arith.divf %1030, %1031 : vector<2x24xf32>
    %1033 = vector.extract_strided_slice %1016 {offsets = [0, 48], sizes = [2, 24], strides = [1, 1]} : vector<2x72xf32> to vector<2x24xf32>
    %1034 = vector.extract_strided_slice %1015 {offsets = [0, 48], sizes = [2, 24], strides = [1, 1]} : vector<2x72xf32> to vector<2x24xf32>
    %1035 = arith.mulf %1024, %1034 : vector<2x24xf32>
    %1036 = arith.addf %1033, %1035 : vector<2x24xf32>
    %1037 = math.tanh %1036 : vector<2x24xf32>
    %cst_161 = arith.constant 1.000000e+00 : f32
    %1038 = vector.broadcast %cst_161 : f32 to vector<2x24xf32>
    %1039 = arith.subf %1038, %1032 : vector<2x24xf32>
    %1040 = arith.mulf %1039, %1037 : vector<2x24xf32>
    %1041 = arith.mulf %1032, %1011 : vector<2x24xf32>
    %1042 = arith.addf %1040, %1041 : vector<2x24xf32>
    %1043 = vector.extract_strided_slice %577 {offsets = [0, 0], sizes = [1, 24], strides = [1, 1]} : vector<2x24xf32> to vector<1x24xf32>
    %1044 = vector.extract_strided_slice %608 {offsets = [0, 0], sizes = [1, 24], strides = [1, 1]} : vector<2x24xf32> to vector<1x24xf32>
    %1045 = vector.extract_strided_slice %639 {offsets = [0, 0], sizes = [1, 24], strides = [1, 1]} : vector<2x24xf32> to vector<1x24xf32>
    %1046 = vector.extract_strided_slice %670 {offsets = [0, 0], sizes = [1, 24], strides = [1, 1]} : vector<2x24xf32> to vector<1x24xf32>
    %1047 = vector.extract_strided_slice %701 {offsets = [0, 0], sizes = [1, 24], strides = [1, 1]} : vector<2x24xf32> to vector<1x24xf32>
    %1048 = vector.extract_strided_slice %732 {offsets = [0, 0], sizes = [1, 24], strides = [1, 1]} : vector<2x24xf32> to vector<1x24xf32>
    %1049 = vector.extract_strided_slice %763 {offsets = [0, 0], sizes = [1, 24], strides = [1, 1]} : vector<2x24xf32> to vector<1x24xf32>
    %1050 = vector.extract_strided_slice %794 {offsets = [0, 0], sizes = [1, 24], strides = [1, 1]} : vector<2x24xf32> to vector<1x24xf32>
    %1051 = vector.extract_strided_slice %825 {offsets = [0, 0], sizes = [1, 24], strides = [1, 1]} : vector<2x24xf32> to vector<1x24xf32>
    %1052 = vector.extract_strided_slice %856 {offsets = [0, 0], sizes = [1, 24], strides = [1, 1]} : vector<2x24xf32> to vector<1x24xf32>
    %1053 = vector.extract_strided_slice %887 {offsets = [0, 0], sizes = [1, 24], strides = [1, 1]} : vector<2x24xf32> to vector<1x24xf32>
    %1054 = vector.extract_strided_slice %918 {offsets = [0, 0], sizes = [1, 24], strides = [1, 1]} : vector<2x24xf32> to vector<1x24xf32>
    %1055 = vector.extract_strided_slice %949 {offsets = [0, 0], sizes = [1, 24], strides = [1, 1]} : vector<2x24xf32> to vector<1x24xf32>
    %1056 = vector.extract_strided_slice %980 {offsets = [0, 0], sizes = [1, 24], strides = [1, 1]} : vector<2x24xf32> to vector<1x24xf32>
    %1057 = vector.extract_strided_slice %1011 {offsets = [0, 0], sizes = [1, 24], strides = [1, 1]} : vector<2x24xf32> to vector<1x24xf32>
    %1058 = vector.extract_strided_slice %1042 {offsets = [0, 0], sizes = [1, 24], strides = [1, 1]} : vector<2x24xf32> to vector<1x24xf32>
    %1059 = tpu.concatenate %1043, %1044, %1045, %1046, %1047, %1048, %1049, %1050, %1051, %1052, %1053, %1054, %1055, %1056, %1057, %1058 in 0 : vector<1x24xf32>, vector<1x24xf32>, vector<1x24xf32>, vector<1x24xf32>, vector<1x24xf32>, vector<1x24xf32>, vector<1x24xf32>, vector<1x24xf32>, vector<1x24xf32>, vector<1x24xf32>, vector<1x24xf32>, vector<1x24xf32>, vector<1x24xf32>, vector<1x24xf32>, vector<1x24xf32>, vector<1x24xf32> -> vector<16x24xf32>
    %1060 = vector.extract_strided_slice %577 {offsets = [1, 0], sizes = [1, 24], strides = [1, 1]} : vector<2x24xf32> to vector<1x24xf32>
    %1061 = vector.extract_strided_slice %608 {offsets = [1, 0], sizes = [1, 24], strides = [1, 1]} : vector<2x24xf32> to vector<1x24xf32>
    %1062 = vector.extract_strided_slice %639 {offsets = [1, 0], sizes = [1, 24], strides = [1, 1]} : vector<2x24xf32> to vector<1x24xf32>
    %1063 = vector.extract_strided_slice %670 {offsets = [1, 0], sizes = [1, 24], strides = [1, 1]} : vector<2x24xf32> to vector<1x24xf32>
    %1064 = vector.extract_strided_slice %701 {offsets = [1, 0], sizes = [1, 24], strides = [1, 1]} : vector<2x24xf32> to vector<1x24xf32>
    %1065 = vector.extract_strided_slice %732 {offsets = [1, 0], sizes = [1, 24], strides = [1, 1]} : vector<2x24xf32> to vector<1x24xf32>
    %1066 = vector.extract_strided_slice %763 {offsets = [1, 0], sizes = [1, 24], strides = [1, 1]} : vector<2x24xf32> to vector<1x24xf32>
    %1067 = vector.extract_strided_slice %794 {offsets = [1, 0], sizes = [1, 24], strides = [1, 1]} : vector<2x24xf32> to vector<1x24xf32>
    %1068 = vector.extract_strided_slice %825 {offsets = [1, 0], sizes = [1, 24], strides = [1, 1]} : vector<2x24xf32> to vector<1x24xf32>
    %1069 = vector.extract_strided_slice %856 {offsets = [1, 0], sizes = [1, 24], strides = [1, 1]} : vector<2x24xf32> to vector<1x24xf32>
    %1070 = vector.extract_strided_slice %887 {offsets = [1, 0], sizes = [1, 24], strides = [1, 1]} : vector<2x24xf32> to vector<1x24xf32>
    %1071 = vector.extract_strided_slice %918 {offsets = [1, 0], sizes = [1, 24], strides = [1, 1]} : vector<2x24xf32> to vector<1x24xf32>
    %1072 = vector.extract_strided_slice %949 {offsets = [1, 0], sizes = [1, 24], strides = [1, 1]} : vector<2x24xf32> to vector<1x24xf32>
    %1073 = vector.extract_strided_slice %980 {offsets = [1, 0], sizes = [1, 24], strides = [1, 1]} : vector<2x24xf32> to vector<1x24xf32>
    %1074 = vector.extract_strided_slice %1011 {offsets = [1, 0], sizes = [1, 24], strides = [1, 1]} : vector<2x24xf32> to vector<1x24xf32>
    %1075 = vector.extract_strided_slice %1042 {offsets = [1, 0], sizes = [1, 24], strides = [1, 1]} : vector<2x24xf32> to vector<1x24xf32>
    %1076 = tpu.concatenate %1060, %1061, %1062, %1063, %1064, %1065, %1066, %1067, %1068, %1069, %1070, %1071, %1072, %1073, %1074, %1075 in 0 : vector<1x24xf32>, vector<1x24xf32>, vector<1x24xf32>, vector<1x24xf32>, vector<1x24xf32>, vector<1x24xf32>, vector<1x24xf32>, vector<1x24xf32>, vector<1x24xf32>, vector<1x24xf32>, vector<1x24xf32>, vector<1x24xf32>, vector<1x24xf32>, vector<1x24xf32>, vector<1x24xf32>, vector<1x24xf32> -> vector<16x24xf32>
    %1077 = tpu.concatenate %1059, %1076 in 0 : vector<16x24xf32>, vector<16x24xf32> -> vector<32x24xf32>
    %c0_162 = arith.constant 0 : index
    %c0_163 = arith.constant 0 : index
    %1078 = vector.load %arg11[%c0_162, %c0_163] : memref<24x32xf32, #tpu.memory_space<vmem>>, vector<24x32xf32>
    %1079 = arith.truncf %1077 : vector<32x24xf32> to vector<32x24xbf16>
    %1080 = arith.truncf %1078 : vector<24x32xf32> to vector<24x32xbf16>
    %cst_164 = arith.constant dense<0.000000e+00> : vector<32x32xf32>
    %1081 = tpu.matmul %1079, %1080, %cst_164 {dimension_numbers = #tpu.dot_dimension_numbers<[1], [0], [0], [1], [0, 0, 1, 1], [], []>} : vector<32x24xbf16>, vector<24x32xbf16>, vector<32x32xf32> -> vector<32x32xf32>
    %c0_165 = arith.constant 0 : index
    %c0_166 = arith.constant 0 : index
    %1082 = vector.load %arg12[%c0_165, %c0_166] : memref<1x32xf32, #tpu.memory_space<vmem>>, vector<1x32xf32>
    %1083 = vector.broadcast %1082 : vector<1x32xf32> to vector<32x32xf32>
    %1084 = arith.addf %1081, %1083 : vector<32x32xf32>
    %c0_167 = arith.constant 0 : index
    %c0_168 = arith.constant 0 : index
    %1085 = vector.load %arg13[%c0_167, %c0_168] : memref<32x32xf32, #tpu.memory_space<vmem>>, vector<32x32xf32>
    %1086 = arith.addf %1084, %1085 : vector<32x32xf32>
    %c0_169 = arith.constant 0 : index
    %c0_170 = arith.constant 0 : index
    %1087 = vector.load %arg16[%c0_169, %c0_170] : memref<32x32xf32, #tpu.memory_space<vmem>>, vector<32x32xf32>
    %c0_171 = arith.constant 0 : index
    %c0_172 = arith.constant 0 : index
    %1088 = vector.load %arg14[%c0_171, %c0_172] : memref<32x96xf32, #tpu.memory_space<vmem>>, vector<32x96xf32>
    %1089 = arith.truncf %1086 : vector<32x32xf32> to vector<32x32xbf16>
    %1090 = arith.truncf %1088 : vector<32x96xf32> to vector<32x96xbf16>
    %cst_173 = arith.constant dense<0.000000e+00> : vector<32x96xf32>
    %1091 = tpu.matmul %1089, %1090, %cst_173 {dimension_numbers = #tpu.dot_dimension_numbers<[1], [0], [0], [1], [0, 0, 1, 1], [], []>} : vector<32x32xbf16>, vector<32x96xbf16>, vector<32x96xf32> -> vector<32x96xf32>
    %c0_174 = arith.constant 0 : index
    %c0_175 = arith.constant 0 : index
    %1092 = vector.load %arg15[%c0_174, %c0_175] : memref<1x96xf32, #tpu.memory_space<vmem>>, vector<1x96xf32>
    %1093 = vector.broadcast %1092 : vector<1x96xf32> to vector<32x96xf32>
    %1094 = arith.addf %1091, %1093 : vector<32x96xf32>
    %1095 = vector.extract_strided_slice %1094 {offsets = [0, 0], sizes = [16, 32], strides = [1, 1]} : vector<32x96xf32> to vector<16x32xf32>
    %cst_176 = arith.constant 0.353553385 : f32
    %1096 = vector.broadcast %cst_176 : f32 to vector<16x32xf32>
    %1097 = arith.mulf %1095, %1096 : vector<16x32xf32>
    %1098 = vector.extract_strided_slice %1094 {offsets = [0, 32], sizes = [16, 32], strides = [1, 1]} : vector<32x96xf32> to vector<16x32xf32>
    %1099 = vector.extract_strided_slice %1094 {offsets = [0, 64], sizes = [16, 32], strides = [1, 1]} : vector<32x96xf32> to vector<16x32xf32>
    %cst_177 = arith.constant 0.000000e+00 : f32
    %1100 = vector.broadcast %cst_177 : f32 to vector<16x32xf32>
    %1101 = vector.extract_strided_slice %1097 {offsets = [0, 0], sizes = [16, 8], strides = [1, 1]} : vector<16x32xf32> to vector<16x8xf32>
    %1102 = vector.extract_strided_slice %1098 {offsets = [0, 0], sizes = [16, 8], strides = [1, 1]} : vector<16x32xf32> to vector<16x8xf32>
    %1103 = tpu.transpose %1102, [1, 0] : vector<16x8xf32> -> vector<8x16xf32>
    %1104 = arith.truncf %1101 : vector<16x8xf32> to vector<16x8xbf16>
    %1105 = arith.truncf %1103 : vector<8x16xf32> to vector<8x16xbf16>
    %cst_178 = arith.constant dense<0.000000e+00> : vector<16x16xf32>
    %1106 = tpu.matmul %1104, %1105, %cst_178 {dimension_numbers = #tpu.dot_dimension_numbers<[1], [0], [0], [1], [0, 0, 1, 1], [], []>} : vector<16x8xbf16>, vector<8x16xbf16>, vector<16x16xf32> -> vector<16x16xf32>
    %cst_179 = arith.constant dense<0xFF800000> : vector<16xf32>
    %1107 = vector.multi_reduction <maximumf>, %1106, %cst_179 [1] : vector<16x16xf32> to vector<16xf32>
    %cst_180 = arith.constant 0xFF800000 : f32
    %1108 = vector.broadcast %cst_180 : f32 to vector<16xf32>
    %1109 = arith.maximumf %1108, %1107 : vector<16xf32>
    %1110 = vector.shape_cast %1109 : vector<16xf32> to vector<16x1xf32>
    %1111 = vector.broadcast %1110 : vector<16x1xf32> to vector<16x16xf32>
    %1112 = arith.subf %1106, %1111 : vector<16x16xf32>
    %1113 = math.exp %1112 : vector<16x16xf32>
    %cst_181 = arith.constant dense<0.000000e+00> : vector<16xf32>
    %1114 = vector.multi_reduction <add>, %1113, %cst_181 [1] : vector<16x16xf32> to vector<16xf32>
    %1115 = vector.shape_cast %1114 : vector<16xf32> to vector<16x1xf32>
    %1116 = vector.broadcast %1115 : vector<16x1xf32> to vector<16x16xf32>
    %1117 = arith.divf %1113, %1116 : vector<16x16xf32>
    %1118 = vector.extract_strided_slice %1099 {offsets = [0, 0], sizes = [16, 8], strides = [1, 1]} : vector<16x32xf32> to vector<16x8xf32>
    %1119 = arith.truncf %1117 : vector<16x16xf32> to vector<16x16xbf16>
    %1120 = arith.truncf %1118 : vector<16x8xf32> to vector<16x8xbf16>
    %cst_182 = arith.constant dense<0.000000e+00> : vector<16x8xf32>
    %1121 = tpu.matmul %1119, %1120, %cst_182 {dimension_numbers = #tpu.dot_dimension_numbers<[1], [0], [0], [1], [0, 0, 1, 1], [], []>} : vector<16x16xbf16>, vector<16x8xbf16>, vector<16x8xf32> -> vector<16x8xf32>
    %1122 = vector.extract_strided_slice %1087 {offsets = [0, 0], sizes = [8, 32], strides = [1, 1]} : vector<32x32xf32> to vector<8x32xf32>
    %1123 = arith.truncf %1121 : vector<16x8xf32> to vector<16x8xbf16>
    %1124 = arith.truncf %1122 : vector<8x32xf32> to vector<8x32xbf16>
    %cst_183 = arith.constant dense<0.000000e+00> : vector<16x32xf32>
    %1125 = tpu.matmul %1123, %1124, %cst_183 {dimension_numbers = #tpu.dot_dimension_numbers<[1], [0], [0], [1], [0, 0, 1, 1], [], []>} : vector<16x8xbf16>, vector<8x32xbf16>, vector<16x32xf32> -> vector<16x32xf32>
    %1126 = arith.addf %1100, %1125 : vector<16x32xf32>
    %1127 = vector.extract_strided_slice %1097 {offsets = [0, 8], sizes = [16, 8], strides = [1, 1]} : vector<16x32xf32> to vector<16x8xf32>
    %1128 = vector.extract_strided_slice %1098 {offsets = [0, 8], sizes = [16, 8], strides = [1, 1]} : vector<16x32xf32> to vector<16x8xf32>
    %1129 = tpu.transpose %1128, [1, 0] : vector<16x8xf32> -> vector<8x16xf32>
    %1130 = arith.truncf %1127 : vector<16x8xf32> to vector<16x8xbf16>
    %1131 = arith.truncf %1129 : vector<8x16xf32> to vector<8x16xbf16>
    %cst_184 = arith.constant dense<0.000000e+00> : vector<16x16xf32>
    %1132 = tpu.matmul %1130, %1131, %cst_184 {dimension_numbers = #tpu.dot_dimension_numbers<[1], [0], [0], [1], [0, 0, 1, 1], [], []>} : vector<16x8xbf16>, vector<8x16xbf16>, vector<16x16xf32> -> vector<16x16xf32>
    %cst_185 = arith.constant dense<0xFF800000> : vector<16xf32>
    %1133 = vector.multi_reduction <maximumf>, %1132, %cst_185 [1] : vector<16x16xf32> to vector<16xf32>
    %cst_186 = arith.constant 0xFF800000 : f32
    %1134 = vector.broadcast %cst_186 : f32 to vector<16xf32>
    %1135 = arith.maximumf %1134, %1133 : vector<16xf32>
    %1136 = vector.shape_cast %1135 : vector<16xf32> to vector<16x1xf32>
    %1137 = vector.broadcast %1136 : vector<16x1xf32> to vector<16x16xf32>
    %1138 = arith.subf %1132, %1137 : vector<16x16xf32>
    %1139 = math.exp %1138 : vector<16x16xf32>
    %cst_187 = arith.constant dense<0.000000e+00> : vector<16xf32>
    %1140 = vector.multi_reduction <add>, %1139, %cst_187 [1] : vector<16x16xf32> to vector<16xf32>
    %1141 = vector.shape_cast %1140 : vector<16xf32> to vector<16x1xf32>
    %1142 = vector.broadcast %1141 : vector<16x1xf32> to vector<16x16xf32>
    %1143 = arith.divf %1139, %1142 : vector<16x16xf32>
    %1144 = vector.extract_strided_slice %1099 {offsets = [0, 8], sizes = [16, 8], strides = [1, 1]} : vector<16x32xf32> to vector<16x8xf32>
    %1145 = arith.truncf %1143 : vector<16x16xf32> to vector<16x16xbf16>
    %1146 = arith.truncf %1144 : vector<16x8xf32> to vector<16x8xbf16>
    %cst_188 = arith.constant dense<0.000000e+00> : vector<16x8xf32>
    %1147 = tpu.matmul %1145, %1146, %cst_188 {dimension_numbers = #tpu.dot_dimension_numbers<[1], [0], [0], [1], [0, 0, 1, 1], [], []>} : vector<16x16xbf16>, vector<16x8xbf16>, vector<16x8xf32> -> vector<16x8xf32>
    %1148 = vector.extract_strided_slice %1087 {offsets = [8, 0], sizes = [8, 32], strides = [1, 1]} : vector<32x32xf32> to vector<8x32xf32>
    %1149 = arith.truncf %1147 : vector<16x8xf32> to vector<16x8xbf16>
    %1150 = arith.truncf %1148 : vector<8x32xf32> to vector<8x32xbf16>
    %cst_189 = arith.constant dense<0.000000e+00> : vector<16x32xf32>
    %1151 = tpu.matmul %1149, %1150, %cst_189 {dimension_numbers = #tpu.dot_dimension_numbers<[1], [0], [0], [1], [0, 0, 1, 1], [], []>} : vector<16x8xbf16>, vector<8x32xbf16>, vector<16x32xf32> -> vector<16x32xf32>
    %1152 = arith.addf %1126, %1151 : vector<16x32xf32>
    %1153 = vector.extract_strided_slice %1097 {offsets = [0, 16], sizes = [16, 8], strides = [1, 1]} : vector<16x32xf32> to vector<16x8xf32>
    %1154 = vector.extract_strided_slice %1098 {offsets = [0, 16], sizes = [16, 8], strides = [1, 1]} : vector<16x32xf32> to vector<16x8xf32>
    %1155 = tpu.transpose %1154, [1, 0] : vector<16x8xf32> -> vector<8x16xf32>
    %1156 = arith.truncf %1153 : vector<16x8xf32> to vector<16x8xbf16>
    %1157 = arith.truncf %1155 : vector<8x16xf32> to vector<8x16xbf16>
    %cst_190 = arith.constant dense<0.000000e+00> : vector<16x16xf32>
    %1158 = tpu.matmul %1156, %1157, %cst_190 {dimension_numbers = #tpu.dot_dimension_numbers<[1], [0], [0], [1], [0, 0, 1, 1], [], []>} : vector<16x8xbf16>, vector<8x16xbf16>, vector<16x16xf32> -> vector<16x16xf32>
    %cst_191 = arith.constant dense<0xFF800000> : vector<16xf32>
    %1159 = vector.multi_reduction <maximumf>, %1158, %cst_191 [1] : vector<16x16xf32> to vector<16xf32>
    %cst_192 = arith.constant 0xFF800000 : f32
    %1160 = vector.broadcast %cst_192 : f32 to vector<16xf32>
    %1161 = arith.maximumf %1160, %1159 : vector<16xf32>
    %1162 = vector.shape_cast %1161 : vector<16xf32> to vector<16x1xf32>
    %1163 = vector.broadcast %1162 : vector<16x1xf32> to vector<16x16xf32>
    %1164 = arith.subf %1158, %1163 : vector<16x16xf32>
    %1165 = math.exp %1164 : vector<16x16xf32>
    %cst_193 = arith.constant dense<0.000000e+00> : vector<16xf32>
    %1166 = vector.multi_reduction <add>, %1165, %cst_193 [1] : vector<16x16xf32> to vector<16xf32>
    %1167 = vector.shape_cast %1166 : vector<16xf32> to vector<16x1xf32>
    %1168 = vector.broadcast %1167 : vector<16x1xf32> to vector<16x16xf32>
    %1169 = arith.divf %1165, %1168 : vector<16x16xf32>
    %1170 = vector.extract_strided_slice %1099 {offsets = [0, 16], sizes = [16, 8], strides = [1, 1]} : vector<16x32xf32> to vector<16x8xf32>
    %1171 = arith.truncf %1169 : vector<16x16xf32> to vector<16x16xbf16>
    %1172 = arith.truncf %1170 : vector<16x8xf32> to vector<16x8xbf16>
    %cst_194 = arith.constant dense<0.000000e+00> : vector<16x8xf32>
    %1173 = tpu.matmul %1171, %1172, %cst_194 {dimension_numbers = #tpu.dot_dimension_numbers<[1], [0], [0], [1], [0, 0, 1, 1], [], []>} : vector<16x16xbf16>, vector<16x8xbf16>, vector<16x8xf32> -> vector<16x8xf32>
    %1174 = vector.extract_strided_slice %1087 {offsets = [16, 0], sizes = [8, 32], strides = [1, 1]} : vector<32x32xf32> to vector<8x32xf32>
    %1175 = arith.truncf %1173 : vector<16x8xf32> to vector<16x8xbf16>
    %1176 = arith.truncf %1174 : vector<8x32xf32> to vector<8x32xbf16>
    %cst_195 = arith.constant dense<0.000000e+00> : vector<16x32xf32>
    %1177 = tpu.matmul %1175, %1176, %cst_195 {dimension_numbers = #tpu.dot_dimension_numbers<[1], [0], [0], [1], [0, 0, 1, 1], [], []>} : vector<16x8xbf16>, vector<8x32xbf16>, vector<16x32xf32> -> vector<16x32xf32>
    %1178 = arith.addf %1152, %1177 : vector<16x32xf32>
    %1179 = vector.extract_strided_slice %1097 {offsets = [0, 24], sizes = [16, 8], strides = [1, 1]} : vector<16x32xf32> to vector<16x8xf32>
    %1180 = vector.extract_strided_slice %1098 {offsets = [0, 24], sizes = [16, 8], strides = [1, 1]} : vector<16x32xf32> to vector<16x8xf32>
    %1181 = tpu.transpose %1180, [1, 0] : vector<16x8xf32> -> vector<8x16xf32>
    %1182 = arith.truncf %1179 : vector<16x8xf32> to vector<16x8xbf16>
    %1183 = arith.truncf %1181 : vector<8x16xf32> to vector<8x16xbf16>
    %cst_196 = arith.constant dense<0.000000e+00> : vector<16x16xf32>
    %1184 = tpu.matmul %1182, %1183, %cst_196 {dimension_numbers = #tpu.dot_dimension_numbers<[1], [0], [0], [1], [0, 0, 1, 1], [], []>} : vector<16x8xbf16>, vector<8x16xbf16>, vector<16x16xf32> -> vector<16x16xf32>
    %cst_197 = arith.constant dense<0xFF800000> : vector<16xf32>
    %1185 = vector.multi_reduction <maximumf>, %1184, %cst_197 [1] : vector<16x16xf32> to vector<16xf32>
    %cst_198 = arith.constant 0xFF800000 : f32
    %1186 = vector.broadcast %cst_198 : f32 to vector<16xf32>
    %1187 = arith.maximumf %1186, %1185 : vector<16xf32>
    %1188 = vector.shape_cast %1187 : vector<16xf32> to vector<16x1xf32>
    %1189 = vector.broadcast %1188 : vector<16x1xf32> to vector<16x16xf32>
    %1190 = arith.subf %1184, %1189 : vector<16x16xf32>
    %1191 = math.exp %1190 : vector<16x16xf32>
    %cst_199 = arith.constant dense<0.000000e+00> : vector<16xf32>
    %1192 = vector.multi_reduction <add>, %1191, %cst_199 [1] : vector<16x16xf32> to vector<16xf32>
    %1193 = vector.shape_cast %1192 : vector<16xf32> to vector<16x1xf32>
    %1194 = vector.broadcast %1193 : vector<16x1xf32> to vector<16x16xf32>
    %1195 = arith.divf %1191, %1194 : vector<16x16xf32>
    %1196 = vector.extract_strided_slice %1099 {offsets = [0, 24], sizes = [16, 8], strides = [1, 1]} : vector<16x32xf32> to vector<16x8xf32>
    %1197 = arith.truncf %1195 : vector<16x16xf32> to vector<16x16xbf16>
    %1198 = arith.truncf %1196 : vector<16x8xf32> to vector<16x8xbf16>
    %cst_200 = arith.constant dense<0.000000e+00> : vector<16x8xf32>
    %1199 = tpu.matmul %1197, %1198, %cst_200 {dimension_numbers = #tpu.dot_dimension_numbers<[1], [0], [0], [1], [0, 0, 1, 1], [], []>} : vector<16x16xbf16>, vector<16x8xbf16>, vector<16x8xf32> -> vector<16x8xf32>
    %1200 = vector.extract_strided_slice %1087 {offsets = [24, 0], sizes = [8, 32], strides = [1, 1]} : vector<32x32xf32> to vector<8x32xf32>
    %1201 = arith.truncf %1199 : vector<16x8xf32> to vector<16x8xbf16>
    %1202 = arith.truncf %1200 : vector<8x32xf32> to vector<8x32xbf16>
    %cst_201 = arith.constant dense<0.000000e+00> : vector<16x32xf32>
    %1203 = tpu.matmul %1201, %1202, %cst_201 {dimension_numbers = #tpu.dot_dimension_numbers<[1], [0], [0], [1], [0, 0, 1, 1], [], []>} : vector<16x8xbf16>, vector<8x32xbf16>, vector<16x32xf32> -> vector<16x32xf32>
    %1204 = arith.addf %1178, %1203 : vector<16x32xf32>
    %1205 = vector.extract_strided_slice %1094 {offsets = [16, 0], sizes = [16, 32], strides = [1, 1]} : vector<32x96xf32> to vector<16x32xf32>
    %cst_202 = arith.constant 0.353553385 : f32
    %1206 = vector.broadcast %cst_202 : f32 to vector<16x32xf32>
    %1207 = arith.mulf %1205, %1206 : vector<16x32xf32>
    %1208 = vector.extract_strided_slice %1094 {offsets = [16, 32], sizes = [16, 32], strides = [1, 1]} : vector<32x96xf32> to vector<16x32xf32>
    %1209 = vector.extract_strided_slice %1094 {offsets = [16, 64], sizes = [16, 32], strides = [1, 1]} : vector<32x96xf32> to vector<16x32xf32>
    %cst_203 = arith.constant 0.000000e+00 : f32
    %1210 = vector.broadcast %cst_203 : f32 to vector<16x32xf32>
    %1211 = vector.extract_strided_slice %1207 {offsets = [0, 0], sizes = [16, 8], strides = [1, 1]} : vector<16x32xf32> to vector<16x8xf32>
    %1212 = vector.extract_strided_slice %1208 {offsets = [0, 0], sizes = [16, 8], strides = [1, 1]} : vector<16x32xf32> to vector<16x8xf32>
    %1213 = tpu.transpose %1212, [1, 0] : vector<16x8xf32> -> vector<8x16xf32>
    %1214 = arith.truncf %1211 : vector<16x8xf32> to vector<16x8xbf16>
    %1215 = arith.truncf %1213 : vector<8x16xf32> to vector<8x16xbf16>
    %cst_204 = arith.constant dense<0.000000e+00> : vector<16x16xf32>
    %1216 = tpu.matmul %1214, %1215, %cst_204 {dimension_numbers = #tpu.dot_dimension_numbers<[1], [0], [0], [1], [0, 0, 1, 1], [], []>} : vector<16x8xbf16>, vector<8x16xbf16>, vector<16x16xf32> -> vector<16x16xf32>
    %cst_205 = arith.constant dense<0xFF800000> : vector<16xf32>
    %1217 = vector.multi_reduction <maximumf>, %1216, %cst_205 [1] : vector<16x16xf32> to vector<16xf32>
    %cst_206 = arith.constant 0xFF800000 : f32
    %1218 = vector.broadcast %cst_206 : f32 to vector<16xf32>
    %1219 = arith.maximumf %1218, %1217 : vector<16xf32>
    %1220 = vector.shape_cast %1219 : vector<16xf32> to vector<16x1xf32>
    %1221 = vector.broadcast %1220 : vector<16x1xf32> to vector<16x16xf32>
    %1222 = arith.subf %1216, %1221 : vector<16x16xf32>
    %1223 = math.exp %1222 : vector<16x16xf32>
    %cst_207 = arith.constant dense<0.000000e+00> : vector<16xf32>
    %1224 = vector.multi_reduction <add>, %1223, %cst_207 [1] : vector<16x16xf32> to vector<16xf32>
    %1225 = vector.shape_cast %1224 : vector<16xf32> to vector<16x1xf32>
    %1226 = vector.broadcast %1225 : vector<16x1xf32> to vector<16x16xf32>
    %1227 = arith.divf %1223, %1226 : vector<16x16xf32>
    %1228 = vector.extract_strided_slice %1209 {offsets = [0, 0], sizes = [16, 8], strides = [1, 1]} : vector<16x32xf32> to vector<16x8xf32>
    %1229 = arith.truncf %1227 : vector<16x16xf32> to vector<16x16xbf16>
    %1230 = arith.truncf %1228 : vector<16x8xf32> to vector<16x8xbf16>
    %cst_208 = arith.constant dense<0.000000e+00> : vector<16x8xf32>
    %1231 = tpu.matmul %1229, %1230, %cst_208 {dimension_numbers = #tpu.dot_dimension_numbers<[1], [0], [0], [1], [0, 0, 1, 1], [], []>} : vector<16x16xbf16>, vector<16x8xbf16>, vector<16x8xf32> -> vector<16x8xf32>
    %1232 = vector.extract_strided_slice %1087 {offsets = [0, 0], sizes = [8, 32], strides = [1, 1]} : vector<32x32xf32> to vector<8x32xf32>
    %1233 = arith.truncf %1231 : vector<16x8xf32> to vector<16x8xbf16>
    %1234 = arith.truncf %1232 : vector<8x32xf32> to vector<8x32xbf16>
    %cst_209 = arith.constant dense<0.000000e+00> : vector<16x32xf32>
    %1235 = tpu.matmul %1233, %1234, %cst_209 {dimension_numbers = #tpu.dot_dimension_numbers<[1], [0], [0], [1], [0, 0, 1, 1], [], []>} : vector<16x8xbf16>, vector<8x32xbf16>, vector<16x32xf32> -> vector<16x32xf32>
    %1236 = arith.addf %1210, %1235 : vector<16x32xf32>
    %1237 = vector.extract_strided_slice %1207 {offsets = [0, 8], sizes = [16, 8], strides = [1, 1]} : vector<16x32xf32> to vector<16x8xf32>
    %1238 = vector.extract_strided_slice %1208 {offsets = [0, 8], sizes = [16, 8], strides = [1, 1]} : vector<16x32xf32> to vector<16x8xf32>
    %1239 = tpu.transpose %1238, [1, 0] : vector<16x8xf32> -> vector<8x16xf32>
    %1240 = arith.truncf %1237 : vector<16x8xf32> to vector<16x8xbf16>
    %1241 = arith.truncf %1239 : vector<8x16xf32> to vector<8x16xbf16>
    %cst_210 = arith.constant dense<0.000000e+00> : vector<16x16xf32>
    %1242 = tpu.matmul %1240, %1241, %cst_210 {dimension_numbers = #tpu.dot_dimension_numbers<[1], [0], [0], [1], [0, 0, 1, 1], [], []>} : vector<16x8xbf16>, vector<8x16xbf16>, vector<16x16xf32> -> vector<16x16xf32>
    %cst_211 = arith.constant dense<0xFF800000> : vector<16xf32>
    %1243 = vector.multi_reduction <maximumf>, %1242, %cst_211 [1] : vector<16x16xf32> to vector<16xf32>
    %cst_212 = arith.constant 0xFF800000 : f32
    %1244 = vector.broadcast %cst_212 : f32 to vector<16xf32>
    %1245 = arith.maximumf %1244, %1243 : vector<16xf32>
    %1246 = vector.shape_cast %1245 : vector<16xf32> to vector<16x1xf32>
    %1247 = vector.broadcast %1246 : vector<16x1xf32> to vector<16x16xf32>
    %1248 = arith.subf %1242, %1247 : vector<16x16xf32>
    %1249 = math.exp %1248 : vector<16x16xf32>
    %cst_213 = arith.constant dense<0.000000e+00> : vector<16xf32>
    %1250 = vector.multi_reduction <add>, %1249, %cst_213 [1] : vector<16x16xf32> to vector<16xf32>
    %1251 = vector.shape_cast %1250 : vector<16xf32> to vector<16x1xf32>
    %1252 = vector.broadcast %1251 : vector<16x1xf32> to vector<16x16xf32>
    %1253 = arith.divf %1249, %1252 : vector<16x16xf32>
    %1254 = vector.extract_strided_slice %1209 {offsets = [0, 8], sizes = [16, 8], strides = [1, 1]} : vector<16x32xf32> to vector<16x8xf32>
    %1255 = arith.truncf %1253 : vector<16x16xf32> to vector<16x16xbf16>
    %1256 = arith.truncf %1254 : vector<16x8xf32> to vector<16x8xbf16>
    %cst_214 = arith.constant dense<0.000000e+00> : vector<16x8xf32>
    %1257 = tpu.matmul %1255, %1256, %cst_214 {dimension_numbers = #tpu.dot_dimension_numbers<[1], [0], [0], [1], [0, 0, 1, 1], [], []>} : vector<16x16xbf16>, vector<16x8xbf16>, vector<16x8xf32> -> vector<16x8xf32>
    %1258 = vector.extract_strided_slice %1087 {offsets = [8, 0], sizes = [8, 32], strides = [1, 1]} : vector<32x32xf32> to vector<8x32xf32>
    %1259 = arith.truncf %1257 : vector<16x8xf32> to vector<16x8xbf16>
    %1260 = arith.truncf %1258 : vector<8x32xf32> to vector<8x32xbf16>
    %cst_215 = arith.constant dense<0.000000e+00> : vector<16x32xf32>
    %1261 = tpu.matmul %1259, %1260, %cst_215 {dimension_numbers = #tpu.dot_dimension_numbers<[1], [0], [0], [1], [0, 0, 1, 1], [], []>} : vector<16x8xbf16>, vector<8x32xbf16>, vector<16x32xf32> -> vector<16x32xf32>
    %1262 = arith.addf %1236, %1261 : vector<16x32xf32>
    %1263 = vector.extract_strided_slice %1207 {offsets = [0, 16], sizes = [16, 8], strides = [1, 1]} : vector<16x32xf32> to vector<16x8xf32>
    %1264 = vector.extract_strided_slice %1208 {offsets = [0, 16], sizes = [16, 8], strides = [1, 1]} : vector<16x32xf32> to vector<16x8xf32>
    %1265 = tpu.transpose %1264, [1, 0] : vector<16x8xf32> -> vector<8x16xf32>
    %1266 = arith.truncf %1263 : vector<16x8xf32> to vector<16x8xbf16>
    %1267 = arith.truncf %1265 : vector<8x16xf32> to vector<8x16xbf16>
    %cst_216 = arith.constant dense<0.000000e+00> : vector<16x16xf32>
    %1268 = tpu.matmul %1266, %1267, %cst_216 {dimension_numbers = #tpu.dot_dimension_numbers<[1], [0], [0], [1], [0, 0, 1, 1], [], []>} : vector<16x8xbf16>, vector<8x16xbf16>, vector<16x16xf32> -> vector<16x16xf32>
    %cst_217 = arith.constant dense<0xFF800000> : vector<16xf32>
    %1269 = vector.multi_reduction <maximumf>, %1268, %cst_217 [1] : vector<16x16xf32> to vector<16xf32>
    %cst_218 = arith.constant 0xFF800000 : f32
    %1270 = vector.broadcast %cst_218 : f32 to vector<16xf32>
    %1271 = arith.maximumf %1270, %1269 : vector<16xf32>
    %1272 = vector.shape_cast %1271 : vector<16xf32> to vector<16x1xf32>
    %1273 = vector.broadcast %1272 : vector<16x1xf32> to vector<16x16xf32>
    %1274 = arith.subf %1268, %1273 : vector<16x16xf32>
    %1275 = math.exp %1274 : vector<16x16xf32>
    %cst_219 = arith.constant dense<0.000000e+00> : vector<16xf32>
    %1276 = vector.multi_reduction <add>, %1275, %cst_219 [1] : vector<16x16xf32> to vector<16xf32>
    %1277 = vector.shape_cast %1276 : vector<16xf32> to vector<16x1xf32>
    %1278 = vector.broadcast %1277 : vector<16x1xf32> to vector<16x16xf32>
    %1279 = arith.divf %1275, %1278 : vector<16x16xf32>
    %1280 = vector.extract_strided_slice %1209 {offsets = [0, 16], sizes = [16, 8], strides = [1, 1]} : vector<16x32xf32> to vector<16x8xf32>
    %1281 = arith.truncf %1279 : vector<16x16xf32> to vector<16x16xbf16>
    %1282 = arith.truncf %1280 : vector<16x8xf32> to vector<16x8xbf16>
    %cst_220 = arith.constant dense<0.000000e+00> : vector<16x8xf32>
    %1283 = tpu.matmul %1281, %1282, %cst_220 {dimension_numbers = #tpu.dot_dimension_numbers<[1], [0], [0], [1], [0, 0, 1, 1], [], []>} : vector<16x16xbf16>, vector<16x8xbf16>, vector<16x8xf32> -> vector<16x8xf32>
    %1284 = vector.extract_strided_slice %1087 {offsets = [16, 0], sizes = [8, 32], strides = [1, 1]} : vector<32x32xf32> to vector<8x32xf32>
    %1285 = arith.truncf %1283 : vector<16x8xf32> to vector<16x8xbf16>
    %1286 = arith.truncf %1284 : vector<8x32xf32> to vector<8x32xbf16>
    %cst_221 = arith.constant dense<0.000000e+00> : vector<16x32xf32>
    %1287 = tpu.matmul %1285, %1286, %cst_221 {dimension_numbers = #tpu.dot_dimension_numbers<[1], [0], [0], [1], [0, 0, 1, 1], [], []>} : vector<16x8xbf16>, vector<8x32xbf16>, vector<16x32xf32> -> vector<16x32xf32>
    %1288 = arith.addf %1262, %1287 : vector<16x32xf32>
    %1289 = vector.extract_strided_slice %1207 {offsets = [0, 24], sizes = [16, 8], strides = [1, 1]} : vector<16x32xf32> to vector<16x8xf32>
    %1290 = vector.extract_strided_slice %1208 {offsets = [0, 24], sizes = [16, 8], strides = [1, 1]} : vector<16x32xf32> to vector<16x8xf32>
    %1291 = tpu.transpose %1290, [1, 0] : vector<16x8xf32> -> vector<8x16xf32>
    %1292 = arith.truncf %1289 : vector<16x8xf32> to vector<16x8xbf16>
    %1293 = arith.truncf %1291 : vector<8x16xf32> to vector<8x16xbf16>
    %cst_222 = arith.constant dense<0.000000e+00> : vector<16x16xf32>
    %1294 = tpu.matmul %1292, %1293, %cst_222 {dimension_numbers = #tpu.dot_dimension_numbers<[1], [0], [0], [1], [0, 0, 1, 1], [], []>} : vector<16x8xbf16>, vector<8x16xbf16>, vector<16x16xf32> -> vector<16x16xf32>
    %cst_223 = arith.constant dense<0xFF800000> : vector<16xf32>
    %1295 = vector.multi_reduction <maximumf>, %1294, %cst_223 [1] : vector<16x16xf32> to vector<16xf32>
    %cst_224 = arith.constant 0xFF800000 : f32
    %1296 = vector.broadcast %cst_224 : f32 to vector<16xf32>
    %1297 = arith.maximumf %1296, %1295 : vector<16xf32>
    %1298 = vector.shape_cast %1297 : vector<16xf32> to vector<16x1xf32>
    %1299 = vector.broadcast %1298 : vector<16x1xf32> to vector<16x16xf32>
    %1300 = arith.subf %1294, %1299 : vector<16x16xf32>
    %1301 = math.exp %1300 : vector<16x16xf32>
    %cst_225 = arith.constant dense<0.000000e+00> : vector<16xf32>
    %1302 = vector.multi_reduction <add>, %1301, %cst_225 [1] : vector<16x16xf32> to vector<16xf32>
    %1303 = vector.shape_cast %1302 : vector<16xf32> to vector<16x1xf32>
    %1304 = vector.broadcast %1303 : vector<16x1xf32> to vector<16x16xf32>
    %1305 = arith.divf %1301, %1304 : vector<16x16xf32>
    %1306 = vector.extract_strided_slice %1209 {offsets = [0, 24], sizes = [16, 8], strides = [1, 1]} : vector<16x32xf32> to vector<16x8xf32>
    %1307 = arith.truncf %1305 : vector<16x16xf32> to vector<16x16xbf16>
    %1308 = arith.truncf %1306 : vector<16x8xf32> to vector<16x8xbf16>
    %cst_226 = arith.constant dense<0.000000e+00> : vector<16x8xf32>
    %1309 = tpu.matmul %1307, %1308, %cst_226 {dimension_numbers = #tpu.dot_dimension_numbers<[1], [0], [0], [1], [0, 0, 1, 1], [], []>} : vector<16x16xbf16>, vector<16x8xbf16>, vector<16x8xf32> -> vector<16x8xf32>
    %1310 = vector.extract_strided_slice %1087 {offsets = [24, 0], sizes = [8, 32], strides = [1, 1]} : vector<32x32xf32> to vector<8x32xf32>
    %1311 = arith.truncf %1309 : vector<16x8xf32> to vector<16x8xbf16>
    %1312 = arith.truncf %1310 : vector<8x32xf32> to vector<8x32xbf16>
    %cst_227 = arith.constant dense<0.000000e+00> : vector<16x32xf32>
    %1313 = tpu.matmul %1311, %1312, %cst_227 {dimension_numbers = #tpu.dot_dimension_numbers<[1], [0], [0], [1], [0, 0, 1, 1], [], []>} : vector<16x8xbf16>, vector<8x32xbf16>, vector<16x32xf32> -> vector<16x32xf32>
    %1314 = arith.addf %1288, %1313 : vector<16x32xf32>
    %1315 = tpu.concatenate %1204, %1314 in 0 : vector<16x32xf32>, vector<16x32xf32> -> vector<32x32xf32>
    %c0_228 = arith.constant 0 : index
    %c0_229 = arith.constant 0 : index
    %1316 = vector.load %arg17[%c0_228, %c0_229] : memref<1x32xf32, #tpu.memory_space<vmem>>, vector<1x32xf32>
    %1317 = vector.broadcast %1316 : vector<1x32xf32> to vector<32x32xf32>
    %1318 = arith.addf %1315, %1317 : vector<32x32xf32>
    %c0_230 = arith.constant 0 : index
    %c0_231 = arith.constant 0 : index
    %c0_232 = arith.constant 0 : index
    %1319 = vector.load %arg18[%c0_230, %c0_231, %c0_232] : memref<2x1x32xf32, #tpu.memory_space<vmem>>, vector<2x1x32xf32>
    %1320 = arith.addf %1086, %1318 : vector<32x32xf32>
    %1321 = vector.extract_strided_slice %1319 {offsets = [0, 0, 0], sizes = [1, 1, 32], strides = [1, 1, 1]} : vector<2x1x32xf32> to vector<1x1x32xf32>
    %1322 = vector.shape_cast %1321 : vector<1x1x32xf32> to vector<1x32xf32>
    %1323 = vector.extract_strided_slice %1319 {offsets = [1, 0, 0], sizes = [1, 1, 32], strides = [1, 1, 1]} : vector<2x1x32xf32> to vector<1x1x32xf32>
    %1324 = vector.shape_cast %1323 : vector<1x1x32xf32> to vector<1x32xf32>
    %cst_233 = arith.constant dense<0.000000e+00> : vector<32xf32>
    %1325 = vector.multi_reduction <add>, %1320, %cst_233 [1] : vector<32x32xf32> to vector<32xf32>
    %1326 = vector.shape_cast %1325 : vector<32xf32> to vector<32x1xf32>
    %cst_234 = arith.constant 3.200000e+01 : f32
    %1327 = vector.broadcast %cst_234 : f32 to vector<32x1xf32>
    %1328 = arith.divf %1326, %1327 : vector<32x1xf32>
    %1329 = vector.broadcast %1328 : vector<32x1xf32> to vector<32x32xf32>
    %1330 = arith.subf %1320, %1329 : vector<32x32xf32>
    %1331 = arith.mulf %1330, %1330 : vector<32x32xf32>
    %cst_235 = arith.constant dense<0.000000e+00> : vector<32xf32>
    %1332 = vector.multi_reduction <add>, %1331, %cst_235 [1] : vector<32x32xf32> to vector<32xf32>
    %1333 = vector.shape_cast %1332 : vector<32xf32> to vector<32x1xf32>
    %cst_236 = arith.constant 3.200000e+01 : f32
    %1334 = vector.broadcast %cst_236 : f32 to vector<32x1xf32>
    %1335 = arith.divf %1333, %1334 : vector<32x1xf32>
    %1336 = vector.broadcast %1328 : vector<32x1xf32> to vector<32x32xf32>
    %1337 = arith.subf %1320, %1336 : vector<32x32xf32>
    %cst_237 = arith.constant 9.99999974E-6 : f32
    %1338 = vector.broadcast %cst_237 : f32 to vector<32x1xf32>
    %1339 = arith.addf %1335, %1338 : vector<32x1xf32>
    %1340 = math.rsqrt %1339 : vector<32x1xf32>
    %1341 = vector.broadcast %1340 : vector<32x1xf32> to vector<32x32xf32>
    %1342 = arith.mulf %1337, %1341 : vector<32x32xf32>
    %1343 = vector.broadcast %1322 : vector<1x32xf32> to vector<32x32xf32>
    %1344 = arith.mulf %1342, %1343 : vector<32x32xf32>
    %1345 = vector.broadcast %1324 : vector<1x32xf32> to vector<32x32xf32>
    %1346 = arith.addf %1344, %1345 : vector<32x32xf32>
    %c0_238 = arith.constant 0 : index
    %c0_239 = arith.constant 0 : index
    %1347 = vector.load %arg19[%c0_238, %c0_239] : memref<32x64xf32, #tpu.memory_space<vmem>>, vector<32x64xf32>
    %1348 = arith.truncf %1346 : vector<32x32xf32> to vector<32x32xbf16>
    %1349 = arith.truncf %1347 : vector<32x64xf32> to vector<32x64xbf16>
    %cst_240 = arith.constant dense<0.000000e+00> : vector<32x64xf32>
    %1350 = tpu.matmul %1348, %1349, %cst_240 {dimension_numbers = #tpu.dot_dimension_numbers<[1], [0], [0], [1], [0, 0, 1, 1], [], []>} : vector<32x32xbf16>, vector<32x64xbf16>, vector<32x64xf32> -> vector<32x64xf32>
    %c0_241 = arith.constant 0 : index
    %c0_242 = arith.constant 0 : index
    %1351 = vector.load %arg20[%c0_241, %c0_242] : memref<1x64xf32, #tpu.memory_space<vmem>>, vector<1x64xf32>
    %1352 = vector.broadcast %1351 : vector<1x64xf32> to vector<32x64xf32>
    %1353 = arith.addf %1350, %1352 : vector<32x64xf32>
    %cst_243 = arith.constant 0.000000e+00 : f32
    %1354 = vector.broadcast %cst_243 : f32 to vector<32x64xf32>
    %1355 = arith.maximumf %1353, %1354 : vector<32x64xf32>
    %c0_244 = arith.constant 0 : index
    %c0_245 = arith.constant 0 : index
    %1356 = vector.load %arg21[%c0_244, %c0_245] : memref<64x32xf32, #tpu.memory_space<vmem>>, vector<64x32xf32>
    %1357 = arith.truncf %1355 : vector<32x64xf32> to vector<32x64xbf16>
    %1358 = arith.truncf %1356 : vector<64x32xf32> to vector<64x32xbf16>
    %cst_246 = arith.constant dense<0.000000e+00> : vector<32x32xf32>
    %1359 = tpu.matmul %1357, %1358, %cst_246 {dimension_numbers = #tpu.dot_dimension_numbers<[1], [0], [0], [1], [0, 0, 1, 1], [], []>} : vector<32x64xbf16>, vector<64x32xbf16>, vector<32x32xf32> -> vector<32x32xf32>
    %c0_247 = arith.constant 0 : index
    %c0_248 = arith.constant 0 : index
    %1360 = vector.load %arg22[%c0_247, %c0_248] : memref<1x32xf32, #tpu.memory_space<vmem>>, vector<1x32xf32>
    %1361 = vector.broadcast %1360 : vector<1x32xf32> to vector<32x32xf32>
    %1362 = arith.addf %1359, %1361 : vector<32x32xf32>
    %c0_249 = arith.constant 0 : index
    %c0_250 = arith.constant 0 : index
    %c0_251 = arith.constant 0 : index
    %1363 = vector.load %arg23[%c0_249, %c0_250, %c0_251] : memref<2x1x32xf32, #tpu.memory_space<vmem>>, vector<2x1x32xf32>
    %1364 = arith.addf %1346, %1362 : vector<32x32xf32>
    %1365 = vector.extract_strided_slice %1363 {offsets = [0, 0, 0], sizes = [1, 1, 32], strides = [1, 1, 1]} : vector<2x1x32xf32> to vector<1x1x32xf32>
    %1366 = vector.shape_cast %1365 : vector<1x1x32xf32> to vector<1x32xf32>
    %1367 = vector.extract_strided_slice %1363 {offsets = [1, 0, 0], sizes = [1, 1, 32], strides = [1, 1, 1]} : vector<2x1x32xf32> to vector<1x1x32xf32>
    %1368 = vector.shape_cast %1367 : vector<1x1x32xf32> to vector<1x32xf32>
    %cst_252 = arith.constant dense<0.000000e+00> : vector<32xf32>
    %1369 = vector.multi_reduction <add>, %1364, %cst_252 [1] : vector<32x32xf32> to vector<32xf32>
    %1370 = vector.shape_cast %1369 : vector<32xf32> to vector<32x1xf32>
    %cst_253 = arith.constant 3.200000e+01 : f32
    %1371 = vector.broadcast %cst_253 : f32 to vector<32x1xf32>
    %1372 = arith.divf %1370, %1371 : vector<32x1xf32>
    %1373 = vector.broadcast %1372 : vector<32x1xf32> to vector<32x32xf32>
    %1374 = arith.subf %1364, %1373 : vector<32x32xf32>
    %1375 = arith.mulf %1374, %1374 : vector<32x32xf32>
    %cst_254 = arith.constant dense<0.000000e+00> : vector<32xf32>
    %1376 = vector.multi_reduction <add>, %1375, %cst_254 [1] : vector<32x32xf32> to vector<32xf32>
    %1377 = vector.shape_cast %1376 : vector<32xf32> to vector<32x1xf32>
    %cst_255 = arith.constant 3.200000e+01 : f32
    %1378 = vector.broadcast %cst_255 : f32 to vector<32x1xf32>
    %1379 = arith.divf %1377, %1378 : vector<32x1xf32>
    %1380 = vector.broadcast %1372 : vector<32x1xf32> to vector<32x32xf32>
    %1381 = arith.subf %1364, %1380 : vector<32x32xf32>
    %cst_256 = arith.constant 9.99999974E-6 : f32
    %1382 = vector.broadcast %cst_256 : f32 to vector<32x1xf32>
    %1383 = arith.addf %1379, %1382 : vector<32x1xf32>
    %1384 = math.rsqrt %1383 : vector<32x1xf32>
    %1385 = vector.broadcast %1384 : vector<32x1xf32> to vector<32x32xf32>
    %1386 = arith.mulf %1381, %1385 : vector<32x32xf32>
    %1387 = vector.broadcast %1366 : vector<1x32xf32> to vector<32x32xf32>
    %1388 = arith.mulf %1386, %1387 : vector<32x32xf32>
    %1389 = vector.broadcast %1368 : vector<1x32xf32> to vector<32x32xf32>
    %1390 = arith.addf %1388, %1389 : vector<32x32xf32>
    %c0_257 = arith.constant 0 : index
    %c0_258 = arith.constant 0 : index
    %1391 = vector.load %arg26[%c0_257, %c0_258] : memref<32x32xf32, #tpu.memory_space<vmem>>, vector<32x32xf32>
    %c0_259 = arith.constant 0 : index
    %c0_260 = arith.constant 0 : index
    %1392 = vector.load %arg24[%c0_259, %c0_260] : memref<32x96xf32, #tpu.memory_space<vmem>>, vector<32x96xf32>
    %1393 = arith.truncf %1390 : vector<32x32xf32> to vector<32x32xbf16>
    %1394 = arith.truncf %1392 : vector<32x96xf32> to vector<32x96xbf16>
    %cst_261 = arith.constant dense<0.000000e+00> : vector<32x96xf32>
    %1395 = tpu.matmul %1393, %1394, %cst_261 {dimension_numbers = #tpu.dot_dimension_numbers<[1], [0], [0], [1], [0, 0, 1, 1], [], []>} : vector<32x32xbf16>, vector<32x96xbf16>, vector<32x96xf32> -> vector<32x96xf32>
    %c0_262 = arith.constant 0 : index
    %c0_263 = arith.constant 0 : index
    %1396 = vector.load %arg25[%c0_262, %c0_263] : memref<1x96xf32, #tpu.memory_space<vmem>>, vector<1x96xf32>
    %1397 = vector.broadcast %1396 : vector<1x96xf32> to vector<32x96xf32>
    %1398 = arith.addf %1395, %1397 : vector<32x96xf32>
    %1399 = vector.extract_strided_slice %1398 {offsets = [0, 0], sizes = [16, 32], strides = [1, 1]} : vector<32x96xf32> to vector<16x32xf32>
    %cst_264 = arith.constant 0.353553385 : f32
    %1400 = vector.broadcast %cst_264 : f32 to vector<16x32xf32>
    %1401 = arith.mulf %1399, %1400 : vector<16x32xf32>
    %1402 = vector.extract_strided_slice %1398 {offsets = [0, 32], sizes = [16, 32], strides = [1, 1]} : vector<32x96xf32> to vector<16x32xf32>
    %1403 = vector.extract_strided_slice %1398 {offsets = [0, 64], sizes = [16, 32], strides = [1, 1]} : vector<32x96xf32> to vector<16x32xf32>
    %cst_265 = arith.constant 0.000000e+00 : f32
    %1404 = vector.broadcast %cst_265 : f32 to vector<16x32xf32>
    %1405 = vector.extract_strided_slice %1401 {offsets = [0, 0], sizes = [16, 8], strides = [1, 1]} : vector<16x32xf32> to vector<16x8xf32>
    %1406 = vector.extract_strided_slice %1402 {offsets = [0, 0], sizes = [16, 8], strides = [1, 1]} : vector<16x32xf32> to vector<16x8xf32>
    %1407 = tpu.transpose %1406, [1, 0] : vector<16x8xf32> -> vector<8x16xf32>
    %1408 = arith.truncf %1405 : vector<16x8xf32> to vector<16x8xbf16>
    %1409 = arith.truncf %1407 : vector<8x16xf32> to vector<8x16xbf16>
    %cst_266 = arith.constant dense<0.000000e+00> : vector<16x16xf32>
    %1410 = tpu.matmul %1408, %1409, %cst_266 {dimension_numbers = #tpu.dot_dimension_numbers<[1], [0], [0], [1], [0, 0, 1, 1], [], []>} : vector<16x8xbf16>, vector<8x16xbf16>, vector<16x16xf32> -> vector<16x16xf32>
    %cst_267 = arith.constant dense<0xFF800000> : vector<16xf32>
    %1411 = vector.multi_reduction <maximumf>, %1410, %cst_267 [1] : vector<16x16xf32> to vector<16xf32>
    %cst_268 = arith.constant 0xFF800000 : f32
    %1412 = vector.broadcast %cst_268 : f32 to vector<16xf32>
    %1413 = arith.maximumf %1412, %1411 : vector<16xf32>
    %1414 = vector.shape_cast %1413 : vector<16xf32> to vector<16x1xf32>
    %1415 = vector.broadcast %1414 : vector<16x1xf32> to vector<16x16xf32>
    %1416 = arith.subf %1410, %1415 : vector<16x16xf32>
    %1417 = math.exp %1416 : vector<16x16xf32>
    %cst_269 = arith.constant dense<0.000000e+00> : vector<16xf32>
    %1418 = vector.multi_reduction <add>, %1417, %cst_269 [1] : vector<16x16xf32> to vector<16xf32>
    %1419 = vector.shape_cast %1418 : vector<16xf32> to vector<16x1xf32>
    %1420 = vector.broadcast %1419 : vector<16x1xf32> to vector<16x16xf32>
    %1421 = arith.divf %1417, %1420 : vector<16x16xf32>
    %1422 = vector.extract_strided_slice %1403 {offsets = [0, 0], sizes = [16, 8], strides = [1, 1]} : vector<16x32xf32> to vector<16x8xf32>
    %1423 = arith.truncf %1421 : vector<16x16xf32> to vector<16x16xbf16>
    %1424 = arith.truncf %1422 : vector<16x8xf32> to vector<16x8xbf16>
    %cst_270 = arith.constant dense<0.000000e+00> : vector<16x8xf32>
    %1425 = tpu.matmul %1423, %1424, %cst_270 {dimension_numbers = #tpu.dot_dimension_numbers<[1], [0], [0], [1], [0, 0, 1, 1], [], []>} : vector<16x16xbf16>, vector<16x8xbf16>, vector<16x8xf32> -> vector<16x8xf32>
    %1426 = vector.extract_strided_slice %1391 {offsets = [0, 0], sizes = [8, 32], strides = [1, 1]} : vector<32x32xf32> to vector<8x32xf32>
    %1427 = arith.truncf %1425 : vector<16x8xf32> to vector<16x8xbf16>
    %1428 = arith.truncf %1426 : vector<8x32xf32> to vector<8x32xbf16>
    %cst_271 = arith.constant dense<0.000000e+00> : vector<16x32xf32>
    %1429 = tpu.matmul %1427, %1428, %cst_271 {dimension_numbers = #tpu.dot_dimension_numbers<[1], [0], [0], [1], [0, 0, 1, 1], [], []>} : vector<16x8xbf16>, vector<8x32xbf16>, vector<16x32xf32> -> vector<16x32xf32>
    %1430 = arith.addf %1404, %1429 : vector<16x32xf32>
    %1431 = vector.extract_strided_slice %1401 {offsets = [0, 8], sizes = [16, 8], strides = [1, 1]} : vector<16x32xf32> to vector<16x8xf32>
    %1432 = vector.extract_strided_slice %1402 {offsets = [0, 8], sizes = [16, 8], strides = [1, 1]} : vector<16x32xf32> to vector<16x8xf32>
    %1433 = tpu.transpose %1432, [1, 0] : vector<16x8xf32> -> vector<8x16xf32>
    %1434 = arith.truncf %1431 : vector<16x8xf32> to vector<16x8xbf16>
    %1435 = arith.truncf %1433 : vector<8x16xf32> to vector<8x16xbf16>
    %cst_272 = arith.constant dense<0.000000e+00> : vector<16x16xf32>
    %1436 = tpu.matmul %1434, %1435, %cst_272 {dimension_numbers = #tpu.dot_dimension_numbers<[1], [0], [0], [1], [0, 0, 1, 1], [], []>} : vector<16x8xbf16>, vector<8x16xbf16>, vector<16x16xf32> -> vector<16x16xf32>
    %cst_273 = arith.constant dense<0xFF800000> : vector<16xf32>
    %1437 = vector.multi_reduction <maximumf>, %1436, %cst_273 [1] : vector<16x16xf32> to vector<16xf32>
    %cst_274 = arith.constant 0xFF800000 : f32
    %1438 = vector.broadcast %cst_274 : f32 to vector<16xf32>
    %1439 = arith.maximumf %1438, %1437 : vector<16xf32>
    %1440 = vector.shape_cast %1439 : vector<16xf32> to vector<16x1xf32>
    %1441 = vector.broadcast %1440 : vector<16x1xf32> to vector<16x16xf32>
    %1442 = arith.subf %1436, %1441 : vector<16x16xf32>
    %1443 = math.exp %1442 : vector<16x16xf32>
    %cst_275 = arith.constant dense<0.000000e+00> : vector<16xf32>
    %1444 = vector.multi_reduction <add>, %1443, %cst_275 [1] : vector<16x16xf32> to vector<16xf32>
    %1445 = vector.shape_cast %1444 : vector<16xf32> to vector<16x1xf32>
    %1446 = vector.broadcast %1445 : vector<16x1xf32> to vector<16x16xf32>
    %1447 = arith.divf %1443, %1446 : vector<16x16xf32>
    %1448 = vector.extract_strided_slice %1403 {offsets = [0, 8], sizes = [16, 8], strides = [1, 1]} : vector<16x32xf32> to vector<16x8xf32>
    %1449 = arith.truncf %1447 : vector<16x16xf32> to vector<16x16xbf16>
    %1450 = arith.truncf %1448 : vector<16x8xf32> to vector<16x8xbf16>
    %cst_276 = arith.constant dense<0.000000e+00> : vector<16x8xf32>
    %1451 = tpu.matmul %1449, %1450, %cst_276 {dimension_numbers = #tpu.dot_dimension_numbers<[1], [0], [0], [1], [0, 0, 1, 1], [], []>} : vector<16x16xbf16>, vector<16x8xbf16>, vector<16x8xf32> -> vector<16x8xf32>
    %1452 = vector.extract_strided_slice %1391 {offsets = [8, 0], sizes = [8, 32], strides = [1, 1]} : vector<32x32xf32> to vector<8x32xf32>
    %1453 = arith.truncf %1451 : vector<16x8xf32> to vector<16x8xbf16>
    %1454 = arith.truncf %1452 : vector<8x32xf32> to vector<8x32xbf16>
    %cst_277 = arith.constant dense<0.000000e+00> : vector<16x32xf32>
    %1455 = tpu.matmul %1453, %1454, %cst_277 {dimension_numbers = #tpu.dot_dimension_numbers<[1], [0], [0], [1], [0, 0, 1, 1], [], []>} : vector<16x8xbf16>, vector<8x32xbf16>, vector<16x32xf32> -> vector<16x32xf32>
    %1456 = arith.addf %1430, %1455 : vector<16x32xf32>
    %1457 = vector.extract_strided_slice %1401 {offsets = [0, 16], sizes = [16, 8], strides = [1, 1]} : vector<16x32xf32> to vector<16x8xf32>
    %1458 = vector.extract_strided_slice %1402 {offsets = [0, 16], sizes = [16, 8], strides = [1, 1]} : vector<16x32xf32> to vector<16x8xf32>
    %1459 = tpu.transpose %1458, [1, 0] : vector<16x8xf32> -> vector<8x16xf32>
    %1460 = arith.truncf %1457 : vector<16x8xf32> to vector<16x8xbf16>
    %1461 = arith.truncf %1459 : vector<8x16xf32> to vector<8x16xbf16>
    %cst_278 = arith.constant dense<0.000000e+00> : vector<16x16xf32>
    %1462 = tpu.matmul %1460, %1461, %cst_278 {dimension_numbers = #tpu.dot_dimension_numbers<[1], [0], [0], [1], [0, 0, 1, 1], [], []>} : vector<16x8xbf16>, vector<8x16xbf16>, vector<16x16xf32> -> vector<16x16xf32>
    %cst_279 = arith.constant dense<0xFF800000> : vector<16xf32>
    %1463 = vector.multi_reduction <maximumf>, %1462, %cst_279 [1] : vector<16x16xf32> to vector<16xf32>
    %cst_280 = arith.constant 0xFF800000 : f32
    %1464 = vector.broadcast %cst_280 : f32 to vector<16xf32>
    %1465 = arith.maximumf %1464, %1463 : vector<16xf32>
    %1466 = vector.shape_cast %1465 : vector<16xf32> to vector<16x1xf32>
    %1467 = vector.broadcast %1466 : vector<16x1xf32> to vector<16x16xf32>
    %1468 = arith.subf %1462, %1467 : vector<16x16xf32>
    %1469 = math.exp %1468 : vector<16x16xf32>
    %cst_281 = arith.constant dense<0.000000e+00> : vector<16xf32>
    %1470 = vector.multi_reduction <add>, %1469, %cst_281 [1] : vector<16x16xf32> to vector<16xf32>
    %1471 = vector.shape_cast %1470 : vector<16xf32> to vector<16x1xf32>
    %1472 = vector.broadcast %1471 : vector<16x1xf32> to vector<16x16xf32>
    %1473 = arith.divf %1469, %1472 : vector<16x16xf32>
    %1474 = vector.extract_strided_slice %1403 {offsets = [0, 16], sizes = [16, 8], strides = [1, 1]} : vector<16x32xf32> to vector<16x8xf32>
    %1475 = arith.truncf %1473 : vector<16x16xf32> to vector<16x16xbf16>
    %1476 = arith.truncf %1474 : vector<16x8xf32> to vector<16x8xbf16>
    %cst_282 = arith.constant dense<0.000000e+00> : vector<16x8xf32>
    %1477 = tpu.matmul %1475, %1476, %cst_282 {dimension_numbers = #tpu.dot_dimension_numbers<[1], [0], [0], [1], [0, 0, 1, 1], [], []>} : vector<16x16xbf16>, vector<16x8xbf16>, vector<16x8xf32> -> vector<16x8xf32>
    %1478 = vector.extract_strided_slice %1391 {offsets = [16, 0], sizes = [8, 32], strides = [1, 1]} : vector<32x32xf32> to vector<8x32xf32>
    %1479 = arith.truncf %1477 : vector<16x8xf32> to vector<16x8xbf16>
    %1480 = arith.truncf %1478 : vector<8x32xf32> to vector<8x32xbf16>
    %cst_283 = arith.constant dense<0.000000e+00> : vector<16x32xf32>
    %1481 = tpu.matmul %1479, %1480, %cst_283 {dimension_numbers = #tpu.dot_dimension_numbers<[1], [0], [0], [1], [0, 0, 1, 1], [], []>} : vector<16x8xbf16>, vector<8x32xbf16>, vector<16x32xf32> -> vector<16x32xf32>
    %1482 = arith.addf %1456, %1481 : vector<16x32xf32>
    %1483 = vector.extract_strided_slice %1401 {offsets = [0, 24], sizes = [16, 8], strides = [1, 1]} : vector<16x32xf32> to vector<16x8xf32>
    %1484 = vector.extract_strided_slice %1402 {offsets = [0, 24], sizes = [16, 8], strides = [1, 1]} : vector<16x32xf32> to vector<16x8xf32>
    %1485 = tpu.transpose %1484, [1, 0] : vector<16x8xf32> -> vector<8x16xf32>
    %1486 = arith.truncf %1483 : vector<16x8xf32> to vector<16x8xbf16>
    %1487 = arith.truncf %1485 : vector<8x16xf32> to vector<8x16xbf16>
    %cst_284 = arith.constant dense<0.000000e+00> : vector<16x16xf32>
    %1488 = tpu.matmul %1486, %1487, %cst_284 {dimension_numbers = #tpu.dot_dimension_numbers<[1], [0], [0], [1], [0, 0, 1, 1], [], []>} : vector<16x8xbf16>, vector<8x16xbf16>, vector<16x16xf32> -> vector<16x16xf32>
    %cst_285 = arith.constant dense<0xFF800000> : vector<16xf32>
    %1489 = vector.multi_reduction <maximumf>, %1488, %cst_285 [1] : vector<16x16xf32> to vector<16xf32>
    %cst_286 = arith.constant 0xFF800000 : f32
    %1490 = vector.broadcast %cst_286 : f32 to vector<16xf32>
    %1491 = arith.maximumf %1490, %1489 : vector<16xf32>
    %1492 = vector.shape_cast %1491 : vector<16xf32> to vector<16x1xf32>
    %1493 = vector.broadcast %1492 : vector<16x1xf32> to vector<16x16xf32>
    %1494 = arith.subf %1488, %1493 : vector<16x16xf32>
    %1495 = math.exp %1494 : vector<16x16xf32>
    %cst_287 = arith.constant dense<0.000000e+00> : vector<16xf32>
    %1496 = vector.multi_reduction <add>, %1495, %cst_287 [1] : vector<16x16xf32> to vector<16xf32>
    %1497 = vector.shape_cast %1496 : vector<16xf32> to vector<16x1xf32>
    %1498 = vector.broadcast %1497 : vector<16x1xf32> to vector<16x16xf32>
    %1499 = arith.divf %1495, %1498 : vector<16x16xf32>
    %1500 = vector.extract_strided_slice %1403 {offsets = [0, 24], sizes = [16, 8], strides = [1, 1]} : vector<16x32xf32> to vector<16x8xf32>
    %1501 = arith.truncf %1499 : vector<16x16xf32> to vector<16x16xbf16>
    %1502 = arith.truncf %1500 : vector<16x8xf32> to vector<16x8xbf16>
    %cst_288 = arith.constant dense<0.000000e+00> : vector<16x8xf32>
    %1503 = tpu.matmul %1501, %1502, %cst_288 {dimension_numbers = #tpu.dot_dimension_numbers<[1], [0], [0], [1], [0, 0, 1, 1], [], []>} : vector<16x16xbf16>, vector<16x8xbf16>, vector<16x8xf32> -> vector<16x8xf32>
    %1504 = vector.extract_strided_slice %1391 {offsets = [24, 0], sizes = [8, 32], strides = [1, 1]} : vector<32x32xf32> to vector<8x32xf32>
    %1505 = arith.truncf %1503 : vector<16x8xf32> to vector<16x8xbf16>
    %1506 = arith.truncf %1504 : vector<8x32xf32> to vector<8x32xbf16>
    %cst_289 = arith.constant dense<0.000000e+00> : vector<16x32xf32>
    %1507 = tpu.matmul %1505, %1506, %cst_289 {dimension_numbers = #tpu.dot_dimension_numbers<[1], [0], [0], [1], [0, 0, 1, 1], [], []>} : vector<16x8xbf16>, vector<8x32xbf16>, vector<16x32xf32> -> vector<16x32xf32>
    %1508 = arith.addf %1482, %1507 : vector<16x32xf32>
    %1509 = vector.extract_strided_slice %1398 {offsets = [16, 0], sizes = [16, 32], strides = [1, 1]} : vector<32x96xf32> to vector<16x32xf32>
    %cst_290 = arith.constant 0.353553385 : f32
    %1510 = vector.broadcast %cst_290 : f32 to vector<16x32xf32>
    %1511 = arith.mulf %1509, %1510 : vector<16x32xf32>
    %1512 = vector.extract_strided_slice %1398 {offsets = [16, 32], sizes = [16, 32], strides = [1, 1]} : vector<32x96xf32> to vector<16x32xf32>
    %1513 = vector.extract_strided_slice %1398 {offsets = [16, 64], sizes = [16, 32], strides = [1, 1]} : vector<32x96xf32> to vector<16x32xf32>
    %cst_291 = arith.constant 0.000000e+00 : f32
    %1514 = vector.broadcast %cst_291 : f32 to vector<16x32xf32>
    %1515 = vector.extract_strided_slice %1511 {offsets = [0, 0], sizes = [16, 8], strides = [1, 1]} : vector<16x32xf32> to vector<16x8xf32>
    %1516 = vector.extract_strided_slice %1512 {offsets = [0, 0], sizes = [16, 8], strides = [1, 1]} : vector<16x32xf32> to vector<16x8xf32>
    %1517 = tpu.transpose %1516, [1, 0] : vector<16x8xf32> -> vector<8x16xf32>
    %1518 = arith.truncf %1515 : vector<16x8xf32> to vector<16x8xbf16>
    %1519 = arith.truncf %1517 : vector<8x16xf32> to vector<8x16xbf16>
    %cst_292 = arith.constant dense<0.000000e+00> : vector<16x16xf32>
    %1520 = tpu.matmul %1518, %1519, %cst_292 {dimension_numbers = #tpu.dot_dimension_numbers<[1], [0], [0], [1], [0, 0, 1, 1], [], []>} : vector<16x8xbf16>, vector<8x16xbf16>, vector<16x16xf32> -> vector<16x16xf32>
    %cst_293 = arith.constant dense<0xFF800000> : vector<16xf32>
    %1521 = vector.multi_reduction <maximumf>, %1520, %cst_293 [1] : vector<16x16xf32> to vector<16xf32>
    %cst_294 = arith.constant 0xFF800000 : f32
    %1522 = vector.broadcast %cst_294 : f32 to vector<16xf32>
    %1523 = arith.maximumf %1522, %1521 : vector<16xf32>
    %1524 = vector.shape_cast %1523 : vector<16xf32> to vector<16x1xf32>
    %1525 = vector.broadcast %1524 : vector<16x1xf32> to vector<16x16xf32>
    %1526 = arith.subf %1520, %1525 : vector<16x16xf32>
    %1527 = math.exp %1526 : vector<16x16xf32>
    %cst_295 = arith.constant dense<0.000000e+00> : vector<16xf32>
    %1528 = vector.multi_reduction <add>, %1527, %cst_295 [1] : vector<16x16xf32> to vector<16xf32>
    %1529 = vector.shape_cast %1528 : vector<16xf32> to vector<16x1xf32>
    %1530 = vector.broadcast %1529 : vector<16x1xf32> to vector<16x16xf32>
    %1531 = arith.divf %1527, %1530 : vector<16x16xf32>
    %1532 = vector.extract_strided_slice %1513 {offsets = [0, 0], sizes = [16, 8], strides = [1, 1]} : vector<16x32xf32> to vector<16x8xf32>
    %1533 = arith.truncf %1531 : vector<16x16xf32> to vector<16x16xbf16>
    %1534 = arith.truncf %1532 : vector<16x8xf32> to vector<16x8xbf16>
    %cst_296 = arith.constant dense<0.000000e+00> : vector<16x8xf32>
    %1535 = tpu.matmul %1533, %1534, %cst_296 {dimension_numbers = #tpu.dot_dimension_numbers<[1], [0], [0], [1], [0, 0, 1, 1], [], []>} : vector<16x16xbf16>, vector<16x8xbf16>, vector<16x8xf32> -> vector<16x8xf32>
    %1536 = vector.extract_strided_slice %1391 {offsets = [0, 0], sizes = [8, 32], strides = [1, 1]} : vector<32x32xf32> to vector<8x32xf32>
    %1537 = arith.truncf %1535 : vector<16x8xf32> to vector<16x8xbf16>
    %1538 = arith.truncf %1536 : vector<8x32xf32> to vector<8x32xbf16>
    %cst_297 = arith.constant dense<0.000000e+00> : vector<16x32xf32>
    %1539 = tpu.matmul %1537, %1538, %cst_297 {dimension_numbers = #tpu.dot_dimension_numbers<[1], [0], [0], [1], [0, 0, 1, 1], [], []>} : vector<16x8xbf16>, vector<8x32xbf16>, vector<16x32xf32> -> vector<16x32xf32>
    %1540 = arith.addf %1514, %1539 : vector<16x32xf32>
    %1541 = vector.extract_strided_slice %1511 {offsets = [0, 8], sizes = [16, 8], strides = [1, 1]} : vector<16x32xf32> to vector<16x8xf32>
    %1542 = vector.extract_strided_slice %1512 {offsets = [0, 8], sizes = [16, 8], strides = [1, 1]} : vector<16x32xf32> to vector<16x8xf32>
    %1543 = tpu.transpose %1542, [1, 0] : vector<16x8xf32> -> vector<8x16xf32>
    %1544 = arith.truncf %1541 : vector<16x8xf32> to vector<16x8xbf16>
    %1545 = arith.truncf %1543 : vector<8x16xf32> to vector<8x16xbf16>
    %cst_298 = arith.constant dense<0.000000e+00> : vector<16x16xf32>
    %1546 = tpu.matmul %1544, %1545, %cst_298 {dimension_numbers = #tpu.dot_dimension_numbers<[1], [0], [0], [1], [0, 0, 1, 1], [], []>} : vector<16x8xbf16>, vector<8x16xbf16>, vector<16x16xf32> -> vector<16x16xf32>
    %cst_299 = arith.constant dense<0xFF800000> : vector<16xf32>
    %1547 = vector.multi_reduction <maximumf>, %1546, %cst_299 [1] : vector<16x16xf32> to vector<16xf32>
    %cst_300 = arith.constant 0xFF800000 : f32
    %1548 = vector.broadcast %cst_300 : f32 to vector<16xf32>
    %1549 = arith.maximumf %1548, %1547 : vector<16xf32>
    %1550 = vector.shape_cast %1549 : vector<16xf32> to vector<16x1xf32>
    %1551 = vector.broadcast %1550 : vector<16x1xf32> to vector<16x16xf32>
    %1552 = arith.subf %1546, %1551 : vector<16x16xf32>
    %1553 = math.exp %1552 : vector<16x16xf32>
    %cst_301 = arith.constant dense<0.000000e+00> : vector<16xf32>
    %1554 = vector.multi_reduction <add>, %1553, %cst_301 [1] : vector<16x16xf32> to vector<16xf32>
    %1555 = vector.shape_cast %1554 : vector<16xf32> to vector<16x1xf32>
    %1556 = vector.broadcast %1555 : vector<16x1xf32> to vector<16x16xf32>
    %1557 = arith.divf %1553, %1556 : vector<16x16xf32>
    %1558 = vector.extract_strided_slice %1513 {offsets = [0, 8], sizes = [16, 8], strides = [1, 1]} : vector<16x32xf32> to vector<16x8xf32>
    %1559 = arith.truncf %1557 : vector<16x16xf32> to vector<16x16xbf16>
    %1560 = arith.truncf %1558 : vector<16x8xf32> to vector<16x8xbf16>
    %cst_302 = arith.constant dense<0.000000e+00> : vector<16x8xf32>
    %1561 = tpu.matmul %1559, %1560, %cst_302 {dimension_numbers = #tpu.dot_dimension_numbers<[1], [0], [0], [1], [0, 0, 1, 1], [], []>} : vector<16x16xbf16>, vector<16x8xbf16>, vector<16x8xf32> -> vector<16x8xf32>
    %1562 = vector.extract_strided_slice %1391 {offsets = [8, 0], sizes = [8, 32], strides = [1, 1]} : vector<32x32xf32> to vector<8x32xf32>
    %1563 = arith.truncf %1561 : vector<16x8xf32> to vector<16x8xbf16>
    %1564 = arith.truncf %1562 : vector<8x32xf32> to vector<8x32xbf16>
    %cst_303 = arith.constant dense<0.000000e+00> : vector<16x32xf32>
    %1565 = tpu.matmul %1563, %1564, %cst_303 {dimension_numbers = #tpu.dot_dimension_numbers<[1], [0], [0], [1], [0, 0, 1, 1], [], []>} : vector<16x8xbf16>, vector<8x32xbf16>, vector<16x32xf32> -> vector<16x32xf32>
    %1566 = arith.addf %1540, %1565 : vector<16x32xf32>
    %1567 = vector.extract_strided_slice %1511 {offsets = [0, 16], sizes = [16, 8], strides = [1, 1]} : vector<16x32xf32> to vector<16x8xf32>
    %1568 = vector.extract_strided_slice %1512 {offsets = [0, 16], sizes = [16, 8], strides = [1, 1]} : vector<16x32xf32> to vector<16x8xf32>
    %1569 = tpu.transpose %1568, [1, 0] : vector<16x8xf32> -> vector<8x16xf32>
    %1570 = arith.truncf %1567 : vector<16x8xf32> to vector<16x8xbf16>
    %1571 = arith.truncf %1569 : vector<8x16xf32> to vector<8x16xbf16>
    %cst_304 = arith.constant dense<0.000000e+00> : vector<16x16xf32>
    %1572 = tpu.matmul %1570, %1571, %cst_304 {dimension_numbers = #tpu.dot_dimension_numbers<[1], [0], [0], [1], [0, 0, 1, 1], [], []>} : vector<16x8xbf16>, vector<8x16xbf16>, vector<16x16xf32> -> vector<16x16xf32>
    %cst_305 = arith.constant dense<0xFF800000> : vector<16xf32>
    %1573 = vector.multi_reduction <maximumf>, %1572, %cst_305 [1] : vector<16x16xf32> to vector<16xf32>
    %cst_306 = arith.constant 0xFF800000 : f32
    %1574 = vector.broadcast %cst_306 : f32 to vector<16xf32>
    %1575 = arith.maximumf %1574, %1573 : vector<16xf32>
    %1576 = vector.shape_cast %1575 : vector<16xf32> to vector<16x1xf32>
    %1577 = vector.broadcast %1576 : vector<16x1xf32> to vector<16x16xf32>
    %1578 = arith.subf %1572, %1577 : vector<16x16xf32>
    %1579 = math.exp %1578 : vector<16x16xf32>
    %cst_307 = arith.constant dense<0.000000e+00> : vector<16xf32>
    %1580 = vector.multi_reduction <add>, %1579, %cst_307 [1] : vector<16x16xf32> to vector<16xf32>
    %1581 = vector.shape_cast %1580 : vector<16xf32> to vector<16x1xf32>
    %1582 = vector.broadcast %1581 : vector<16x1xf32> to vector<16x16xf32>
    %1583 = arith.divf %1579, %1582 : vector<16x16xf32>
    %1584 = vector.extract_strided_slice %1513 {offsets = [0, 16], sizes = [16, 8], strides = [1, 1]} : vector<16x32xf32> to vector<16x8xf32>
    %1585 = arith.truncf %1583 : vector<16x16xf32> to vector<16x16xbf16>
    %1586 = arith.truncf %1584 : vector<16x8xf32> to vector<16x8xbf16>
    %cst_308 = arith.constant dense<0.000000e+00> : vector<16x8xf32>
    %1587 = tpu.matmul %1585, %1586, %cst_308 {dimension_numbers = #tpu.dot_dimension_numbers<[1], [0], [0], [1], [0, 0, 1, 1], [], []>} : vector<16x16xbf16>, vector<16x8xbf16>, vector<16x8xf32> -> vector<16x8xf32>
    %1588 = vector.extract_strided_slice %1391 {offsets = [16, 0], sizes = [8, 32], strides = [1, 1]} : vector<32x32xf32> to vector<8x32xf32>
    %1589 = arith.truncf %1587 : vector<16x8xf32> to vector<16x8xbf16>
    %1590 = arith.truncf %1588 : vector<8x32xf32> to vector<8x32xbf16>
    %cst_309 = arith.constant dense<0.000000e+00> : vector<16x32xf32>
    %1591 = tpu.matmul %1589, %1590, %cst_309 {dimension_numbers = #tpu.dot_dimension_numbers<[1], [0], [0], [1], [0, 0, 1, 1], [], []>} : vector<16x8xbf16>, vector<8x32xbf16>, vector<16x32xf32> -> vector<16x32xf32>
    %1592 = arith.addf %1566, %1591 : vector<16x32xf32>
    %1593 = vector.extract_strided_slice %1511 {offsets = [0, 24], sizes = [16, 8], strides = [1, 1]} : vector<16x32xf32> to vector<16x8xf32>
    %1594 = vector.extract_strided_slice %1512 {offsets = [0, 24], sizes = [16, 8], strides = [1, 1]} : vector<16x32xf32> to vector<16x8xf32>
    %1595 = tpu.transpose %1594, [1, 0] : vector<16x8xf32> -> vector<8x16xf32>
    %1596 = arith.truncf %1593 : vector<16x8xf32> to vector<16x8xbf16>
    %1597 = arith.truncf %1595 : vector<8x16xf32> to vector<8x16xbf16>
    %cst_310 = arith.constant dense<0.000000e+00> : vector<16x16xf32>
    %1598 = tpu.matmul %1596, %1597, %cst_310 {dimension_numbers = #tpu.dot_dimension_numbers<[1], [0], [0], [1], [0, 0, 1, 1], [], []>} : vector<16x8xbf16>, vector<8x16xbf16>, vector<16x16xf32> -> vector<16x16xf32>
    %cst_311 = arith.constant dense<0xFF800000> : vector<16xf32>
    %1599 = vector.multi_reduction <maximumf>, %1598, %cst_311 [1] : vector<16x16xf32> to vector<16xf32>
    %cst_312 = arith.constant 0xFF800000 : f32
    %1600 = vector.broadcast %cst_312 : f32 to vector<16xf32>
    %1601 = arith.maximumf %1600, %1599 : vector<16xf32>
    %1602 = vector.shape_cast %1601 : vector<16xf32> to vector<16x1xf32>
    %1603 = vector.broadcast %1602 : vector<16x1xf32> to vector<16x16xf32>
    %1604 = arith.subf %1598, %1603 : vector<16x16xf32>
    %1605 = math.exp %1604 : vector<16x16xf32>
    %cst_313 = arith.constant dense<0.000000e+00> : vector<16xf32>
    %1606 = vector.multi_reduction <add>, %1605, %cst_313 [1] : vector<16x16xf32> to vector<16xf32>
    %1607 = vector.shape_cast %1606 : vector<16xf32> to vector<16x1xf32>
    %1608 = vector.broadcast %1607 : vector<16x1xf32> to vector<16x16xf32>
    %1609 = arith.divf %1605, %1608 : vector<16x16xf32>
    %1610 = vector.extract_strided_slice %1513 {offsets = [0, 24], sizes = [16, 8], strides = [1, 1]} : vector<16x32xf32> to vector<16x8xf32>
    %1611 = arith.truncf %1609 : vector<16x16xf32> to vector<16x16xbf16>
    %1612 = arith.truncf %1610 : vector<16x8xf32> to vector<16x8xbf16>
    %cst_314 = arith.constant dense<0.000000e+00> : vector<16x8xf32>
    %1613 = tpu.matmul %1611, %1612, %cst_314 {dimension_numbers = #tpu.dot_dimension_numbers<[1], [0], [0], [1], [0, 0, 1, 1], [], []>} : vector<16x16xbf16>, vector<16x8xbf16>, vector<16x8xf32> -> vector<16x8xf32>
    %1614 = vector.extract_strided_slice %1391 {offsets = [24, 0], sizes = [8, 32], strides = [1, 1]} : vector<32x32xf32> to vector<8x32xf32>
    %1615 = arith.truncf %1613 : vector<16x8xf32> to vector<16x8xbf16>
    %1616 = arith.truncf %1614 : vector<8x32xf32> to vector<8x32xbf16>
    %cst_315 = arith.constant dense<0.000000e+00> : vector<16x32xf32>
    %1617 = tpu.matmul %1615, %1616, %cst_315 {dimension_numbers = #tpu.dot_dimension_numbers<[1], [0], [0], [1], [0, 0, 1, 1], [], []>} : vector<16x8xbf16>, vector<8x32xbf16>, vector<16x32xf32> -> vector<16x32xf32>
    %1618 = arith.addf %1592, %1617 : vector<16x32xf32>
    %1619 = tpu.concatenate %1508, %1618 in 0 : vector<16x32xf32>, vector<16x32xf32> -> vector<32x32xf32>
    %c0_316 = arith.constant 0 : index
    %c0_317 = arith.constant 0 : index
    %1620 = vector.load %arg27[%c0_316, %c0_317] : memref<1x32xf32, #tpu.memory_space<vmem>>, vector<1x32xf32>
    %1621 = vector.broadcast %1620 : vector<1x32xf32> to vector<32x32xf32>
    %1622 = arith.addf %1619, %1621 : vector<32x32xf32>
    %c0_318 = arith.constant 0 : index
    %c0_319 = arith.constant 0 : index
    %c0_320 = arith.constant 0 : index
    %1623 = vector.load %arg28[%c0_318, %c0_319, %c0_320] : memref<2x1x32xf32, #tpu.memory_space<vmem>>, vector<2x1x32xf32>
    %1624 = arith.addf %1390, %1622 : vector<32x32xf32>
    %1625 = vector.extract_strided_slice %1623 {offsets = [0, 0, 0], sizes = [1, 1, 32], strides = [1, 1, 1]} : vector<2x1x32xf32> to vector<1x1x32xf32>
    %1626 = vector.shape_cast %1625 : vector<1x1x32xf32> to vector<1x32xf32>
    %1627 = vector.extract_strided_slice %1623 {offsets = [1, 0, 0], sizes = [1, 1, 32], strides = [1, 1, 1]} : vector<2x1x32xf32> to vector<1x1x32xf32>
    %1628 = vector.shape_cast %1627 : vector<1x1x32xf32> to vector<1x32xf32>
    %cst_321 = arith.constant dense<0.000000e+00> : vector<32xf32>
    %1629 = vector.multi_reduction <add>, %1624, %cst_321 [1] : vector<32x32xf32> to vector<32xf32>
    %1630 = vector.shape_cast %1629 : vector<32xf32> to vector<32x1xf32>
    %cst_322 = arith.constant 3.200000e+01 : f32
    %1631 = vector.broadcast %cst_322 : f32 to vector<32x1xf32>
    %1632 = arith.divf %1630, %1631 : vector<32x1xf32>
    %1633 = vector.broadcast %1632 : vector<32x1xf32> to vector<32x32xf32>
    %1634 = arith.subf %1624, %1633 : vector<32x32xf32>
    %1635 = arith.mulf %1634, %1634 : vector<32x32xf32>
    %cst_323 = arith.constant dense<0.000000e+00> : vector<32xf32>
    %1636 = vector.multi_reduction <add>, %1635, %cst_323 [1] : vector<32x32xf32> to vector<32xf32>
    %1637 = vector.shape_cast %1636 : vector<32xf32> to vector<32x1xf32>
    %cst_324 = arith.constant 3.200000e+01 : f32
    %1638 = vector.broadcast %cst_324 : f32 to vector<32x1xf32>
    %1639 = arith.divf %1637, %1638 : vector<32x1xf32>
    %1640 = vector.broadcast %1632 : vector<32x1xf32> to vector<32x32xf32>
    %1641 = arith.subf %1624, %1640 : vector<32x32xf32>
    %cst_325 = arith.constant 9.99999974E-6 : f32
    %1642 = vector.broadcast %cst_325 : f32 to vector<32x1xf32>
    %1643 = arith.addf %1639, %1642 : vector<32x1xf32>
    %1644 = math.rsqrt %1643 : vector<32x1xf32>
    %1645 = vector.broadcast %1644 : vector<32x1xf32> to vector<32x32xf32>
    %1646 = arith.mulf %1641, %1645 : vector<32x32xf32>
    %1647 = vector.broadcast %1626 : vector<1x32xf32> to vector<32x32xf32>
    %1648 = arith.mulf %1646, %1647 : vector<32x32xf32>
    %1649 = vector.broadcast %1628 : vector<1x32xf32> to vector<32x32xf32>
    %1650 = arith.addf %1648, %1649 : vector<32x32xf32>
    %c0_326 = arith.constant 0 : index
    %c0_327 = arith.constant 0 : index
    %1651 = vector.load %arg29[%c0_326, %c0_327] : memref<32x64xf32, #tpu.memory_space<vmem>>, vector<32x64xf32>
    %1652 = arith.truncf %1650 : vector<32x32xf32> to vector<32x32xbf16>
    %1653 = arith.truncf %1651 : vector<32x64xf32> to vector<32x64xbf16>
    %cst_328 = arith.constant dense<0.000000e+00> : vector<32x64xf32>
    %1654 = tpu.matmul %1652, %1653, %cst_328 {dimension_numbers = #tpu.dot_dimension_numbers<[1], [0], [0], [1], [0, 0, 1, 1], [], []>} : vector<32x32xbf16>, vector<32x64xbf16>, vector<32x64xf32> -> vector<32x64xf32>
    %c0_329 = arith.constant 0 : index
    %c0_330 = arith.constant 0 : index
    %1655 = vector.load %arg30[%c0_329, %c0_330] : memref<1x64xf32, #tpu.memory_space<vmem>>, vector<1x64xf32>
    %1656 = vector.broadcast %1655 : vector<1x64xf32> to vector<32x64xf32>
    %1657 = arith.addf %1654, %1656 : vector<32x64xf32>
    %cst_331 = arith.constant 0.000000e+00 : f32
    %1658 = vector.broadcast %cst_331 : f32 to vector<32x64xf32>
    %1659 = arith.maximumf %1657, %1658 : vector<32x64xf32>
    %c0_332 = arith.constant 0 : index
    %c0_333 = arith.constant 0 : index
    %1660 = vector.load %arg31[%c0_332, %c0_333] : memref<64x32xf32, #tpu.memory_space<vmem>>, vector<64x32xf32>
    %1661 = arith.truncf %1659 : vector<32x64xf32> to vector<32x64xbf16>
    %1662 = arith.truncf %1660 : vector<64x32xf32> to vector<64x32xbf16>
    %cst_334 = arith.constant dense<0.000000e+00> : vector<32x32xf32>
    %1663 = tpu.matmul %1661, %1662, %cst_334 {dimension_numbers = #tpu.dot_dimension_numbers<[1], [0], [0], [1], [0, 0, 1, 1], [], []>} : vector<32x64xbf16>, vector<64x32xbf16>, vector<32x32xf32> -> vector<32x32xf32>
    %c0_335 = arith.constant 0 : index
    %c0_336 = arith.constant 0 : index
    %1664 = vector.load %arg32[%c0_335, %c0_336] : memref<1x32xf32, #tpu.memory_space<vmem>>, vector<1x32xf32>
    %1665 = vector.broadcast %1664 : vector<1x32xf32> to vector<32x32xf32>
    %1666 = arith.addf %1663, %1665 : vector<32x32xf32>
    %c0_337 = arith.constant 0 : index
    %c0_338 = arith.constant 0 : index
    %c0_339 = arith.constant 0 : index
    %1667 = vector.load %arg33[%c0_337, %c0_338, %c0_339] : memref<2x1x32xf32, #tpu.memory_space<vmem>>, vector<2x1x32xf32>
    %1668 = arith.addf %1650, %1666 : vector<32x32xf32>
    %1669 = vector.extract_strided_slice %1667 {offsets = [0, 0, 0], sizes = [1, 1, 32], strides = [1, 1, 1]} : vector<2x1x32xf32> to vector<1x1x32xf32>
    %1670 = vector.shape_cast %1669 : vector<1x1x32xf32> to vector<1x32xf32>
    %1671 = vector.extract_strided_slice %1667 {offsets = [1, 0, 0], sizes = [1, 1, 32], strides = [1, 1, 1]} : vector<2x1x32xf32> to vector<1x1x32xf32>
    %1672 = vector.shape_cast %1671 : vector<1x1x32xf32> to vector<1x32xf32>
    %cst_340 = arith.constant dense<0.000000e+00> : vector<32xf32>
    %1673 = vector.multi_reduction <add>, %1668, %cst_340 [1] : vector<32x32xf32> to vector<32xf32>
    %1674 = vector.shape_cast %1673 : vector<32xf32> to vector<32x1xf32>
    %cst_341 = arith.constant 3.200000e+01 : f32
    %1675 = vector.broadcast %cst_341 : f32 to vector<32x1xf32>
    %1676 = arith.divf %1674, %1675 : vector<32x1xf32>
    %1677 = vector.broadcast %1676 : vector<32x1xf32> to vector<32x32xf32>
    %1678 = arith.subf %1668, %1677 : vector<32x32xf32>
    %1679 = arith.mulf %1678, %1678 : vector<32x32xf32>
    %cst_342 = arith.constant dense<0.000000e+00> : vector<32xf32>
    %1680 = vector.multi_reduction <add>, %1679, %cst_342 [1] : vector<32x32xf32> to vector<32xf32>
    %1681 = vector.shape_cast %1680 : vector<32xf32> to vector<32x1xf32>
    %cst_343 = arith.constant 3.200000e+01 : f32
    %1682 = vector.broadcast %cst_343 : f32 to vector<32x1xf32>
    %1683 = arith.divf %1681, %1682 : vector<32x1xf32>
    %1684 = vector.broadcast %1676 : vector<32x1xf32> to vector<32x32xf32>
    %1685 = arith.subf %1668, %1684 : vector<32x32xf32>
    %cst_344 = arith.constant 9.99999974E-6 : f32
    %1686 = vector.broadcast %cst_344 : f32 to vector<32x1xf32>
    %1687 = arith.addf %1683, %1686 : vector<32x1xf32>
    %1688 = math.rsqrt %1687 : vector<32x1xf32>
    %1689 = vector.broadcast %1688 : vector<32x1xf32> to vector<32x32xf32>
    %1690 = arith.mulf %1685, %1689 : vector<32x32xf32>
    %1691 = vector.broadcast %1670 : vector<1x32xf32> to vector<32x32xf32>
    %1692 = arith.mulf %1690, %1691 : vector<32x32xf32>
    %1693 = vector.broadcast %1672 : vector<1x32xf32> to vector<32x32xf32>
    %1694 = arith.addf %1692, %1693 : vector<32x32xf32>
    %1695 = vector.extract_strided_slice %1694 {offsets = [15, 0], sizes = [1, 32], strides = [1, 1]} : vector<32x32xf32> to vector<1x32xf32>
    %1696 = vector.extract_strided_slice %1694 {offsets = [31, 0], sizes = [1, 32], strides = [1, 1]} : vector<32x32xf32> to vector<1x32xf32>
    %1697 = tpu.concatenate %1695, %1696 in 0 : vector<1x32xf32>, vector<1x32xf32> -> vector<2x32xf32>
    %c0_345 = arith.constant 0 : index
    %c0_346 = arith.constant 0 : index
    %1698 = vector.load %arg34[%c0_345, %c0_346] : memref<32x4xf32, #tpu.memory_space<vmem>>, vector<32x4xf32>
    %1699 = arith.truncf %1697 : vector<2x32xf32> to vector<2x32xbf16>
    %1700 = arith.truncf %1698 : vector<32x4xf32> to vector<32x4xbf16>
    %cst_347 = arith.constant dense<0.000000e+00> : vector<2x4xf32>
    %1701 = tpu.matmul %1699, %1700, %cst_347 {dimension_numbers = #tpu.dot_dimension_numbers<[1], [0], [0], [1], [0, 0, 1, 1], [], []>} : vector<2x32xbf16>, vector<32x4xbf16>, vector<2x4xf32> -> vector<2x4xf32>
    %c0_348 = arith.constant 0 : index
    %c0_349 = arith.constant 0 : index
    %1702 = vector.load %arg35[%c0_348, %c0_349] : memref<1x4xf32, #tpu.memory_space<vmem>>, vector<1x4xf32>
    %1703 = vector.broadcast %1702 : vector<1x4xf32> to vector<2x4xf32>
    %1704 = arith.addf %1701, %1703 : vector<2x4xf32>
    %c0_350 = arith.constant 0 : index
    %c0_351 = arith.constant 0 : index
    %1705 = vector.load %arg36[%c0_350, %c0_351] : memref<2x4xf32, #tpu.memory_space<vmem>>, vector<2x4xf32>
    tpu.vector_store %arg36[%c0_350, %c0_351], %1704 {strides = array<i32>} : memref<2x4xf32, #tpu.memory_space<vmem>>, vector<2x4xf32>,
    return
  }
}

</mosaic_0001>

<bundles_post_ra>
// kernel: model_forward.1
= control target key start
LH: loop header
LB: loop body
LE: loop exit
PB: predicated region body
PF: predicated region fallthrough
CT: control target
= control target key end

     0   :  { %s8927_s6 = smov 1   ;;  %s8928_s10 = smov 2   ;;  %s10507_s0 = inlined_call_operand.smem [shape: u32[37], index: -1, kind: input, shape index: {}] }
   0x1   :  { %s8986_s5 = sld [smem:[%s10507_s0]]   ;;  %s8929_s14 = smov 3  }
   0x2   :  { %s8991_s9 = sld [smem:[%s10507_s0 + %s8927_s6]]   ;;  %s8930_s18 = smov 4  }
   0x3   :  { %s8996_s13 = sld [smem:[%s10507_s0 + %s8928_s10]]   ;;  %s8931_s22 = smov 5  }
   0x4   :  { %s9001_s17 = sld [smem:[%s10507_s0 + %s8929_s14]]   ;;  %s8932_s26 = smov 6  }
   0x5   :  { %s9006_s21 = sld [smem:[%s10507_s0 + %s8930_s18]]   ;;  %s8933_s30 = smov 7  }
   0x6   :  { %s9011_s25 = sld [smem:[%s10507_s0 + %s8931_s22]]   ;;  %s8934_s4 = smov 8  }
   0x7   :  { %s9016_s29 = sld [smem:[%s10507_s0 + %s8932_s26]]   ;;  %s8935_s10 = smov 9  }
   0x8   :  { %s9021_s3 = sld [smem:[%s10507_s0 + %s8933_s30]]   ;;  %s8936_s15 = smov 10  }
   0x9   :  { %s9026_s8 = sld [smem:[%s10507_s0 + %s8934_s4]]   ;;  %s8937_s20 = smov 11  }
   0xa   :  { %s9031_s14 = sld [smem:[%s10507_s0 + %s8935_s10]]   ;;  %s8938_s26 = smov 12  }
   0xb   :  { %s9036_s19 = sld [smem:[%s10507_s0 + %s8936_s15]]   ;;  %s8939_s1 = smov 13  }
   0xc   :  { %s9041_s24 = sld [smem:[%s10507_s0 + %s8937_s20]]   ;;  %s8940_s7 = smov 14  }
   0xd   :  { %s9046_s30 = sld [smem:[%s10507_s0 + %s8938_s26]]   ;;  %s8941_s15 = smov 15  }
   0xe   :  { %s9051_s6 = sld [smem:[%s10507_s0 + %s8939_s1]]   ;;  %s8942_s22 = smov 16  }
   0xf   :  { %s9056_s12 = sld [smem:[%s10507_s0 + %s8940_s7]]   ;;  %s8943_s28 = smov 17  }
  0x10   :  { %s9061_s20 = sld [smem:[%s10507_s0 + %s8941_s15]]   ;;  %s8944_s7 = smov 18  }
  0x11   :  { %s9066_s27 = sld [smem:[%s10507_s0 + %s8942_s22]]   ;;  %s8945_s15 = smov 19  }
  0x12   :  { %s9071_s4 = sld [smem:[%s10507_s0 + %s8943_s28]]   ;;  %s8946_s22 = smov 20  }
  0x13   :  { %s8947_s28 = smov 21  }
  0x14   :  { %10519 = sst [smem:[#allocation5_spill]] %s9051_s6 }
  0x15   :  { %s9076_s6 = sld [smem:[%s10507_s0 + %s8944_s7]]   ;;  %s8948_s7 = smov 22  }
  0x16   :  { %10520 = sst [smem:[#allocation6_spill]] %s9061_s20 }
  0x17   :  { %10521 = sst [smem:[#allocation7_spill]] %s9066_s27 }
  0x18   :  { %10522 = sst [smem:[#allocation8_spill]] %s9071_s4 }
  0x19   :  { %s9081_s20 = sld [smem:[%s10507_s0 + %s8945_s15]]   ;;  %s8949_s15 = smov 23  }
  0x1a   :  { %s9086_s27 = sld [smem:[%s10507_s0 + %s8946_s22]]   ;;  %s8950_s22 = smov 24  }
  0x1b   :  { %10523 = sst [smem:[#allocation9_spill]] %s9076_s6 }
  0x1c   :  { %s9091_s4 = sld [smem:[%s10507_s0 + %s8947_s28]]   ;;  %s8951_s28 = smov 25  }
  0x1d   :  { %s9096_s6 = sld [smem:[%s10507_s0 + %s8948_s7]]   ;;  %s8952_s7 = smov 26  }
  0x1f   :  { %10524 = sst [smem:[#allocation10_spill]] %s9081_s20 }
  0x20   :  { %10525 = sst [smem:[#allocation11_spill]] %s9086_s27 }
  0x21   :  { %s9101_s20 = sld [smem:[%s10507_s0 + %s8949_s15]]   ;;  %s8953_s15 = smov 27  }
  0x22   :  { %10526 = sst [smem:[#allocation12_spill]] %s9091_s4 }
  0x23   :  { %10527 = sst [smem:[#allocation13_spill]] %s9096_s6 }
  0x24   :  { %s9106_s27 = sld [smem:[%s10507_s0 + %s8950_s22]]   ;;  %s8954_s22 = smov 28  }
  0x25   :  { %s9111_s4 = sld [smem:[%s10507_s0 + %s8951_s28]]   ;;  %s8955_s28 = smov 29  }
  0x26   :  { %s9116_s6 = sld [smem:[%s10507_s0 + %s8952_s7]]   ;;  %s8956_s7 = smov 30  }
  0x27   :  { %10528 = sst [smem:[#allocation14_spill]] %s9101_s20 }
  0x28   :  { %s9121_s20 = sld [smem:[%s10507_s0 + %s8953_s15]]   ;;  %s8957_s15 = smov 31  }
  0x2a   :  { %10529 = sst [smem:[#allocation15_spill]] %s9106_s27 }
  0x2b   :  { %10530 = sst [smem:[#allocation16_spill]] %s9111_s4 }
  0x2c   :  { %10531 = sst [smem:[#allocation17_spill]] %s9116_s6 }
  0x2d   :  { %s9126_s27 = sld [smem:[%s10507_s0 + %s8954_s22]]   ;;  %s8958_s22 = smov 32  }
  0x2e   :  { %10532 = sst [smem:[#allocation18_spill]] %s9121_s20 }
  0x2f   :  { %s9131_s4 = sld [smem:[%s10507_s0 + %s8955_s28]]   ;;  %s8959_s28 = smov 33  }
  0x30   :  { %s9136_s6 = sld [smem:[%s10507_s0 + %s8956_s7]]   ;;  %s8960_s7 = smov 34  }
  0x31   :  { %s9141_s20 = sld [smem:[%s10507_s0 + %s8957_s15]]   ;;  %s8961_s15 = smov 35  }
  0x33   :  { %10533 = sst [smem:[#allocation19_spill]] %s9126_s27 }
  0x34   :  { %s9146_s27 = sld [smem:[%s10507_s0 + %s8958_s22]]   ;;  %s8962_s22 = smov 36  }
  0x35   :  { %10534 = sst [smem:[#allocation20_spill]] %s9131_s4 }
  0x36   :  { %10535 = sst [smem:[#allocation21_spill]] %s9136_s6 }
  0x37   :  { %10536 = sst [smem:[#allocation22_spill]] %s9141_s20 }
  0x38   :  { %s9151_s4 = sld [smem:[%s10507_s0 + %s8959_s28]]  }
  0x39   :  { %s9156_s6 = sld [smem:[%s10507_s0 + %s8960_s7]]  }
  0x3a   :  { %10537 = sst [smem:[#allocation23_spill]] %s9146_s27 }
  0x3b   :  { %s9161_s20 = sld [smem:[%s10507_s0 + %s8961_s15]]  }
  0x3c   :  { %s9166_s27 = sld [smem:[%s10507_s0 + %s8962_s22]]  }
  0x3d   :  { %v7408_v0 = vld [vmem:[%s8991_s9 + $0x8] sm:$0xff]  ;;  %vm181_vm0 = vcmask 1043456   ;;  %v152_v1 = vld [vmem:[%s8986_s5] sm:$0xff]  ;;  %v154_v4 = vld [vmem:[%s8986_s5 + $0x10] sm:$0xff] }
  0x3e   :  { %v153_v2 = vld [vmem:[%s8986_s5 + $0x8] sm:$0xff]  ;;  %v164_v3 = vpack.c.bf16 %v7408_v0, %v7408_v0  ;;  %v155_v5 = vld [vmem:[%s8986_s5 + $0x18] sm:$0xff]  ;;  %v156_v7 = vld [vmem:[%s8986_s5 + $0x20] sm:$0xf] }
  0x3f   :  { %v158_v6 = vpack.c.bf16 %v153_v2, %v152_v1  ;;  %v159_v8 = vpack.c.bf16 %v155_v5, %v154_v4  ;;  %v163_v9 = vpack.c.bf16 %v156_v7, %v156_v7  ;;  %v157_v10 = vld [vmem:[%s8991_s9] sm:$0xff] }
  0x40   :  { %78 = vsyncpa [#allocation3], 0  ;;  %8467 = vmatprep.subr.msk.bf16.mxu0 %vm181_vm0, %v164_v3  ;;  %v183_v11 = vsel %vm181_vm0, %v164_v3, 0  ;;  %vm168_vm1 = vcmask 1046528   ;;  %v160_v13 = vpack.c.bf16 %v157_v10, %v157_v10  ;;  %v7413_v14 = vld [vmem:[%s8991_s9 + $0x10] sm:$0xff]  ;;  %vm174_vm2 = vcmask 64512  }
  0x41   :  { %v169_v12 = vrot.slane %v158_v6, 1  ;;  %7812 = vmatpush3.bf16.msra.mxu0 %v183_v11  ;;  %v170_v15 = vrot.slane %v159_v8, 1  ;;  %v172_v16 = vrot.slane %v163_v9, 1  ;;  %v294_v20 = vpack.c.bf16 %v7413_v14, %v7413_v14  ;;  %v378_v27 = vld [vmem:[%s9001_s17] sm:$0xff]  ;;  %v379_v28 = vld [vmem:[%s9001_s17 + $0x8] sm:$0xff]  ;;  %v448_v34 = vld [vmem:[%s9006_s21 + $0x10] sm:$0xff] }
  0x42   :  { %8468 = vmatprep.subr.msk.bf16.mxu0 %vm181_vm0, %v160_v13  ;;  %v241_v19 = vsel %vm181_vm0, %v160_v13, 0  ;;  %v296_v21 = vrot.slane %v158_v6, 2  ;;  %v297_v22 = vrot.slane %v159_v8, 2  ;;  %vm295_vm3 = vcmask 1045504   ;;  %v446_v30 = vld [vmem:[%s9006_s21] sm:$0xff]  ;;  %v447_v31 = vld [vmem:[%s9006_s21 + $0x8] sm:$0xff] }
  0x43   :  { %v171_v17 = vsel %vm168_vm1, %v169_v12, %v170_v15  ;;  %v173_v18 = vsel %vm168_vm1, %v170_v15, %v172_v16  ;;  %v308_v23 = vsel %vm181_vm0, %v294_v20, 0  ;;  %v299_v25 = vrot.slane %v163_v9, 2  ;;  %v7416_v37 = vld [vmem:[%s8996_s13] ss:$0 sm:$0xff]  ;;  %s8966_s0 = smov 80   ;;  %s8967_s5 = smov 48  }
  0x44   :  { %7813 = vmatprep.mubr.msk.bf16.mxu0 %vm174_vm2, %v171_v17  ;;  %v298_v24 = vsel %vm295_vm3, %v296_v21, %v297_v22  ;;  %v382_v29 = vpack.c.bf16 %v379_v28, %v378_v27  ;;  %v9196_v32 = vpack.c.bf16 %v447_v31, %v446_v30  ;;  %v8963_v33 = vmov 0.0   ;;  %v7417_v53 = vld [vmem:[%s9011_s25] ss:$0 sm:$0xff]  ;;  %s8968_s9 = smov 104   ;;  %s10538_s13 = sld [smem:[#allocation5_spill]] }
  0x45   :  { %7814 = vmatmul.mubr.msk.bf16.vlgmr.msra.gmra.mrb[0].mxu0 %vm174_vm2, %v173_v18  ;;  %v300_v26 = vsel %vm295_vm3, %v297_v22, %v299_v25  ;;  %v450_v35 = vpack.c.bf16 %v448_v34, %v448_v34  ;;  %vm8964_vm4 = vmmov 0   ;;  %vm390_vm5 = vcmask 130048   ;;  %v9234_v61 = vld [vmem:[%s9016_s29] ss:$0 sm:$0xff]  ;;  %s10539_s17 = sld [smem:[#allocation6_spill]]  ;;  %s8969_s21 = smov 96  }
  0x46   :  { %7818 = vmatpush3.bf16.msra.mxu0 %v241_v19  ;;  %7819 = vmatprep.mubr.msk.bf16.mxu0 %vm174_vm2, %v158_v6  ;;  %v8965_v52 = vmov 0   ;;  %vm458_vm6 = vcmask 195584   ;;  %vm1706_vm7 = vcmask 1041408   ;;  %vm3079_vm8 = vcmask 1040384   ;;  %s8970_s25 = smov 88   ;;  %s10542_s28 = sld [smem:[#allocation9_spill]] }
  0x47   :  { %8469 = vmatprep.subr.msk.bf16.mxu0 %vm181_vm0, %v294_v20  ;;  %7829 = vmatprep.subr.bf16.mxu1 %v382_v29  ;;  %v9204_v36 = vsel %vm181_vm0, %v450_v35, 0  ;;  %vm3082_vm9 = vcmask 1042432   ;;  %vm3085_vm10 = vcmask 1044480   ;;  %vm3240_vm11 = vcmask 261120   ;;  %s10543_s1 = sld [smem:[#allocation10_spill]]  ;;  %s10544_s2 = sld [smem:[#allocation12_spill]] }
  0x48   :  { %7830 = vmatpush3.bf16.msra.mxu1 %v382_v29  ;;  %s10545_s7 = sld [smem:[#allocation11_spill]]  ;;  %s10546_s10 = sld [smem:[#allocation13_spill]]  ;;  %vm5141_vm12 = vcmask 523264   ;;  %vm7356_vm13 = vcmask 25600  }
  0x49   :  { %7835 = vmatprep.subr.bf16.mxu1 %v8963_v33  ;;  %s10547_s11 = sld [smem:[#allocation15_spill]]  ;;  %s10548_s15 = sld [smem:[#allocation14_spill]] }
  0x4a   :  { %s10549_s16 = sld [smem:[#allocation16_spill]]  ;;  %s10550_s18 = sld [smem:[#allocation17_spill]] }
  0x4b   :  { %s10551_s22 = sld [smem:[#allocation18_spill]]  ;;  %s10552_s23 = sld [smem:[#allocation19_spill]] }
  0x4c   :  { %s10553_s26 = sld [smem:[#allocation20_spill]] }
  0x51   :  { %7820 = vmatmul.mubr.msk.bf16.vlgmr.msra.gmra.mrb[0].mxu0 %vm174_vm2, %v159_v8 }
  0x52   :  { %7824 = vmatpush3.bf16.msra.mxu0 %v308_v23  ;;  %7825 = vmatprep.mubr.msk.bf16.mxu0 %vm174_vm2, %v298_v24 }
  0x53   :  { %7851 = vmatprep.subr.bf16.mxu0 %v8963_v33 }
  0x5d   :  { %7826 = vmatmul.mubr.msk.bf16.vlgmr.msra.gmra.mrb[0].mxu0 %vm174_vm2, %v300_v26 }
  0x5e   :  { %7852 = vmatpush3.bf16.msra.mxu0 %v9196_v32  ;;  %7855 = vmatprep.mubr.msk.bf16.mxu0 %vm8964_vm4, %v8963_v33 }
  0x5f   :  { %7853 = vmatprep.subr.bf16.mxu0 %v8963_v33 }
  0x62   :  { %7854 = vmatpush3.bf16.msra.mxu0 %v9204_v36 }
  0x63   :  { %7867 = vmatprep.subr.bf16.mxu0 %v8963_v33 }
 0x130   :  { %v7827_v38 = vpop.f32.mrb[0].mxu0 }
 0x131   :  { %v372_v39 = vadd.f32 %v7827_v38, %v7416_v37  ;;  %v344_v40 = vpop.f32.mrb[1].mxu0 }
 0x132   :  { %v370_v41 = vadd.f32 %v7416_v37, %v344_v40  ;;  %v7828_v42 = vpop.f32.mrb[2].mxu0 }
 0x133   :  { %v373_v43 = vadd.f32 %v7828_v42, %v7416_v37  ;;  %v347_v44 = vpop.f32.mrb[3].mxu0  ;;  %v376_v46 = vmax.f32 %v372_v39, 0.0 }
 0x134   :  { %v371_v45 = vadd.f32 %v7416_v37, %v347_v44  ;;  %v374_v48 = vmax.f32 %v370_v41, 0.0 }
 0x135   :  { %v377_v47 = vmax.f32 %v373_v43, 0.0 }
 0x136   :  { %v375_v49 = vmax.f32 %v371_v45, 0.0 }
 0x137   :  { %v381_v50 = vpack.c.bf16 %v377_v47, %v376_v46 }
 0x138   :  { %v380_v51 = vpack.c.bf16 %v375_v49, %v374_v48 }
 0x13a   :  { %7831 = vmatprep.mubr.msk.bf16.mxu1 %vm390_vm5, %v380_v51 }
 0x13b   :  { %7832 = vmatmul.mubr.msk.bf16.vlgmr.msra.gmra.mrb[0].mxu1 %vm390_vm5, %v381_v50 }
 0x13c   :  { %7836 = vmatpush3.bf16.msra.mxu1 %v9196_v32  ;;  %7839 = vmatprep.mubr.msk.bf16.mxu1 %vm8964_vm4, %v8963_v33 }
 0x13d   :  { %7837 = vmatprep.subr.bf16.mxu1 %v8963_v33 }
 0x140   :  { %7838 = vmatpush3.bf16.msra.mxu1 %v9204_v36 }
 0x141   :  { %7843 = vmatprep.subr.bf16.mxu1 %v8963_v33 }
 0x143   :  { %7840 = vmatmul.mubr.bf16.vlgmr.msra.gmra.mrb[4].mxu1 %v8965_v52 }
 0x144   :  { %7844 = vmatpush3.bf16.msra.mxu1 %v9196_v32  ;;  %7847 = vmatprep.mubr.msk.bf16.mxu1 %vm8964_vm4, %v8963_v33 }
 0x145   :  { %7845 = vmatprep.subr.bf16.mxu1 %v8963_v33 }
 0x148   :  { %7846 = vmatpush3.bf16.msra.mxu1 %v9204_v36 }
 0x149   :  { %7859 = vmatprep.subr.bf16.mxu1 %v8963_v33 }
 0x20e   :  { %v7833_v54 = vpop.f32.mrb[0].mxu1 }
 0x20f   :  { %v9227_v55 = vadd.f32 %v7833_v54, %v7417_v53  ;;  %v431_v56 = vpop.f32.mrb[1].mxu1 }
 0x210   :  { %v7834_v57 = vpop.f32.mrb[2].mxu1  ;;  %v9238_v3 = vadd.f32 %v7417_v53, %v431_v56 }
 0x211   :  { %v9229_v58 = vadd.f32 %v7834_v57, %v7417_v53  ;;  %v434_v59 = vpop.f32.mrb[3].mxu1 }
 0x212   :  { %v9231_v60 = vadd.f32 %v7417_v53, %v434_v59 }
 0x216   :  { %v499_v62 = vpop.f32.mrb[4].mxu1 }
 0x217   :  { %v500_v63 = vadd.f32 %v9234_v61, %v499_v62  ;;  %v7841_v0 = vpop.f32.mrb[5].mxu1 }
 0x218   :  { %v502_v1 = vpop.f32.mrb[6].mxu1 }
 0x219   :  { %513 = vrot.lane.b32.xlu0 %v500_v63, %s8966_s0  ;;  %v7842_v2 = vpop.f32.mrb[7].mxu1  ;;  %v505_v4 = vadd.f32 %v500_v63, %v9238_v3 }
 0x21b   :  { %v7421_v5 = vmul.f32 -1.442695, %v505_v4 }
 0x21d   :  { %8553 = vpow2.f32 %v7421_v5 }
 0x227   :  { %v8554_v6 = vpop.eup %8553 }
 0x228   :  { %v509_v7 = vadd.f32 1.0, %v8554_v6 }
 0x22a   :  { %8555 = vrcp.f32 %v509_v7 }
 0x234   :  { %v8556_v8 = vpop.eup %8555 }
 0x235   :  { %v523_v14 = vsub.f32 1.0, %v8556_v8  ;;  %v529_v16 = vmul.f32 0.0, %v8556_v8 }
 0x28b   :  { %v514_v9 = vpop.permute.xlu0 %513 }
 0x28c   :  { %v516_v10 = vmul.f32 %v8556_v8, %v514_v9 }
 0x28e   :  { %518 = vrot.lane.b32.xlu0 %v516_v10, %s8967_s5 }
 0x300   :  { %v519_v11 = vpop.permute.xlu0 %518 }
 0x301   :  { %v521_v12 = vadd.f32 %v519_v11, %v9238_v3 }
 0x303   :  { %8557 = vtanh.f32 %v521_v12 }
 0x30d   :  { %v8558_v13 = vpop.eup %8557 }
 0x30e   :  { %525 = vrot.lane.b32.xlu1 %v8558_v13, %s8968_s9 }
 0x380   :  { %v526_v15 = vpop.permute.xlu1 %525 }
 0x381   :  { %v528_v17 = vmul.f32 %v526_v15, %v523_v14 }
 0x383   :  { %v9244_v18 = vadd.f32 %v529_v16, %v528_v17 }
 0x385   :  { %v531_v19 = vpack.c.bf16 %v9244_v18, %v9244_v18  ;;  %v605_v41 = vrot.slane %v9244_v18, 6 }
 0x387   :  { %533 = vrot.lane.b32.xlu1 %v531_v19, %s8968_s9 }
 0x3f9   :  { %v534_v20 = vpop.permute.xlu1 %533 }
 0x3fa   :  { %7848 = vmatmul.mubr.msk.bf16.vlgmr.msra.gmra.mrb[8].mxu1 %vm458_vm6, %v534_v20 }
 0x3fb   :  { %7860 = vmatpush3.bf16.msra.mxu1 %v9196_v32  ;;  %7863 = vmatprep.mubr.msk.bf16.mxu1 %vm8964_vm4, %v8963_v33 }
 0x3fc   :  { %7861 = vmatprep.subr.bf16.mxu1 %v8963_v33 }
 0x3ff   :  { %7862 = vmatpush3.bf16.msra.mxu1 %v9204_v36 }
 0x400   :  { %7875 = vmatprep.subr.bf16.mxu1 %v8963_v33 }
 0x4cd   :  { %v572_v21 = vpop.f32.mrb[8].mxu1 }
 0x4ce   :  { %v573_v22 = vadd.f32 %v9234_v61, %v572_v21  ;;  %v7849_v23 = vpop.f32.mrb[9].mxu1 }
 0x4cf   :  { %v575_v24 = vpop.f32.mrb[10].mxu1 }
 0x4d0   :  { %v579_v25 = vrot.slane %v573_v22, 6  ;;  %v7850_v26 = vpop.f32.mrb[11].mxu1 }
 0x4d2   :  { %588 = vrot.lane.b32.xlu0 %v579_v25, %s8966_s0  ;;  %v581_v27 = vadd.f32 %v579_v25, %v9238_v3 }
 0x4d4   :  { %v7423_v28 = vmul.f32 -1.442695, %v581_v27 }
 0x4d6   :  { %8559 = vpow2.f32 %v7423_v28 }
 0x4e0   :  { %v8560_v29 = vpop.eup %8559 }
 0x4e1   :  { %v585_v30 = vadd.f32 1.0, %v8560_v29 }
 0x4e3   :  { %8561 = vrcp.f32 %v585_v30 }
 0x4ed   :  { %v8562_v31 = vpop.eup %8561 }
 0x4ee   :  { %v598_v40 = vsub.f32 1.0, %v8562_v31  ;;  %v607_v43 = vmul.f32 %v8562_v31, %v605_v41 }
 0x544   :  { %v589_v34 = vpop.permute.xlu0 %588 }
 0x545   :  { %v591_v35 = vmul.f32 %v8562_v31, %v589_v34 }
 0x547   :  { %593 = vrot.lane.b32.xlu1 %v591_v35, %s8967_s5 }
 0x5b9   :  { %v594_v37 = vpop.permute.xlu1 %593 }
 0x5ba   :  { %v596_v38 = vadd.f32 %v594_v37, %v9238_v3 }
 0x5bc   :  { %8563 = vtanh.f32 %v596_v38 }
 0x5c6   :  { %v8564_v39 = vpop.eup %8563 }
 0x5c7   :  { %600 = vrot.lane.b32.xlu0 %v8564_v39, %s8968_s9 }
 0x639   :  { %v601_v42 = vpop.permute.xlu0 %600 }
 0x63a   :  { %v603_v44 = vmul.f32 %v601_v42, %v598_v40 }
 0x63c   :  { %v608_v45 = vadd.f32 %v607_v43, %v603_v44 }
 0x63e   :  { %v609_v46 = vpack.c.bf16 %v608_v45, %v608_v45  ;;  %v684_v8 = vrot.slane %v608_v45, 6  ;;  %v1707_v13 = vsel %vm1706_vm7, %v9244_v18, %v608_v45 }
 0x640   :  { %v611_v47 = vrot.slane %v609_v46, 1 }
 0x642   :  { %612 = vrot.lane.b32.xlu1 %v611_v47, %s8968_s9 }
 0x6b4   :  { %v613_v48 = vpop.permute.xlu1 %612 }
 0x6b5   :  { %7856 = vmatmul.mubr.msk.bf16.vlgmr.msra.gmra.mrb[4].mxu0 %vm458_vm6, %v613_v48 }
 0x6b6   :  { %7868 = vmatpush3.bf16.msra.mxu0 %v9196_v32  ;;  %7871 = vmatprep.mubr.msk.bf16.mxu0 %vm8964_vm4, %v8963_v33 }
 0x6b7   :  { %7869 = vmatprep.subr.bf16.mxu0 %v8963_v33 }
 0x6ba   :  { %7870 = vmatpush3.bf16.msra.mxu0 %v9204_v36 }
 0x6bb   :  { %7883 = vmatprep.subr.bf16.mxu0 %v8963_v33 }
 0x788   :  { %v651_v49 = vpop.f32.mrb[4].mxu0 }
 0x789   :  { %v652_v50 = vadd.f32 %v9234_v61, %v651_v49  ;;  %v7857_v51 = vpop.f32.mrb[5].mxu0 }
 0x78a   :  { %v654_v53 = vpop.f32.mrb[6].mxu0 }
 0x78b   :  { %v658_v54 = vrot.slane %v652_v50, 4  ;;  %v7858_v56 = vpop.f32.mrb[7].mxu0 }
 0x78d   :  { %667 = vrot.lane.b32.xlu0 %v658_v54, %s8966_s0  ;;  %v660_v57 = vadd.f32 %v658_v54, %v9238_v3 }
 0x78f   :  { %v7425_v59 = vmul.f32 -1.442695, %v660_v57 }
 0x791   :  { %8565 = vpow2.f32 %v7425_v59 }
 0x79b   :  { %v8566_v62 = vpop.eup %8565 }
 0x79c   :  { %v664_v63 = vadd.f32 1.0, %v8566_v62 }
 0x79e   :  { %8567 = vrcp.f32 %v664_v63 }
 0x7a8   :  { %v8568_v0 = vpop.eup %8567 }
 0x7a9   :  { %v677_v7 = vsub.f32 1.0, %v8568_v0  ;;  %v686_v10 = vmul.f32 %v8568_v0, %v684_v8 }
 0x7ff   :  { %v668_v1 = vpop.permute.xlu0 %667 }
 0x800   :  { %v670_v2 = vmul.f32 %v8568_v0, %v668_v1 }
 0x802   :  { %672 = vrot.lane.b32.xlu1 %v670_v2, %s8967_s5 }
 0x874   :  { %v673_v4 = vpop.permute.xlu1 %672 }
 0x875   :  { %v675_v5 = vadd.f32 %v673_v4, %v9238_v3 }
 0x877   :  { %8569 = vtanh.f32 %v675_v5 }
 0x881   :  { %v8570_v6 = vpop.eup %8569 }
 0x882   :  { %679 = vrot.lane.b32.xlu0 %v8570_v6, %s8968_s9 }
 0x8f4   :  { %v680_v9 = vpop.permute.xlu0 %679 }
 0x8f5   :  { %v682_v11 = vmul.f32 %v680_v9, %v677_v7 }
 0x8f7   :  { %v687_v12 = vadd.f32 %v686_v10, %v682_v11 }
 0x8f9   :  { %v688_v14 = vpack.c.bf16 %v687_v12, %v687_v12  ;;  %v1708_v15 = vsel %vm181_vm0, %v1707_v13, %v687_v12  ;;  %v763_v38 = vrot.slane %v687_v12, 6 }
 0x8fb   :  { %v690_v16 = vrot.slane %v688_v14, 2 }
 0x8fd   :  { %691 = vrot.lane.b32.xlu1 %v690_v16, %s8968_s9 }
 0x96f   :  { %v692_v17 = vpop.permute.xlu1 %691 }
 0x970   :  { %7864 = vmatmul.mubr.msk.bf16.vlgmr.msra.gmra.mrb[12].mxu1 %vm458_vm6, %v692_v17 }
 0x971   :  { %7876 = vmatpush3.bf16.msra.mxu1 %v9196_v32  ;;  %7879 = vmatprep.mubr.msk.bf16.mxu1 %vm8964_vm4, %v8963_v33 }
 0x972   :  { %7877 = vmatprep.subr.bf16.mxu1 %v8963_v33 }
 0x975   :  { %7878 = vmatpush3.bf16.msra.mxu1 %v9204_v36 }
 0x976   :  { %7891 = vmatprep.subr.bf16.mxu1 %v8963_v33 }
 0xa43   :  { %v730_v18 = vpop.f32.mrb[12].mxu1 }
 0xa44   :  { %v731_v19 = vadd.f32 %v9234_v61, %v730_v18  ;;  %v7865_v20 = vpop.f32.mrb[13].mxu1 }
 0xa45   :  { %v733_v21 = vpop.f32.mrb[14].mxu1 }
 0xa46   :  { %v737_v22 = vrot.slane %v731_v19, 2  ;;  %v7866_v23 = vpop.f32.mrb[15].mxu1 }
 0xa48   :  { %746 = vrot.lane.b32.xlu0 %v737_v22, %s8966_s0  ;;  %v739_v24 = vadd.f32 %v737_v22, %v9238_v3 }
 0xa4a   :  { %v7427_v25 = vmul.f32 -1.442695, %v739_v24 }
 0xa4c   :  { %8571 = vpow2.f32 %v7427_v25 }
 0xa56   :  { %v8572_v26 = vpop.eup %8571 }
 0xa57   :  { %v743_v27 = vadd.f32 1.0, %v8572_v26 }
 0xa59   :  { %8573 = vrcp.f32 %v743_v27 }
 0xa63   :  { %v8574_v28 = vpop.eup %8573 }
 0xa64   :  { %v756_v37 = vsub.f32 1.0, %v8574_v28  ;;  %v765_v40 = vmul.f32 %v8574_v28, %v763_v38 }
 0xaba   :  { %v747_v29 = vpop.permute.xlu0 %746 }
 0xabb   :  { %v749_v30 = vmul.f32 %v8574_v28, %v747_v29 }
 0xabd   :  { %751 = vrot.lane.b32.xlu1 %v749_v30, %s8967_s5 }
 0xb2f   :  { %v752_v31 = vpop.permute.xlu1 %751 }
 0xb30   :  { %v754_v34 = vadd.f32 %v752_v31, %v9238_v3 }
 0xb32   :  { %8575 = vtanh.f32 %v754_v34 }
 0xb3c   :  { %v8576_v35 = vpop.eup %8575 }
 0xb3d   :  { %758 = vrot.lane.b32.xlu0 %v8576_v35, %s8968_s9 }
 0xbaf   :  { %v759_v39 = vpop.permute.xlu0 %758 }
 0xbb0   :  { %v761_v41 = vmul.f32 %v759_v39, %v756_v37 }
 0xbb2   :  { %v766_v42 = vadd.f32 %v765_v40, %v761_v41 }
 0xbb4   :  { %v767_v43 = vpack.c.bf16 %v766_v42, %v766_v42  ;;  %v9295_v44 = vsel %vm295_vm3, %v1708_v15, %v766_v42  ;;  %v840_v4 = vrot.slane %v766_v42, 6 }
 0xbb6   :  { %v769_v45 = vrot.slane %v767_v43, 3 }
 0xbb8   :  { %770 = vrot.lane.b32.xlu1 %v769_v45, %s8968_s9 }
 0xc2a   :  { %v771_v46 = vpop.permute.xlu1 %770 }
 0xc2b   :  { %7872 = vmatmul.mubr.msk.bf16.vlgmr.msra.gmra.mrb[8].mxu0 %vm458_vm6, %v771_v46 }
 0xc2c   :  { %7884 = vmatpush3.bf16.msra.mxu0 %v9196_v32  ;;  %7887 = vmatprep.mubr.msk.bf16.mxu0 %vm8964_vm4, %v8963_v33 }
 0xc2d   :  { %7885 = vmatprep.subr.bf16.mxu0 %v8963_v33 }
 0xc30   :  { %7886 = vmatpush3.bf16.msra.mxu0 %v9204_v36 }
 0xc31   :  { %7899 = vmatprep.subr.bf16.mxu0 %v8963_v33 }
 0xcfe   :  { %v809_v3 = vpop.f32.mrb[8].mxu0 }
 0xcff   :  { %v810_v47 = vadd.f32 %v9234_v61, %v809_v3  ;;  %v7873_v48 = vpop.f32.mrb[9].mxu0 }
 0xd00   :  { %v812_v49 = vpop.f32.mrb[10].mxu0 }
 0xd01   :  { %823 = vrot.lane.b32.xlu0 %v810_v47, %s8966_s0  ;;  %v7874_v50 = vpop.f32.mrb[11].mxu0  ;;  %v815_v51 = vadd.f32 %v810_v47, %v9231_v60 }
 0xd03   :  { %v7429_v53 = vmul.f32 -1.442695, %v815_v51 }
 0xd05   :  { %8577 = vpow2.f32 %v7429_v53 }
 0xd0f   :  { %v8578_v54 = vpop.eup %8577 }
 0xd10   :  { %v819_v56 = vadd.f32 1.0, %v8578_v54 }
 0xd12   :  { %8579 = vrcp.f32 %v819_v56 }
 0xd1c   :  { %v8580_v57 = vpop.eup %8579 }
 0xd1d   :  { %v833_v2 = vsub.f32 1.0, %v8580_v57  ;;  %v842_v6 = vmul.f32 %v8580_v57, %v840_v4 }
 0xd73   :  { %v824_v59 = vpop.permute.xlu0 %823 }
 0xd74   :  { %v826_v62 = vmul.f32 %v8580_v57, %v824_v59 }
 0xd76   :  { %828 = vrot.lane.b32.xlu1 %v826_v62, %s8967_s5 }
 0xde8   :  { %v829_v63 = vpop.permute.xlu1 %828 }
 0xde9   :  { %v831_v0 = vadd.f32 %v829_v63, %v9231_v60 }
 0xdeb   :  { %8581 = vtanh.f32 %v831_v0 }
 0xdf5   :  { %v8582_v1 = vpop.eup %8581 }
 0xdf6   :  { %835 = vrot.lane.b32.xlu0 %v8582_v1, %s8968_s9 }
 0xe68   :  { %v836_v5 = vpop.permute.xlu0 %835 }
 0xe69   :  { %v838_v7 = vmul.f32 %v836_v5, %v833_v2 }
 0xe6b   :  { %v9311_v8 = vadd.f32 %v842_v6, %v838_v7 }
 0xe6d   :  { %v844_v9 = vpack.c.bf16 %v9311_v8, %v9311_v8  ;;  %v918_v28 = vrot.slane %v9311_v8, 6 }
 0xe6f   :  { %846 = vrot.lane.b32.xlu1 %v844_v9, %s8968_s9 }
 0xee1   :  { %v847_v10 = vpop.permute.xlu1 %846 }
 0xee2   :  { %7880 = vmatmul.mubr.msk.bf16.vlgmr.msra.gmra.mrb[16].mxu1 %vm458_vm6, %v847_v10 }
 0xee3   :  { %7892 = vmatpush3.bf16.msra.mxu1 %v9196_v32  ;;  %7895 = vmatprep.mubr.msk.bf16.mxu1 %vm8964_vm4, %v8963_v33 }
 0xee4   :  { %7893 = vmatprep.subr.bf16.mxu1 %v8963_v33 }
 0xee7   :  { %7894 = vmatpush3.bf16.msra.mxu1 %v9204_v36 }
 0xee8   :  { %7907 = vmatprep.subr.bf16.mxu1 %v8963_v33 }
 0xfb5   :  { %v885_v11 = vpop.f32.mrb[16].mxu1 }
 0xfb6   :  { %v886_v12 = vadd.f32 %v9234_v61, %v885_v11  ;;  %v7881_v13 = vpop.f32.mrb[17].mxu1 }
 0xfb7   :  { %v888_v14 = vpop.f32.mrb[18].mxu1 }
 0xfb8   :  { %v892_v15 = vrot.slane %v886_v12, 6  ;;  %v7882_v16 = vpop.f32.mrb[19].mxu1 }
 0xfba   :  { %901 = vrot.lane.b32.xlu0 %v892_v15, %s8966_s0  ;;  %v894_v17 = vadd.f32 %v892_v15, %v9231_v60 }
 0xfbc   :  { %v7431_v18 = vmul.f32 -1.442695, %v894_v17 }
 0xfbe   :  { %8583 = vpow2.f32 %v7431_v18 }
 0xfc8   :  { %v8584_v19 = vpop.eup %8583 }
 0xfc9   :  { %v898_v20 = vadd.f32 1.0, %v8584_v19 }
 0xfcb   :  { %8585 = vrcp.f32 %v898_v20 }
 0xfd5   :  { %v8586_v21 = vpop.eup %8585 }
 0xfd6   :  { %v911_v27 = vsub.f32 1.0, %v8586_v21  ;;  %v920_v30 = vmul.f32 %v8586_v21, %v918_v28 }
0x102c   :  { %v902_v22 = vpop.permute.xlu0 %901 }
0x102d   :  { %v904_v23 = vmul.f32 %v8586_v21, %v902_v22 }
0x102f   :  { %906 = vrot.lane.b32.xlu1 %v904_v23, %s8967_s5 }
0x10a1   :  { %v907_v24 = vpop.permute.xlu1 %906 }
0x10a2   :  { %v909_v25 = vadd.f32 %v907_v24, %v9231_v60 }
0x10a4   :  { %8587 = vtanh.f32 %v909_v25 }
0x10ae   :  { %v8588_v26 = vpop.eup %8587 }
0x10af   :  { %913 = vrot.lane.b32.xlu0 %v8588_v26, %s8968_s9 }
0x1121   :  { %v914_v29 = vpop.permute.xlu0 %913 }
0x1122   :  { %v916_v31 = vmul.f32 %v914_v29, %v911_v27 }
0x1124   :  { %v921_v34 = vadd.f32 %v920_v30, %v916_v31 }
0x1126   :  { %v922_v35 = vpack.c.bf16 %v921_v34, %v921_v34  ;;  %v997_v59 = vrot.slane %v921_v34, 6  ;;  %v1711_v2 = vsel %vm1706_vm7, %v9311_v8, %v921_v34 }
0x1128   :  { %v924_v37 = vrot.slane %v922_v35, 1 }
0x112a   :  { %925 = vrot.lane.b32.xlu1 %v924_v37, %s8968_s9 }
0x119c   :  { %v926_v38 = vpop.permute.xlu1 %925 }
0x119d   :  { %7888 = vmatmul.mubr.msk.bf16.vlgmr.msra.gmra.mrb[12].mxu0 %vm458_vm6, %v926_v38 }
0x119e   :  { %7900 = vmatpush3.bf16.msra.mxu0 %v9196_v32  ;;  %7903 = vmatprep.mubr.msk.bf16.mxu0 %vm8964_vm4, %v8963_v33 }
0x119f   :  { %7901 = vmatprep.subr.bf16.mxu0 %v8963_v33 }
0x11a2   :  { %7902 = vmatpush3.bf16.msra.mxu0 %v9204_v36 }
0x11a3   :  { %7915 = vmatprep.subr.bf16.mxu0 %v8963_v33 }
0x1270   :  { %v964_v39 = vpop.f32.mrb[12].mxu0 }
0x1271   :  { %v965_v40 = vadd.f32 %v9234_v61, %v964_v39  ;;  %v7889_v41 = vpop.f32.mrb[13].mxu0 }
0x1272   :  { %v967_v42 = vpop.f32.mrb[14].mxu0 }
0x1273   :  { %v971_v43 = vrot.slane %v965_v40, 4  ;;  %v7890_v45 = vpop.f32.mrb[15].mxu0 }
0x1275   :  { %980 = vrot.lane.b32.xlu0 %v971_v43, %s8966_s0  ;;  %v973_v46 = vadd.f32 %v971_v43, %v9231_v60 }
0x1277   :  { %v7433_v3 = vmul.f32 -1.442695, %v973_v46 }
0x1279   :  { %8589 = vpow2.f32 %v7433_v3 }
0x1283   :  { %v8590_v47 = vpop.eup %8589 }
0x1284   :  { %v977_v48 = vadd.f32 1.0, %v8590_v47 }
0x1286   :  { %8591 = vrcp.f32 %v977_v48 }
0x1290   :  { %v8592_v49 = vpop.eup %8591 }
0x1291   :  { %v990_v57 = vsub.f32 1.0, %v8592_v49  ;;  %v999_v63 = vmul.f32 %v8592_v49, %v997_v59 }
0x12e7   :  { %v981_v50 = vpop.permute.xlu0 %980 }
0x12e8   :  { %v983_v51 = vmul.f32 %v8592_v49, %v981_v50 }
0x12ea   :  { %985 = vrot.lane.b32.xlu1 %v983_v51, %s8967_s5 }
0x135c   :  { %v986_v53 = vpop.permute.xlu1 %985 }
0x135d   :  { %v988_v54 = vadd.f32 %v986_v53, %v9231_v60 }
0x135f   :  { %8593 = vtanh.f32 %v988_v54 }
0x1369   :  { %v8594_v56 = vpop.eup %8593 }
0x136a   :  { %992 = vrot.lane.b32.xlu0 %v8594_v56, %s8968_s9 }
0x13dc   :  { %v993_v62 = vpop.permute.xlu0 %992 }
0x13dd   :  { %v995_v0 = vmul.f32 %v993_v62, %v990_v57 }
0x13df   :  { %v1000_v1 = vadd.f32 %v999_v63, %v995_v0 }
0x13e1   :  { %v1001_v4 = vpack.c.bf16 %v1000_v1, %v1000_v1  ;;  %v1712_v5 = vsel %vm181_vm0, %v1711_v2, %v1000_v1  ;;  %v1076_v25 = vrot.slane %v1000_v1, 6 }
0x13e3   :  { %v1003_v6 = vrot.slane %v1001_v4, 2 }
0x13e5   :  { %1004 = vrot.lane.b32.xlu1 %v1003_v6, %s8968_s9 }
0x1457   :  { %v1005_v7 = vpop.permute.xlu1 %1004 }
0x1458   :  { %7896 = vmatmul.mubr.msk.bf16.vlgmr.msra.gmra.mrb[20].mxu1 %vm458_vm6, %v1005_v7 }
0x1459   :  { %7908 = vmatpush3.bf16.msra.mxu1 %v9196_v32  ;;  %7911 = vmatprep.mubr.msk.bf16.mxu1 %vm8964_vm4, %v8963_v33 }
0x145a   :  { %7909 = vmatprep.subr.bf16.mxu1 %v8963_v33 }
0x145d   :  { %7910 = vmatpush3.bf16.msra.mxu1 %v9204_v36 }
0x145e   :  { %7923 = vmatprep.subr.bf16.mxu1 %v8963_v33 }
0x152b   :  { %v1043_v8 = vpop.f32.mrb[20].mxu1 }
0x152c   :  { %v1044_v9 = vadd.f32 %v9234_v61, %v1043_v8  ;;  %v7897_v10 = vpop.f32.mrb[21].mxu1 }
0x152d   :  { %v1046_v11 = vpop.f32.mrb[22].mxu1 }
0x152e   :  { %v1050_v12 = vrot.slane %v1044_v9, 2  ;;  %v7898_v13 = vpop.f32.mrb[23].mxu1 }
0x1530   :  { %1059 = vrot.lane.b32.xlu0 %v1050_v12, %s8966_s0  ;;  %v1052_v14 = vadd.f32 %v1050_v12, %v9231_v60 }
0x1532   :  { %v7435_v15 = vmul.f32 -1.442695, %v1052_v14 }
0x1534   :  { %8595 = vpow2.f32 %v7435_v15 }
0x153e   :  { %v8596_v16 = vpop.eup %8595 }
0x153f   :  { %v1056_v17 = vadd.f32 1.0, %v8596_v16 }
0x1541   :  { %8597 = vrcp.f32 %v1056_v17 }
0x154b   :  { %v8598_v18 = vpop.eup %8597 }
0x154c   :  { %v1069_v24 = vsub.f32 1.0, %v8598_v18  ;;  %v1078_v27 = vmul.f32 %v8598_v18, %v1076_v25 }
0x15a2   :  { %v1060_v19 = vpop.permute.xlu0 %1059 }
0x15a3   :  { %v1062_v20 = vmul.f32 %v8598_v18, %v1060_v19 }
0x15a5   :  { %1064 = vrot.lane.b32.xlu1 %v1062_v20, %s8967_s5 }
0x1617   :  { %v1065_v21 = vpop.permute.xlu1 %1064 }
0x1618   :  { %v1067_v22 = vadd.f32 %v1065_v21, %v9231_v60 }
0x161a   :  { %8599 = vtanh.f32 %v1067_v22 }
0x1624   :  { %v8600_v23 = vpop.eup %8599 }
0x1625   :  { %1071 = vrot.lane.b32.xlu0 %v8600_v23, %s8968_s9 }
0x1697   :  { %v1072_v26 = vpop.permute.xlu0 %1071 }
0x1698   :  { %v1074_v28 = vmul.f32 %v1072_v26, %v1069_v24 }
0x169a   :  { %v1079_v29 = vadd.f32 %v1078_v27, %v1074_v28 }
0x169c   :  { %v1080_v30 = vpack.c.bf16 %v1079_v29, %v1079_v29  ;;  %v9362_v31 = vsel %vm295_vm3, %v1712_v5, %v1079_v29  ;;  %v1153_v54 = vrot.slane %v1079_v29, 6 }
0x169d   :  { %v1723_v34 = vpack.c.bf16 %v9362_v31, %v9295_v44 }
0x169e   :  { %v1082_v35 = vrot.slane %v1080_v30, 3 }
0x16a0   :  { %1083 = vrot.lane.b32.xlu1 %v1082_v35, %s8968_s9 }
0x1712   :  { %v1084_v60 = vpop.permute.xlu1 %1083 }
0x1713   :  { %7904 = vmatmul.mubr.msk.bf16.vlgmr.msra.gmra.mrb[16].mxu0 %vm458_vm6, %v1084_v60 }
0x1714   :  { %7916 = vmatpush3.bf16.msra.mxu0 %v9196_v32  ;;  %7919 = vmatprep.mubr.msk.bf16.mxu0 %vm8964_vm4, %v8963_v33 }
0x1715   :  { %7917 = vmatprep.subr.bf16.mxu0 %v8963_v33 }
0x1718   :  { %7918 = vmatpush3.bf16.msra.mxu0 %v9204_v36 }
0x1719   :  { %7931 = vmatprep.subr.bf16.mxu0 %v8963_v33 }
0x17e6   :  { %v1122_v37 = vpop.f32.mrb[16].mxu0 }
0x17e7   :  { %v1123_v38 = vadd.f32 %v9234_v61, %v1122_v37  ;;  %v7905_v39 = vpop.f32.mrb[17].mxu0 }
0x17e8   :  { %v1125_v40 = vpop.f32.mrb[18].mxu0 }
0x17e9   :  { %1136 = vrot.lane.b32.xlu0 %v1123_v38, %s8966_s0  ;;  %v7906_v41 = vpop.f32.mrb[19].mxu0  ;;  %v1128_v42 = vadd.f32 %v1123_v38, %v9227_v55 }
0x17eb   :  { %v7437_v43 = vmul.f32 -1.442695, %v1128_v42 }
0x17ed   :  { %8601 = vpow2.f32 %v7437_v43 }
0x17f7   :  { %v8602_v45 = vpop.eup %8601 }
0x17f8   :  { %v1132_v46 = vadd.f32 1.0, %v8602_v45 }
0x17fa   :  { %8603 = vrcp.f32 %v1132_v46 }
0x1804   :  { %v8604_v3 = vpop.eup %8603 }
0x1805   :  { %v1146_v53 = vsub.f32 1.0, %v8604_v3  ;;  %v1155_v57 = vmul.f32 %v8604_v3, %v1153_v54 }
0x185b   :  { %v1137_v47 = vpop.permute.xlu0 %1136 }
0x185c   :  { %v1139_v48 = vmul.f32 %v8604_v3, %v1137_v47 }
0x185e   :  { %1141 = vrot.lane.b32.xlu1 %v1139_v48, %s8967_s5 }
0x18d0   :  { %v1142_v49 = vpop.permute.xlu1 %1141 }
0x18d1   :  { %v1144_v50 = vadd.f32 %v1142_v49, %v9227_v55 }
0x18d3   :  { %8605 = vtanh.f32 %v1144_v50 }
0x18dd   :  { %v8606_v51 = vpop.eup %8605 }
0x18de   :  { %1148 = vrot.lane.b32.xlu0 %v8606_v51, %s8968_s9 }
0x1950   :  { %v1149_v56 = vpop.permute.xlu0 %1148 }
0x1951   :  { %v1151_v59 = vmul.f32 %v1149_v56, %v1146_v53 }
0x1953   :  { %v9380_v62 = vadd.f32 %v1155_v57, %v1151_v59 }
0x1955   :  { %v1157_v63 = vpack.c.bf16 %v9380_v62, %v9380_v62  ;;  %v1231_v19 = vrot.slane %v9380_v62, 6 }
0x1957   :  { %1159 = vrot.lane.b32.xlu1 %v1157_v63, %s8968_s9 }
0x19c9   :  { %v1160_v0 = vpop.permute.xlu1 %1159 }
0x19ca   :  { %7912 = vmatmul.mubr.msk.bf16.vlgmr.msra.gmra.mrb[24].mxu1 %vm458_vm6, %v1160_v0 }
0x19cb   :  { %7924 = vmatpush3.bf16.msra.mxu1 %v9196_v32  ;;  %7927 = vmatprep.mubr.msk.bf16.mxu1 %vm8964_vm4, %v8963_v33 }
0x19cc   :  { %7925 = vmatprep.subr.bf16.mxu1 %v8963_v33 }
0x19cf   :  { %7926 = vmatpush3.bf16.msra.mxu1 %v9204_v36 }
0x19d0   :  { %7939 = vmatprep.subr.bf16.mxu1 %v8963_v33 }
0x1a9d   :  { %v1198_v1 = vpop.f32.mrb[24].mxu1 }
0x1a9e   :  { %v1199_v2 = vadd.f32 %v9234_v61, %v1198_v1  ;;  %v7913_v4 = vpop.f32.mrb[25].mxu1 }
0x1a9f   :  { %v1201_v5 = vpop.f32.mrb[26].mxu1 }
0x1aa0   :  { %v1205_v6 = vrot.slane %v1199_v2, 6  ;;  %v7914_v7 = vpop.f32.mrb[27].mxu1 }
0x1aa2   :  { %1214 = vrot.lane.b32.xlu0 %v1205_v6, %s8966_s0  ;;  %v1207_v8 = vadd.f32 %v1205_v6, %v9227_v55 }
0x1aa4   :  { %v7439_v9 = vmul.f32 -1.442695, %v1207_v8 }
0x1aa6   :  { %8607 = vpow2.f32 %v7439_v9 }
0x1ab0   :  { %v8608_v10 = vpop.eup %8607 }
0x1ab1   :  { %v1211_v11 = vadd.f32 1.0, %v8608_v10 }
0x1ab3   :  { %8609 = vrcp.f32 %v1211_v11 }
0x1abd   :  { %v8610_v12 = vpop.eup %8609 }
0x1abe   :  { %v1224_v18 = vsub.f32 1.0, %v8610_v12  ;;  %v1233_v21 = vmul.f32 %v8610_v12, %v1231_v19 }
0x1b14   :  { %v1215_v13 = vpop.permute.xlu0 %1214 }
0x1b15   :  { %v1217_v14 = vmul.f32 %v8610_v12, %v1215_v13 }
0x1b17   :  { %1219 = vrot.lane.b32.xlu1 %v1217_v14, %s8967_s5 }
0x1b89   :  { %v1220_v15 = vpop.permute.xlu1 %1219 }
0x1b8a   :  { %v1222_v16 = vadd.f32 %v1220_v15, %v9227_v55 }
0x1b8c   :  { %8611 = vtanh.f32 %v1222_v16 }
0x1b96   :  { %v8612_v17 = vpop.eup %8611 }
0x1b97   :  { %1226 = vrot.lane.b32.xlu0 %v8612_v17, %s8968_s9 }
0x1c09   :  { %v1227_v20 = vpop.permute.xlu0 %1226 }
0x1c0a   :  { %v1229_v22 = vmul.f32 %v1227_v20, %v1224_v18 }
0x1c0c   :  { %v1234_v23 = vadd.f32 %v1233_v21, %v1229_v22 }
0x1c0e   :  { %v1235_v24 = vpack.c.bf16 %v1234_v23, %v1234_v23  ;;  %v1310_v48 = vrot.slane %v1234_v23, 6  ;;  %v1714_v54 = vsel %vm1706_vm7, %v9380_v62, %v1234_v23 }
0x1c10   :  { %v1237_v25 = vrot.slane %v1235_v24, 1 }
0x1c12   :  { %1238 = vrot.lane.b32.xlu1 %v1237_v25, %s8968_s9 }
0x1c84   :  { %v1239_v26 = vpop.permute.xlu1 %1238 }
0x1c85   :  { %7920 = vmatmul.mubr.msk.bf16.vlgmr.msra.gmra.mrb[20].mxu0 %vm458_vm6, %v1239_v26 }
0x1c86   :  { %7932 = vmatpush3.bf16.msra.mxu0 %v9196_v32  ;;  %7935 = vmatprep.mubr.msk.bf16.mxu0 %vm8964_vm4, %v8963_v33 }
0x1c87   :  { %7933 = vmatprep.subr.bf16.mxu0 %v8963_v33 }
0x1c8a   :  { %7934 = vmatpush3.bf16.msra.mxu0 %v9204_v36 }
0x1c8b   :  { %7947 = vmatprep.subr.bf16.mxu0 %v8963_v33 }
0x1d58   :  { %v1277_v27 = vpop.f32.mrb[20].mxu0 }
0x1d59   :  { %v1278_v28 = vadd.f32 %v9234_v61, %v1277_v27  ;;  %v7921_v29 = vpop.f32.mrb[21].mxu0 }
0x1d5a   :  { %v1280_v30 = vpop.f32.mrb[22].mxu0 }
0x1d5b   :  { %v1284_v35 = vrot.slane %v1278_v28, 4  ;;  %v7922_v60 = vpop.f32.mrb[23].mxu0 }
0x1d5d   :  { %1293 = vrot.lane.b32.xlu0 %v1284_v35, %s8966_s0  ;;  %v1286_v37 = vadd.f32 %v1284_v35, %v9227_v55 }
0x1d5f   :  { %v7441_v38 = vmul.f32 -1.442695, %v1286_v37 }
0x1d61   :  { %8613 = vpow2.f32 %v7441_v38 }
0x1d6b   :  { %v8614_v39 = vpop.eup %8613 }
0x1d6c   :  { %v1290_v40 = vadd.f32 1.0, %v8614_v39 }
0x1d6e   :  { %8615 = vrcp.f32 %v1290_v40 }
0x1d78   :  { %v8616_v41 = vpop.eup %8615 }
0x1d79   :  { %v1303_v47 = vsub.f32 1.0, %v8616_v41  ;;  %v1312_v50 = vmul.f32 %v8616_v41, %v1310_v48 }
0x1dcf   :  { %v1294_v42 = vpop.permute.xlu0 %1293 }
0x1dd0   :  { %v1296_v43 = vmul.f32 %v8616_v41, %v1294_v42 }
0x1dd2   :  { %1298 = vrot.lane.b32.xlu1 %v1296_v43, %s8967_s5 }
0x1e44   :  { %v1299_v45 = vpop.permute.xlu1 %1298 }
0x1e45   :  { %v1301_v46 = vadd.f32 %v1299_v45, %v9227_v55 }
0x1e47   :  { %8617 = vtanh.f32 %v1301_v46 }
0x1e51   :  { %v8618_v3 = vpop.eup %8617 }
0x1e52   :  { %1305 = vrot.lane.b32.xlu0 %v8618_v3, %s8968_s9 }
0x1ec4   :  { %v1306_v49 = vpop.permute.xlu0 %1305 }
0x1ec5   :  { %v1308_v51 = vmul.f32 %v1306_v49, %v1303_v47 }
0x1ec7   :  { %v1313_v53 = vadd.f32 %v1312_v50, %v1308_v51 }
0x1ec9   :  { %v1314_v56 = vpack.c.bf16 %v1313_v53, %v1313_v53  ;;  %v1715_v57 = vsel %vm181_vm0, %v1714_v54, %v1313_v53  ;;  %v1389_v17 = vrot.slane %v1313_v53, 6 }
0x1ecb   :  { %v1316_v59 = vrot.slane %v1314_v56, 2 }
0x1ecd   :  { %1317 = vrot.lane.b32.xlu1 %v1316_v59, %s8968_s9 }
0x1f3f   :  { %v1318_v63 = vpop.permute.xlu1 %1317 }
0x1f40   :  { %7928 = vmatmul.mubr.msk.bf16.vlgmr.msra.gmra.mrb[28].mxu1 %vm458_vm6, %v1318_v63 }
0x1f41   :  { %7940 = vmatpush3.bf16.msra.mxu1 %v9196_v32  ;;  %7943 = vmatprep.mubr.msk.bf16.mxu1 %vm8964_vm4, %v8963_v33 }
0x1f42   :  { %7941 = vmatprep.subr.bf16.mxu1 %v8963_v33 }
0x1f45   :  { %7942 = vmatpush3.bf16.msra.mxu1 %v9204_v36 }
0x1f46   :  { %7955 = vmatprep.subr.bf16.mxu1 %v8963_v33 }
0x2013   :  { %v1356_v62 = vpop.f32.mrb[28].mxu1 }
0x2014   :  { %v1357_v0 = vadd.f32 %v9234_v61, %v1356_v62  ;;  %v7929_v1 = vpop.f32.mrb[29].mxu1 }
0x2015   :  { %v1359_v2 = vpop.f32.mrb[30].mxu1 }
0x2016   :  { %v1363_v4 = vrot.slane %v1357_v0, 2  ;;  %v7930_v5 = vpop.f32.mrb[31].mxu1 }
0x2018   :  { %1372 = vrot.lane.b32.xlu0 %v1363_v4, %s8966_s0  ;;  %v1365_v6 = vadd.f32 %v1363_v4, %v9227_v55 }
0x201a   :  { %v7443_v7 = vmul.f32 -1.442695, %v1365_v6 }
0x201c   :  { %8619 = vpow2.f32 %v7443_v7 }
0x2026   :  { %v8620_v8 = vpop.eup %8619 }
0x2027   :  { %v1369_v9 = vadd.f32 1.0, %v8620_v8 }
0x2029   :  { %8621 = vrcp.f32 %v1369_v9 }
0x2033   :  { %v8622_v10 = vpop.eup %8621 }
0x2034   :  { %v1382_v16 = vsub.f32 1.0, %v8622_v10  ;;  %v1391_v19 = vmul.f32 %v8622_v10, %v1389_v17  ;;  %v8901_v17 = vld [vmem:[%s9016_s29] ss:$0 sm:$0xff]  ;;  %s8971_s29 = smov 120  }
0x208a   :  { %v1373_v11 = vpop.permute.xlu0 %1372 }
0x208b   :  { %v1375_v12 = vmul.f32 %v8622_v10, %v1373_v11 }
0x208d   :  { %1377 = vrot.lane.b32.xlu1 %v1375_v12, %s8967_s5 }
0x20ff   :  { %v1378_v13 = vpop.permute.xlu1 %1377 }
0x2100   :  { %v1380_v14 = vadd.f32 %v1378_v13, %v9227_v55 }
0x2102   :  { %8623 = vtanh.f32 %v1380_v14 }
0x210c   :  { %v8624_v15 = vpop.eup %8623 }
0x210d   :  { %1384 = vrot.lane.b32.xlu0 %v8624_v15, %s8968_s9 }
0x217f   :  { %v1385_v18 = vpop.permute.xlu0 %1384 }
0x2180   :  { %v1387_v20 = vmul.f32 %v1385_v18, %v1382_v16 }
0x2182   :  { %v1392_v21 = vadd.f32 %v1391_v19, %v1387_v20 }
0x2184   :  { %v1393_v22 = vpack.c.bf16 %v1392_v21, %v1392_v21  ;;  %v9431_v23 = vsel %vm295_vm3, %v1715_v57, %v1392_v21  ;;  %v1466_v46 = vrot.slane %v1392_v21, 6 }
0x2186   :  { %v1395_v24 = vrot.slane %v1393_v22, 3 }
0x2188   :  { %1396 = vrot.lane.b32.xlu1 %v1395_v24, %s8968_s9 }
0x21fa   :  { %v1397_v25 = vpop.permute.xlu1 %1396 }
0x21fb   :  { %7936 = vmatmul.mubr.msk.bf16.vlgmr.msra.gmra.mrb[24].mxu0 %vm458_vm6, %v1397_v25 }
0x21fc   :  { %7948 = vmatpush3.bf16.msra.mxu0 %v9196_v32  ;;  %7951 = vmatprep.mubr.msk.bf16.mxu0 %vm8964_vm4, %v8963_v33 }
0x21fd   :  { %7949 = vmatprep.subr.bf16.mxu0 %v8963_v33 }
0x2200   :  { %7950 = vmatpush3.bf16.msra.mxu0 %v9204_v36 }
0x22ce   :  { %v1435_v55 = vpop.f32.mrb[24].mxu0 }
0x22cf   :  { %v1436_v26 = vadd.f32 %v9234_v61, %v1435_v55  ;;  %v7937_v27 = vpop.f32.mrb[25].mxu0 }
0x22d0   :  { %v1438_v28 = vpop.f32.mrb[26].mxu0 }
0x22d1   :  { %1449 = vrot.lane.b32.xlu0 %v1436_v26, %s8966_s0  ;;  %v7938_v29 = vpop.f32.mrb[27].mxu0  ;;  %v1441_v30 = vadd.f32 %v1436_v26, %v9229_v58 }
0x22d3   :  { %v7445_v35 = vmul.f32 -1.442695, %v1441_v30 }
0x22d5   :  { %8625 = vpow2.f32 %v7445_v35 }
0x22df   :  { %v8626_v60 = vpop.eup %8625 }
0x22e0   :  { %v1445_v37 = vadd.f32 1.0, %v8626_v60 }
0x22e2   :  { %8627 = vrcp.f32 %v1445_v37 }
0x22ec   :  { %v8628_v38 = vpop.eup %8627 }
0x22ed   :  { %v1459_v45 = vsub.f32 1.0, %v8628_v38  ;;  %v1468_v47 = vmul.f32 %v8628_v38, %v1466_v46 }
0x2343   :  { %v1450_v39 = vpop.permute.xlu0 %1449 }
0x2344   :  { %v1452_v40 = vmul.f32 %v8628_v38, %v1450_v39 }
0x2346   :  { %1454 = vrot.lane.b32.xlu1 %v1452_v40, %s8967_s5 }
0x23b8   :  { %v1455_v41 = vpop.permute.xlu1 %1454 }
0x23b9   :  { %v1457_v42 = vadd.f32 %v1455_v41, %v9229_v58 }
0x23bb   :  { %8629 = vtanh.f32 %v1457_v42 }
0x23c5   :  { %v8630_v43 = vpop.eup %8629 }
0x23c6   :  { %1461 = vrot.lane.b32.xlu0 %v8630_v43, %s8968_s9 }
0x2438   :  { %v1462_v3 = vpop.permute.xlu0 %1461 }
0x2439   :  { %v1464_v48 = vmul.f32 %v1462_v3, %v1459_v45 }
0x243b   :  { %v9446_v49 = vadd.f32 %v1468_v47, %v1464_v48 }
0x243d   :  { %v1470_v50 = vpack.c.bf16 %v9446_v49, %v9446_v49  ;;  %v1544_v8 = vrot.slane %v9446_v49, 6 }
0x243f   :  { %1472 = vrot.lane.b32.xlu1 %v1470_v50, %s8968_s9 }
0x24b1   :  { %v1473_v51 = vpop.permute.xlu1 %1472 }
0x24b2   :  { %7944 = vmatmul.mubr.msk.bf16.vlgmr.msra.gmra.mrb[32].mxu1 %vm458_vm6, %v1473_v51 }
0x24b3   :  { %7956 = vmatpush3.bf16.msra.mxu1 %v9196_v32  ;;  %7959 = vmatprep.mubr.msk.bf16.mxu1 %vm8964_vm4, %v8963_v33 }
0x24b4   :  { %7957 = vmatprep.subr.bf16.mxu1 %v8963_v33 }
0x24b7   :  { %7958 = vmatpush3.bf16.msra.mxu1 %v9204_v36 }
0x24b8   :  { %7971 = vmatprep.subr.bf16.mxu1 %v8963_v33 }
0x2585   :  { %v1511_v53 = vpop.f32.mrb[32].mxu1 }
0x2586   :  { %v1512_v54 = vadd.f32 %v9234_v61, %v1511_v53  ;;  %v7945_v56 = vpop.f32.mrb[33].mxu1 }
0x2587   :  { %v1514_v57 = vpop.f32.mrb[34].mxu1 }
0x2588   :  { %v1518_v59 = vrot.slane %v1512_v54, 6  ;;  %v7946_v63 = vpop.f32.mrb[35].mxu1 }
0x258a   :  { %1527 = vrot.lane.b32.xlu0 %v1518_v59, %s8966_s0  ;;  %v1520_v32 = vadd.f32 %v1518_v59, %v9229_v58 }
0x258c   :  { %v7447_v62 = vmul.f32 -1.442695, %v1520_v32 }
0x258e   :  { %8631 = vpow2.f32 %v7447_v62 }
0x2598   :  { %v8632_v0 = vpop.eup %8631 }
0x2599   :  { %v1524_v1 = vadd.f32 1.0, %v8632_v0 }
0x259b   :  { %8633 = vrcp.f32 %v1524_v1 }
0x25a5   :  { %v8634_v2 = vpop.eup %8633 }
0x25a6   :  { %v1537_v7 = vsub.f32 1.0, %v8634_v2  ;;  %v1546_v10 = vmul.f32 %v8634_v2, %v1544_v8  ;;  %v1720_v8 = vld [vmem:[%s9021_s3] sm:$0xff] }
0x25fc   :  { %v1528_v36 = vpop.permute.xlu0 %1527 }
0x25fd   :  { %v1530_v4 = vmul.f32 %v8634_v2, %v1528_v36 }
0x25ff   :  { %1532 = vrot.lane.b32.xlu1 %v1530_v4, %s8967_s5  ;;  %v1798_v4 = vld [vmem:[%s9026_s8] sm:$0xff] }
0x2671   :  { %v1533_v5 = vpop.permute.xlu1 %1532 }
0x2672   :  { %v1535_v61 = vadd.f32 %v1533_v5, %v9229_v58  ;;  %v1799_v5 = vld [vmem:[%s9026_s8 + $0x8] sm:$0xff] }
0x2674   :  { %8635 = vtanh.f32 %v1535_v61  ;;  %v1800_v61 = vld [vmem:[%s9026_s8 + $0x10] sm:$0xff]  ;;  %s8973_s8 = smov 64  }
0x267e   :  { %v8636_v6 = vpop.eup %8635 }
0x267f   :  { %1539 = vrot.lane.b32.xlu0 %v8636_v6, %s8968_s9  ;;  %v9499_v6 = vpack.c.bf16 %v1799_v5, %v1798_v4 }
0x26f1   :  { %v1540_v9 = vpop.permute.xlu0 %1539 }
0x26f2   :  { %v1542_v11 = vmul.f32 %v1540_v9, %v1537_v7  ;;  %v1802_v7 = vpack.c.bf16 %v1800_v61, %v1800_v61  ;;  %v1721_v9 = vld [vmem:[%s9021_s3 + $0x8] sm:$0xff] }
0x26f4   :  { %v1547_v12 = vadd.f32 %v1546_v10, %v1542_v11  ;;  %v1722_v10 = vld [vmem:[%s9021_s3 + $0x10] sm:$0xff]  ;;  %v1725_v11 = vpack.c.bf16 %v1721_v9, %v1720_v8  ;;  %s8972_s3 = smov 56  }
0x26f6   :  { %v1548_v13 = vpack.c.bf16 %v1547_v12, %v1547_v12  ;;  %v1623_v38 = vrot.slane %v1547_v12, 6  ;;  %v1717_v43 = vsel %vm1706_vm7, %v9446_v49, %v1547_v12  ;;  %v1726_v12 = vpack.c.bf16 %v1722_v10, %v1722_v10  ;;  %7963 = vmatprep.subr.bf16.mxu0 %v1725_v11 }
0x26f8   :  { %v1550_v14 = vrot.slane %v1548_v13, 1  ;;  %v1747_v31 = vsel %vm181_vm0, %v1726_v12, 0 }
0x26fa   :  { %1551 = vrot.lane.b32.xlu1 %v1550_v14, %s8968_s9 }
0x276c   :  { %v1552_v15 = vpop.permute.xlu1 %1551 }
0x276d   :  { %7952 = vmatmul.mubr.msk.bf16.vlgmr.msra.gmra.mrb[28].mxu0 %vm458_vm6, %v1552_v15 }
0x276e   :  { %7964 = vmatpush3.bf16.msra.mxu0 %v1725_v11 }
0x276f   :  { %8470 = vmatprep.subr.msk.bf16.mxu0 %vm181_vm0, %v1726_v12 }
0x2772   :  { %7966 = vmatpush3.bf16.msra.mxu0 %v1747_v31 }
0x2773   :  { %7979 = vmatprep.subr.bf16.mxu0 %v8963_v33 }
0x2840   :  { %v1590_v16 = vpop.f32.mrb[28].mxu0 }
0x2841   :  { %v1591_v18 = vadd.f32 %v8901_v17, %v1590_v16  ;;  %v7953_v19 = vpop.f32.mrb[29].mxu0 }
0x2842   :  { %v1593_v20 = vpop.f32.mrb[30].mxu0  ;;  %v9528_v19 = vld [vmem:[%s9036_s19] ss:$0 sm:$0xff] }
0x2843   :  { %v1597_v21 = vrot.slane %v1591_v18, 4  ;;  %v7954_v22 = vpop.f32.mrb[31].mxu0 }
0x2845   :  { %1606 = vrot.lane.b32.xlu0 %v1597_v21, %s8966_s0  ;;  %v1599_v24 = vadd.f32 %v1597_v21, %v9229_v58 }
0x2847   :  { %v7449_v25 = vmul.f32 -1.442695, %v1599_v24 }
0x2849   :  { %8637 = vpow2.f32 %v7449_v25 }
0x2853   :  { %v8638_v55 = vpop.eup %8637 }
0x2854   :  { %v1603_v26 = vadd.f32 1.0, %v8638_v55 }
0x2856   :  { %8639 = vrcp.f32 %v1603_v26 }
0x2860   :  { %v8640_v27 = vpop.eup %8639 }
0x2861   :  { %v1616_v37 = vsub.f32 1.0, %v8640_v27  ;;  %v1625_v40 = vmul.f32 %v8640_v27, %v1623_v38 }
0x28b7   :  { %v1607_v28 = vpop.permute.xlu0 %1606 }
0x28b8   :  { %v1609_v29 = vmul.f32 %v8640_v27, %v1607_v28 }
0x28ba   :  { %1611 = vrot.lane.b32.xlu1 %v1609_v29, %s8967_s5 }
0x292c   :  { %v1612_v30 = vpop.permute.xlu1 %1611 }
0x292d   :  { %v1614_v35 = vadd.f32 %v1612_v30, %v9229_v58 }
0x292f   :  { %8641 = vtanh.f32 %v1614_v35 }
0x2939   :  { %v8642_v60 = vpop.eup %8641 }
0x293a   :  { %1618 = vrot.lane.b32.xlu0 %v8642_v60, %s8968_s9 }
0x29ac   :  { %v1619_v39 = vpop.permute.xlu0 %1618 }
0x29ad   :  { %v1621_v41 = vmul.f32 %v1619_v39, %v1616_v37 }
0x29af   :  { %v9473_v42 = vadd.f32 %v1625_v40, %v1621_v41 }
0x29b1   :  { %v1627_v45 = vpack.c.bf16 %v9473_v42, %v9473_v42  ;;  %v9481_v46 = vsel %vm181_vm0, %v1717_v43, %v9473_v42  ;;  %v1702_v13 = vrot.slane %v9473_v42, 6 }
0x29b3   :  { %v1629_v3 = vrot.slane %v1627_v45, 2 }
0x29b5   :  { %1630 = vrot.lane.b32.xlu1 %v1629_v3, %s8968_s9 }
0x2a27   :  { %v1631_v47 = vpop.permute.xlu1 %1630 }
0x2a28   :  { %7960 = vmatmul.mubr.msk.bf16.vlgmr.msra.gmra.mrb[36].mxu1 %vm458_vm6, %v1631_v47 }
0x2a29   :  { %7975 = vmatprep.mubr.msk.bf16.mxu1 %vm8964_vm4, %v8963_v33  ;;  %7972 = vmatpush3.bf16.msra.mxu1 %v9499_v6 }
0x2a2a   :  { %7973 = vmatprep.subr.bf16.mxu1 %v8963_v33 }
0x2afb   :  { %v1669_v48 = vpop.f32.mrb[36].mxu1 }
0x2afc   :  { %v1670_v50 = vadd.f32 %v8901_v17, %v1669_v48  ;;  %v7961_v51 = vpop.f32.mrb[37].mxu1 }
0x2afd   :  { %v1672_v49 = vpop.f32.mrb[38].mxu1 }
0x2afe   :  { %v1676_v53 = vrot.slane %v1670_v50, 2  ;;  %v7962_v54 = vpop.f32.mrb[39].mxu1 }
0x2b00   :  { %1685 = vrot.lane.b32.xlu0 %v1676_v53, %s8966_s0  ;;  %v1678_v56 = vadd.f32 %v1676_v53, %v9229_v58 }
0x2b02   :  { %v7451_v57 = vmul.f32 -1.442695, %v1678_v56 }
0x2b04   :  { %8643 = vpow2.f32 %v7451_v57 }
0x2b0e   :  { %v8644_v59 = vpop.eup %8643 }
0x2b0f   :  { %v1682_v63 = vadd.f32 1.0, %v8644_v59 }
0x2b11   :  { %8645 = vrcp.f32 %v1682_v63 }
0x2b1b   :  { %v8646_v32 = vpop.eup %8645 }
0x2b1c   :  { %v1704_v15 = vmul.f32 %v8646_v32, %v1702_v13 }
0x2b72   :  { %v1686_v62 = vpop.permute.xlu0 %1685 }
0x2b73   :  { %v1688_v0 = vmul.f32 %v8646_v32, %v1686_v62 }
0x2b75   :  { %1690 = vrot.lane.b32.xlu1 %v1688_v0, %s8967_s5 }
0x2b79   :  { %1736 = vrot.lane.b32.xlu1 %v1723_v34, %s8968_s9  ;;  %v1695_v34 = vsub.f32 1.0, %v8646_v32 }
0x2be7   :  { %v1691_v1 = vpop.permute.xlu1 %1690 }
0x2be8   :  { %v1693_v2 = vadd.f32 %v1691_v1, %v9229_v58  ;;  %v9507_v58 = vsel %vm181_vm0, %v1802_v7, 0 }
0x2be9   :  { %7974 = vmatpush3.bf16.msra.mxu1 %v9507_v58 }
0x2bea   :  { %8647 = vtanh.f32 %v1693_v2  ;;  %7987 = vmatprep.subr.bf16.mxu1 %v8963_v33 }
0x2beb   :  { %v1737_v36 = vpop.permute.xlu1 %1736 }
0x2bec   :  { %7967 = vmatprep.mubr.msk.bf16.mxu0 %vm458_vm6, %v1737_v36  ;;  %7976 = vmatmul.mubr.bf16.vlgmr.msra.gmra.mrb[40].mxu1 %v8965_v52 }
0x2bed   :  { %7988 = vmatpush3.bf16.msra.mxu1 %v9499_v6  ;;  %7991 = vmatprep.mubr.msk.bf16.mxu1 %vm8964_vm4, %v8963_v33 }
0x2bee   :  { %7989 = vmatprep.subr.bf16.mxu1 %v8963_v33 }
0x2bf1   :  { %7990 = vmatpush3.bf16.msra.mxu1 %v9507_v58 }
0x2bf2   :  { %8003 = vmatprep.subr.bf16.mxu1 %v8963_v33 }
0x2bf4   :  { %v8648_v44 = vpop.eup %8647 }
0x2bf5   :  { %1697 = vrot.lane.b32.xlu0 %v8648_v44, %s8968_s9 }
0x2c67   :  { %v1698_v14 = vpop.permute.xlu0 %1697 }
0x2c68   :  { %v1700_v52 = vmul.f32 %v1698_v14, %v1695_v34 }
0x2c6a   :  { %v1705_v16 = vadd.f32 %v1704_v15, %v1700_v52 }
0x2c6c   :  { %v1719_v17 = vsel %vm295_vm3, %v9481_v46, %v1705_v16 }
0x2c6d   :  { %v1724_v18 = vpack.c.bf16 %v1719_v17, %v9431_v23  ;;  %v7452_v23 = vld [vmem:[%s9031_s14] ss:$0 sm:$0xff]  ;;  %s8974_s14 = smov 112  }
0x2c6f   :  { %1738 = vrot.lane.b32.xlu0 %v1724_v18, %s8968_s9 }
0x2cbf   :  { %v1847_v20 = vpop.f32.mrb[40].mxu1 }
0x2cc0   :  { %v1848_v21 = vadd.f32 %v9528_v19, %v1847_v20  ;;  %v7977_v22 = vpop.f32.mrb[41].mxu1 }
0x2cc1   :  { %v1850_v24 = vpop.f32.mrb[42].mxu1 }
0x2cc2   :  { %v7978_v25 = vpop.f32.mrb[43].mxu1  ;;  %1861 = vrot.lane.b32.xlu1 %v1848_v21, %s8966_s0 }
0x2ce1   :  { %v1739_v55 = vpop.permute.xlu0 %1738 }
0x2ce2   :  { %7968 = vmatmul.mubr.msk.bf16.vlgmr.msra.gmra.mrb[32].mxu0 %vm458_vm6, %v1739_v55 }
0x2ce3   :  { %7980 = vmatpush3.bf16.msra.mxu0 %v9499_v6  ;;  %7983 = vmatprep.mubr.msk.bf16.mxu0 %vm8964_vm4, %v8963_v33 }
0x2ce4   :  { %7981 = vmatprep.subr.bf16.mxu0 %v8963_v33 }
0x2ce7   :  { %7982 = vmatpush3.bf16.msra.mxu0 %v9507_v58 }
0x2ce8   :  { %7995 = vmatprep.subr.bf16.mxu0 %v8963_v33 }
0x2d34   :  { %v1862_v42 = vpop.permute.xlu1 %1861 }
0x2db5   :  { %v7969_v26 = vpop.f32.mrb[32].mxu0 }
0x2db6   :  { %v9540_v27 = vadd.f32 %v7969_v26, %v7452_v23  ;;  %v1783_v28 = vpop.f32.mrb[33].mxu0 }
0x2db7   :  { %v9542_v29 = vadd.f32 %v7452_v23, %v1783_v28  ;;  %v7970_v30 = vpop.f32.mrb[34].mxu0 }
0x2db8   :  { %v9544_v35 = vadd.f32 %v7970_v30, %v7452_v23  ;;  %v1786_v60 = vpop.f32.mrb[35].mxu0 }
0x2db9   :  { %v9546_v37 = vadd.f32 %v7452_v23, %v1786_v60  ;;  %v1853_v38 = vadd.f32 %v1848_v21, %v9542_v29 }
0x2dbb   :  { %v7456_v39 = vmul.f32 -1.442695, %v1853_v38 }
0x2dbd   :  { %8649 = vpow2.f32 %v7456_v39 }
0x2dc7   :  { %v8650_v40 = vpop.eup %8649 }
0x2dc8   :  { %v1857_v41 = vadd.f32 1.0, %v8650_v40 }
0x2dca   :  { %8651 = vrcp.f32 %v1857_v41 }
0x2dd4   :  { %v8652_v43 = vpop.eup %8651 }
0x2dd5   :  { %v1864_v45 = vmul.f32 %v8652_v43, %v1862_v42  ;;  %v1871_v48 = vsub.f32 1.0, %v8652_v43  ;;  %v1877_v51 = vmul.f32 0.0, %v8652_v43 }
0x2dd7   :  { %1866 = vrot.lane.b32.xlu0 %v1864_v45, %s8967_s5 }
0x2e49   :  { %v1867_v46 = vpop.permute.xlu0 %1866 }
0x2e4a   :  { %v1869_v3 = vadd.f32 %v1867_v46, %v9542_v29 }
0x2e4c   :  { %8653 = vtanh.f32 %v1869_v3 }
0x2e56   :  { %v8654_v47 = vpop.eup %8653 }
0x2e57   :  { %1873 = vrot.lane.b32.xlu1 %v8654_v47, %s8968_s9 }
0x2ec9   :  { %v1874_v50 = vpop.permute.xlu1 %1873 }
0x2eca   :  { %v1876_v49 = vmul.f32 %v1874_v50, %v1871_v48 }
0x2ecc   :  { %v9552_v53 = vadd.f32 %v1877_v51, %v1876_v49 }
0x2ece   :  { %v1879_v54 = vpack.c.bf16 %v9552_v53, %v9552_v53  ;;  %v1953_v12 = vrot.slane %v9552_v53, 6  ;;  %v3097_v48 = vrot.slane %v9552_v53, 1 }
0x2ed0   :  { %1881 = vrot.lane.b32.xlu0 %v1879_v54, %s8968_s9 }
0x2f42   :  { %v1882_v56 = vpop.permute.xlu0 %1881 }
0x2f43   :  { %7984 = vmatmul.mubr.msk.bf16.vlgmr.msra.gmra.mrb[36].mxu0 %vm458_vm6, %v1882_v56 }
0x2f44   :  { %7996 = vmatpush3.bf16.msra.mxu0 %v9499_v6  ;;  %7999 = vmatprep.mubr.msk.bf16.mxu0 %vm8964_vm4, %v8963_v33 }
0x2f45   :  { %7997 = vmatprep.subr.bf16.mxu0 %v8963_v33 }
0x2f48   :  { %7998 = vmatpush3.bf16.msra.mxu0 %v9507_v58 }
0x2f49   :  { %8011 = vmatprep.subr.bf16.mxu0 %v8963_v33 }
0x3016   :  { %v1920_v57 = vpop.f32.mrb[36].mxu0 }
0x3017   :  { %v1921_v59 = vadd.f32 %v9528_v19, %v1920_v57  ;;  %v7985_v63 = vpop.f32.mrb[37].mxu0 }
0x3018   :  { %v1923_v32 = vpop.f32.mrb[38].mxu0 }
0x3019   :  { %v1927_v62 = vrot.slane %v1921_v59, 6  ;;  %v7986_v0 = vpop.f32.mrb[39].mxu0 }
0x301b   :  { %1936 = vrot.lane.b32.xlu1 %v1927_v62, %s8966_s0  ;;  %v1929_v1 = vadd.f32 %v1927_v62, %v9542_v29 }
0x301d   :  { %v7458_v2 = vmul.f32 -1.442695, %v1929_v1 }
0x301f   :  { %8655 = vpow2.f32 %v7458_v2 }
0x3029   :  { %v8656_v36 = vpop.eup %8655 }
0x302a   :  { %v1933_v4 = vadd.f32 1.0, %v8656_v36 }
0x302c   :  { %8657 = vrcp.f32 %v1933_v4 }
0x3036   :  { %v8658_v5 = vpop.eup %8657 }
0x3037   :  { %v1946_v11 = vsub.f32 1.0, %v8658_v5  ;;  %v1955_v31 = vmul.f32 %v8658_v5, %v1953_v12 }
0x308d   :  { %v1937_v61 = vpop.permute.xlu1 %1936 }
0x308e   :  { %v1939_v7 = vmul.f32 %v8658_v5, %v1937_v61 }
0x3090   :  { %1941 = vrot.lane.b32.xlu0 %v1939_v7, %s8967_s5 }
0x3102   :  { %v1942_v8 = vpop.permute.xlu0 %1941 }
0x3103   :  { %v1944_v9 = vadd.f32 %v1942_v8, %v9542_v29 }
0x3105   :  { %8659 = vtanh.f32 %v1944_v9 }
0x310f   :  { %v8660_v10 = vpop.eup %8659 }
0x3110   :  { %1948 = vrot.lane.b32.xlu1 %v8660_v10, %s8968_s9 }
0x3182   :  { %v1949_v44 = vpop.permute.xlu1 %1948 }
0x3183   :  { %v1951_v34 = vmul.f32 %v1949_v44, %v1946_v11 }
0x3185   :  { %v1956_v13 = vadd.f32 %v1955_v31, %v1951_v34 }
0x3187   :  { %v1957_v14 = vpack.c.bf16 %v1956_v13, %v1956_v13  ;;  %v2032_v41 = vrot.slane %v1956_v13, 6  ;;  %v3054_v46 = vrot.slane %v1956_v13, 1  ;;  %v3099_v3 = vrot.slane %v1956_v13, 2 }
0x3189   :  { %v1959_v15 = vrot.slane %v1957_v14, 1  ;;  %v3080_v54 = vsel %vm3079_vm8, %v9552_v53, %v3054_v46  ;;  %v3121_v56 = vsel %vm3079_vm8, %v3097_v48, %v3099_v3 }
0x318b   :  { %1960 = vrot.lane.b32.xlu0 %v1959_v15, %s8968_s9 }
0x31fd   :  { %v1961_v52 = vpop.permute.xlu0 %1960 }
0x31fe   :  { %7992 = vmatmul.mubr.msk.bf16.vlgmr.msra.gmra.mrb[44].mxu1 %vm458_vm6, %v1961_v52 }
0x31ff   :  { %8004 = vmatpush3.bf16.msra.mxu1 %v9499_v6  ;;  %8007 = vmatprep.mubr.msk.bf16.mxu1 %vm8964_vm4, %v8963_v33 }
0x3200   :  { %8005 = vmatprep.subr.bf16.mxu1 %v8963_v33 }
0x3203   :  { %8006 = vmatpush3.bf16.msra.mxu1 %v9507_v58 }
0x3204   :  { %8019 = vmatprep.subr.bf16.mxu1 %v8963_v33 }
0x32d1   :  { %v1999_v16 = vpop.f32.mrb[44].mxu1 }
0x32d2   :  { %v2000_v17 = vadd.f32 %v9528_v19, %v1999_v16  ;;  %v7993_v18 = vpop.f32.mrb[45].mxu1 }
0x32d3   :  { %v2002_v20 = vpop.f32.mrb[46].mxu1 }
0x32d4   :  { %v2006_v21 = vrot.slane %v2000_v17, 4  ;;  %v7994_v22 = vpop.f32.mrb[47].mxu1 }
0x32d6   :  { %2015 = vrot.lane.b32.xlu1 %v2006_v21, %s8966_s0  ;;  %v2008_v24 = vadd.f32 %v2006_v21, %v9542_v29 }
0x32d8   :  { %v7460_v25 = vmul.f32 -1.442695, %v2008_v24 }
0x32da   :  { %8661 = vpow2.f32 %v7460_v25 }
0x32e4   :  { %v8662_v55 = vpop.eup %8661 }
0x32e5   :  { %v2012_v23 = vadd.f32 1.0, %v8662_v55 }
0x32e7   :  { %8663 = vrcp.f32 %v2012_v23 }
0x32f1   :  { %v8664_v26 = vpop.eup %8663 }
0x32f2   :  { %v2025_v40 = vsub.f32 1.0, %v8664_v26  ;;  %v2034_v43 = vmul.f32 %v8664_v26, %v2032_v41 }
0x3348   :  { %v2016_v28 = vpop.permute.xlu1 %2015 }
0x3349   :  { %v2018_v30 = vmul.f32 %v8664_v26, %v2016_v28 }
0x334b   :  { %2020 = vrot.lane.b32.xlu0 %v2018_v30, %s8967_s5 }
0x33bd   :  { %v2021_v60 = vpop.permute.xlu0 %2020 }
0x33be   :  { %v2023_v38 = vadd.f32 %v2021_v60, %v9542_v29 }
0x33c0   :  { %8665 = vtanh.f32 %v2023_v38 }
0x33ca   :  { %v8666_v39 = vpop.eup %8665 }
0x33cb   :  { %2027 = vrot.lane.b32.xlu1 %v8666_v39, %s8968_s9 }
0x343d   :  { %v2028_v42 = vpop.permute.xlu1 %2027 }
0x343e   :  { %v2030_v45 = vmul.f32 %v2028_v42, %v2025_v40 }
0x3440   :  { %v2035_v47 = vadd.f32 %v2034_v43, %v2030_v45 }
0x3442   :  { %v3056_v50 = vrot.slane %v2035_v47, 2  ;;  %v3101_v51 = vrot.slane %v2035_v47, 3  ;;  %v2036_v49 = vpack.c.bf16 %v2035_v47, %v2035_v47  ;;  %v2111_v34 = vrot.slane %v2035_v47, 6 }
0x3444   :  { %v3081_v57 = vsel %vm1706_vm7, %v3080_v54, %v3056_v50  ;;  %v3122_v59 = vsel %vm1706_vm7, %v3121_v56, %v3101_v51  ;;  %v2038_v63 = vrot.slane %v2036_v49, 2 }
0x3446   :  { %2039 = vrot.lane.b32.xlu0 %v2038_v63, %s8968_s9 }
0x34b8   :  { %v2040_v32 = vpop.permute.xlu0 %2039 }
0x34b9   :  { %8000 = vmatmul.mubr.msk.bf16.vlgmr.msra.gmra.mrb[40].mxu0 %vm458_vm6, %v2040_v32 }
0x34ba   :  { %8012 = vmatpush3.bf16.msra.mxu0 %v9499_v6  ;;  %8015 = vmatprep.mubr.msk.bf16.mxu0 %vm8964_vm4, %v8963_v33 }
0x34bb   :  { %8013 = vmatprep.subr.bf16.mxu0 %v8963_v33 }
0x34be   :  { %8014 = vmatpush3.bf16.msra.mxu0 %v9507_v58 }
0x34bf   :  { %8027 = vmatprep.subr.bf16.mxu0 %v8963_v33 }
0x358c   :  { %v2078_v53 = vpop.f32.mrb[40].mxu0 }
0x358d   :  { %v2079_v62 = vadd.f32 %v9528_v19, %v2078_v53  ;;  %v8001_v0 = vpop.f32.mrb[41].mxu0 }
0x358e   :  { %v2081_v1 = vpop.f32.mrb[42].mxu0 }
0x358f   :  { %v2085_v2 = vrot.slane %v2079_v62, 2  ;;  %v8002_v36 = vpop.f32.mrb[43].mxu0 }
0x3591   :  { %2094 = vrot.lane.b32.xlu1 %v2085_v2, %s8966_s0  ;;  %v2087_v4 = vadd.f32 %v2085_v2, %v9542_v29 }
0x3593   :  { %v7462_v5 = vmul.f32 -1.442695, %v2087_v4 }
0x3595   :  { %8667 = vpow2.f32 %v7462_v5 }
0x359f   :  { %v8668_v61 = vpop.eup %8667 }
0x35a0   :  { %v2091_v7 = vadd.f32 1.0, %v8668_v61 }
0x35a2   :  { %8669 = vrcp.f32 %v2091_v7 }
0x35ac   :  { %v8670_v8 = vpop.eup %8669 }
0x35ad   :  { %v2104_v31 = vsub.f32 1.0, %v8670_v8  ;;  %v2113_v14 = vmul.f32 %v8670_v8, %v2111_v34 }
0x3603   :  { %v2095_v9 = vpop.permute.xlu1 %2094 }
0x3604   :  { %v2097_v10 = vmul.f32 %v8670_v8, %v2095_v9 }
0x3606   :  { %2099 = vrot.lane.b32.xlu0 %v2097_v10, %s8967_s5 }
0x3678   :  { %v2100_v11 = vpop.permute.xlu0 %2099 }
0x3679   :  { %v2102_v12 = vadd.f32 %v2100_v11, %v9542_v29 }
0x367b   :  { %8671 = vtanh.f32 %v2102_v12 }
0x3685   :  { %v8672_v44 = vpop.eup %8671 }
0x3686   :  { %2106 = vrot.lane.b32.xlu1 %v8672_v44, %s8968_s9 }
0x36f8   :  { %v2107_v13 = vpop.permute.xlu1 %2106 }
0x36f9   :  { %v2109_v15 = vmul.f32 %v2107_v13, %v2104_v31 }
0x36fb   :  { %v2114_v52 = vadd.f32 %v2113_v14, %v2109_v15 }
0x36fd   :  { %v3058_v16 = vrot.slane %v2114_v52, 3  ;;  %v3103_v17 = vrot.slane %v2114_v52, 4  ;;  %v2115_v18 = vpack.c.bf16 %v2114_v52, %v2114_v52  ;;  %v2188_v3 = vrot.slane %v2114_v52, 6 }
0x36ff   :  { %v3083_v20 = vsel %vm3082_vm9, %v3081_v57, %v3058_v16  ;;  %v3123_v21 = vsel %vm3082_vm9, %v3122_v59, %v3103_v17  ;;  %v2117_v22 = vrot.slane %v2115_v18, 3 }
0x3701   :  { %2118 = vrot.lane.b32.xlu0 %v2117_v22, %s8968_s9 }
0x3773   :  { %v2119_v29 = vpop.permute.xlu0 %2118 }
0x3774   :  { %8008 = vmatmul.mubr.msk.bf16.vlgmr.msra.gmra.mrb[48].mxu1 %vm458_vm6, %v2119_v29 }
0x3775   :  { %8020 = vmatpush3.bf16.msra.mxu1 %v9499_v6  ;;  %8023 = vmatprep.mubr.msk.bf16.mxu1 %vm8964_vm4, %v8963_v33 }
0x3776   :  { %8021 = vmatprep.subr.bf16.mxu1 %v8963_v33 }
0x3779   :  { %8022 = vmatpush3.bf16.msra.mxu1 %v9507_v58 }
0x377a   :  { %8035 = vmatprep.subr.bf16.mxu1 %v8963_v33 }
0x3847   :  { %v2157_v24 = vpop.f32.mrb[48].mxu1 }
0x3848   :  { %v2158_v25 = vadd.f32 %v9528_v19, %v2157_v24  ;;  %v8009_v55 = vpop.f32.mrb[49].mxu1 }
0x3849   :  { %v2160_v23 = vpop.f32.mrb[50].mxu1 }
0x384a   :  { %2171 = vrot.lane.b32.xlu1 %v2158_v25, %s8966_s0  ;;  %v8010_v26 = vpop.f32.mrb[51].mxu1  ;;  %v2163_v28 = vadd.f32 %v2158_v25, %v9546_v37 }
0x384c   :  { %v7464_v30 = vmul.f32 -1.442695, %v2163_v28 }
0x384e   :  { %8673 = vpow2.f32 %v7464_v30 }
0x3858   :  { %v8674_v60 = vpop.eup %8673 }
0x3859   :  { %v2167_v38 = vadd.f32 1.0, %v8674_v60 }
0x385b   :  { %8675 = vrcp.f32 %v2167_v38 }
0x3865   :  { %v8676_v39 = vpop.eup %8675 }
0x3866   :  { %v2181_v46 = vsub.f32 1.0, %v8676_v39  ;;  %v2190_v48 = vmul.f32 %v8676_v39, %v2188_v3 }
0x38bc   :  { %v2172_v40 = vpop.permute.xlu1 %2171 }
0x38bd   :  { %v2174_v41 = vmul.f32 %v8676_v39, %v2172_v40 }
0x38bf   :  { %2176 = vrot.lane.b32.xlu0 %v2174_v41, %s8967_s5 }
0x3931   :  { %v2177_v42 = vpop.permute.xlu0 %2176 }
0x3932   :  { %v2179_v43 = vadd.f32 %v2177_v42, %v9546_v37 }
0x3934   :  { %8677 = vtanh.f32 %v2179_v43 }
0x393e   :  { %v8678_v45 = vpop.eup %8677 }
0x393f   :  { %2183 = vrot.lane.b32.xlu1 %v8678_v45, %s8968_s9 }
0x39b1   :  { %v2184_v47 = vpop.permute.xlu1 %2183 }
0x39b2   :  { %v2186_v50 = vmul.f32 %v2184_v47, %v2181_v46 }
0x39b4   :  { %v2191_v51 = vadd.f32 %v2190_v48, %v2186_v50 }
0x39b6   :  { %v3060_v49 = vrot.slane %v2191_v51, 4  ;;  %v3105_v54 = vrot.slane %v2191_v51, 5  ;;  %v2192_v56 = vpack.c.bf16 %v2191_v51, %v2191_v51  ;;  %v2266_v31 = vrot.slane %v2191_v51, 6 }
0x39b8   :  { %2194 = vrot.lane.b32.xlu0 %v2192_v56, %s8968_s9  ;;  %v3084_v57 = vsel %vm181_vm0, %v3083_v20, %v3060_v49  ;;  %v9624_v59 = vsel %vm181_vm0, %v3123_v21, %v3105_v54 }
0x3a2a   :  { %v2195_v63 = vpop.permute.xlu0 %2194 }
0x3a2b   :  { %8016 = vmatmul.mubr.msk.bf16.vlgmr.msra.gmra.mrb[44].mxu0 %vm458_vm6, %v2195_v63 }
0x3a2c   :  { %8028 = vmatpush3.bf16.msra.mxu0 %v9499_v6  ;;  %8031 = vmatprep.mubr.msk.bf16.mxu0 %vm8964_vm4, %v8963_v33 }
0x3a2d   :  { %8029 = vmatprep.subr.bf16.mxu0 %v8963_v33 }
0x3a30   :  { %8030 = vmatpush3.bf16.msra.mxu0 %v9507_v58 }
0x3a31   :  { %8043 = vmatprep.subr.bf16.mxu0 %v8963_v33 }
0x3afe   :  { %v2233_v32 = vpop.f32.mrb[44].mxu0 }
0x3aff   :  { %v2234_v53 = vadd.f32 %v9528_v19, %v2233_v32  ;;  %v8017_v62 = vpop.f32.mrb[45].mxu0 }
0x3b00   :  { %v2236_v0 = vpop.f32.mrb[46].mxu0 }
0x3b01   :  { %v2240_v1 = vrot.slane %v2234_v53, 6  ;;  %v8018_v2 = vpop.f32.mrb[47].mxu0 }
0x3b03   :  { %2249 = vrot.lane.b32.xlu1 %v2240_v1, %s8966_s0  ;;  %v2242_v36 = vadd.f32 %v2240_v1, %v9546_v37 }
0x3b05   :  { %v7466_v4 = vmul.f32 -1.442695, %v2242_v36 }
0x3b07   :  { %8679 = vpow2.f32 %v7466_v4 }
0x3b11   :  { %v8680_v5 = vpop.eup %8679 }
0x3b12   :  { %v2246_v61 = vadd.f32 1.0, %v8680_v5 }
0x3b14   :  { %8681 = vrcp.f32 %v2246_v61 }
0x3b1e   :  { %v8682_v7 = vpop.eup %8681 }
0x3b1f   :  { %v2259_v44 = vsub.f32 1.0, %v8682_v7  ;;  %v2268_v13 = vmul.f32 %v8682_v7, %v2266_v31 }
0x3b75   :  { %v2250_v8 = vpop.permute.xlu1 %2249 }
0x3b76   :  { %v2252_v9 = vmul.f32 %v8682_v7, %v2250_v8 }
0x3b78   :  { %2254 = vrot.lane.b32.xlu0 %v2252_v9, %s8967_s5 }
0x3bea   :  { %v2255_v10 = vpop.permute.xlu0 %2254 }
0x3beb   :  { %v2257_v11 = vadd.f32 %v2255_v10, %v9546_v37 }
0x3bed   :  { %8683 = vtanh.f32 %v2257_v11 }
0x3bf7   :  { %v8684_v12 = vpop.eup %8683 }
0x3bf8   :  { %2261 = vrot.lane.b32.xlu1 %v8684_v12, %s8968_s9 }
0x3c6a   :  { %v2262_v34 = vpop.permute.xlu1 %2261 }
0x3c6b   :  { %v2264_v14 = vmul.f32 %v2262_v34, %v2259_v44 }
0x3c6d   :  { %v2269_v15 = vadd.f32 %v2268_v13, %v2264_v14 }
0x3c6f   :  { %v3062_v52 = vrot.slane %v2269_v15, 5  ;;  %v2270_v16 = vpack.c.bf16 %v2269_v15, %v2269_v15  ;;  %v2345_v45 = vrot.slane %v2269_v15, 6 }
0x3c71   :  { %v9640_v17 = vsel %vm3085_vm10, %v3084_v57, %v3062_v52  ;;  %v2272_v18 = vrot.slane %v2270_v16, 1  ;;  %v3125_v49 = vsel %vm3085_vm10, %v9624_v59, %v2345_v45 }
0x3c73   :  { %2273 = vrot.lane.b32.xlu0 %v2272_v18, %s8968_s9 }
0x3ce5   :  { %v2274_v20 = vpop.permute.xlu0 %2273 }
0x3ce6   :  { %8024 = vmatmul.mubr.msk.bf16.vlgmr.msra.gmra.mrb[52].mxu1 %vm458_vm6, %v2274_v20 }
0x3ce7   :  { %8036 = vmatpush3.bf16.msra.mxu1 %v9499_v6  ;;  %8039 = vmatprep.mubr.msk.bf16.mxu1 %vm8964_vm4, %v8963_v33 }
0x3ce8   :  { %8037 = vmatprep.subr.bf16.mxu1 %v8963_v33 }
0x3ceb   :  { %8038 = vmatpush3.bf16.msra.mxu1 %v9507_v58 }
0x3cec   :  { %8051 = vmatprep.subr.bf16.mxu1 %v8963_v33 }
0x3db9   :  { %v2312_v21 = vpop.f32.mrb[52].mxu1 }
0x3dba   :  { %v2313_v22 = vadd.f32 %v9528_v19, %v2312_v21  ;;  %v8025_v29 = vpop.f32.mrb[53].mxu1 }
0x3dbb   :  { %v2315_v24 = vpop.f32.mrb[54].mxu1 }
0x3dbc   :  { %v2319_v25 = vrot.slane %v2313_v22, 4  ;;  %v8026_v55 = vpop.f32.mrb[55].mxu1 }
0x3dbe   :  { %2328 = vrot.lane.b32.xlu1 %v2319_v25, %s8966_s0  ;;  %v2321_v23 = vadd.f32 %v2319_v25, %v9546_v37 }
0x3dc0   :  { %v7468_v26 = vmul.f32 -1.442695, %v2321_v23 }
0x3dc2   :  { %8685 = vpow2.f32 %v7468_v26 }
0x3dcc   :  { %v8686_v28 = vpop.eup %8685 }
0x3dcd   :  { %v2325_v30 = vadd.f32 1.0, %v8686_v28 }
0x3dcf   :  { %8687 = vrcp.f32 %v2325_v30 }
0x3dd9   :  { %v8688_v60 = vpop.eup %8687 }
0x3dda   :  { %v2338_v43 = vsub.f32 1.0, %v8688_v60  ;;  %v2347_v3 = vmul.f32 %v8688_v60, %v2345_v45 }
0x3e30   :  { %v2329_v38 = vpop.permute.xlu1 %2328 }
0x3e31   :  { %v2331_v39 = vmul.f32 %v8688_v60, %v2329_v38 }
0x3e33   :  { %2333 = vrot.lane.b32.xlu0 %v2331_v39, %s8967_s5 }
0x3ea5   :  { %v2334_v40 = vpop.permute.xlu0 %2333 }
0x3ea6   :  { %v2336_v41 = vadd.f32 %v2334_v40, %v9546_v37 }
0x3ea8   :  { %8689 = vtanh.f32 %v2336_v41 }
0x3eb2   :  { %v8690_v42 = vpop.eup %8689 }
0x3eb3   :  { %2340 = vrot.lane.b32.xlu1 %v8690_v42, %s8968_s9 }
0x3f25   :  { %v2341_v46 = vpop.permute.xlu1 %2340 }
0x3f26   :  { %v2343_v47 = vmul.f32 %v2341_v46, %v2338_v43 }
0x3f28   :  { %v2348_v48 = vadd.f32 %v2347_v3, %v2343_v47 }
0x3f2a   :  { %v3107_v50 = vrot.slane %v2348_v48, 7  ;;  %v2349_v51 = vpack.c.bf16 %v2348_v48, %v2348_v48  ;;  %v2424_v12 = vrot.slane %v2348_v48, 6 }
0x3f2c   :  { %v2351_v54 = vrot.slane %v2349_v51, 2  ;;  %v3126_v56 = vsel %vm295_vm3, %v3125_v49, %v3107_v50  ;;  %v3087_v16 = vsel %vm295_vm3, %v9640_v17, %v2424_v12 }
0x3f2e   :  { %2352 = vrot.lane.b32.xlu0 %v2351_v54, %s8968_s9 }
0x3fa0   :  { %v2353_v57 = vpop.permute.xlu0 %2352 }
0x3fa1   :  { %8032 = vmatmul.mubr.msk.bf16.vlgmr.msra.gmra.mrb[48].mxu0 %vm458_vm6, %v2353_v57 }
0x3fa2   :  { %8044 = vmatpush3.bf16.msra.mxu0 %v9499_v6  ;;  %8047 = vmatprep.mubr.msk.bf16.mxu0 %vm8964_vm4, %v8963_v33 }
0x3fa3   :  { %8045 = vmatprep.subr.bf16.mxu0 %v8963_v33 }
0x3fa6   :  { %8046 = vmatpush3.bf16.msra.mxu0 %v9507_v58 }
0x3fa7   :  { %8059 = vmatprep.subr.bf16.mxu0 %v8963_v33 }
0x4074   :  { %v2391_v59 = vpop.f32.mrb[48].mxu0 }
0x4075   :  { %v2392_v63 = vadd.f32 %v9528_v19, %v2391_v59  ;;  %v8033_v32 = vpop.f32.mrb[49].mxu0 }
0x4076   :  { %v2394_v53 = vpop.f32.mrb[50].mxu0 }
0x4077   :  { %v2398_v62 = vrot.slane %v2392_v63, 2  ;;  %v8034_v0 = vpop.f32.mrb[51].mxu0 }
0x4079   :  { %2407 = vrot.lane.b32.xlu1 %v2398_v62, %s8966_s0  ;;  %v2400_v1 = vadd.f32 %v2398_v62, %v9546_v37 }
0x407b   :  { %v7470_v2 = vmul.f32 -1.442695, %v2400_v1 }
0x407d   :  { %8691 = vpow2.f32 %v7470_v2 }
0x4087   :  { %v8692_v36 = vpop.eup %8691 }
0x4088   :  { %v2404_v4 = vadd.f32 1.0, %v8692_v36 }
0x408a   :  { %8693 = vrcp.f32 %v2404_v4 }
0x4094   :  { %v8694_v5 = vpop.eup %8693 }
0x4095   :  { %v2417_v11 = vsub.f32 1.0, %v8694_v5  ;;  %v2426_v31 = vmul.f32 %v8694_v5, %v2424_v12 }
0x40eb   :  { %v2408_v61 = vpop.permute.xlu1 %2407 }
0x40ec   :  { %v2410_v7 = vmul.f32 %v8694_v5, %v2408_v61 }
0x40ee   :  { %2412 = vrot.lane.b32.xlu0 %v2410_v7, %s8967_s5 }
0x4160   :  { %v2413_v8 = vpop.permute.xlu0 %2412 }
0x4161   :  { %v2415_v9 = vadd.f32 %v2413_v8, %v9546_v37 }
0x4163   :  { %8695 = vtanh.f32 %v2415_v9 }
0x416d   :  { %v8696_v10 = vpop.eup %8695 }
0x416e   :  { %2419 = vrot.lane.b32.xlu1 %v8696_v10, %s8968_s9 }
0x41e0   :  { %v2420_v44 = vpop.permute.xlu1 %2419 }
0x41e1   :  { %v2422_v34 = vmul.f32 %v2420_v44, %v2417_v11 }
0x41e3   :  { %v2427_v13 = vadd.f32 %v2426_v31, %v2422_v34 }
0x41e5   :  { %v3064_v14 = vrot.slane %v2427_v13, 7  ;;  %v2428_v15 = vpack.c.bf16 %v2427_v13, %v2427_v13  ;;  %v9674_v52 = vsel %vm168_vm1, %v3126_v56, %v2427_v13  ;;  %v2501_v42 = vrot.slane %v2427_v13, 6 }
0x41e7   :  { %v2430_v18 = vrot.slane %v2428_v15, 3  ;;  %v9679_v37 = vsel %vm168_vm1, %v3087_v16, %v3064_v14 }
0x41e9   :  { %2431 = vrot.lane.b32.xlu0 %v2430_v18, %s8968_s9 }
0x425b   :  { %v2432_v20 = vpop.permute.xlu0 %2431 }
0x425c   :  { %8040 = vmatmul.mubr.msk.bf16.vlgmr.msra.gmra.mrb[56].mxu1 %vm458_vm6, %v2432_v20 }
0x425d   :  { %8052 = vmatpush3.bf16.msra.mxu1 %v9499_v6  ;;  %8055 = vmatprep.mubr.msk.bf16.mxu1 %vm8964_vm4, %v8963_v33 }
0x425e   :  { %8053 = vmatprep.subr.bf16.mxu1 %v8963_v33 }
0x4261   :  { %8054 = vmatpush3.bf16.msra.mxu1 %v9507_v58 }
0x4262   :  { %8067 = vmatprep.subr.bf16.mxu1 %v8963_v33 }
0x432f   :  { %v2470_v17 = vpop.f32.mrb[56].mxu1 }
0x4330   :  { %v2471_v21 = vadd.f32 %v9528_v19, %v2470_v17  ;;  %v8041_v22 = vpop.f32.mrb[57].mxu1 }
0x4331   :  { %v2473_v29 = vpop.f32.mrb[58].mxu1 }
0x4332   :  { %2484 = vrot.lane.b32.xlu1 %v2471_v21, %s8966_s0  ;;  %v8042_v24 = vpop.f32.mrb[59].mxu1  ;;  %v2476_v25 = vadd.f32 %v2471_v21, %v9540_v27 }
0x4334   :  { %v7472_v55 = vmul.f32 -1.442695, %v2476_v25 }
0x4336   :  { %8697 = vpow2.f32 %v7472_v55 }
0x4340   :  { %v8698_v23 = vpop.eup %8697 }
0x4341   :  { %v2480_v26 = vadd.f32 1.0, %v8698_v23 }
0x4343   :  { %8699 = vrcp.f32 %v2480_v26 }
0x434d   :  { %v8700_v28 = vpop.eup %8699 }
0x434e   :  { %v2494_v41 = vsub.f32 1.0, %v8700_v28  ;;  %v2503_v45 = vmul.f32 %v8700_v28, %v2501_v42 }
0x43a4   :  { %v2485_v30 = vpop.permute.xlu1 %2484 }
0x43a5   :  { %v2487_v60 = vmul.f32 %v8700_v28, %v2485_v30 }
0x43a7   :  { %2489 = vrot.lane.b32.xlu0 %v2487_v60, %s8967_s5 }
0x4419   :  { %v2490_v38 = vpop.permute.xlu0 %2489 }
0x441a   :  { %v2492_v39 = vadd.f32 %v2490_v38, %v9540_v27 }
0x441c   :  { %8701 = vtanh.f32 %v2492_v39 }
0x4426   :  { %v8702_v40 = vpop.eup %8701 }
0x4427   :  { %2496 = vrot.lane.b32.xlu1 %v8702_v40, %s8968_s9 }
0x4499   :  { %v2497_v43 = vpop.permute.xlu1 %2496 }
0x449a   :  { %v2499_v46 = vmul.f32 %v2497_v43, %v2494_v41 }
0x449c   :  { %v9695_v3 = vadd.f32 %v2503_v45, %v2499_v46 }
0x449e   :  { %v2505_v47 = vpack.c.bf16 %v9695_v3, %v9695_v3  ;;  %v2579_v61 = vrot.slane %v9695_v3, 6  ;;  %v3109_v42 = vrot.slane %v9695_v3, 1 }
0x44a0   :  { %2507 = vrot.lane.b32.xlu0 %v2505_v47, %s8968_s9 }
0x4512   :  { %v2508_v48 = vpop.permute.xlu0 %2507 }
0x4513   :  { %8048 = vmatmul.mubr.msk.bf16.vlgmr.msra.gmra.mrb[52].mxu0 %vm458_vm6, %v2508_v48 }
0x4514   :  { %8060 = vmatpush3.bf16.msra.mxu0 %v9499_v6  ;;  %8063 = vmatprep.mubr.msk.bf16.mxu0 %vm8964_vm4, %v8963_v33 }
0x4515   :  { %8061 = vmatprep.subr.bf16.mxu0 %v8963_v33 }
0x4518   :  { %8062 = vmatpush3.bf16.msra.mxu0 %v9507_v58 }
0x4519   :  { %8075 = vmatprep.subr.bf16.mxu0 %v8963_v33 }
0x45e6   :  { %v2546_v50 = vpop.f32.mrb[52].mxu0 }
0x45e7   :  { %v2547_v51 = vadd.f32 %v9528_v19, %v2546_v50  ;;  %v8049_v49 = vpop.f32.mrb[53].mxu0 }
0x45e8   :  { %v2549_v54 = vpop.f32.mrb[54].mxu0 }
0x45e9   :  { %v2553_v56 = vrot.slane %v2547_v51, 6  ;;  %v8050_v57 = vpop.f32.mrb[55].mxu0 }
0x45eb   :  { %2562 = vrot.lane.b32.xlu1 %v2553_v56, %s8966_s0  ;;  %v2555_v59 = vadd.f32 %v2553_v56, %v9540_v27 }
0x45ed   :  { %v7474_v63 = vmul.f32 -1.442695, %v2555_v59 }
0x45ef   :  { %8703 = vpow2.f32 %v7474_v63 }
0x45f9   :  { %v8704_v32 = vpop.eup %8703 }
0x45fa   :  { %v2559_v53 = vadd.f32 1.0, %v8704_v32 }
0x45fc   :  { %8705 = vrcp.f32 %v2559_v53 }
0x4606   :  { %v8706_v62 = vpop.eup %8705 }
0x4607   :  { %v2572_v5 = vsub.f32 1.0, %v8706_v62  ;;  %v2581_v8 = vmul.f32 %v8706_v62, %v2579_v61 }
0x465d   :  { %v2563_v0 = vpop.permute.xlu1 %2562 }
0x465e   :  { %v2565_v1 = vmul.f32 %v8706_v62, %v2563_v0 }
0x4660   :  { %2567 = vrot.lane.b32.xlu0 %v2565_v1, %s8967_s5 }
0x46d2   :  { %v2568_v2 = vpop.permute.xlu0 %2567 }
0x46d3   :  { %v2570_v36 = vadd.f32 %v2568_v2, %v9540_v27 }
0x46d5   :  { %8707 = vtanh.f32 %v2570_v36 }
0x46df   :  { %v8708_v4 = vpop.eup %8707 }
0x46e0   :  { %2574 = vrot.lane.b32.xlu1 %v8708_v4, %s8968_s9 }
0x4752   :  { %v2575_v7 = vpop.permute.xlu1 %2574 }
0x4753   :  { %v2577_v9 = vmul.f32 %v2575_v7, %v2572_v5 }
0x4755   :  { %v2582_v10 = vadd.f32 %v2581_v8, %v2577_v9 }
0x4757   :  { %v2583_v11 = vpack.c.bf16 %v2582_v10, %v2582_v10  ;;  %v2658_v28 = vrot.slane %v2582_v10, 6  ;;  %v3066_v39 = vrot.slane %v2582_v10, 1  ;;  %v3111_v40 = vrot.slane %v2582_v10, 2 }
0x4759   :  { %v2585_v12 = vrot.slane %v2583_v11, 1  ;;  %v3090_v47 = vsel %vm3079_vm8, %v9695_v3, %v3066_v39  ;;  %v3128_v48 = vsel %vm3079_vm8, %v3109_v42, %v3111_v40 }
0x475b   :  { %2586 = vrot.lane.b32.xlu0 %v2585_v12, %s8968_s9 }
0x47cd   :  { %v2587_v44 = vpop.permute.xlu0 %2586 }
0x47ce   :  { %8056 = vmatmul.mubr.msk.bf16.vlgmr.msra.gmra.mrb[60].mxu1 %vm458_vm6, %v2587_v44 }
0x47cf   :  { %8068 = vmatpush3.bf16.msra.mxu1 %v9499_v6  ;;  %8071 = vmatprep.mubr.msk.bf16.mxu1 %vm8964_vm4, %v8963_v33 }
0x47d0   :  { %8069 = vmatprep.subr.bf16.mxu1 %v8963_v33 }
0x47d3   :  { %8070 = vmatpush3.bf16.msra.mxu1 %v9507_v58 }
0x47d4   :  { %8083 = vmatprep.subr.bf16.mxu1 %v8963_v33 }
0x48a1   :  { %v2625_v31 = vpop.f32.mrb[60].mxu1 }
0x48a2   :  { %v2626_v34 = vadd.f32 %v9528_v19, %v2625_v31  ;;  %v8057_v13 = vpop.f32.mrb[61].mxu1 }
0x48a3   :  { %v2628_v14 = vpop.f32.mrb[62].mxu1 }
0x48a4   :  { %v2632_v15 = vrot.slane %v2626_v34, 4  ;;  %v8058_v16 = vpop.f32.mrb[63].mxu1 }
0x48a6   :  { %2641 = vrot.lane.b32.xlu1 %v2632_v15, %s8966_s0  ;;  %v2634_v18 = vadd.f32 %v2632_v15, %v9540_v27 }
0x48a8   :  { %v7476_v20 = vmul.f32 -1.442695, %v2634_v18 }
0x48aa   :  { %8709 = vpow2.f32 %v7476_v20 }
0x48b4   :  { %v8710_v17 = vpop.eup %8709 }
0x48b5   :  { %v2638_v21 = vadd.f32 1.0, %v8710_v17 }
0x48b7   :  { %8711 = vrcp.f32 %v2638_v21 }
0x48c1   :  { %v8712_v22 = vpop.eup %8711 }
0x48c2   :  { %v2651_v26 = vsub.f32 1.0, %v8712_v22  ;;  %v2660_v60 = vmul.f32 %v8712_v22, %v2658_v28 }
0x4918   :  { %v2642_v29 = vpop.permute.xlu1 %2641 }
0x4919   :  { %v2644_v24 = vmul.f32 %v8712_v22, %v2642_v29 }
0x491b   :  { %2646 = vrot.lane.b32.xlu0 %v2644_v24, %s8967_s5 }
0x498d   :  { %v2647_v25 = vpop.permute.xlu0 %2646 }
0x498e   :  { %v2649_v55 = vadd.f32 %v2647_v25, %v9540_v27 }
0x4990   :  { %8713 = vtanh.f32 %v2649_v55 }
0x499a   :  { %v8714_v23 = vpop.eup %8713 }
0x499b   :  { %2653 = vrot.lane.b32.xlu1 %v8714_v23, %s8968_s9 }
0x4a0d   :  { %v2654_v30 = vpop.permute.xlu1 %2653 }
0x4a0e   :  { %v2656_v38 = vmul.f32 %v2654_v30, %v2651_v26 }
0x4a10   :  { %v2661_v41 = vadd.f32 %v2660_v60, %v2656_v38 }
0x4a12   :  { %v3068_v43 = vrot.slane %v2661_v41, 2  ;;  %v3113_v45 = vrot.slane %v2661_v41, 3  ;;  %v2662_v46 = vpack.c.bf16 %v2661_v41, %v2661_v41  ;;  %v2737_v9 = vrot.slane %v2661_v41, 6 }
0x4a14   :  { %v3091_v50 = vsel %vm1706_vm7, %v3090_v47, %v3068_v43  ;;  %v3129_v51 = vsel %vm1706_vm7, %v3128_v48, %v3113_v45  ;;  %v2664_v49 = vrot.slane %v2662_v46, 2 }
0x4a16   :  { %2665 = vrot.lane.b32.xlu0 %v2664_v49, %s8968_s9 }
0x4a88   :  { %v2666_v54 = vpop.permute.xlu0 %2665 }
0x4a89   :  { %8064 = vmatmul.mubr.msk.bf16.vlgmr.msra.gmra.mrb[56].mxu0 %vm458_vm6, %v2666_v54  ;;  %v9775_v54 = vld [vmem:[%s9036_s19] ss:$0 sm:$0xff]  ;;  %s10540_s19 = sld [smem:[#allocation7_spill]] }
0x4a8a   :  { %8076 = vmatpush3.bf16.msra.mxu0 %v9499_v6  ;;  %8079 = vmatprep.mubr.msk.bf16.mxu0 %vm8964_vm4, %v8963_v33 }
0x4a8b   :  { %8077 = vmatprep.subr.bf16.mxu0 %v8963_v33 }
0x4a8e   :  { %8078 = vmatpush3.bf16.msra.mxu0 %v9507_v58 }
0x4a8f   :  { %8091 = vmatprep.subr.bf16.mxu0 %v8963_v33 }
0x4b5c   :  { %v2704_v3 = vpop.f32.mrb[56].mxu0 }
0x4b5d   :  { %v2705_v56 = vadd.f32 %v9528_v19, %v2704_v3  ;;  %v8065_v57 = vpop.f32.mrb[57].mxu0 }
0x4b5e   :  { %v2707_v59 = vpop.f32.mrb[58].mxu0 }
0x4b5f   :  { %v2711_v63 = vrot.slane %v2705_v56, 2  ;;  %v8066_v32 = vpop.f32.mrb[59].mxu0 }
0x4b61   :  { %2720 = vrot.lane.b32.xlu1 %v2711_v63, %s8966_s0  ;;  %v2713_v53 = vadd.f32 %v2711_v63, %v9540_v27 }
0x4b63   :  { %v7478_v62 = vmul.f32 -1.442695, %v2713_v53 }
0x4b65   :  { %8715 = vpow2.f32 %v7478_v62 }
0x4b6f   :  { %v8716_v0 = vpop.eup %8715 }
0x4b70   :  { %v2717_v1 = vadd.f32 1.0, %v8716_v0 }
0x4b72   :  { %8717 = vrcp.f32 %v2717_v1 }
0x4b7c   :  { %v8718_v2 = vpop.eup %8717 }
0x4b7d   :  { %v2730_v8 = vsub.f32 1.0, %v8718_v2  ;;  %v2739_v11 = vmul.f32 %v8718_v2, %v2737_v9 }
0x4bd3   :  { %v2721_v36 = vpop.permute.xlu1 %2720 }
0x4bd4   :  { %v2723_v4 = vmul.f32 %v8718_v2, %v2721_v36 }
0x4bd6   :  { %2725 = vrot.lane.b32.xlu0 %v2723_v4, %s8967_s5 }
0x4c48   :  { %v2726_v5 = vpop.permute.xlu0 %2725 }
0x4c49   :  { %v2728_v61 = vadd.f32 %v2726_v5, %v9540_v27 }
0x4c4b   :  { %8719 = vtanh.f32 %v2728_v61 }
0x4c55   :  { %v8720_v7 = vpop.eup %8719 }
0x4c56   :  { %2732 = vrot.lane.b32.xlu1 %v8720_v7, %s8968_s9 }
0x4cc8   :  { %v2733_v10 = vpop.permute.xlu1 %2732 }
0x4cc9   :  { %v2735_v12 = vmul.f32 %v2733_v10, %v2730_v8 }
0x4ccb   :  { %v2740_v44 = vadd.f32 %v2739_v11, %v2735_v12 }
0x4ccd   :  { %v3070_v31 = vrot.slane %v2740_v44, 3  ;;  %v3115_v34 = vrot.slane %v2740_v44, 4  ;;  %v2741_v13 = vpack.c.bf16 %v2740_v44, %v2740_v44  ;;  %v2814_v39 = vrot.slane %v2740_v44, 6 }
0x4ccf   :  { %v3092_v14 = vsel %vm3082_vm9, %v3091_v50, %v3070_v31  ;;  %v3130_v15 = vsel %vm3082_vm9, %v3129_v51, %v3115_v34  ;;  %v2743_v16 = vrot.slane %v2741_v13, 3 }
0x4cd1   :  { %2744 = vrot.lane.b32.xlu0 %v2743_v16, %s8968_s9 }
0x4d43   :  { %v2745_v27 = vpop.permute.xlu0 %2744 }
0x4d44   :  { %8072 = vmatmul.mubr.msk.bf16.vlgmr.msra.gmra.mrb[64].mxu1 %vm458_vm6, %v2745_v27 }
0x4d45   :  { %8084 = vmatpush3.bf16.msra.mxu1 %v9499_v6  ;;  %8087 = vmatprep.mubr.msk.bf16.mxu1 %vm8964_vm4, %v8963_v33 }
0x4d46   :  { %8085 = vmatprep.subr.bf16.mxu1 %v8963_v33 }
0x4d49   :  { %8086 = vmatpush3.bf16.msra.mxu1 %v9507_v58 }
0x4e17   :  { %v2783_v18 = vpop.f32.mrb[64].mxu1 }
0x4e18   :  { %v2784_v20 = vadd.f32 %v9528_v19, %v2783_v18  ;;  %v8073_v17 = vpop.f32.mrb[65].mxu1 }
0x4e19   :  { %v2786_v21 = vpop.f32.mrb[66].mxu1 }
0x4e1a   :  { %2797 = vrot.lane.b32.xlu1 %v2784_v20, %s8966_s0  ;;  %v8074_v22 = vpop.f32.mrb[67].mxu1  ;;  %v2789_v29 = vadd.f32 %v2784_v20, %v9544_v35 }
0x4e1c   :  { %v7480_v24 = vmul.f32 -1.442695, %v2789_v29 }
0x4e1e   :  { %8721 = vpow2.f32 %v7480_v24 }
0x4e28   :  { %v8722_v25 = vpop.eup %8721 }
0x4e29   :  { %v2793_v55 = vadd.f32 1.0, %v8722_v25 }
0x4e2b   :  { %8723 = vrcp.f32 %v2793_v55 }
0x4e35   :  { %v8724_v23 = vpop.eup %8723 }
0x4e36   :  { %v2807_v38 = vsub.f32 1.0, %v8724_v23  ;;  %v2816_v41 = vmul.f32 %v8724_v23, %v2814_v39 }
0x4e8c   :  { %v2798_v26 = vpop.permute.xlu1 %2797 }
0x4e8d   :  { %v2800_v28 = vmul.f32 %v8724_v23, %v2798_v26 }
0x4e8f   :  { %2802 = vrot.lane.b32.xlu0 %v2800_v28, %s8967_s5 }
0x4f01   :  { %v2803_v30 = vpop.permute.xlu0 %2802 }
0x4f02   :  { %v2805_v19 = vadd.f32 %v2803_v30, %v9544_v35 }
0x4f04   :  { %8725 = vtanh.f32 %v2805_v19 }
0x4f0e   :  { %v8726_v60 = vpop.eup %8725 }
0x4f0f   :  { %2809 = vrot.lane.b32.xlu1 %v8726_v60, %s8968_s9 }
0x4f81   :  { %v2810_v40 = vpop.permute.xlu1 %2809 }
0x4f82   :  { %v2812_v42 = vmul.f32 %v2810_v40, %v2807_v38 }
0x4f84   :  { %v2817_v43 = vadd.f32 %v2816_v41, %v2812_v42 }
0x4f86   :  { %v3072_v45 = vrot.slane %v2817_v43, 4  ;;  %v3117_v46 = vrot.slane %v2817_v43, 5  ;;  %v2818_v47 = vpack.c.bf16 %v2817_v43, %v2817_v43  ;;  %v2892_v61 = vrot.slane %v2817_v43, 6 }
0x4f88   :  { %2820 = vrot.lane.b32.xlu0 %v2818_v47, %s8968_s9  ;;  %v3093_v48 = vsel %vm181_vm0, %v3092_v14, %v3072_v45  ;;  %v9766_v50 = vsel %vm181_vm0, %v3130_v15, %v3117_v46 }
0x4ffa   :  { %v2821_v51 = vpop.permute.xlu0 %2820 }
0x4ffb   :  { %8080 = vmatmul.mubr.msk.bf16.vlgmr.msra.gmra.mrb[60].mxu0 %vm458_vm6, %v2821_v51 }
0x4ffc   :  { %8092 = vmatpush3.bf16.msra.mxu0 %v9499_v6  ;;  %8095 = vmatprep.mubr.msk.bf16.mxu0 %vm8964_vm4, %v8963_v33 }
0x4ffd   :  { %8093 = vmatprep.subr.bf16.mxu0 %v8963_v33 }
0x5000   :  { %8094 = vmatpush3.bf16.msra.mxu0 %v9507_v58 }
0x50ce   :  { %v2859_v49 = vpop.f32.mrb[60].mxu0 }
0x50cf   :  { %v2860_v3 = vadd.f32 %v9775_v54, %v2859_v49  ;;  %v8081_v56 = vpop.f32.mrb[61].mxu0 }
0x50d0   :  { %v2862_v57 = vpop.f32.mrb[62].mxu0 }
0x50d1   :  { %v2866_v59 = vrot.slane %v2860_v3, 6  ;;  %v8082_v63 = vpop.f32.mrb[63].mxu0 }
0x50d3   :  { %2875 = vrot.lane.b32.xlu1 %v2866_v59, %s8966_s0  ;;  %v2868_v6 = vadd.f32 %v2866_v59, %v9544_v35 }
0x50d5   :  { %v7482_v32 = vmul.f32 -1.442695, %v2868_v6 }
0x50d7   :  { %8727 = vpow2.f32 %v7482_v32 }
0x50e1   :  { %v8728_v53 = vpop.eup %8727 }
0x50e2   :  { %v2872_v62 = vadd.f32 1.0, %v8728_v53 }
0x50e4   :  { %8729 = vrcp.f32 %v2872_v62 }
0x50ee   :  { %v8730_v0 = vpop.eup %8729 }
0x50ef   :  { %v2885_v5 = vsub.f32 1.0, %v8730_v0  ;;  %v2894_v8 = vmul.f32 %v8730_v0, %v2892_v61 }
0x5145   :  { %v2876_v58 = vpop.permute.xlu1 %2875 }
0x5146   :  { %v2878_v1 = vmul.f32 %v8730_v0, %v2876_v58 }
0x5148   :  { %2880 = vrot.lane.b32.xlu0 %v2878_v1, %s8967_s5  ;;  %v3135_v1 = vld [vmem:[%s9041_s24] sm:$0xff] }
0x51ba   :  { %v2881_v2 = vpop.permute.xlu0 %2880 }
0x51bb   :  { %v2883_v36 = vadd.f32 %v2881_v2, %v9544_v35  ;;  %v3136_v2 = vld [vmem:[%s9041_s24 + $0x8] sm:$0xff] }
0x51bd   :  { %8731 = vtanh.f32 %v2883_v36  ;;  %v3137_v36 = vld [vmem:[%s9041_s24 + $0x10] sm:$0xff]  ;;  %s8975_s24 = smov 72  }
0x51c7   :  { %v8732_v4 = vpop.eup %8731 }
0x51c8   :  { %2887 = vrot.lane.b32.xlu1 %v8732_v4, %s8968_s9  ;;  %v3140_v4 = vpack.c.bf16 %v3136_v2, %v3135_v1 }
0x51ca   :  { %8099 = vmatprep.subr.bf16.mxu1 %v3140_v4 }
0x523a   :  { %v2888_v7 = vpop.permute.xlu1 %2887 }
0x523b   :  { %v2890_v9 = vmul.f32 %v2888_v7, %v2885_v5  ;;  %v3141_v5 = vpack.c.bf16 %v3137_v36, %v3137_v36 }
0x523d   :  { %v2895_v10 = vadd.f32 %v2894_v8, %v2890_v9  ;;  %v3162_v7 = vsel %vm181_vm0, %v3141_v5, 0 }
0x523f   :  { %v3074_v11 = vrot.slane %v2895_v10, 5  ;;  %v2896_v12 = vpack.c.bf16 %v2895_v10, %v2895_v10  ;;  %v2971_v30 = vrot.slane %v2895_v10, 6 }
0x5241   :  { %v3094_v44 = vsel %vm3085_vm10, %v3093_v48, %v3074_v11  ;;  %v2898_v31 = vrot.slane %v2896_v12, 1  ;;  %v3132_v43 = vsel %vm3085_vm10, %v9766_v50, %v2971_v30 }
0x5243   :  { %2899 = vrot.lane.b32.xlu0 %v2898_v31, %s8968_s9 }
0x52b5   :  { %v2900_v34 = vpop.permute.xlu0 %2899 }
0x52b6   :  { %8088 = vmatmul.mubr.msk.bf16.vlgmr.msra.gmra.mrb[68].mxu1 %vm458_vm6, %v2900_v34 }
0x52b7   :  { %8100 = vmatpush3.bf16.msra.mxu1 %v3140_v4 }
0x52b8   :  { %8471 = vmatprep.subr.msk.bf16.mxu1 %vm181_vm0, %v3141_v5 }
0x52bb   :  { %8102 = vmatpush3.bf16.msra.mxu1 %v3162_v7 }
0x52bc   :  { %8115 = vmatprep.subr.bf16.mxu1 %v8963_v33 }
0x5389   :  { %v2938_v13 = vpop.f32.mrb[68].mxu1 }
0x538a   :  { %v2939_v14 = vadd.f32 %v9775_v54, %v2938_v13  ;;  %v8089_v15 = vpop.f32.mrb[69].mxu1 }
0x538b   :  { %v2941_v16 = vpop.f32.mrb[70].mxu1 }
0x538c   :  { %v2945_v27 = vrot.slane %v2939_v14, 4  ;;  %v8090_v18 = vpop.f32.mrb[71].mxu1  ;;  %v3226_v16 = vld [vmem:[%s9056_s12 + $0x8] sm:$0xff] }
0x538d   :  { %v3228_v18 = vld [vmem:[%s9056_s12 + $0x18] sm:$0xff] }
0x538e   :  { %2954 = vrot.lane.b32.xlu1 %v2945_v27, %s8966_s0  ;;  %v2947_v20 = vadd.f32 %v2945_v27, %v9544_v35 }
0x5390   :  { %v7484_v17 = vmul.f32 -1.442695, %v2947_v20 }
0x5392   :  { %8733 = vpow2.f32 %v7484_v17  ;;  %v7487_v17 = vld [vmem:[%s9046_s30] ss:$0 sm:$0xff]  ;;  %s8976_s30 = smov 40  }
0x539c   :  { %v8734_v21 = vpop.eup %8733 }
0x539d   :  { %v2951_v22 = vadd.f32 1.0, %v8734_v21 }
0x539f   :  { %8735 = vrcp.f32 %v2951_v22 }
0x53a9   :  { %v8736_v29 = vpop.eup %8735 }
0x53aa   :  { %v2964_v28 = vsub.f32 1.0, %v8736_v29  ;;  %v2973_v60 = vmul.f32 %v8736_v29, %v2971_v30  ;;  %v3214_v30 = vld [vmem:[%s10538_s13 + $0x8] sm:$0xff] }
0x5400   :  { %v2955_v24 = vpop.permute.xlu1 %2954 }
0x5401   :  { %v2957_v25 = vmul.f32 %v8736_v29, %v2955_v24 }
0x5403   :  { %2959 = vrot.lane.b32.xlu0 %v2957_v25, %s8967_s5  ;;  %v3216_v25 = vld [vmem:[%s10538_s13 + $0x18] sm:$0xff] }
0x5475   :  { %v2960_v55 = vpop.permute.xlu0 %2959 }
0x5476   :  { %v2962_v23 = vadd.f32 %v2960_v55, %v9544_v35 }
0x5478   :  { %8737 = vtanh.f32 %v2962_v23  ;;  %v3213_v23 = vld [vmem:[%s10538_s13] sm:$0xff] }
0x5482   :  { %v8738_v26 = vpop.eup %8737 }
0x5483   :  { %2966 = vrot.lane.b32.xlu1 %v8738_v26, %s8968_s9 }
0x54f5   :  { %v2967_v19 = vpop.permute.xlu1 %2966 }
0x54f6   :  { %v2969_v38 = vmul.f32 %v2967_v19, %v2964_v28  ;;  %v3215_v19 = vld [vmem:[%s10538_s13 + $0x10] sm:$0xff] }
0x54f8   :  { %v2974_v39 = vadd.f32 %v2973_v60, %v2969_v38 }
0x54fa   :  { %v3119_v40 = vrot.slane %v2974_v39, 7  ;;  %v2975_v41 = vpack.c.bf16 %v2974_v39, %v2974_v39  ;;  %v3050_v42 = vrot.slane %v2974_v39, 6 }
0x54fc   :  { %v2977_v45 = vrot.slane %v2975_v41, 2  ;;  %v3133_v46 = vsel %vm295_vm3, %v3132_v43, %v3119_v40  ;;  %v3095_v47 = vsel %vm295_vm3, %v3094_v44, %v3050_v42 }
0x54fe   :  { %2978 = vrot.lane.b32.xlu0 %v2977_v45, %s8968_s9  ;;  %v7490_v45 = vld [vmem:[%s10539_s17] ss:$0 sm:$0xff] }
0x5570   :  { %v2979_v48 = vpop.permute.xlu0 %2978 }
0x5571   :  { %8096 = vmatmul.mubr.msk.bf16.vlgmr.msra.gmra.mrb[64].mxu0 %vm458_vm6, %v2979_v48 }
0x5644   :  { %v3017_v51 = vpop.f32.mrb[64].mxu0 }
0x5645   :  { %v3018_v49 = vadd.f32 %v9775_v54, %v3017_v51  ;;  %v8097_v3 = vpop.f32.mrb[65].mxu0 }
0x5646   :  { %v3020_v56 = vpop.f32.mrb[66].mxu0 }
0x5647   :  { %v3024_v57 = vrot.slane %v3018_v49, 2  ;;  %v8098_v59 = vpop.f32.mrb[67].mxu0 }
0x5649   :  { %3033 = vrot.lane.b32.xlu1 %v3024_v57, %s8966_s0  ;;  %v3026_v50 = vadd.f32 %v3024_v57, %v9544_v35 }
0x564b   :  { %v7486_v63 = vmul.f32 -1.442695, %v3026_v50 }
0x564d   :  { %8739 = vpow2.f32 %v7486_v63 }
0x5657   :  { %v8740_v6 = vpop.eup %8739 }
0x5658   :  { %v3030_v32 = vadd.f32 1.0, %v8740_v6 }
0x565a   :  { %8741 = vrcp.f32 %v3030_v32 }
0x5664   :  { %v8742_v53 = vpop.eup %8741 }
0x5665   :  { %v3043_v8 = vsub.f32 1.0, %v8742_v53  ;;  %v3052_v9 = vmul.f32 %v8742_v53, %v3050_v42 }
0x56bb   :  { %v3034_v62 = vpop.permute.xlu1 %3033 }
0x56bc   :  { %v3036_v0 = vmul.f32 %v8742_v53, %v3034_v62 }
0x56be   :  { %3038 = vrot.lane.b32.xlu0 %v3036_v0, %s8967_s5 }
0x5730   :  { %v3039_v54 = vpop.permute.xlu0 %3038 }
0x5731   :  { %v3041_v58 = vadd.f32 %v3039_v54, %v9544_v35 }
0x5733   :  { %8743 = vtanh.f32 %v3041_v58 }
0x573d   :  { %v8744_v61 = vpop.eup %8743 }
0x573e   :  { %3045 = vrot.lane.b32.xlu1 %v8744_v61, %s8968_s9 }
0x57b0   :  { %v3046_v35 = vpop.permute.xlu1 %3045 }
0x57b1   :  { %v3048_v10 = vmul.f32 %v3046_v35, %v3043_v8 }
0x57b3   :  { %v3053_v11 = vadd.f32 %v3052_v9, %v3048_v10 }
0x57b5   :  { %v3077_v12 = vrot.slane %v3053_v11, 7  ;;  %v3134_v44 = vsel %vm168_vm1, %v3133_v46, %v3053_v11 }
0x57b6   :  { %v3139_v31 = vpack.c.bf16 %v3134_v44, %v9674_v52  ;;  %v3225_v52 = vld [vmem:[%s9056_s12] sm:$0xff] }
0x57b7   :  { %v3096_v34 = vsel %vm168_vm1, %v3095_v47, %v3077_v12  ;;  %v3231_v27 = vpack.c.bf16 %v3226_v16, %v3225_v52 }
0x57b8   :  { %3153 = vrot.lane.b32.xlu1 %v3139_v31, %s8968_s9  ;;  %v3138_v13 = vpack.c.bf16 %v3096_v34, %v9679_v37  ;;  %v3227_v37 = vld [vmem:[%s9056_s12 + $0x10] sm:$0xff]  ;;  %s10541_s12 = sld [smem:[#allocation8_spill]] }
0x57b9   :  { %8107 = vmatprep.subr.bf16.mxu0 %v3231_v27  ;;  %v3232_v20 = vpack.c.bf16 %v3228_v18, %v3227_v37 }
0x57ba   :  { %3151 = vrot.lane.b32.xlu0 %v3138_v13, %s8968_s9  ;;  %8108 = vmatpush3.bf16.msra.mxu0 %v3231_v27 }
0x57bb   :  { %8109 = vmatprep.subr.bf16.mxu0 %v3232_v20 }
0x57be   :  { %8110 = vmatpush3.bf16.msra.mxu0 %v3232_v20 }
0x57bf   :  { %8121 = vmatprep.subr.bf16.mxu0 %v8963_v33 }
0x582a   :  { %v3154_v15 = vpop.permute.xlu1 %3153 }
0x582c   :  { %v3152_v14 = vpop.permute.xlu0 %3151 }
0x582d   :  { %8103 = vmatprep.mubr.msk.bf16.mxu1 %vm458_vm6, %v3152_v14 }
0x582e   :  { %8104 = vmatmul.mubr.msk.bf16.vlgmr.msra.gmra.mrb[72].mxu1 %vm458_vm6, %v3154_v15 }
0x582f   :  { %8117 = vmatprep.mubr.msk.bf16.mxu1 %vm8964_vm4, %v8963_v33 }
0x5901   :  { %v8105_v21 = vpop.f32.mrb[72].mxu1 }
0x5902   :  { %v3198_v22 = vpop.f32.mrb[73].mxu1  ;;  %v3207_v55 = vadd.f32 %v8105_v21, %v7487_v17 }
0x5903   :  { %v3199_v29 = vadd.f32 %v7487_v17, %v3198_v22  ;;  %v8106_v24 = vpop.f32.mrb[74].mxu1 }
0x5904   :  { %v3210_v26 = vadd.f32 %v8106_v24, %v7487_v17  ;;  %v3201_v28 = vpop.f32.mrb[75].mxu1  ;;  %v9836_v41 = vadd.f32 %v3215_v19, %v3207_v55 }
0x5905   :  { %v3202_v60 = vadd.f32 %v7487_v17, %v3201_v28  ;;  %v9832_v39 = vadd.f32 %v3213_v23, %v3199_v29 }
0x5906   :  { %v9830_v38 = vadd.f32 %v3216_v25, %v3210_v26 }
0x5907   :  { %v9834_v40 = vadd.f32 %v3214_v30, %v3202_v60 }
0x5908   :  { %v3230_v43 = vpack.c.bf16 %v9830_v38, %v9836_v41 }
0x5909   :  { %v3229_v42 = vpack.c.bf16 %v9834_v40, %v9832_v39 }
0x590b   :  { %8111 = vmatprep.mubr.msk.bf16.mxu0 %vm3240_vm11, %v3229_v42 }
0x590c   :  { %8112 = vmatmul.mubr.msk.bf16.vlgmr.msra.gmra.mrb[68].mxu0 %vm3240_vm11, %v3230_v43 }
0x590d   :  { %8123 = vmatprep.mubr.msk.bf16.mxu0 %vm8964_vm4, %v8963_v33 }
0x59df   :  { %v8113_v46 = vpop.f32.mrb[68].mxu0 }
0x59e0   :  { %v9847_v47 = vadd.f32 %v8113_v46, %v7490_v45  ;;  %v3281_v48 = vpop.f32.mrb[69].mxu0 }
0x59e1   :  { %v9849_v51 = vadd.f32 %v7490_v45, %v3281_v48  ;;  %v8114_v49 = vpop.f32.mrb[70].mxu0 }
0x59e2   :  { %v9851_v3 = vadd.f32 %v8114_v49, %v7490_v45  ;;  %v3284_v56 = vpop.f32.mrb[71].mxu0 }
0x59e3   :  { %v9853_v57 = vadd.f32 %v7490_v45, %v3284_v56  ;;  %3300 = vrot.lane.b32.xlu0 %v9849_v51, %s8969_s21  ;;  %v3296_v50 = vmul.f32 0.35355338, %v9849_v51 }
0x59e5   :  { %3302 = vrot.lane.b32.xlu1 %v9853_v57, %s8969_s21  ;;  %v3297_v59 = vmul.f32 0.35355338, %v9853_v57  ;;  %v9890_v19 = vpack.c.bf16 %v9853_v57, %v9849_v51 }
0x59e7   :  { %3461 = vrot.lane.b32.xlu0 %v9849_v51, %s8970_s25  ;;  %v9865_v63 = vpack.c.bf16 %v3297_v59, %v3296_v50 }
0x59e9   :  { %3463 = vrot.lane.b32.xlu1 %v9853_v57, %s8970_s25 }
0x59eb   :  { %3501 = vrot.lane.b32.xlu0 %v9865_v63, %s8971_s29 }
0x5a55   :  { %v3301_v6 = vpop.permute.xlu0 %3300 }
0x5a56   :  { %3306 = vxpose.xlu1.b32.start [1/2] (short) (narrow) %v3301_v6, 8 }
0x5a57   :  { %v3303_v32 = vpop.permute.xlu1 %3302 }
0x5a59   :  { %v3462_v53 = vpop.permute.xlu0 %3461 }
0x5a5a   :  { %3307 = vxpose.xlu1.b32.end [2/2] (short) (narrow) %v3303_v32, 8  ;;  %3467 = vxpose.xlu0.b32.start [1/2] (short) (narrow) %v3462_v53, 8 }
0x5a5b   :  { %v3464_v62 = vpop.permute.xlu1 %3463 }
0x5a5d   :  { %v3502_v0 = vpop.permute.xlu0 %3501 }
0x5a5e   :  { %3468 = vxpose.xlu0.b32.end [2/2] (short) (narrow) %v3464_v62, 8 }
0x5ad6   :  { %v3322_v54 = vpop.trf.xlu1 }
0x5ad7   :  { %v3339_v58 = vpack.c.bf16 %v3322_v54, %v3322_v54 }
0x5ad9   :  { %v3344_v1 = vsel %vm181_vm0, %v3339_v58, 0 }
0x5ada   :  { %8116 = vmatpush3.bf16.msra.mxu1 %v3344_v1  ;;  %v3483_v2 = vpop.trf.xlu0 }
0x5adb   :  { %v3499_v36 = vpack.c.bf16 %v3483_v2, %v3483_v2  ;;  %8127 = vmatprep.subr.bf16.mxu1 %v8963_v33  ;;  %v3221_v2 = vld [vmem:[%s10540_s19] sm:$0xff] }
0x5add   :  { %8118 = vmatmul.mubr.msk.bf16.vlgmr.msra.gmra.mrb[76].mxu1 %vm174_vm2, %v9865_v63  ;;  %v3507_v4 = vsel %vm181_vm0, %v3499_v36, 0  ;;  %v3460_v36 = vpack.c.bf16 %v3221_v2, %v3221_v2 }
0x5ade   :  { %8128 = vmatpush3.bf16.msra.mxu1 %v3507_v4  ;;  %8129 = vmatprep.mubr.msk.bf16.mxu1 %vm8964_vm4, %v8963_v33 }
0x5adf   :  { %8139 = vmatprep.subr.bf16.mxu1 %v8963_v33  ;;  %v9912_v4 = vsel %vm181_vm0, %v3460_v36, 0 }
0x5ae5   :  { %8130 = vmatmul.mubr.msk.bf16.vlgmr.msra.gmra.mrb[80].mxu1 %vm174_vm2, %v3502_v0 }
0x5ae6   :  { %8141 = vmatprep.mubr.msk.bf16.mxu1 %vm8964_vm4, %v8963_v33 }
0x5bb0   :  { %v3380_v5 = vpop.f32.mrb[76].mxu1 }
0x5bb1   :  { %v8119_v61 = vpop.f32.mrb[77].mxu1  ;;  %v3387_v7 = vsel %vm390_vm5, %v3380_v5, -inf }
0x5bb2   :  { %3388 = vmax.xlane.f32.xlu0 %v3387_v7  ;;  %v3383_v8 = vpop.f32.mrb[78].mxu1 }
0x5bb3   :  { %v8120_v35 = vpop.f32.mrb[79].mxu1  ;;  %v3390_v9 = vsel %vm390_vm5, %v3383_v8, -inf }
0x5bb4   :  { %3391 = vmax.xlane.f32.xlu1 %v3390_v9 }
0x5bb8   :  { %v3543_v10 = vpop.f32.mrb[80].mxu1 }
0x5bb9   :  { %v8131_v11 = vpop.f32.mrb[81].mxu1  ;;  %v3550_v12 = vsel %vm390_vm5, %v3543_v10, -inf }
0x5bba   :  { %3551 = vmax.xlane.f32.xlu0 %v3550_v12  ;;  %v3546_v44 = vpop.f32.mrb[82].mxu1 }
0x5bbb   :  { %v8132_v31 = vpop.f32.mrb[83].mxu1  ;;  %v3553_v34 = vsel %vm390_vm5, %v3546_v44, -inf }
0x5bbc   :  { %3554 = vmax.xlane.f32.xlu1 %v3553_v34 }
0x5c3f   :  { %v3389_v13 = vpop.xlane.xlu0 %3388 }
0x5c40   :  { %v3393_v14 = vsub.f32 %v3380_v5, %v3389_v13  ;;  %v3222_v5 = vld [vmem:[%s10540_s19 + $0x8] sm:$0xff] }
0x5c41   :  { %v3392_v15 = vpop.xlane.xlu1 %3391  ;;  %v3621_v61 = vpack.c.bf16 %v3222_v5, %v3222_v5 }
0x5c42   :  { %v3395_v52 = vmul.f32 1.442695, %v3393_v14  ;;  %v3394_v16 = vsub.f32 %v3383_v8, %v3392_v15 }
0x5c43   :  { %v9918_v7 = vsel %vm181_vm0, %v3621_v61, 0 }
0x5c44   :  { %8745 = vpow2.f32 %v3395_v52  ;;  %v3397_v27 = vmul.f32 1.442695, %v3394_v16  ;;  %8140 = vmatpush3.bf16.msra.mxu1 %v9918_v7 }
0x5c45   :  { %8151 = vmatprep.subr.bf16.mxu1 %v8963_v33 }
0x5c46   :  { %8747 = vpow2.f32 %v3397_v27 }
0x5c47   :  { %v3552_v37 = vpop.xlane.xlu0 %3551 }
0x5c48   :  { %v3556_v18 = vsub.f32 %v3543_v10, %v3552_v37 }
0x5c49   :  { %v3555_v20 = vpop.xlane.xlu1 %3554 }
0x5c4a   :  { %v3558_v17 = vmul.f32 1.442695, %v3556_v18  ;;  %v3557_v21 = vsub.f32 %v3546_v44, %v3555_v20 }
0x5c4c   :  { %8749 = vpow2.f32 %v3558_v17  ;;  %v3560_v22 = vmul.f32 1.442695, %v3557_v21 }
0x5c4e   :  { %v8746_v29 = vpop.eup %8745  ;;  %8751 = vpow2.f32 %v3560_v22 }
0x5c4f   :  { %v3399_v24 = vsel %vm390_vm5, %v8746_v29, 0.0 }
0x5c50   :  { %v8748_v25 = vpop.eup %8747  ;;  %3400 = vadd.xlane.f32.xlu0 %v3399_v24 }
0x5c51   :  { %v3402_v55 = vsel %vm390_vm5, %v8748_v25, 0.0 }
0x5c52   :  { %3403 = vadd.xlane.f32.xlu1 %v3402_v55 }
0x5c56   :  { %v8750_v23 = vpop.eup %8749 }
0x5c57   :  { %v3562_v26 = vsel %vm390_vm5, %v8750_v23, 0.0 }
0x5c58   :  { %v8752_v28 = vpop.eup %8751  ;;  %3563 = vadd.xlane.f32.xlu0 %v3562_v26 }
0x5c59   :  { %v3565_v30 = vsel %vm390_vm5, %v8752_v28, 0.0 }
0x5c5a   :  { %3566 = vadd.xlane.f32.xlu1 %v3565_v30 }
0x5c6b   :  { %3573 = vrot.lane.b32.xlu1 %v9890_v19, %s8972_s3 }
0x5c6e   :  { %3412 = vrot.lane.b32.xlu0 %v9890_v19, %s8973_s8 }
0x5c6f   :  { %3716 = vrot.lane.b32.xlu1 %v9849_v51, %s8966_s0 }
0x5c72   :  { %3718 = vrot.lane.b32.xlu0 %v9853_v57, %s8966_s0 }
0x5c73   :  { %3755 = vrot.lane.b32.xlu1 %v9865_v63, %s8974_s14 }
0x5cdd   :  { %v3401_v60 = vpop.xlane.xlu0 %3400 }
0x5cde   :  { %8753 = vrcp.f32 %v3401_v60 }
0x5cdf   :  { %v3404_v42 = vpop.xlane.xlu1 %3403 }
0x5ce0   :  { %8755 = vrcp.f32 %v3404_v42  ;;  %v8523_v42 = vpack.i.bf16 %v9853_v57, %v9849_v51 }
0x5ce5   :  { %v3564_v43 = vpop.xlane.xlu0 %3563 }
0x5ce6   :  { %8757 = vrcp.f32 %v3564_v43 }
0x5ce7   :  { %v3567_v45 = vpop.xlane.xlu1 %3566 }
0x5ce8   :  { %v8754_v46 = vpop.eup %8753  ;;  %8759 = vrcp.f32 %v3567_v45 }
0x5ce9   :  { %v3413_v48 = vpop.permute.xlu0 %3412  ;;  %v3406_v56 = vmul.f32 %v8754_v46, %v8746_v29 }
0x5cea   :  { %v8756_v49 = vpop.eup %8755  ;;  %8122 = vmatpush3.bf16.msra.mxu0 %v3413_v48 }
0x5ceb   :  { %v3408_v59 = vmul.f32 %v8756_v49, %v8748_v25  ;;  %v3574_v50 = vpop.permute.xlu1 %3573  ;;  %8133 = vmatprep.subr.bf16.mxu0 %v8963_v33 }
0x5ced   :  { %v3409_v6 = vpack.c.bf16 %v3408_v59, %v3406_v56  ;;  %v3719_v58 = vpop.permute.xlu0 %3718 }
0x5cef   :  { %8124 = vmatmul.mubr.msk.bf16.vlgmr.msra.gmra.mrb[72].mxu0 %vm390_vm5, %v3409_v6  ;;  %v3717_v32 = vpop.permute.xlu1 %3716 }
0x5cf0   :  { %v8758_v53 = vpop.eup %8757  ;;  %8134 = vmatpush3.bf16.msra.mxu0 %v3574_v50  ;;  %3722 = vxpose.xlu0.b32.start [1/2] (short) (narrow) %v3717_v32, 8 }
0x5cf1   :  { %8135 = vmatprep.mubr.msk.bf16.mxu0 %vm8964_vm4, %v8963_v33  ;;  %8145 = vmatprep.subr.bf16.mxu0 %v8963_v33  ;;  %v3569_v0 = vmul.f32 %v8758_v53, %v8750_v23 }
0x5cf2   :  { %v8760_v62 = vpop.eup %8759 }
0x5cf3   :  { %v3571_v54 = vmul.f32 %v8760_v62, %v8752_v28  ;;  %v3756_v16 = vpop.permute.xlu1 %3755 }
0x5cf4   :  { %3723 = vxpose.xlu0.b32.end [2/2] (short) (narrow) %v3719_v58, 8 }
0x5cf5   :  { %v3572_v1 = vpack.c.bf16 %v3571_v54, %v3569_v0 }
0x5cf7   :  { %8136 = vmatmul.mubr.msk.bf16.vlgmr.msra.gmra.mrb[76].mxu0 %vm390_vm5, %v3572_v1 }
0x5cf8   :  { %8147 = vmatprep.mubr.msk.bf16.mxu0 %vm8964_vm4, %v8963_v33  ;;  %8146 = vmatpush3.bf16.msra.mxu0 %v9912_v4 }
0x5cf9   :  { %8157 = vmatprep.subr.bf16.mxu0 %v8963_v33 }
0x5d70   :  { %v3738_v12 = vpop.trf.xlu0 }
0x5d71   :  { %v3754_v44 = vpack.c.bf16 %v3738_v12, %v3738_v12 }
0x5d73   :  { %v3761_v52 = vsel %vm181_vm0, %v3754_v44, 0 }
0x5dc2   :  { %v3452_v8 = vpop.f32.mrb[72].mxu0 }
0x5dc3   :  { %v8125_v35 = vpop.f32.mrb[73].mxu0 }
0x5dc4   :  { %v3455_v9 = vpop.f32.mrb[74].mxu0 }
0x5dc5   :  { %v3459_v10 = vpack.c.bf16 %v3455_v9, %v3452_v8  ;;  %v8126_v11 = vpop.f32.mrb[75].mxu0  ;;  %v3223_v9 = vld [vmem:[%s10540_s19 + $0x10] sm:$0xff] }
0x5dc7   :  { %8148 = vmatmul.mubr.msk.bf16.vlgmr.msra.gmra.mrb[80].mxu0 %vm174_vm2, %v3459_v10  ;;  %v3875_v10 = vpack.c.bf16 %v3223_v9, %v3223_v9 }
0x5dc8   :  { %8159 = vmatprep.mubr.msk.bf16.mxu0 %vm8964_vm4, %v8963_v33 }
0x5dc9   :  { %v9959_v11 = vsel %vm181_vm0, %v3875_v10, 0 }
0x5dca   :  { %v3613_v31 = vpop.f32.mrb[76].mxu0 }
0x5dcb   :  { %v8137_v34 = vpop.f32.mrb[77].mxu0 }
0x5dcc   :  { %v3616_v13 = vpop.f32.mrb[78].mxu0 }
0x5dcd   :  { %v3620_v14 = vpack.c.bf16 %v3616_v13, %v3613_v31  ;;  %v8138_v15 = vpop.f32.mrb[79].mxu0 }
0x5dcf   :  { %8142 = vmatmul.mubr.msk.bf16.vlgmr.msra.gmra.mrb[84].mxu1 %vm174_vm2, %v3620_v14 }
0x5dd0   :  { %8152 = vmatpush3.bf16.msra.mxu1 %v3761_v52  ;;  %8153 = vmatprep.mubr.msk.bf16.mxu1 %vm8964_vm4, %v8963_v33 }
0x5dd1   :  { %8163 = vmatprep.subr.bf16.mxu1 %v8963_v33 }
0x5dd7   :  { %8154 = vmatmul.mubr.msk.bf16.vlgmr.msra.gmra.mrb[88].mxu1 %vm174_vm2, %v3756_v16 }
0x5dd8   :  { %8165 = vmatprep.mubr.msk.bf16.mxu1 %vm8964_vm4, %v8963_v33  ;;  %8164 = vmatpush3.bf16.msra.mxu1 %v9959_v11 }
0x5dd9   :  { %8175 = vmatprep.subr.bf16.mxu1 %v8963_v33 }
0x5e9a   :  { %v3709_v27 = vpop.f32.mrb[80].mxu0 }
0x5e9b   :  { %v8149_v37 = vpop.f32.mrb[81].mxu0 }
0x5e9c   :  { %v3712_v18 = vpop.f32.mrb[82].mxu0 }
0x5e9d   :  { %v8150_v20 = vpop.f32.mrb[83].mxu0 }
0x5ea2   :  { %v3662_v17 = vpop.f32.mrb[84].mxu1 }
0x5ea3   :  { %v9933_v21 = vadd.f32 %v3709_v27, %v3662_v17  ;;  %v8143_v22 = vpop.f32.mrb[85].mxu1 }
0x5ea4   :  { %v3665_v29 = vpop.f32.mrb[86].mxu1 }
0x5ea5   :  { %v9935_v24 = vadd.f32 %v3712_v18, %v3665_v29  ;;  %v8144_v25 = vpop.f32.mrb[87].mxu1  ;;  %v9970_v18 = vpack.i.bf16 %v9851_v3, %v9847_v47 }
0x5eaa   :  { %v3797_v55 = vpop.f32.mrb[88].mxu1 }
0x5eab   :  { %v8155_v23 = vpop.f32.mrb[89].mxu1  ;;  %v3804_v26 = vsel %vm390_vm5, %v3797_v55, -inf }
0x5eac   :  { %3805 = vmax.xlane.f32.xlu1 %v3804_v26  ;;  %v3800_v28 = vpop.f32.mrb[90].mxu1 }
0x5ead   :  { %v8156_v30 = vpop.f32.mrb[91].mxu1  ;;  %v3807_v60 = vsel %vm390_vm5, %v3800_v28, -inf }
0x5eae   :  { %3808 = vmax.xlane.f32.xlu0 %v3807_v60  ;;  %v4135_v60 = vmul.f32 0.35355338, %v9851_v3 }
0x5ebd   :  { %8524 = vrot.lane.b32.xlu1 %v8523_v42, %s8975_s24  ;;  %v4134_v42 = vmul.f32 0.35355338, %v9847_v47 }
0x5f39   :  { %v3806_v43 = vpop.xlane.xlu1 %3805 }
0x5f3a   :  { %v3810_v45 = vsub.f32 %v3797_v55, %v3806_v43  ;;  %v9982_v43 = vpack.c.bf16 %v4135_v60, %v4134_v42 }
0x5f3b   :  { %v3809_v46 = vpop.xlane.xlu0 %3808 }
0x5f3c   :  { %v3812_v48 = vmul.f32 1.442695, %v3810_v45  ;;  %v3811_v49 = vsub.f32 %v3800_v28, %v3809_v46 }
0x5f3d   :  { %v8525_v51 = vpop.permute.xlu1 %8524 }
0x5f3e   :  { %8761 = vpow2.f32 %v3812_v48  ;;  %v3814_v56 = vmul.f32 1.442695, %v3811_v49  ;;  %v8526_v57 = vunpack.i.l.bf16 %v8525_v51  ;;  %v8527_v53 = vunpack.i.h.bf16 %v8525_v51 }
0x5f40   :  { %8763 = vpow2.f32 %v3814_v56 }
0x5f48   :  { %v8762_v59 = vpop.eup %8761 }
0x5f49   :  { %v3816_v50 = vsel %vm390_vm5, %v8762_v59, 0.0 }
0x5f4a   :  { %v8764_v6 = vpop.eup %8763  ;;  %3817 = vadd.xlane.f32.xlu1 %v3816_v50 }
0x5f4b   :  { %v3819_v32 = vsel %vm390_vm5, %v8764_v6, 0.0 }
0x5f4c   :  { %3820 = vadd.xlane.f32.xlu0 %v3819_v32 }
0x5f5b   :  { %3964 = vrot.lane.b32.xlu1 %v9865_v63, %s8968_s9 }
0x5f62   :  { %3827 = vrot.lane.b32.xlu0 %v9890_v19, %s8967_s5 }
0x5f80   :  { %3931 = vxpose.xlu0.b32.start [1/2] (short) (narrow) %v8526_v57, 8 }
0x5f84   :  { %3932 = vxpose.xlu0.b32.end [2/2] (short) (narrow) %v8527_v53, 8 }
0x5fd7   :  { %v3818_v62 = vpop.xlane.xlu1 %3817 }
0x5fd8   :  { %8765 = vrcp.f32 %v3818_v62 }
0x5fd9   :  { %v3821_v0 = vpop.xlane.xlu0 %3820 }
0x5fda   :  { %8767 = vrcp.f32 %v3821_v0 }
0x5fdb   :  { %v3965_v35 = vpop.permute.xlu1 %3964 }
0x5fdd   :  { %v3828_v54 = vpop.permute.xlu0 %3827 }
0x5fde   :  { %8158 = vmatpush3.bf16.msra.mxu0 %v3828_v54 }
0x5fdf   :  { %8169 = vmatprep.subr.bf16.mxu0 %v8963_v33 }
0x5fe2   :  { %v8766_v58 = vpop.eup %8765 }
0x5fe3   :  { %v3823_v63 = vmul.f32 %v8766_v58, %v8762_v59 }
0x5fe4   :  { %v8768_v1 = vpop.eup %8767 }
0x5fe5   :  { %v3825_v2 = vmul.f32 %v8768_v1, %v8764_v6 }
0x5fe7   :  { %v3826_v36 = vpack.c.bf16 %v3825_v2, %v3823_v63 }
0x5fe9   :  { %8160 = vmatmul.mubr.msk.bf16.vlgmr.msra.gmra.mrb[84].mxu0 %vm390_vm5, %v3826_v36 }
0x5fea   :  { %8171 = vmatprep.mubr.msk.bf16.mxu0 %vm8964_vm4, %v8963_v33 }
0x6000   :  { %v3947_v5 = vpop.trf.xlu0 }
0x6001   :  { %v3963_v61 = vpack.c.bf16 %v3947_v5, %v3947_v5 }
0x6003   :  { %v3970_v8 = vsel %vm181_vm0, %v3963_v61, 0 }
0x6004   :  { %8170 = vmatpush3.bf16.msra.mxu0 %v3970_v8 }
0x6005   :  { %8181 = vmatprep.subr.bf16.mxu0 %v8963_v33 }
0x6007   :  { %8172 = vmatmul.mubr.msk.bf16.vlgmr.msra.gmra.mrb[88].mxu0 %vm174_vm2, %v3965_v35  ;;  %v3224_v35 = vld [vmem:[%s10540_s19 + $0x18] sm:$0xff] }
0x6008   :  { %8183 = vmatprep.mubr.msk.bf16.mxu0 %vm8964_vm4, %v8963_v33  ;;  %v4084_v9 = vpack.c.bf16 %v3224_v35, %v3224_v35 }
0x600a   :  { %v10013_v10 = vsel %vm181_vm0, %v4084_v9, 0 }
0x600b   :  { %8182 = vmatpush3.bf16.msra.mxu0 %v10013_v10 }
0x600c   :  { %8193 = vmatprep.subr.bf16.mxu0 %v8963_v33 }
0x60bc   :  { %v3867_v12 = vpop.f32.mrb[84].mxu0 }
0x60bd   :  { %v8161_v44 = vpop.f32.mrb[85].mxu0 }
0x60be   :  { %v3870_v31 = vpop.f32.mrb[86].mxu0 }
0x60bf   :  { %v3874_v34 = vpack.c.bf16 %v3870_v31, %v3867_v12  ;;  %v8162_v13 = vpop.f32.mrb[87].mxu0 }
0x60c1   :  { %8166 = vmatmul.mubr.msk.bf16.vlgmr.msra.gmra.mrb[92].mxu1 %vm174_vm2, %v3874_v34 }
0x60c2   :  { %8177 = vmatprep.mubr.msk.bf16.mxu1 %vm8964_vm4, %v8963_v33 }
0x60da   :  { %v4006_v14 = vpop.f32.mrb[88].mxu0 }
0x60db   :  { %v8173_v15 = vpop.f32.mrb[89].mxu0  ;;  %v4013_v52 = vsel %vm390_vm5, %v4006_v14, -inf }
0x60dc   :  { %4014 = vmax.xlane.f32.xlu1 %v4013_v52  ;;  %v4009_v16 = vpop.f32.mrb[90].mxu0 }
0x60dd   :  { %v8174_v27 = vpop.f32.mrb[91].mxu0  ;;  %v4016_v37 = vsel %vm390_vm5, %v4009_v16, -inf }
0x60de   :  { %4017 = vmax.xlane.f32.xlu0 %v4016_v37 }
0x60ed   :  { %8529 = vrot.lane.b32.xlu1 %v9970_v18, %s8969_s21 }
0x60f1   :  { %4300 = vrot.lane.b32.xlu1 %v9851_v3, %s8970_s25 }
0x60f4   :  { %4298 = vrot.lane.b32.xlu0 %v9847_v47, %s8970_s25 }
0x6169   :  { %v4015_v20 = vpop.xlane.xlu1 %4014 }
0x616a   :  { %v4019_v17 = vsub.f32 %v4006_v14, %v4015_v20 }
0x616b   :  { %v4018_v22 = vpop.xlane.xlu0 %4017 }
0x616c   :  { %v4021_v29 = vmul.f32 1.442695, %v4019_v17  ;;  %v4020_v25 = vsub.f32 %v4009_v16, %v4018_v22 }
0x616d   :  { %v8530_v50 = vpop.permute.xlu1 %8529 }
0x616e   :  { %8769 = vpow2.f32 %v4021_v29  ;;  %v4023_v55 = vmul.f32 1.442695, %v4020_v25  ;;  %v8531_v6 = vunpack.i.l.bf16 %v8530_v50  ;;  %v8532_v32 = vunpack.i.h.bf16 %v8530_v50 }
0x616f   :  { %v4299_v51 = vpop.permute.xlu0 %4298 }
0x6170   :  { %8771 = vpow2.f32 %v4023_v55 }
0x6171   :  { %v4301_v57 = vpop.permute.xlu1 %4300 }
0x6178   :  { %v8770_v23 = vpop.eup %8769 }
0x6179   :  { %v4025_v26 = vsel %vm390_vm5, %v8770_v23, 0.0 }
0x617a   :  { %v8772_v28 = vpop.eup %8771  ;;  %4026 = vadd.xlane.f32.xlu1 %v4025_v26 }
0x617b   :  { %v4028_v30 = vsel %vm390_vm5, %v8772_v28, 0.0 }
0x617c   :  { %4029 = vadd.xlane.f32.xlu0 %v4028_v30 }
0x618b   :  { %4338 = vrot.lane.b32.xlu1 %v9982_v43, %s8971_s29 }
0x6192   :  { %4036 = vrot.lane.b32.xlu0 %v9890_v19, %s8976_s30 }
0x6194   :  { %v3916_v45 = vpop.f32.mrb[92].mxu1 }
0x6195   :  { %v9989_v46 = vadd.f32 %v3916_v45, %v9933_v21  ;;  %v8167_v48 = vpop.f32.mrb[93].mxu1 }
0x6196   :  { %v3919_v49 = vpop.f32.mrb[94].mxu1 }
0x6197   :  { %v9992_v56 = vadd.f32 %v3919_v49, %v9935_v24  ;;  %v8168_v59 = vpop.f32.mrb[95].mxu1 }
0x61b0   :  { %4144 = vxpose.xlu0.b32.start [1/2] (short) (narrow) %v8531_v6, 8 }
0x61b4   :  { %4145 = vxpose.xlu0.b32.end [2/2] (short) (narrow) %v8532_v32, 8  ;;  %4304 = vxpose.xlu1.b32.start [1/2] (short) (narrow) %v4299_v51, 8 }
0x61b8   :  { %4305 = vxpose.xlu1.b32.end [2/2] (short) (narrow) %v4301_v57, 8 }
0x6207   :  { %v4027_v19 = vpop.xlane.xlu1 %4026 }
0x6208   :  { %8773 = vrcp.f32 %v4027_v19 }
0x6209   :  { %v4030_v53 = vpop.xlane.xlu0 %4029 }
0x620a   :  { %8775 = vrcp.f32 %v4030_v53 }
0x620b   :  { %v4339_v1 = vpop.permute.xlu1 %4338 }
0x620d   :  { %v4037_v21 = vpop.permute.xlu0 %4036 }
0x620e   :  { %8176 = vmatpush3.bf16.msra.mxu1 %v4037_v21 }
0x620f   :  { %8187 = vmatprep.subr.bf16.mxu1 %v8963_v33 }
0x6212   :  { %v8774_v24 = vpop.eup %8773 }
0x6213   :  { %v4032_v0 = vmul.f32 %v8774_v24, %v8770_v23 }
0x6214   :  { %v8776_v62 = vpop.eup %8775 }
0x6215   :  { %v4034_v54 = vmul.f32 %v8776_v62, %v8772_v28  ;;  %v10030_v62 = vpack.c.bf16 %v9851_v3, %v9847_v47 }
0x6217   :  { %v4035_v58 = vpack.c.bf16 %v4034_v54, %v4032_v0 }
0x6219   :  { %8178 = vmatmul.mubr.msk.bf16.vlgmr.msra.gmra.mrb[96].mxu1 %vm390_vm5, %v4035_v58 }
0x621a   :  { %8189 = vmatprep.mubr.msk.bf16.mxu1 %vm8964_vm4, %v8963_v33 }
0x6230   :  { %v4160_v63 = vpop.trf.xlu0 }
0x6231   :  { %v4177_v2 = vpack.c.bf16 %v4160_v63, %v4160_v63 }
0x6233   :  { %v4182_v36 = vsel %vm181_vm0, %v4177_v2, 0 }
0x6234   :  { %8188 = vmatpush3.bf16.msra.mxu1 %v4182_v36  ;;  %v4320_v5 = vpop.trf.xlu1 }
0x6235   :  { %v4336_v61 = vpack.c.bf16 %v4320_v5, %v4320_v5  ;;  %8199 = vmatprep.subr.bf16.mxu1 %v8963_v33 }
0x6237   :  { %8190 = vmatmul.mubr.msk.bf16.vlgmr.msra.gmra.mrb[100].mxu1 %vm174_vm2, %v9982_v43  ;;  %v4344_v8 = vsel %vm181_vm0, %v4336_v61, 0 }
0x6238   :  { %8200 = vmatpush3.bf16.msra.mxu1 %v4344_v8  ;;  %8201 = vmatprep.mubr.msk.bf16.mxu1 %vm8964_vm4, %v8963_v33 }
0x6239   :  { %8211 = vmatprep.subr.bf16.mxu1 %v8963_v33 }
0x623f   :  { %8202 = vmatmul.mubr.msk.bf16.vlgmr.msra.gmra.mrb[104].mxu1 %vm174_vm2, %v4339_v1 }
0x6240   :  { %8212 = vmatpush3.bf16.msra.mxu1 %v9918_v7  ;;  %8213 = vmatprep.mubr.msk.bf16.mxu1 %vm8964_vm4, %v8963_v33 }
0x6241   :  { %8223 = vmatprep.subr.bf16.mxu1 %v8963_v33 }
0x62ec   :  { %v4076_v12 = vpop.f32.mrb[96].mxu1 }
0x62ed   :  { %v8179_v44 = vpop.f32.mrb[97].mxu1 }
0x62ee   :  { %v4079_v31 = vpop.f32.mrb[98].mxu1 }
0x62ef   :  { %v4083_v34 = vpack.c.bf16 %v4079_v31, %v4076_v12  ;;  %v8180_v13 = vpop.f32.mrb[99].mxu1 }
0x62f1   :  { %8184 = vmatmul.mubr.msk.bf16.vlgmr.msra.gmra.mrb[92].mxu0 %vm174_vm2, %v4083_v34 }
0x62f2   :  { %8195 = vmatprep.mubr.msk.bf16.mxu0 %vm8964_vm4, %v8963_v33 }
0x630a   :  { %v4218_v7 = vpop.f32.mrb[100].mxu1 }
0x630b   :  { %v8191_v14 = vpop.f32.mrb[101].mxu1  ;;  %v4225_v15 = vsel %vm390_vm5, %v4218_v7, -inf }
0x630c   :  { %4226 = vmax.xlane.f32.xlu0 %v4225_v15  ;;  %v4221_v52 = vpop.f32.mrb[102].mxu1 }
0x630d   :  { %v8192_v16 = vpop.f32.mrb[103].mxu1  ;;  %v4228_v27 = vsel %vm390_vm5, %v4221_v52, -inf }
0x630e   :  { %4229 = vmax.xlane.f32.xlu1 %v4228_v27 }
0x6312   :  { %v4380_v37 = vpop.f32.mrb[104].mxu1 }
0x6313   :  { %v8203_v20 = vpop.f32.mrb[105].mxu1  ;;  %v4387_v17 = vsel %vm390_vm5, %v4380_v37, -inf }
0x6314   :  { %4388 = vmax.xlane.f32.xlu0 %v4387_v17  ;;  %v4383_v22 = vpop.f32.mrb[106].mxu1 }
0x6315   :  { %v8204_v29 = vpop.f32.mrb[107].mxu1  ;;  %v4390_v25 = vsel %vm390_vm5, %v4383_v22, -inf }
0x6318   :  { %4391 = vmax.xlane.f32.xlu0 %v4390_v25 }
0x6399   :  { %v4227_v55 = vpop.xlane.xlu0 %4226 }
0x639a   :  { %v4231_v23 = vsub.f32 %v4218_v7, %v4227_v55 }
0x639b   :  { %v4230_v26 = vpop.xlane.xlu1 %4229 }
0x639c   :  { %v4233_v28 = vmul.f32 1.442695, %v4231_v23  ;;  %v4232_v30 = vsub.f32 %v4221_v52, %v4230_v26 }
0x639e   :  { %8777 = vpow2.f32 %v4233_v28  ;;  %v4235_v60 = vmul.f32 1.442695, %v4232_v30 }
0x63a0   :  { %8779 = vpow2.f32 %v4235_v60 }
0x63a1   :  { %v4389_v42 = vpop.xlane.xlu0 %4388 }
0x63a2   :  { %v4393_v45 = vsub.f32 %v4380_v37, %v4389_v42 }
0x63a4   :  { %v4395_v48 = vmul.f32 1.442695, %v4393_v45 }
0x63a5   :  { %v4392_v49 = vpop.xlane.xlu0 %4391 }
0x63a6   :  { %8781 = vpow2.f32 %v4395_v48  ;;  %v4394_v59 = vsub.f32 %v4383_v22, %v4392_v49 }
0x63a8   :  { %v8778_v50 = vpop.eup %8777  ;;  %v4397_v6 = vmul.f32 1.442695, %v4394_v59 }
0x63a9   :  { %v4237_v32 = vsel %vm390_vm5, %v8778_v50, 0.0 }
0x63aa   :  { %v8780_v51 = vpop.eup %8779  ;;  %8783 = vpow2.f32 %v4397_v6  ;;  %4238 = vadd.xlane.f32.xlu1 %v4237_v32 }
0x63ab   :  { %v4240_v57 = vsel %vm390_vm5, %v8780_v51, 0.0 }
0x63ac   :  { %4241 = vadd.xlane.f32.xlu0 %v4240_v57 }
0x63b0   :  { %v8782_v19 = vpop.eup %8781 }
0x63b1   :  { %v4399_v53 = vsel %vm390_vm5, %v8782_v19, 0.0 }
0x63b2   :  { %4400 = vadd.xlane.f32.xlu1 %v4399_v53 }
0x63b4   :  { %v8784_v21 = vpop.eup %8783 }
0x63b5   :  { %v4402_v24 = vsel %vm390_vm5, %v8784_v21, 0.0 }
0x63b6   :  { %4403 = vadd.xlane.f32.xlu0 %v4402_v24 }
0x63c3   :  { %4250 = vrot.lane.b32.xlu1 %v10030_v62, %s8973_s8 }
0x63c4   :  { %v4125_v0 = vpop.f32.mrb[92].mxu0 }
0x63c5   :  { %v10035_v54 = vadd.f32 %v4125_v0, %v9989_v46  ;;  %v8185_v58 = vpop.f32.mrb[93].mxu0 }
0x63c6   :  { %v4128_v1 = vpop.f32.mrb[94].mxu0 }
0x63c7   :  { %v10038_v63 = vadd.f32 %v4128_v1, %v9992_v56  ;;  %v8186_v2 = vpop.f32.mrb[95].mxu0  ;;  %4546 = vrot.lane.b32.xlu1 %v9847_v47, %s8966_s0 }
0x63cb   :  { %4548 = vrot.lane.b32.xlu1 %v9851_v3, %s8966_s0 }
0x63cc   :  { %4410 = vrot.lane.b32.xlu0 %v10030_v62, %s8972_s3 }
0x63d0   :  { %4585 = vrot.lane.b32.xlu0 %v9982_v43, %s8974_s14 }
0x6437   :  { %v4239_v46 = vpop.xlane.xlu1 %4238 }
0x6438   :  { %8785 = vrcp.f32 %v4239_v46 }
0x6439   :  { %v4242_v36 = vpop.xlane.xlu0 %4241 }
0x643a   :  { %8787 = vrcp.f32 %v4242_v36 }
0x643f   :  { %v4401_v5 = vpop.xlane.xlu1 %4400 }
0x6440   :  { %8789 = vrcp.f32 %v4401_v5 }
0x6442   :  { %v8786_v56 = vpop.eup %8785 }
0x6443   :  { %v4251_v61 = vpop.permute.xlu1 %4250  ;;  %v4404_v8 = vpop.xlane.xlu0 %4403  ;;  %v4244_v47 = vmul.f32 %v8786_v56, %v8778_v50 }
0x6444   :  { %v8788_v35 = vpop.eup %8787  ;;  %8791 = vrcp.f32 %v4404_v8  ;;  %8194 = vmatpush3.bf16.msra.mxu0 %v4251_v61 }
0x6445   :  { %v4246_v3 = vmul.f32 %v8788_v35, %v8780_v51  ;;  %8205 = vmatprep.subr.bf16.mxu0 %v8963_v33 }
0x6447   :  { %v4547_v9 = vpop.permute.xlu1 %4546  ;;  %v4411_v12 = vpop.permute.xlu0 %4410  ;;  %v4247_v44 = vpack.c.bf16 %v4246_v3, %v4244_v47 }
0x6448   :  { %4552 = vxpose.xlu1.b32.start [1/2] (short) (narrow) %v4547_v9, 8 }
0x6449   :  { %8196 = vmatmul.mubr.msk.bf16.vlgmr.msra.gmra.mrb[96].mxu0 %vm390_vm5, %v4247_v44 }
0x644a   :  { %8206 = vmatpush3.bf16.msra.mxu0 %v4411_v12  ;;  %8207 = vmatprep.mubr.msk.bf16.mxu0 %vm8964_vm4, %v8963_v33  ;;  %v8790_v34 = vpop.eup %8789 }
0x644b   :  { %v4549_v31 = vpop.permute.xlu1 %4548  ;;  %8217 = vmatprep.subr.bf16.mxu0 %v8963_v33  ;;  %v4406_v7 = vmul.f32 %v8790_v34, %v8782_v19  ;;  %v4586_v28 = vpop.permute.xlu0 %4585 }
0x644c   :  { %4553 = vxpose.xlu1.b32.end [2/2] (short) (narrow) %v4549_v31, 8 }
0x644e   :  { %v8792_v13 = vpop.eup %8791 }
0x644f   :  { %v4408_v14 = vmul.f32 %v8792_v13, %v8784_v21 }
0x6451   :  { %v4409_v15 = vpack.c.bf16 %v4408_v14, %v4406_v7 }
0x6453   :  { %8208 = vmatmul.mubr.msk.bf16.vlgmr.msra.gmra.mrb[100].mxu0 %vm390_vm5, %v4409_v15 }
0x6454   :  { %8218 = vmatpush3.bf16.msra.mxu0 %v9912_v4  ;;  %8219 = vmatprep.mubr.msk.bf16.mxu0 %vm8964_vm4, %v8963_v33 }
0x6455   :  { %8229 = vmatprep.subr.bf16.mxu0 %v8963_v33 }
0x64c8   :  { %v4568_v17 = vpop.trf.xlu1 }
0x64c9   :  { %v4584_v22 = vpack.c.bf16 %v4568_v17, %v4568_v17 }
0x64cb   :  { %v4591_v26 = vsel %vm181_vm0, %v4584_v22, 0 }
0x651c   :  { %v4290_v52 = vpop.f32.mrb[96].mxu0 }
0x651d   :  { %v8197_v16 = vpop.f32.mrb[97].mxu0 }
0x651e   :  { %v4293_v27 = vpop.f32.mrb[98].mxu0 }
0x651f   :  { %v4297_v37 = vpack.c.bf16 %v4293_v27, %v4290_v52  ;;  %v8198_v20 = vpop.f32.mrb[99].mxu0 }
0x6521   :  { %8220 = vmatmul.mubr.msk.bf16.vlgmr.msra.gmra.mrb[104].mxu0 %vm174_vm2, %v4297_v37 }
0x6522   :  { %8231 = vmatprep.mubr.msk.bf16.mxu0 %vm8964_vm4, %v8963_v33 }
0x6526   :  { %v4450_v29 = vpop.f32.mrb[100].mxu0 }
0x6527   :  { %v8209_v25 = vpop.f32.mrb[101].mxu0 }
0x6528   :  { %v4453_v4 = vpop.f32.mrb[102].mxu0 }
0x6529   :  { %v4457_v55 = vpack.c.bf16 %v4453_v4, %v4450_v29  ;;  %v8210_v23 = vpop.f32.mrb[103].mxu0 }
0x652b   :  { %8214 = vmatmul.mubr.msk.bf16.vlgmr.msra.gmra.mrb[108].mxu1 %vm174_vm2, %v4457_v55 }
0x652c   :  { %8224 = vmatpush3.bf16.msra.mxu1 %v4591_v26  ;;  %8225 = vmatprep.mubr.msk.bf16.mxu1 %vm8964_vm4, %v8963_v33 }
0x652d   :  { %8235 = vmatprep.subr.bf16.mxu1 %v8963_v33 }
0x6533   :  { %8226 = vmatmul.mubr.msk.bf16.vlgmr.msra.gmra.mrb[112].mxu1 %vm174_vm2, %v4586_v28 }
0x6534   :  { %8236 = vmatpush3.bf16.msra.mxu1 %v9959_v11  ;;  %8237 = vmatprep.mubr.msk.bf16.mxu1 %vm8964_vm4, %v8963_v33 }
0x6535   :  { %8247 = vmatprep.subr.bf16.mxu1 %v8963_v33 }
0x65f4   :  { %v4539_v30 = vpop.f32.mrb[104].mxu0 }
0x65f5   :  { %v8221_v60 = vpop.f32.mrb[105].mxu0 }
0x65f6   :  { %v4542_v42 = vpop.f32.mrb[106].mxu0 }
0x65f7   :  { %v8222_v45 = vpop.f32.mrb[107].mxu0 }
0x65fe   :  { %v4495_v48 = vpop.f32.mrb[108].mxu1 }
0x65ff   :  { %v10071_v49 = vadd.f32 %v4539_v30, %v4495_v48  ;;  %v8215_v59 = vpop.f32.mrb[109].mxu1 }
0x6600   :  { %v4498_v50 = vpop.f32.mrb[110].mxu1 }
0x6601   :  { %v10073_v6 = vadd.f32 %v4542_v42, %v4498_v50  ;;  %v8216_v32 = vpop.f32.mrb[111].mxu1  ;;  %v7517_v42 = vld [vmem:[%s10541_s12] ss:$0 sm:$0xff] }
0x6602   :  { %v4964_v45 = vadd.f32 %v7517_v42, %v10038_v63 }
0x6604   :  { %v4970_v50 = vadd.f32 %v4964_v45, %v9834_v40  ;;  %v4963_v40 = vadd.f32 %v7517_v42, %v10035_v54 }
0x6606   :  { %v4627_v51 = vpop.f32.mrb[112].mxu1 }
0x6607   :  { %v8227_v57 = vpop.f32.mrb[113].mxu1  ;;  %v4634_v11 = vsel %vm390_vm5, %v4627_v51, -inf }
0x6608   :  { %4635 = vmax.xlane.f32.xlu0 %v4634_v11  ;;  %v4630_v19 = vpop.f32.mrb[114].mxu1 }
0x6609   :  { %v8228_v53 = vpop.f32.mrb[115].mxu1  ;;  %v4637_v21 = vsel %vm390_vm5, %v4630_v19, -inf }
0x660c   :  { %4638 = vmax.xlane.f32.xlu0 %v4637_v21 }
0x6622   :  { %8534 = vrot.lane.b32.xlu0 %v9970_v18, %s8975_s24 }
0x6695   :  { %v4636_v24 = vpop.xlane.xlu0 %4635 }
0x6696   :  { %v4640_v0 = vsub.f32 %v4627_v51, %v4636_v24  ;;  %v4976_v51 = vsel %vm3240_vm11, %v4970_v50, 0.0 }
0x6698   :  { %v4642_v58 = vmul.f32 1.442695, %v4640_v0  ;;  %v4969_v0 = vadd.f32 %v4963_v40, %v9832_v39 }
0x6699   :  { %v4639_v1 = vpop.xlane.xlu0 %4638 }
0x669a   :  { %8793 = vpow2.f32 %v4642_v58  ;;  %v4641_v2 = vsub.f32 %v4630_v19, %v4639_v1  ;;  %v4973_v58 = vsel %vm3240_vm11, %v4969_v0, 0.0 }
0x669c   :  { %v4644_v46 = vmul.f32 1.442695, %v4641_v2 }
0x669d   :  { %v8535_v18 = vpop.permute.xlu0 %8534 }
0x669e   :  { %8795 = vpow2.f32 %v4644_v46  ;;  %v8536_v8 = vunpack.i.l.bf16 %v8535_v18  ;;  %v8537_v35 = vunpack.i.h.bf16 %v8535_v18 }
0x66a4   :  { %v8794_v36 = vpop.eup %8793 }
0x66a5   :  { %v4646_v5 = vsel %vm390_vm5, %v8794_v36, 0.0 }
0x66a6   :  { %4647 = vadd.xlane.f32.xlu1 %v4646_v5 }
0x66a8   :  { %v8796_v56 = vpop.eup %8795 }
0x66a9   :  { %v4649_v61 = vsel %vm390_vm5, %v8796_v56, 0.0 }
0x66aa   :  { %4650 = vadd.xlane.f32.xlu0 %v4649_v61 }
0x66b7   :  { %4657 = vrot.lane.b32.xlu1 %v10030_v62, %s8967_s5 }
0x66c0   :  { %4790 = vrot.lane.b32.xlu0 %v9982_v43, %s8968_s9 }
0x66e0   :  { %4757 = vxpose.xlu1.b32.start [1/2] (short) (narrow) %v8536_v8, 8 }
0x66e4   :  { %4758 = vxpose.xlu1.b32.end [2/2] (short) (narrow) %v8537_v35, 8 }
0x6733   :  { %v4648_v47 = vpop.xlane.xlu1 %4647 }
0x6734   :  { %8797 = vrcp.f32 %v4648_v47 }
0x6737   :  { %v4658_v3 = vpop.permute.xlu1 %4657  ;;  %v4651_v9 = vpop.xlane.xlu0 %4650 }
0x6738   :  { %8799 = vrcp.f32 %v4651_v9  ;;  %8230 = vmatpush3.bf16.msra.mxu0 %v4658_v3 }
0x6739   :  { %8241 = vmatprep.subr.bf16.mxu0 %v8963_v33 }
0x673b   :  { %v4791_v15 = vpop.permute.xlu0 %4790 }
0x673e   :  { %v8798_v12 = vpop.eup %8797 }
0x673f   :  { %v4653_v31 = vmul.f32 %v8798_v12, %v8794_v36 }
0x6742   :  { %v8800_v44 = vpop.eup %8799 }
0x6743   :  { %v4655_v34 = vmul.f32 %v8800_v44, %v8796_v56 }
0x6745   :  { %v4656_v13 = vpack.c.bf16 %v4655_v34, %v4653_v31 }
0x6747   :  { %8232 = vmatmul.mubr.msk.bf16.vlgmr.msra.gmra.mrb[108].mxu0 %vm390_vm5, %v4656_v13 }
0x6748   :  { %8243 = vmatprep.mubr.msk.bf16.mxu0 %vm8964_vm4, %v8963_v33 }
0x6760   :  { %v4773_v43 = vpop.trf.xlu1 }
0x6761   :  { %v4789_v7 = vpack.c.bf16 %v4773_v43, %v4773_v43 }
0x6763   :  { %v4796_v14 = vsel %vm181_vm0, %v4789_v7, 0 }
0x6764   :  { %8242 = vmatpush3.bf16.msra.mxu0 %v4796_v14 }
0x6765   :  { %8253 = vmatprep.subr.bf16.mxu0 %v8963_v33 }
0x6767   :  { %8244 = vmatmul.mubr.msk.bf16.vlgmr.msra.gmra.mrb[112].mxu0 %vm174_vm2, %v4791_v15 }
0x6768   :  { %8254 = vmatpush3.bf16.msra.mxu0 %v10013_v10  ;;  %8255 = vmatprep.mubr.msk.bf16.mxu0 %vm8964_vm4, %v8963_v33 }
0x681a   :  { %v4697_v52 = vpop.f32.mrb[108].mxu0 }
0x681b   :  { %v8233_v16 = vpop.f32.mrb[109].mxu0 }
0x681c   :  { %v4700_v27 = vpop.f32.mrb[110].mxu0 }
0x681d   :  { %v4704_v37 = vpack.c.bf16 %v4700_v27, %v4697_v52  ;;  %v8234_v20 = vpop.f32.mrb[111].mxu0 }
0x681f   :  { %8238 = vmatmul.mubr.msk.bf16.vlgmr.msra.gmra.mrb[116].mxu1 %vm174_vm2, %v4704_v37 }
0x6820   :  { %8249 = vmatprep.mubr.msk.bf16.mxu1 %vm8964_vm4, %v8963_v33 }
0x683a   :  { %v4832_v17 = vpop.f32.mrb[112].mxu0 }
0x683b   :  { %v8245_v22 = vpop.f32.mrb[113].mxu0  ;;  %v4839_v29 = vsel %vm390_vm5, %v4832_v17, -inf }
0x683c   :  { %4840 = vmax.xlane.f32.xlu0 %v4839_v29  ;;  %v4835_v10 = vpop.f32.mrb[114].mxu0 }
0x683d   :  { %v8246_v25 = vpop.f32.mrb[115].mxu0  ;;  %v4842_v4 = vsel %vm390_vm5, %v4835_v10, -inf }
0x6840   :  { %4843 = vmax.xlane.f32.xlu0 %v4842_v4 }
0x68c9   :  { %v4841_v55 = vpop.xlane.xlu0 %4840 }
0x68ca   :  { %v4845_v23 = vsub.f32 %v4832_v17, %v4841_v55 }
0x68cc   :  { %v4847_v26 = vmul.f32 1.442695, %v4845_v23 }
0x68cd   :  { %v4844_v28 = vpop.xlane.xlu0 %4843 }
0x68ce   :  { %8801 = vpow2.f32 %v4847_v26  ;;  %v4846_v30 = vsub.f32 %v4835_v10, %v4844_v28 }
0x68d0   :  { %v4849_v60 = vmul.f32 1.442695, %v4846_v30 }
0x68d2   :  { %8803 = vpow2.f32 %v4849_v60 }
0x68d8   :  { %v8802_v48 = vpop.eup %8801 }
0x68d9   :  { %v4851_v59 = vsel %vm390_vm5, %v8802_v48, 0.0 }
0x68da   :  { %4852 = vadd.xlane.f32.xlu1 %v4851_v59 }
0x68dc   :  { %v8804_v32 = vpop.eup %8803 }
0x68dd   :  { %v4854_v57 = vsel %vm390_vm5, %v8804_v32, 0.0 }
0x68de   :  { %4977 = vadd.xlane.f32.xlu1 %v4976_v51  ;;  %4855 = vadd.xlane.f32.xlu0 %v4854_v57  ;;  %v7518_v57 = vld [vmem:[%s10542_s28] ss:$0 sm:$0xff] }
0x68f2   :  { %v4742_v11 = vpop.f32.mrb[116].mxu1 }
0x68f3   :  { %v4749_v19 = vadd.f32 %v4742_v11, %v10071_v49  ;;  %v8239_v53 = vpop.f32.mrb[117].mxu1 }
0x68f4   :  { %4862 = vrot.lane.b32.xlu0 %v10030_v62, %s8976_s30  ;;  %v4745_v63 = vpop.f32.mrb[118].mxu1 }
0x68f5   :  { %v4750_v21 = vadd.f32 %v4745_v63, %v10073_v6  ;;  %v8240_v24 = vpop.f32.mrb[119].mxu1  ;;  %v7519_v63 = vld [vmem:[%s10542_s28 + $0x1] ss:$0 sm:$0xff] }
0x6913   :  { %4974 = vadd.xlane.f32.xlu0 %v4973_v58  ;;  %v5046_v58 = vld [vmem:[%s10543_s1] sm:$0xff] }
0x6967   :  { %v4853_v1 = vpop.xlane.xlu1 %4852 }
0x6968   :  { %8805 = vrcp.f32 %v4853_v1  ;;  %v5047_v1 = vld [vmem:[%s10543_s1 + $0x8] sm:$0xff] }
0x696b   :  { %v4856_v2 = vpop.xlane.xlu0 %4855  ;;  %v4978_v13 = vpop.xlane.xlu1 %4977 }
0x696c   :  { %8807 = vrcp.f32 %v4856_v2  ;;  %v4987_v14 = vmul.f32 0.03125, %v4978_v13  ;;  %v5052_v2 = vpack.c.bf16 %v5047_v1, %v5046_v58 }
0x696e   :  { %v4991_v27 = vsub.f32 %v4970_v50, %v4987_v14 }
0x696f   :  { %v4863_v49 = vpop.permute.xlu0 %4862 }
0x6970   :  { %8248 = vmatpush3.bf16.msra.mxu1 %v4863_v49  ;;  %v4995_v22 = vmul.f32 %v4991_v27, %v4991_v27  ;;  %v5048_v49 = vld [vmem:[%s10543_s1 + $0x10] sm:$0xff] }
0x6971   :  { %8259 = vmatprep.subr.bf16.mxu1 %v5052_v2 }
0x6972   :  { %v8806_v46 = vpop.eup %8805  ;;  %v5001_v29 = vsel %vm3240_vm11, %v4995_v22, 0.0 }
0x6973   :  { %v4858_v62 = vmul.f32 %v8806_v46, %v8802_v48  ;;  %v5049_v46 = vld [vmem:[%s10543_s1 + $0x18] sm:$0xff] }
0x6976   :  { %v8808_v36 = vpop.eup %8807 }
0x6977   :  { %v4860_v5 = vmul.f32 %v8808_v36, %v8804_v32  ;;  %v5053_v36 = vpack.c.bf16 %v5049_v46, %v5048_v49 }
0x6979   :  { %v4861_v56 = vpack.c.bf16 %v4860_v5, %v4858_v62  ;;  %v5120_v62 = vld [vmem:[%s10544_s2] sm:$0xff]  ;;  %v5121_v5 = vld [vmem:[%s10544_s2 + $0x8] sm:$0xff] }
0x697b   :  { %8250 = vmatmul.mubr.msk.bf16.vlgmr.msra.gmra.mrb[120].mxu1 %vm390_vm5, %v4861_v56  ;;  %v5122_v56 = vld [vmem:[%s10544_s2 + $0x10] sm:$0xff] }
0x697c   :  { %8260 = vmatpush3.bf16.msra.mxu1 %v5052_v2 }
0x697d   :  { %8261 = vmatprep.subr.bf16.mxu1 %v5053_v36 }
0x6980   :  { %8262 = vmatpush3.bf16.msra.mxu1 %v5053_v36 }
0x69a0   :  { %v4975_v8 = vpop.xlane.xlu0 %4974 }
0x69a1   :  { %v4986_v12 = vmul.f32 0.03125, %v4975_v8 }
0x69a3   :  { %v4990_v15 = vsub.f32 %v4969_v0, %v4986_v12 }
0x69a5   :  { %v4994_v20 = vmul.f32 %v4990_v15, %v4990_v15 }
0x69a7   :  { %v4998_v17 = vsel %vm3240_vm11, %v4994_v20, 0.0 }
0x6a4e   :  { %v4902_v6 = vpop.f32.mrb[120].mxu1 }
0x6a4f   :  { %v8251_v54 = vpop.f32.mrb[121].mxu1 }
0x6a50   :  { %v4905_v61 = vpop.f32.mrb[122].mxu1  ;;  %v5123_v54 = vld [vmem:[%s10544_s2 + $0x18] sm:$0xff] }
0x6a51   :  { %v4909_v39 = vpack.c.bf16 %v4905_v61, %v4902_v6  ;;  %v8252_v18 = vpop.f32.mrb[123].mxu1  ;;  %v5130_v6 = vpack.c.bf16 %v5121_v5, %v5120_v62  ;;  %v5131_v61 = vpack.c.bf16 %v5123_v54, %v5122_v56 }
0x6a53   :  { %8256 = vmatmul.mubr.msk.bf16.vlgmr.msra.gmra.mrb[116].mxu0 %vm174_vm2, %v4909_v39  ;;  %8267 = vmatprep.subr.bf16.mxu0 %v5130_v6 }
0x6a54   :  { %8268 = vmatpush3.bf16.msra.mxu0 %v5130_v6 }
0x6a55   :  { %8269 = vmatprep.subr.bf16.mxu0 %v5131_v61 }
0x6a58   :  { %8270 = vmatpush3.bf16.msra.mxu0 %v5131_v61 }
0x6b26   :  { %v4947_v35 = vpop.f32.mrb[116].mxu0 }
0x6b27   :  { %v4954_v47 = vadd.f32 %v4947_v35, %v4749_v19  ;;  %v8257_v3 = vpop.f32.mrb[117].mxu0 }
0x6b28   :  { %v4950_v9 = vpop.f32.mrb[118].mxu0 }
0x6b29   :  { %v4965_v44 = vadd.f32 %v7517_v42, %v4954_v47  ;;  %v4955_v31 = vadd.f32 %v4950_v9, %v4750_v21  ;;  %v8258_v34 = vpop.f32.mrb[119].mxu0 }
0x6b2b   :  { %v4966_v43 = vadd.f32 %v7517_v42, %v4955_v31  ;;  %v4971_v7 = vadd.f32 %v4965_v44, %v9836_v41 }
0x6b2d   :  { %v4979_v52 = vsel %vm3240_vm11, %v4971_v7, 0.0  ;;  %v4972_v16 = vadd.f32 %v4966_v43, %v9830_v38 }
0x6b2e   :  { %4980 = vadd.xlane.f32.xlu1 %v4979_v52  ;;  %v5125_v52 = vld [vmem:[%s10544_s2 + $0x28] sm:$0xff] }
0x6b2f   :  { %v4982_v37 = vsel %vm3240_vm11, %v4972_v16, 0.0 }
0x6b32   :  { %4983 = vadd.xlane.f32.xlu1 %v4982_v37  ;;  %v5127_v37 = vld [vmem:[%s10544_s2 + $0x38] sm:$0xff] }
0x6b36   :  { %4999 = vadd.xlane.f32.xlu1 %v4998_v17  ;;  %v7520_v17 = vld [vmem:[%s10545_s7] ss:$0 sm:$0xff] }
0x6b3a   :  { %5002 = vadd.xlane.f32.xlu1 %v5001_v29 }
0x6bbb   :  { %v4981_v41 = vpop.xlane.xlu1 %4980 }
0x6bbc   :  { %v4988_v10 = vmul.f32 0.03125, %v4981_v41 }
0x6bbe   :  { %v4992_v25 = vsub.f32 %v4971_v7, %v4988_v10 }
0x6bbf   :  { %v4984_v4 = vpop.xlane.xlu1 %4983 }
0x6bc0   :  { %v4989_v55 = vmul.f32 0.03125, %v4984_v4  ;;  %v4996_v23 = vmul.f32 %v4992_v25, %v4992_v25 }
0x6bc2   :  { %v4993_v38 = vsub.f32 %v4972_v16, %v4989_v55  ;;  %v5004_v26 = vsel %vm3240_vm11, %v4996_v23, 0.0 }
0x6bc3   :  { %5005 = vadd.xlane.f32.xlu0 %v5004_v26  ;;  %v5000_v28 = vpop.xlane.xlu1 %4999 }
0x6bc4   :  { %v5010_v30 = vmul.f32 0.03125, %v5000_v28  ;;  %v4997_v60 = vmul.f32 %v4993_v38, %v4993_v38 }
0x6bc6   :  { %v5014_v42 = vadd.f32 1e-05, %v5010_v30  ;;  %v5007_v45 = vsel %vm3240_vm11, %v4997_v60, 0.0 }
0x6bc7   :  { %5008 = vadd.xlane.f32.xlu1 %v5007_v45  ;;  %v5003_v48 = vpop.xlane.xlu1 %5002  ;;  %v7523_v45 = vld [vmem:[%s10546_s10] ss:$0 sm:$0xff] }
0x6bc8   :  { %8809 = vrsqrt.f32 %v5014_v42  ;;  %v5011_v59 = vmul.f32 0.03125, %v5003_v48 }
0x6bca   :  { %v5015_v50 = vadd.f32 1e-05, %v5011_v59 }
0x6bcc   :  { %8811 = vrsqrt.f32 %v5015_v50 }
0x6bd2   :  { %v8810_v32 = vpop.eup %8809 }
0x6bd3   :  { %v5022_v51 = vmul.f32 %v8810_v32, %v4990_v15  ;;  %v5124_v15 = vld [vmem:[%s10544_s2 + $0x20] sm:$0xff] }
0x6bd4   :  { %v5132_v16 = vpack.c.bf16 %v5125_v52, %v5124_v15 }
0x6bd5   :  { %v5032_v53 = vmul.f32 %v7518_v57, %v5022_v51 }
0x6bd6   :  { %v8812_v11 = vpop.eup %8811  ;;  %8271 = vmatprep.subr.bf16.mxu0 %v5132_v16 }
0x6bd7   :  { %v5023_v19 = vmul.f32 %v8812_v11, %v4991_v27  ;;  %v10125_v24 = vadd.f32 %v7519_v63, %v5032_v53  ;;  %8272 = vmatpush3.bf16.msra.mxu0 %v5132_v16  ;;  %v5126_v27 = vld [vmem:[%s10544_s2 + $0x30] sm:$0xff] }
0x6bd8   :  { %v5133_v20 = vpack.c.bf16 %v5127_v37, %v5126_v27 }
0x6bd9   :  { %v5033_v21 = vmul.f32 %v7518_v57, %v5023_v19 }
0x6bda   :  { %8273 = vmatprep.subr.bf16.mxu0 %v5133_v20 }
0x6bdb   :  { %v10127_v40 = vadd.f32 %v7519_v63, %v5033_v21  ;;  %8274 = vmatpush3.bf16.msra.mxu0 %v5133_v20 }
0x6bdc   :  { %8293 = vmatprep.subr.bf16.mxu0 %v8963_v33 }
0x6bdd   :  { %v5050_v0 = vpack.c.bf16 %v10127_v40, %v10125_v24 }
0x6bdf   :  { %8263 = vmatprep.mubr.msk.bf16.mxu1 %vm3240_vm11, %v5050_v0 }
0x6c50   :  { %v5006_v39 = vpop.xlane.xlu0 %5005 }
0x6c51   :  { %v5012_v18 = vmul.f32 0.03125, %v5006_v39 }
0x6c53   :  { %v5016_v8 = vadd.f32 1e-05, %v5012_v18 }
0x6c54   :  { %v5009_v35 = vpop.xlane.xlu1 %5008 }
0x6c55   :  { %8813 = vrsqrt.f32 %v5016_v8  ;;  %v5013_v47 = vmul.f32 0.03125, %v5009_v35 }
0x6c57   :  { %v5017_v3 = vadd.f32 1e-05, %v5013_v47 }
0x6c59   :  { %8815 = vrsqrt.f32 %v5017_v3 }
0x6c5f   :  { %v8814_v9 = vpop.eup %8813 }
0x6c60   :  { %v5024_v12 = vmul.f32 %v8814_v9, %v4992_v25 }
0x6c62   :  { %v5034_v31 = vmul.f32 %v7518_v57, %v5024_v12 }
0x6c63   :  { %v8816_v44 = vpop.eup %8815 }
0x6c64   :  { %v5025_v34 = vmul.f32 %v8816_v44, %v4993_v38  ;;  %v5044_v43 = vadd.f32 %v7519_v63, %v5034_v31 }
0x6c66   :  { %v5035_v13 = vmul.f32 %v7518_v57, %v5025_v34  ;;  %v5279_v34 = vld [vmem:[%s10547_s11] sm:$0xff] }
0x6c68   :  { %v5045_v7 = vadd.f32 %v7519_v63, %v5035_v13  ;;  %v5280_v13 = vld [vmem:[%s10547_s11 + $0x8] sm:$0xff] }
0x6c6a   :  { %v5051_v14 = vpack.c.bf16 %v5045_v7, %v5044_v43 }
0x6c6c   :  { %8264 = vmatmul.mubr.msk.bf16.vlgmr.msra.gmra.mrb[124].mxu1 %vm3240_vm11, %v5051_v14  ;;  %v5282_v14 = vld [vmem:[%s10547_s11 + $0x18] sm:$0xff] }
0x6d3f   :  { %v8265_v22 = vpop.f32.mrb[124].mxu1 }
0x6d40   :  { %v5110_v29 = vadd.f32 %v8265_v22, %v7520_v17  ;;  %v5101_v41 = vpop.f32.mrb[125].mxu1 }
0x6d41   :  { %v5102_v10 = vadd.f32 %v7520_v17, %v5101_v41  ;;  %v8266_v25 = vpop.f32.mrb[126].mxu1 }
0x6d42   :  { %v5113_v4 = vadd.f32 %v8266_v25, %v7520_v17  ;;  %v5104_v55 = vpop.f32.mrb[127].mxu1  ;;  %v5118_v38 = vmax.f32 %v5110_v29, 0.0 }
0x6d43   :  { %v5105_v23 = vadd.f32 %v7520_v17, %v5104_v55  ;;  %v5116_v28 = vmax.f32 %v5102_v10, 0.0 }
0x6d44   :  { %v5119_v26 = vmax.f32 %v5113_v4, 0.0 }
0x6d45   :  { %v5117_v30 = vmax.f32 %v5105_v23, 0.0  ;;  %v7526_v23 = vld [vmem:[%s10548_s15] ss:$0 sm:$0xff] }
0x6d46   :  { %v5129_v60 = vpack.c.bf16 %v5119_v26, %v5118_v38 }
0x6d47   :  { %v5128_v42 = vpack.c.bf16 %v5117_v30, %v5116_v28 }
0x6d49   :  { %8275 = vmatprep.mubr.msk.bf16.mxu0 %vm5141_vm12, %v5128_v42  ;;  %v7527_v42 = vld [vmem:[%s10548_s15 + $0x1] ss:$0 sm:$0xff] }
0x6d4a   :  { %8276 = vmatmul.mubr.msk.bf16.vlgmr.msra.gmra.mrb[120].mxu0 %vm5141_vm12, %v5129_v60 }
0x6d4b   :  { %8295 = vmatprep.mubr.msk.bf16.mxu0 %vm8964_vm4, %v8963_v33 }
0x6e1d   :  { %v8277_v48 = vpop.f32.mrb[120].mxu0 }
0x6e1e   :  { %v5182_v59 = vpop.f32.mrb[121].mxu0  ;;  %v5191_v50 = vadd.f32 %v8277_v48, %v7523_v45 }
0x6e1f   :  { %v5183_v32 = vadd.f32 %v7523_v45, %v5182_v59  ;;  %v8278_v51 = vpop.f32.mrb[122].mxu0 }
0x6e20   :  { %v5185_v57 = vpop.f32.mrb[123].mxu0  ;;  %v5194_v19 = vadd.f32 %v8278_v51, %v7523_v45  ;;  %v5201_v63 = vadd.f32 %v5191_v50, %v5044_v43  ;;  %v5285_v43 = vpack.c.bf16 %v5280_v13, %v5279_v34 }
0x6e21   :  { %v5199_v11 = vadd.f32 %v5183_v32, %v10125_v24  ;;  %v5186_v53 = vadd.f32 %v7523_v45, %v5185_v57 }
0x6e22   :  { %v5202_v58 = vadd.f32 %v5194_v19, %v5045_v7  ;;  %v5209_v2 = vsel %vm3240_vm11, %v5201_v63, 0.0  ;;  %8279 = vmatprep.subr.bf16.mxu1 %v5285_v43  ;;  %v5281_v7 = vld [vmem:[%s10547_s11 + $0x10] sm:$0xff] }
0x6e23   :  { %v5200_v21 = vadd.f32 %v5186_v53, %v10127_v40  ;;  %v5203_v0 = vsel %vm3240_vm11, %v5199_v11, 0.0  ;;  %8280 = vmatpush3.bf16.msra.mxu1 %v5285_v43  ;;  %v5286_v15 = vpack.c.bf16 %v5282_v14, %v5281_v7 }
0x6e24   :  { %5204 = vadd.xlane.f32.xlu0 %v5203_v0  ;;  %v5212_v49 = vsel %vm3240_vm11, %v5202_v58, 0.0  ;;  %v7528_v0 = vld [vmem:[%s10549_s16] ss:$0 sm:$0xff] }
0x6e25   :  { %v5206_v1 = vsel %vm3240_vm11, %v5200_v21, 0.0  ;;  %8281 = vmatprep.subr.bf16.mxu1 %v5286_v15 }
0x6e26   :  { %5207 = vadd.xlane.f32.xlu1 %v5206_v1 }
0x6e27   :  { %8282 = vmatpush3.bf16.msra.mxu1 %v5286_v15 }
0x6e28   :  { %5210 = vadd.xlane.f32.xlu0 %v5209_v2  ;;  %8287 = vmatprep.subr.bf16.mxu1 %v8963_v33 }
0x6e2a   :  { %5213 = vadd.xlane.f32.xlu1 %v5212_v49 }
0x6eb1   :  { %v5205_v46 = vpop.xlane.xlu0 %5204 }
0x6eb2   :  { %v5215_v24 = vmul.f32 0.03125, %v5205_v46 }
0x6eb3   :  { %v5208_v36 = vpop.xlane.xlu1 %5207 }
0x6eb4   :  { %v5219_v62 = vsub.f32 %v5199_v11, %v5215_v24  ;;  %v5216_v5 = vmul.f32 0.03125, %v5208_v36 }
0x6eb5   :  { %v5211_v56 = vpop.xlane.xlu0 %5210 }
0x6eb6   :  { %v5220_v40 = vsub.f32 %v5200_v21, %v5216_v5  ;;  %v5217_v6 = vmul.f32 0.03125, %v5211_v56  ;;  %v5223_v54 = vmul.f32 %v5219_v62, %v5219_v62 }
0x6eb7   :  { %v5214_v61 = vpop.xlane.xlu1 %5213 }
0x6eb8   :  { %v5221_v39 = vsub.f32 %v5201_v63, %v5217_v6  ;;  %v5218_v18 = vmul.f32 0.03125, %v5214_v61  ;;  %v5227_v8 = vsel %vm3240_vm11, %v5223_v54, 0.0  ;;  %v5224_v35 = vmul.f32 %v5220_v40, %v5220_v40 }
0x6eb9   :  { %5228 = vadd.xlane.f32.xlu0 %v5227_v8 }
0x6eba   :  { %v5222_v47 = vsub.f32 %v5202_v58, %v5218_v18  ;;  %v5230_v3 = vsel %vm3240_vm11, %v5224_v35, 0.0  ;;  %v5225_v9 = vmul.f32 %v5221_v39, %v5221_v39 }
0x6ebb   :  { %5231 = vadd.xlane.f32.xlu1 %v5230_v3 }
0x6ebc   :  { %v5233_v12 = vsel %vm3240_vm11, %v5225_v9, 0.0  ;;  %v5226_v44 = vmul.f32 %v5222_v47, %v5222_v47 }
0x6ebd   :  { %5234 = vadd.xlane.f32.xlu0 %v5233_v12 }
0x6ebe   :  { %v5236_v31 = vsel %vm3240_vm11, %v5226_v44, 0.0 }
0x6ebf   :  { %5237 = vadd.xlane.f32.xlu1 %v5236_v31 }
0x6f46   :  { %v5229_v52 = vpop.xlane.xlu0 %5228 }
0x6f47   :  { %v5239_v16 = vmul.f32 0.03125, %v5229_v52 }
0x6f48   :  { %v5232_v27 = vpop.xlane.xlu1 %5231 }
0x6f49   :  { %v5243_v37 = vadd.f32 1e-05, %v5239_v16  ;;  %v5240_v20 = vmul.f32 0.03125, %v5232_v27 }
0x6f4a   :  { %v5235_v17 = vpop.xlane.xlu0 %5234 }
0x6f4b   :  { %8817 = vrsqrt.f32 %v5243_v37  ;;  %v5244_v22 = vadd.f32 1e-05, %v5240_v20  ;;  %v5241_v29 = vmul.f32 0.03125, %v5235_v17 }
0x6f4c   :  { %v5238_v41 = vpop.xlane.xlu1 %5237 }
0x6f4d   :  { %8819 = vrsqrt.f32 %v5244_v22  ;;  %v5245_v10 = vadd.f32 1e-05, %v5241_v29  ;;  %v5242_v25 = vmul.f32 0.03125, %v5238_v41 }
0x6f4f   :  { %8821 = vrsqrt.f32 %v5245_v10  ;;  %v5246_v4 = vadd.f32 1e-05, %v5242_v25 }
0x6f51   :  { %8823 = vrsqrt.f32 %v5246_v4 }
0x6f55   :  { %v8818_v55 = vpop.eup %8817 }
0x6f56   :  { %v5251_v38 = vmul.f32 %v8818_v55, %v5219_v62 }
0x6f57   :  { %v8820_v26 = vpop.eup %8819 }
0x6f58   :  { %v5252_v28 = vmul.f32 %v8820_v26, %v5220_v40  ;;  %v5261_v30 = vmul.f32 %v7526_v23, %v5251_v38 }
0x6f59   :  { %v8822_v60 = vpop.eup %8821 }
0x6f5a   :  { %v5253_v45 = vmul.f32 %v8822_v60, %v5221_v39  ;;  %v5262_v48 = vmul.f32 %v7526_v23, %v5252_v28  ;;  %v10169_v51 = vadd.f32 %v7527_v42, %v5261_v30 }
0x6f5b   :  { %v8824_v59 = vpop.eup %8823 }
0x6f5c   :  { %v5263_v50 = vmul.f32 %v7526_v23, %v5253_v45  ;;  %v5254_v32 = vmul.f32 %v8824_v59, %v5222_v47  ;;  %v10171_v57 = vadd.f32 %v7527_v42, %v5262_v48 }
0x6f5e   :  { %v5264_v11 = vmul.f32 %v7526_v23, %v5254_v32  ;;  %v5283_v19 = vpack.c.bf16 %v10171_v57, %v10169_v51  ;;  %v10176_v53 = vadd.f32 %v7527_v42, %v5263_v50 }
0x6f60   :  { %8283 = vmatprep.mubr.msk.bf16.mxu1 %vm3240_vm11, %v5283_v19  ;;  %v10178_v63 = vadd.f32 %v7527_v42, %v5264_v11 }
0x6f62   :  { %v5284_v21 = vpack.c.bf16 %v10178_v63, %v10176_v53 }
0x6f64   :  { %8284 = vmatmul.mubr.msk.bf16.vlgmr.msra.gmra.mrb[128].mxu1 %vm3240_vm11, %v5284_v21 }
0x6f65   :  { %8289 = vmatprep.mubr.msk.bf16.mxu1 %vm8964_vm4, %v8963_v33 }
0x7037   :  { %v8285_v58 = vpop.f32.mrb[128].mxu1 }
0x7038   :  { %v10186_v1 = vadd.f32 %v8285_v58, %v7528_v0  ;;  %v5334_v2 = vpop.f32.mrb[129].mxu1 }
0x7039   :  { %v10188_v49 = vadd.f32 %v7528_v0, %v5334_v2  ;;  %v8286_v46 = vpop.f32.mrb[130].mxu1 }
0x703a   :  { %v10190_v24 = vadd.f32 %v8286_v46, %v7528_v0  ;;  %v5337_v36 = vpop.f32.mrb[131].mxu1 }
0x703b   :  { %v10192_v62 = vadd.f32 %v7528_v0, %v5337_v36  ;;  %5353 = vrot.lane.b32.xlu0 %v10188_v49, %s8969_s21  ;;  %v5349_v56 = vmul.f32 0.35355338, %v10188_v49 }
0x703d   :  { %5355 = vrot.lane.b32.xlu1 %v10192_v62, %s8969_s21  ;;  %v5350_v5 = vmul.f32 0.35355338, %v10192_v62  ;;  %v10229_v32 = vpack.c.bf16 %v10192_v62, %v10188_v49 }
0x703f   :  { %5516 = vrot.lane.b32.xlu0 %v10192_v62, %s8970_s25  ;;  %v10204_v40 = vpack.c.bf16 %v5350_v5, %v5349_v56 }
0x7041   :  { %5514 = vrot.lane.b32.xlu1 %v10188_v49, %s8970_s25 }
0x7045   :  { %5554 = vrot.lane.b32.xlu1 %v10204_v40, %s8971_s29 }
0x70ad   :  { %v5354_v6 = vpop.permute.xlu0 %5353 }
0x70ae   :  { %5359 = vxpose.xlu0.b32.start [1/2] (short) (narrow) %v5354_v6, 8 }
0x70af   :  { %v5356_v54 = vpop.permute.xlu1 %5355 }
0x70b1   :  { %v5517_v39 = vpop.permute.xlu0 %5516 }
0x70b2   :  { %5360 = vxpose.xlu0.b32.end [2/2] (short) (narrow) %v5356_v54, 8 }
0x70b3   :  { %v5515_v61 = vpop.permute.xlu1 %5514 }
0x70b4   :  { %5520 = vxpose.xlu1.b32.start [1/2] (short) (narrow) %v5515_v61, 8 }
0x70b7   :  { %v5555_v35 = vpop.permute.xlu1 %5554 }
0x70b8   :  { %5521 = vxpose.xlu1.b32.end [2/2] (short) (narrow) %v5517_v39, 8 }
0x712e   :  { %v5375_v18 = vpop.trf.xlu0 }
0x712f   :  { %v5392_v8 = vpack.c.bf16 %v5375_v18, %v5375_v18 }
0x7131   :  { %v5397_v47 = vsel %vm181_vm0, %v5392_v8, 0 }
0x7132   :  { %8288 = vmatpush3.bf16.msra.mxu1 %v5397_v47 }
0x7133   :  { %8299 = vmatprep.subr.bf16.mxu1 %v8963_v33 }
0x7134   :  { %v5536_v3 = vpop.trf.xlu1 }
0x7135   :  { %8290 = vmatmul.mubr.msk.bf16.vlgmr.msra.gmra.mrb[132].mxu1 %vm174_vm2, %v10204_v40  ;;  %v5552_v9 = vpack.c.bf16 %v5536_v3, %v5536_v3  ;;  %v5275_v3 = vld [vmem:[%s10550_s18] sm:$0xff] }
0x7136   :  { %8301 = vmatprep.mubr.msk.bf16.mxu1 %vm8964_vm4, %v8963_v33 }
0x7137   :  { %v5560_v12 = vsel %vm181_vm0, %v5552_v9, 0  ;;  %v5513_v9 = vpack.c.bf16 %v5275_v3, %v5275_v3 }
0x7138   :  { %8300 = vmatpush3.bf16.msra.mxu1 %v5560_v12 }
0x7139   :  { %8311 = vmatprep.subr.bf16.mxu1 %v8963_v33  ;;  %v10251_v12 = vsel %vm181_vm0, %v5513_v9, 0 }
0x713d   :  { %8302 = vmatmul.mubr.msk.bf16.vlgmr.msra.gmra.mrb[136].mxu1 %vm174_vm2, %v5555_v35 }
0x713e   :  { %8313 = vmatprep.mubr.msk.bf16.mxu1 %vm8964_vm4, %v8963_v33 }
0x7208   :  { %v5433_v44 = vpop.f32.mrb[132].mxu1 }
0x7209   :  { %v8291_v31 = vpop.f32.mrb[133].mxu1  ;;  %v5440_v34 = vsel %vm390_vm5, %v5433_v44, -inf }
0x720a   :  { %5441 = vmax.xlane.f32.xlu0 %v5440_v34  ;;  %v5436_v13 = vpop.f32.mrb[134].mxu1 }
0x720b   :  { %v8292_v43 = vpop.f32.mrb[135].mxu1  ;;  %v5443_v7 = vsel %vm390_vm5, %v5436_v13, -inf }
0x720c   :  { %5444 = vmax.xlane.f32.xlu1 %v5443_v7 }
0x7210   :  { %v5596_v14 = vpop.f32.mrb[136].mxu1 }
0x7211   :  { %v8303_v15 = vpop.f32.mrb[137].mxu1  ;;  %v5603_v52 = vsel %vm390_vm5, %v5596_v14, -inf }
0x7212   :  { %5604 = vmax.xlane.f32.xlu0 %v5603_v52  ;;  %v5599_v16 = vpop.f32.mrb[138].mxu1 }
0x7213   :  { %v8304_v27 = vpop.f32.mrb[139].mxu1  ;;  %v5606_v37 = vsel %vm390_vm5, %v5599_v16, -inf }
0x7216   :  { %5607 = vmax.xlane.f32.xlu0 %v5606_v37 }
0x7297   :  { %v5442_v20 = vpop.xlane.xlu0 %5441 }
0x7298   :  { %v5446_v17 = vsub.f32 %v5433_v44, %v5442_v20  ;;  %v5276_v44 = vld [vmem:[%s10550_s18 + $0x8] sm:$0xff] }
0x7299   :  { %v5445_v22 = vpop.xlane.xlu1 %5444  ;;  %v5674_v31 = vpack.c.bf16 %v5276_v44, %v5276_v44 }
0x729a   :  { %v5448_v29 = vmul.f32 1.442695, %v5446_v17  ;;  %v5447_v41 = vsub.f32 %v5436_v13, %v5445_v22 }
0x729b   :  { %v10257_v34 = vsel %vm181_vm0, %v5674_v31, 0 }
0x729c   :  { %8825 = vpow2.f32 %v5448_v29  ;;  %v5450_v10 = vmul.f32 1.442695, %v5447_v41  ;;  %8312 = vmatpush3.bf16.msra.mxu1 %v10257_v34 }
0x729d   :  { %8323 = vmatprep.subr.bf16.mxu1 %v8963_v33 }
0x729e   :  { %8827 = vpow2.f32 %v5450_v10 }
0x729f   :  { %v5605_v25 = vpop.xlane.xlu0 %5604 }
0x72a0   :  { %v5609_v4 = vsub.f32 %v5596_v14, %v5605_v25 }
0x72a2   :  { %v5611_v55 = vmul.f32 1.442695, %v5609_v4 }
0x72a3   :  { %v5608_v23 = vpop.xlane.xlu0 %5607 }
0x72a4   :  { %8829 = vpow2.f32 %v5611_v55  ;;  %v5610_v38 = vsub.f32 %v5599_v16, %v5608_v23 }
0x72a6   :  { %v8826_v26 = vpop.eup %8825  ;;  %v5613_v28 = vmul.f32 1.442695, %v5610_v38 }
0x72a7   :  { %v5452_v30 = vsel %vm390_vm5, %v8826_v26, 0.0 }
0x72a8   :  { %v8828_v60 = vpop.eup %8827  ;;  %8831 = vpow2.f32 %v5613_v28  ;;  %5453 = vadd.xlane.f32.xlu1 %v5452_v30 }
0x72a9   :  { %v5455_v42 = vsel %vm390_vm5, %v8828_v60, 0.0 }
0x72aa   :  { %5456 = vadd.xlane.f32.xlu0 %v5455_v42 }
0x72ae   :  { %v8830_v45 = vpop.eup %8829 }
0x72af   :  { %v5615_v48 = vsel %vm390_vm5, %v8830_v45, 0.0 }
0x72b0   :  { %5616 = vadd.xlane.f32.xlu1 %v5615_v48 }
0x72b2   :  { %v8832_v59 = vpop.eup %8831 }
0x72b3   :  { %v5618_v50 = vsel %vm390_vm5, %v8832_v59, 0.0 }
0x72b4   :  { %5619 = vadd.xlane.f32.xlu0 %v5618_v50 }
0x72c1   :  { %5465 = vrot.lane.b32.xlu1 %v10229_v32, %s8973_s8 }
0x72c5   :  { %5769 = vrot.lane.b32.xlu1 %v10188_v49, %s8966_s0 }
0x72c9   :  { %5771 = vrot.lane.b32.xlu1 %v10192_v62, %s8966_s0 }
0x72ca   :  { %5626 = vrot.lane.b32.xlu0 %v10229_v32, %s8972_s3 }
0x72ce   :  { %5808 = vrot.lane.b32.xlu0 %v10204_v40, %s8974_s14 }
0x7335   :  { %v5454_v11 = vpop.xlane.xlu1 %5453 }
0x7336   :  { %8833 = vrcp.f32 %v5454_v11 }
0x7337   :  { %v5457_v19 = vpop.xlane.xlu0 %5456 }
0x7338   :  { %8835 = vrcp.f32 %v5457_v19  ;;  %v8538_v19 = vpack.i.bf16 %v10192_v62, %v10188_v49 }
0x733d   :  { %v5617_v21 = vpop.xlane.xlu1 %5616 }
0x733e   :  { %8837 = vrcp.f32 %v5617_v21 }
0x7340   :  { %v8834_v0 = vpop.eup %8833 }
0x7341   :  { %v5466_v58 = vpop.permute.xlu1 %5465  ;;  %v5620_v2 = vpop.xlane.xlu0 %5619  ;;  %v5459_v36 = vmul.f32 %v8834_v0, %v8826_v26 }
0x7342   :  { %v8836_v46 = vpop.eup %8835  ;;  %8839 = vrcp.f32 %v5620_v2  ;;  %8294 = vmatpush3.bf16.msra.mxu0 %v5466_v58 }
0x7343   :  { %v5461_v5 = vmul.f32 %v8836_v46, %v8828_v60  ;;  %8305 = vmatprep.subr.bf16.mxu0 %v8963_v33 }
0x7345   :  { %v5770_v56 = vpop.permute.xlu1 %5769  ;;  %v5627_v6 = vpop.permute.xlu0 %5626  ;;  %v5462_v54 = vpack.c.bf16 %v5461_v5, %v5459_v36 }
0x7346   :  { %5775 = vxpose.xlu1.b32.start [1/2] (short) (narrow) %v5770_v56, 8 }
0x7347   :  { %8296 = vmatmul.mubr.msk.bf16.vlgmr.msra.gmra.mrb[124].mxu0 %vm390_vm5, %v5462_v54 }
0x7348   :  { %8306 = vmatpush3.bf16.msra.mxu0 %v5627_v6  ;;  %8307 = vmatprep.mubr.msk.bf16.mxu0 %vm8964_vm4, %v8963_v33  ;;  %v8838_v39 = vpop.eup %8837 }
0x7349   :  { %v5772_v61 = vpop.permute.xlu1 %5771  ;;  %8317 = vmatprep.subr.bf16.mxu0 %v8963_v33  ;;  %v5622_v8 = vmul.f32 %v8838_v39, %v8830_v45  ;;  %v5809_v41 = vpop.permute.xlu0 %5808  ;;  %v10289_v39 = vpack.i.bf16 %v10190_v24, %v10186_v1 }
0x734a   :  { %5776 = vxpose.xlu1.b32.end [2/2] (short) (narrow) %v5772_v61, 8 }
0x734c   :  { %v8840_v18 = vpop.eup %8839 }
0x734d   :  { %v5624_v35 = vmul.f32 %v8840_v18, %v8832_v59  ;;  %v6188_v18 = vmul.f32 0.35355338, %v10190_v24 }
0x734f   :  { %v5625_v47 = vpack.c.bf16 %v5624_v35, %v5622_v8  ;;  %v6187_v8 = vmul.f32 0.35355338, %v10186_v1 }
0x7351   :  { %8308 = vmatmul.mubr.msk.bf16.vlgmr.msra.gmra.mrb[128].mxu0 %vm390_vm5, %v5625_v47 }
0x7352   :  { %8319 = vmatprep.mubr.msk.bf16.mxu0 %vm8964_vm4, %v8963_v33  ;;  %8318 = vmatpush3.bf16.msra.mxu0 %v10251_v12 }
0x7353   :  { %8329 = vmatprep.subr.bf16.mxu0 %v8963_v33 }
0x73c6   :  { %v5791_v52 = vpop.trf.xlu1 }
0x73c7   :  { %v5807_v16 = vpack.c.bf16 %v5791_v52, %v5791_v52 }
0x73c9   :  { %v5814_v29 = vsel %vm181_vm0, %v5807_v16, 0  ;;  %v5277_v16 = vld [vmem:[%s10550_s18 + $0x10] sm:$0xff] }
0x741a   :  { %v5505_v13 = vpop.f32.mrb[124].mxu0 }
0x741b   :  { %v8297_v43 = vpop.f32.mrb[125].mxu0 }
0x741c   :  { %v5508_v7 = vpop.f32.mrb[126].mxu0 }
0x741d   :  { %v5512_v14 = vpack.c.bf16 %v5508_v7, %v5505_v13  ;;  %v8298_v15 = vpop.f32.mrb[127].mxu0 }
0x741f   :  { %8320 = vmatmul.mubr.msk.bf16.vlgmr.msra.gmra.mrb[132].mxu0 %vm174_vm2, %v5512_v14 }
0x7420   :  { %8331 = vmatprep.mubr.msk.bf16.mxu0 %vm8964_vm4, %v8963_v33 }
0x7424   :  { %v5666_v27 = vpop.f32.mrb[128].mxu0 }
0x7425   :  { %v8309_v37 = vpop.f32.mrb[129].mxu0 }
0x7426   :  { %v5669_v20 = vpop.f32.mrb[130].mxu0 }
0x7427   :  { %v5673_v17 = vpack.c.bf16 %v5669_v20, %v5666_v27  ;;  %v8310_v22 = vpop.f32.mrb[131].mxu0  ;;  %v5928_v27 = vpack.c.bf16 %v5277_v16, %v5277_v16 }
0x7429   :  { %8314 = vmatmul.mubr.msk.bf16.vlgmr.msra.gmra.mrb[140].mxu1 %vm174_vm2, %v5673_v17  ;;  %v10312_v37 = vsel %vm181_vm0, %v5928_v27, 0 }
0x742a   :  { %8324 = vmatpush3.bf16.msra.mxu1 %v5814_v29  ;;  %8325 = vmatprep.mubr.msk.bf16.mxu1 %vm8964_vm4, %v8963_v33 }
0x742b   :  { %8335 = vmatprep.subr.bf16.mxu1 %v8963_v33 }
0x7431   :  { %8326 = vmatmul.mubr.msk.bf16.vlgmr.msra.gmra.mrb[144].mxu1 %vm174_vm2, %v5809_v41 }
0x7432   :  { %8337 = vmatprep.mubr.msk.bf16.mxu1 %vm8964_vm4, %v8963_v33  ;;  %8336 = vmatpush3.bf16.msra.mxu1 %v10312_v37 }
0x7433   :  { %8347 = vmatprep.subr.bf16.mxu1 %v8963_v33 }
0x74f2   :  { %v5762_v10 = vpop.f32.mrb[132].mxu0 }
0x74f3   :  { %v8321_v25 = vpop.f32.mrb[133].mxu0 }
0x74f4   :  { %v5765_v4 = vpop.f32.mrb[134].mxu0 }
0x74f5   :  { %v8322_v55 = vpop.f32.mrb[135].mxu0 }
0x74fc   :  { %v5715_v23 = vpop.f32.mrb[140].mxu1 }
0x74fd   :  { %v10272_v38 = vadd.f32 %v5762_v10, %v5715_v23  ;;  %v8315_v26 = vpop.f32.mrb[141].mxu1 }
0x74fe   :  { %v5718_v28 = vpop.f32.mrb[142].mxu1 }
0x74ff   :  { %v10274_v30 = vadd.f32 %v5765_v4, %v5718_v28  ;;  %v8316_v60 = vpop.f32.mrb[143].mxu1 }
0x7504   :  { %v5850_v42 = vpop.f32.mrb[144].mxu1 }
0x7505   :  { %v8327_v45 = vpop.f32.mrb[145].mxu1  ;;  %v5857_v48 = vsel %vm390_vm5, %v5850_v42, -inf }
0x7506   :  { %5858 = vmax.xlane.f32.xlu0 %v5857_v48  ;;  %v5853_v59 = vpop.f32.mrb[146].mxu1 }
0x7507   :  { %v8328_v50 = vpop.f32.mrb[147].mxu1  ;;  %v5860_v11 = vsel %vm390_vm5, %v5853_v59, -inf }
0x750a   :  { %5861 = vmax.xlane.f32.xlu0 %v5860_v11 }
0x7520   :  { %8539 = vrot.lane.b32.xlu0 %v8538_v19, %s8975_s24 }
0x7593   :  { %v5859_v21 = vpop.xlane.xlu0 %5858 }
0x7594   :  { %v5863_v0 = vsub.f32 %v5850_v42, %v5859_v21 }
0x7596   :  { %v5865_v58 = vmul.f32 1.442695, %v5863_v0 }
0x7597   :  { %v5862_v2 = vpop.xlane.xlu0 %5861 }
0x7598   :  { %8841 = vpow2.f32 %v5865_v58  ;;  %v5864_v46 = vsub.f32 %v5853_v59, %v5862_v2 }
0x759a   :  { %v5867_v36 = vmul.f32 1.442695, %v5864_v46 }
0x759b   :  { %v8540_v49 = vpop.permute.xlu0 %8539 }
0x759c   :  { %8843 = vpow2.f32 %v5867_v36  ;;  %v8541_v62 = vunpack.i.l.bf16 %v8540_v49  ;;  %v8542_v61 = vunpack.i.h.bf16 %v8540_v49 }
0x75a2   :  { %v8842_v5 = vpop.eup %8841 }
0x75a3   :  { %v5869_v56 = vsel %vm390_vm5, %v8842_v5, 0.0 }
0x75a4   :  { %5870 = vadd.xlane.f32.xlu1 %v5869_v56 }
0x75a6   :  { %v8844_v6 = vpop.eup %8843 }
0x75a7   :  { %v5872_v54 = vsel %vm390_vm5, %v8844_v6, 0.0 }
0x75a8   :  { %5873 = vadd.xlane.f32.xlu0 %v5872_v54 }
0x75b5   :  { %5880 = vrot.lane.b32.xlu1 %v10229_v32, %s8967_s5 }
0x75be   :  { %6017 = vrot.lane.b32.xlu0 %v10204_v40, %s8968_s9  ;;  %v10297_v40 = vpack.c.bf16 %v6188_v18, %v6187_v8 }
0x75de   :  { %5984 = vxpose.xlu1.b32.start [1/2] (short) (narrow) %v8541_v62, 8 }
0x75e2   :  { %5985 = vxpose.xlu1.b32.end [2/2] (short) (narrow) %v8542_v61, 8 }
0x7600   :  { %8544 = vrot.lane.b32.xlu1 %v10289_v39, %s8969_s21 }
0x7604   :  { %6353 = vrot.lane.b32.xlu1 %v10190_v24, %s8970_s25 }
0x7608   :  { %6391 = vrot.lane.b32.xlu1 %v10297_v40, %s8971_s29 }
0x7631   :  { %v5871_v35 = vpop.xlane.xlu1 %5870 }
0x7632   :  { %8845 = vrcp.f32 %v5871_v35 }
0x7635   :  { %v5881_v47 = vpop.permute.xlu1 %5880  ;;  %v5874_v3 = vpop.xlane.xlu0 %5873 }
0x7636   :  { %8847 = vrcp.f32 %v5874_v3  ;;  %8330 = vmatpush3.bf16.msra.mxu0 %v5881_v47 }
0x7637   :  { %8341 = vmatprep.subr.bf16.mxu0 %v8963_v33 }
0x7639   :  { %v6018_v52 = vpop.permute.xlu0 %6017 }
0x763c   :  { %v8846_v9 = vpop.eup %8845 }
0x763d   :  { %v5876_v31 = vmul.f32 %v8846_v9, %v8842_v5 }
0x7640   :  { %v8848_v44 = vpop.eup %8847 }
0x7641   :  { %v5878_v13 = vmul.f32 %v8848_v44, %v8844_v6 }
0x7643   :  { %v5879_v43 = vpack.c.bf16 %v5878_v13, %v5876_v31 }
0x7645   :  { %8332 = vmatmul.mubr.msk.bf16.vlgmr.msra.gmra.mrb[136].mxu0 %vm390_vm5, %v5879_v43 }
0x7646   :  { %8343 = vmatprep.mubr.msk.bf16.mxu0 %vm8964_vm4, %v8963_v33 }
0x765e   :  { %v6000_v7 = vpop.trf.xlu1 }
0x765f   :  { %v6016_v14 = vpack.c.bf16 %v6000_v7, %v6000_v7 }
0x7661   :  { %v6023_v15 = vsel %vm181_vm0, %v6016_v14, 0  ;;  %v5278_v14 = vld [vmem:[%s10550_s18 + $0x18] sm:$0xff] }
0x7662   :  { %8342 = vmatpush3.bf16.msra.mxu0 %v6023_v15  ;;  %v6137_v15 = vpack.c.bf16 %v5278_v14, %v5278_v14 }
0x7663   :  { %8353 = vmatprep.subr.bf16.mxu0 %v8963_v33 }
0x7665   :  { %8344 = vmatmul.mubr.msk.bf16.vlgmr.msra.gmra.mrb[140].mxu0 %vm174_vm2, %v6018_v52  ;;  %v10352_v52 = vsel %vm181_vm0, %v6137_v15, 0 }
0x7666   :  { %8355 = vmatprep.mubr.msk.bf16.mxu0 %vm8964_vm4, %v8963_v33  ;;  %8354 = vmatpush3.bf16.msra.mxu0 %v10352_v52 }
0x7667   :  { %8365 = vmatprep.subr.bf16.mxu0 %v8963_v33 }
0x7672   :  { %v8545_v59 = vpop.permute.xlu1 %8544 }
0x7673   :  { %v8546_v49 = vunpack.i.l.bf16 %v8545_v59  ;;  %v8547_v62 = vunpack.i.h.bf16 %v8545_v59 }
0x7676   :  { %v6354_v19 = vpop.permute.xlu1 %6353 }
0x7718   :  { %v5920_v20 = vpop.f32.mrb[136].mxu0 }
0x7719   :  { %v8333_v17 = vpop.f32.mrb[137].mxu0 }
0x771a   :  { %v5923_v22 = vpop.f32.mrb[138].mxu0 }
0x771b   :  { %v5927_v29 = vpack.c.bf16 %v5923_v22, %v5920_v20  ;;  %v8334_v41 = vpop.f32.mrb[139].mxu0 }
0x771d   :  { %8338 = vmatmul.mubr.msk.bf16.vlgmr.msra.gmra.mrb[148].mxu1 %vm174_vm2, %v5927_v29 }
0x771e   :  { %8349 = vmatprep.mubr.msk.bf16.mxu1 %vm8964_vm4, %v8963_v33 }
0x7738   :  { %v6059_v10 = vpop.f32.mrb[140].mxu0 }
0x7739   :  { %v8345_v25 = vpop.f32.mrb[141].mxu0  ;;  %v6066_v4 = vsel %vm390_vm5, %v6059_v10, -inf }
0x773a   :  { %6067 = vmax.xlane.f32.xlu0 %v6066_v4  ;;  %v6062_v55 = vpop.f32.mrb[142].mxu0 }
0x773b   :  { %v8346_v23 = vpop.f32.mrb[143].mxu0  ;;  %v6069_v26 = vsel %vm390_vm5, %v6062_v55, -inf }
0x773e   :  { %6070 = vmax.xlane.f32.xlu0 %v6069_v26 }
0x7754   :  { %6351 = vrot.lane.b32.xlu0 %v10186_v1, %s8970_s25 }
0x77c7   :  { %v6068_v28 = vpop.xlane.xlu0 %6067 }
0x77c8   :  { %v6072_v60 = vsub.f32 %v6059_v10, %v6068_v28 }
0x77ca   :  { %v6074_v42 = vmul.f32 1.442695, %v6072_v60 }
0x77cb   :  { %v6071_v45 = vpop.xlane.xlu0 %6070 }
0x77cc   :  { %8849 = vpow2.f32 %v6074_v42  ;;  %v6073_v48 = vsub.f32 %v6062_v55, %v6071_v45 }
0x77ce   :  { %v6076_v50 = vmul.f32 1.442695, %v6073_v48 }
0x77cf   :  { %v6352_v11 = vpop.permute.xlu0 %6351 }
0x77d0   :  { %8851 = vpow2.f32 %v6076_v50  ;;  %6357 = vxpose.xlu1.b32.start [1/2] (short) (narrow) %v6352_v11, 8 }
0x77d4   :  { %6358 = vxpose.xlu1.b32.end [2/2] (short) (narrow) %v6354_v19, 8 }
0x77d6   :  { %v8850_v21 = vpop.eup %8849 }
0x77d7   :  { %v6078_v0 = vsel %vm390_vm5, %v8850_v21, 0.0 }
0x77d8   :  { %6079 = vadd.xlane.f32.xlu0 %v6078_v0 }
0x77da   :  { %v8852_v58 = vpop.eup %8851 }
0x77db   :  { %v6081_v2 = vsel %vm390_vm5, %v8852_v58, 0.0 }
0x77dc   :  { %6082 = vadd.xlane.f32.xlu0 %v6081_v2 }
0x77f0   :  { %v5969_v46 = vpop.f32.mrb[148].mxu1 }
0x77f1   :  { %v10326_v36 = vadd.f32 %v5969_v46, %v10272_v38  ;;  %v8339_v5 = vpop.f32.mrb[149].mxu1 }
0x77f2   :  { %6089 = vrot.lane.b32.xlu0 %v10229_v32, %s8976_s30  ;;  %v5972_v56 = vpop.f32.mrb[150].mxu1 }
0x77f3   :  { %v10331_v6 = vadd.f32 %v5972_v56, %v10274_v30  ;;  %v8340_v54 = vpop.f32.mrb[151].mxu1  ;;  %v6392_v30 = vpop.permute.xlu1 %6391 }
0x7810   :  { %6197 = vxpose.xlu0.b32.start [1/2] (short) (narrow) %v8546_v49, 8 }
0x7814   :  { %6198 = vxpose.xlu0.b32.end [2/2] (short) (narrow) %v8547_v62, 8 }
0x7850   :  { %v6373_v9 = vpop.trf.xlu1 }
0x7851   :  { %v6389_v13 = vpack.c.bf16 %v6373_v9, %v6373_v9 }
0x7853   :  { %v6397_v7 = vsel %vm181_vm0, %v6389_v13, 0 }
0x7865   :  { %v6080_v61 = vpop.xlane.xlu0 %6079 }
0x7866   :  { %8853 = vrcp.f32 %v6080_v61 }
0x7869   :  { %v6083_v18 = vpop.xlane.xlu0 %6082 }
0x786a   :  { %8855 = vrcp.f32 %v6083_v18 }
0x786d   :  { %v6090_v8 = vpop.permute.xlu0 %6089 }
0x786e   :  { %8348 = vmatpush3.bf16.msra.mxu1 %v6090_v8 }
0x786f   :  { %8359 = vmatprep.subr.bf16.mxu1 %v8963_v33 }
0x7870   :  { %v8854_v38 = vpop.eup %8853 }
0x7871   :  { %v6085_v32 = vmul.f32 %v8854_v38, %v8850_v21 }
0x7874   :  { %v8856_v35 = vpop.eup %8855 }
0x7875   :  { %v6087_v47 = vmul.f32 %v8856_v35, %v8852_v58  ;;  %v10369_v35 = vpack.c.bf16 %v10190_v24, %v10186_v1 }
0x7877   :  { %v6088_v3 = vpack.c.bf16 %v6087_v47, %v6085_v32 }
0x7879   :  { %8350 = vmatmul.mubr.msk.bf16.vlgmr.msra.gmra.mrb[152].mxu1 %vm390_vm5, %v6088_v3 }
0x787a   :  { %8361 = vmatprep.mubr.msk.bf16.mxu1 %vm8964_vm4, %v8963_v33 }
0x7890   :  { %v6213_v44 = vpop.trf.xlu0 }
0x7891   :  { %v6230_v31 = vpack.c.bf16 %v6213_v44, %v6213_v44 }
0x7893   :  { %v6235_v43 = vsel %vm181_vm0, %v6230_v31, 0 }
0x7894   :  { %8360 = vmatpush3.bf16.msra.mxu1 %v6235_v43 }
0x7895   :  { %8371 = vmatprep.subr.bf16.mxu1 %v8963_v33 }
0x7897   :  { %8362 = vmatmul.mubr.msk.bf16.vlgmr.msra.gmra.mrb[156].mxu1 %vm174_vm2, %v10297_v40 }
0x7898   :  { %8372 = vmatpush3.bf16.msra.mxu1 %v6397_v7  ;;  %8373 = vmatprep.mubr.msk.bf16.mxu1 %vm8964_vm4, %v8963_v33 }
0x7899   :  { %8383 = vmatprep.subr.bf16.mxu1 %v8963_v33 }
0x789f   :  { %8374 = vmatmul.mubr.msk.bf16.vlgmr.msra.gmra.mrb[160].mxu1 %vm174_vm2, %v6392_v30 }
0x78a0   :  { %8384 = vmatpush3.bf16.msra.mxu1 %v10257_v34  ;;  %8385 = vmatprep.mubr.msk.bf16.mxu1 %vm8964_vm4, %v8963_v33 }
0x78a1   :  { %8395 = vmatprep.subr.bf16.mxu1 %v8963_v33 }
0x794c   :  { %v6129_v16 = vpop.f32.mrb[152].mxu1 }
0x794d   :  { %v8351_v27 = vpop.f32.mrb[153].mxu1 }
0x794e   :  { %v6132_v20 = vpop.f32.mrb[154].mxu1 }
0x794f   :  { %v6136_v17 = vpack.c.bf16 %v6132_v20, %v6129_v16  ;;  %v8352_v22 = vpop.f32.mrb[155].mxu1 }
0x7951   :  { %8356 = vmatmul.mubr.msk.bf16.vlgmr.msra.gmra.mrb[144].mxu0 %vm174_vm2, %v6136_v17 }
0x7952   :  { %8367 = vmatprep.mubr.msk.bf16.mxu0 %vm8964_vm4, %v8963_v33 }
0x796a   :  { %v6271_v34 = vpop.f32.mrb[156].mxu1 }
0x796b   :  { %v8363_v29 = vpop.f32.mrb[157].mxu1  ;;  %v6278_v41 = vsel %vm390_vm5, %v6271_v34, -inf }
0x796c   :  { %6279 = vmax.xlane.f32.xlu0 %v6278_v41  ;;  %v6274_v10 = vpop.f32.mrb[158].mxu1 }
0x796d   :  { %v8364_v25 = vpop.f32.mrb[159].mxu1  ;;  %v6281_v4 = vsel %vm390_vm5, %v6274_v10, -inf }
0x796e   :  { %6282 = vmax.xlane.f32.xlu1 %v6281_v4 }
0x7972   :  { %v6433_v55 = vpop.f32.mrb[160].mxu1 }
0x7973   :  { %v8375_v23 = vpop.f32.mrb[161].mxu1  ;;  %v6440_v26 = vsel %vm390_vm5, %v6433_v55, -inf }
0x7974   :  { %6441 = vmax.xlane.f32.xlu0 %v6440_v26  ;;  %v6436_v28 = vpop.f32.mrb[162].mxu1 }
0x7975   :  { %v8376_v60 = vpop.f32.mrb[163].mxu1  ;;  %v6443_v42 = vsel %vm390_vm5, %v6436_v28, -inf }
0x7978   :  { %6444 = vmax.xlane.f32.xlu0 %v6443_v42 }
0x79f9   :  { %v6280_v45 = vpop.xlane.xlu0 %6279 }
0x79fa   :  { %v6284_v48 = vsub.f32 %v6271_v34, %v6280_v45 }
0x79fb   :  { %v6283_v59 = vpop.xlane.xlu1 %6282 }
0x79fc   :  { %v6286_v50 = vmul.f32 1.442695, %v6284_v48  ;;  %v6285_v11 = vsub.f32 %v6274_v10, %v6283_v59 }
0x79fe   :  { %8857 = vpow2.f32 %v6286_v50  ;;  %v6288_v19 = vmul.f32 1.442695, %v6285_v11 }
0x7a00   :  { %8859 = vpow2.f32 %v6288_v19 }
0x7a01   :  { %v6442_v21 = vpop.xlane.xlu0 %6441 }
0x7a02   :  { %v6446_v0 = vsub.f32 %v6433_v55, %v6442_v21 }
0x7a04   :  { %v6448_v58 = vmul.f32 1.442695, %v6446_v0 }
0x7a05   :  { %v6445_v2 = vpop.xlane.xlu0 %6444 }
0x7a06   :  { %8861 = vpow2.f32 %v6448_v58  ;;  %v6447_v46 = vsub.f32 %v6436_v28, %v6445_v2 }
0x7a08   :  { %v8858_v5 = vpop.eup %8857  ;;  %v6450_v56 = vmul.f32 1.442695, %v6447_v46 }
0x7a09   :  { %v6290_v54 = vsel %vm390_vm5, %v8858_v5, 0.0 }
0x7a0a   :  { %v8860_v49 = vpop.eup %8859  ;;  %8863 = vpow2.f32 %v6450_v56  ;;  %6291 = vadd.xlane.f32.xlu1 %v6290_v54 }
0x7a0b   :  { %v6293_v62 = vsel %vm390_vm5, %v8860_v49, 0.0 }
0x7a0c   :  { %6294 = vadd.xlane.f32.xlu0 %v6293_v62 }
0x7a10   :  { %v8862_v61 = vpop.eup %8861 }
0x7a11   :  { %v6452_v18 = vsel %vm390_vm5, %v8862_v61, 0.0 }
0x7a12   :  { %6453 = vadd.xlane.f32.xlu1 %v6452_v18 }
0x7a14   :  { %v8864_v8 = vpop.eup %8863 }
0x7a15   :  { %v6455_v38 = vsel %vm390_vm5, %v8864_v8, 0.0 }
0x7a16   :  { %6456 = vadd.xlane.f32.xlu0 %v6455_v38 }
0x7a23   :  { %6303 = vrot.lane.b32.xlu1 %v10369_v35, %s8973_s8 }
0x7a24   :  { %v6178_v32 = vpop.f32.mrb[144].mxu0 }
0x7a25   :  { %v10374_v47 = vadd.f32 %v6178_v32, %v10326_v36  ;;  %v8357_v3 = vpop.f32.mrb[145].mxu0 }
0x7a26   :  { %v6181_v30 = vpop.f32.mrb[146].mxu0 }
0x7a27   :  { %v10377_v9 = vadd.f32 %v6181_v30, %v10331_v6  ;;  %v8358_v44 = vpop.f32.mrb[147].mxu0  ;;  %6599 = vrot.lane.b32.xlu1 %v10186_v1, %s8966_s0 }
0x7a2b   :  { %6601 = vrot.lane.b32.xlu1 %v10190_v24, %s8966_s0  ;;  %s10554_s0 = sld [smem:[#allocation22_spill]] }
0x7a2c   :  { %6463 = vrot.lane.b32.xlu0 %v10369_v35, %s8972_s3 }
0x7a30   :  { %6638 = vrot.lane.b32.xlu0 %v10297_v40, %s8974_s14 }
0x7a97   :  { %v6292_v36 = vpop.xlane.xlu1 %6291 }
0x7a98   :  { %8865 = vrcp.f32 %v6292_v36 }
0x7a99   :  { %v6295_v31 = vpop.xlane.xlu0 %6294 }
0x7a9a   :  { %8867 = vrcp.f32 %v6295_v31 }
0x7a9f   :  { %v6454_v13 = vpop.xlane.xlu1 %6453 }
0x7aa0   :  { %8869 = vrcp.f32 %v6454_v13 }
0x7aa2   :  { %v8866_v6 = vpop.eup %8865 }
0x7aa3   :  { %v6304_v43 = vpop.permute.xlu1 %6303  ;;  %v6457_v7 = vpop.xlane.xlu0 %6456  ;;  %v6297_v1 = vmul.f32 %v8866_v6, %v8858_v5 }
0x7aa4   :  { %v8868_v14 = vpop.eup %8867  ;;  %8871 = vrcp.f32 %v6457_v7  ;;  %8366 = vmatpush3.bf16.msra.mxu0 %v6304_v43 }
0x7aa5   :  { %v6299_v24 = vmul.f32 %v8868_v14, %v8860_v49  ;;  %8377 = vmatprep.subr.bf16.mxu0 %v8963_v33 }
0x7aa7   :  { %v6600_v15 = vpop.permute.xlu1 %6599  ;;  %v6464_v16 = vpop.permute.xlu0 %6463  ;;  %v6300_v27 = vpack.c.bf16 %v6299_v24, %v6297_v1 }
0x7aa8   :  { %6605 = vxpose.xlu1.b32.start [1/2] (short) (narrow) %v6600_v15, 8 }
0x7aa9   :  { %8368 = vmatmul.mubr.msk.bf16.vlgmr.msra.gmra.mrb[148].mxu0 %vm390_vm5, %v6300_v27 }
0x7aaa   :  { %8378 = vmatpush3.bf16.msra.mxu0 %v6464_v16  ;;  %8379 = vmatprep.mubr.msk.bf16.mxu0 %vm8964_vm4, %v8963_v33  ;;  %v8870_v17 = vpop.eup %8869 }
0x7aab   :  { %v6602_v20 = vpop.permute.xlu1 %6601  ;;  %8389 = vmatprep.subr.bf16.mxu0 %v8963_v33  ;;  %v6459_v34 = vmul.f32 %v8870_v17, %v8862_v61  ;;  %v6639_v50 = vpop.permute.xlu0 %6638 }
0x7aac   :  { %6606 = vxpose.xlu1.b32.end [2/2] (short) (narrow) %v6602_v20, 8 }
0x7aae   :  { %v8872_v22 = vpop.eup %8871 }
0x7aaf   :  { %v6461_v29 = vmul.f32 %v8872_v22, %v8864_v8 }
0x7ab1   :  { %v6462_v41 = vpack.c.bf16 %v6461_v29, %v6459_v34 }
0x7ab3   :  { %8380 = vmatmul.mubr.msk.bf16.vlgmr.msra.gmra.mrb[152].mxu0 %vm390_vm5, %v6462_v41 }
0x7ab4   :  { %8390 = vmatpush3.bf16.msra.mxu0 %v10251_v12  ;;  %8391 = vmatprep.mubr.msk.bf16.mxu0 %vm8964_vm4, %v8963_v33 }
0x7ab5   :  { %8401 = vmatprep.subr.bf16.mxu0 %v8963_v33 }
0x7b28   :  { %v6621_v26 = vpop.trf.xlu1 }
0x7b29   :  { %v6637_v28 = vpack.c.bf16 %v6621_v26, %v6621_v26 }
0x7b2b   :  { %v6644_v59 = vsel %vm181_vm0, %v6637_v28, 0 }
0x7b7c   :  { %v6343_v10 = vpop.f32.mrb[148].mxu0 }
0x7b7d   :  { %v8369_v25 = vpop.f32.mrb[149].mxu0 }
0x7b7e   :  { %v6346_v4 = vpop.f32.mrb[150].mxu0 }
0x7b7f   :  { %v6350_v55 = vpack.c.bf16 %v6346_v4, %v6343_v10  ;;  %v8370_v23 = vpop.f32.mrb[151].mxu0 }
0x7b81   :  { %8392 = vmatmul.mubr.msk.bf16.vlgmr.msra.gmra.mrb[156].mxu0 %vm174_vm2, %v6350_v55 }
0x7b82   :  { %8403 = vmatprep.mubr.msk.bf16.mxu0 %vm8964_vm4, %v8963_v33 }
0x7b86   :  { %v6503_v60 = vpop.f32.mrb[152].mxu0 }
0x7b87   :  { %v8381_v42 = vpop.f32.mrb[153].mxu0 }
0x7b88   :  { %v6506_v12 = vpop.f32.mrb[154].mxu0 }
0x7b89   :  { %v6510_v45 = vpack.c.bf16 %v6506_v12, %v6503_v60  ;;  %v8382_v48 = vpop.f32.mrb[155].mxu0 }
0x7b8b   :  { %8386 = vmatmul.mubr.msk.bf16.vlgmr.msra.gmra.mrb[164].mxu1 %vm174_vm2, %v6510_v45 }
0x7b8c   :  { %8396 = vmatpush3.bf16.msra.mxu1 %v6644_v59  ;;  %8397 = vmatprep.mubr.msk.bf16.mxu1 %vm8964_vm4, %v8963_v33 }
0x7b8d   :  { %8407 = vmatprep.subr.bf16.mxu1 %v8963_v33 }
0x7b93   :  { %8398 = vmatmul.mubr.msk.bf16.vlgmr.msra.gmra.mrb[168].mxu1 %vm174_vm2, %v6639_v50 }
0x7b94   :  { %8408 = vmatpush3.bf16.msra.mxu1 %v10312_v37  ;;  %8409 = vmatprep.mubr.msk.bf16.mxu1 %vm8964_vm4, %v8963_v33 }
0x7b95   :  { %8419 = vmatprep.subr.bf16.mxu1 %v8963_v33 }
0x7c54   :  { %v6592_v11 = vpop.f32.mrb[156].mxu0 }
0x7c55   :  { %v8393_v19 = vpop.f32.mrb[157].mxu0 }
0x7c56   :  { %v6595_v21 = vpop.f32.mrb[158].mxu0 }
0x7c57   :  { %v8394_v0 = vpop.f32.mrb[159].mxu0 }
0x7c5e   :  { %v6548_v58 = vpop.f32.mrb[164].mxu1 }
0x7c5f   :  { %v10410_v2 = vadd.f32 %v6592_v11, %v6548_v58  ;;  %v8387_v46 = vpop.f32.mrb[165].mxu1 }
0x7c60   :  { %v6551_v5 = vpop.f32.mrb[166].mxu1 }
0x7c61   :  { %v10412_v56 = vadd.f32 %v6595_v21, %v6551_v5  ;;  %v8388_v54 = vpop.f32.mrb[167].mxu1  ;;  %v7555_v21 = vld [vmem:[%s10551_s22] ss:$0 sm:$0xff] }
0x7c62   :  { %v7017_v0 = vadd.f32 %v7555_v21, %v10377_v9 }
0x7c64   :  { %v7023_v5 = vadd.f32 %v7017_v0, %v10171_v57  ;;  %v7016_v57 = vadd.f32 %v7555_v21, %v10374_v47 }
0x7c66   :  { %v6680_v49 = vpop.f32.mrb[168].mxu1 }
0x7c67   :  { %v8399_v62 = vpop.f32.mrb[169].mxu1  ;;  %v6687_v37 = vsel %vm390_vm5, %v6680_v49, -inf }
0x7c68   :  { %6688 = vmax.xlane.f32.xlu0 %v6687_v37  ;;  %v6683_v61 = vpop.f32.mrb[170].mxu1 }
0x7c69   :  { %v8400_v18 = vpop.f32.mrb[171].mxu1  ;;  %v6690_v8 = vsel %vm390_vm5, %v6683_v61, -inf }
0x7c6c   :  { %6691 = vmax.xlane.f32.xlu0 %v6690_v8 }
0x7c82   :  { %8549 = vrot.lane.b32.xlu0 %v10289_v39, %s8975_s24 }
0x7cf5   :  { %v6689_v38 = vpop.xlane.xlu0 %6688 }
0x7cf6   :  { %v6693_v32 = vsub.f32 %v6680_v49, %v6689_v38  ;;  %v7029_v49 = vsel %vm3240_vm11, %v7023_v5, 0.0 }
0x7cf8   :  { %v6695_v3 = vmul.f32 1.442695, %v6693_v32  ;;  %v7022_v32 = vadd.f32 %v7016_v57, %v10169_v51 }
0x7cf9   :  { %v6692_v30 = vpop.xlane.xlu0 %6691 }
0x7cfa   :  { %8873 = vpow2.f32 %v6695_v3  ;;  %v6694_v44 = vsub.f32 %v6683_v61, %v6692_v30  ;;  %v7026_v3 = vsel %vm3240_vm11, %v7022_v32, 0.0 }
0x7cfc   :  { %v6697_v36 = vmul.f32 1.442695, %v6694_v44 }
0x7cfd   :  { %v8550_v39 = vpop.permute.xlu0 %8549 }
0x7cfe   :  { %8875 = vpow2.f32 %v6697_v36  ;;  %v8551_v7 = vunpack.i.l.bf16 %v8550_v39  ;;  %v8552_v14 = vunpack.i.h.bf16 %v8550_v39 }
0x7d04   :  { %v8874_v31 = vpop.eup %8873 }
0x7d05   :  { %v6699_v13 = vsel %vm390_vm5, %v8874_v31, 0.0 }
0x7d06   :  { %6700 = vadd.xlane.f32.xlu1 %v6699_v13 }
0x7d08   :  { %v8876_v6 = vpop.eup %8875 }
0x7d09   :  { %v6702_v43 = vsel %vm390_vm5, %v8876_v6, 0.0 }
0x7d0a   :  { %6703 = vadd.xlane.f32.xlu0 %v6702_v43 }
0x7d17   :  { %6710 = vrot.lane.b32.xlu1 %v10369_v35, %s8967_s5  ;;  %s10555_s5 = sld [smem:[#allocation21_spill]] }
0x7d20   :  { %6843 = vrot.lane.b32.xlu0 %v10297_v40, %s8968_s9  ;;  %s10556_s9 = sld [smem:[#allocation23_spill]] }
0x7d40   :  { %6810 = vxpose.xlu1.b32.start [1/2] (short) (narrow) %v8551_v7, 8 }
0x7d44   :  { %6811 = vxpose.xlu1.b32.end [2/2] (short) (narrow) %v8552_v14, 8 }
0x7d93   :  { %v6701_v1 = vpop.xlane.xlu1 %6700 }
0x7d94   :  { %8877 = vrcp.f32 %v6701_v1 }
0x7d97   :  { %v6711_v24 = vpop.permute.xlu1 %6710  ;;  %v6704_v15 = vpop.xlane.xlu0 %6703 }
0x7d98   :  { %8879 = vrcp.f32 %v6704_v15  ;;  %8402 = vmatpush3.bf16.msra.mxu0 %v6711_v24 }
0x7d99   :  { %8413 = vmatprep.subr.bf16.mxu0 %v8963_v33 }
0x7d9b   :  { %v6844_v41 = vpop.permute.xlu0 %6843 }
0x7d9e   :  { %v8878_v16 = vpop.eup %8877 }
0x7d9f   :  { %v6706_v20 = vmul.f32 %v8878_v16, %v8874_v31 }
0x7da2   :  { %v8880_v27 = vpop.eup %8879 }
0x7da3   :  { %v6708_v17 = vmul.f32 %v8880_v27, %v8876_v6 }
0x7da5   :  { %v6709_v22 = vpack.c.bf16 %v6708_v17, %v6706_v20 }
0x7da7   :  { %8404 = vmatmul.mubr.msk.bf16.vlgmr.msra.gmra.mrb[160].mxu0 %vm390_vm5, %v6709_v22 }
0x7da8   :  { %8415 = vmatprep.mubr.msk.bf16.mxu0 %vm8964_vm4, %v8963_v33 }
0x7dc0   :  { %v6826_v40 = vpop.trf.xlu1 }
0x7dc1   :  { %v6842_v34 = vpack.c.bf16 %v6826_v40, %v6826_v40 }
0x7dc3   :  { %v6849_v29 = vsel %vm181_vm0, %v6842_v34, 0 }
0x7dc4   :  { %8414 = vmatpush3.bf16.msra.mxu0 %v6849_v29 }
0x7dc5   :  { %8425 = vmatprep.subr.bf16.mxu0 %v8963_v33 }
0x7dc7   :  { %8416 = vmatmul.mubr.msk.bf16.vlgmr.msra.gmra.mrb[164].mxu0 %vm174_vm2, %v6844_v41 }
0x7dc8   :  { %8426 = vmatpush3.bf16.msra.mxu0 %v10352_v52  ;;  %8427 = vmatprep.mubr.msk.bf16.mxu0 %vm8964_vm4, %v8963_v33 }
0x7e7a   :  { %v6750_v10 = vpop.f32.mrb[160].mxu0 }
0x7e7b   :  { %v8405_v25 = vpop.f32.mrb[161].mxu0 }
0x7e7c   :  { %v6753_v4 = vpop.f32.mrb[162].mxu0 }
0x7e7d   :  { %v6757_v55 = vpack.c.bf16 %v6753_v4, %v6750_v10  ;;  %v8406_v23 = vpop.f32.mrb[163].mxu0 }
0x7e7f   :  { %8410 = vmatmul.mubr.msk.bf16.vlgmr.msra.gmra.mrb[172].mxu1 %vm174_vm2, %v6757_v55 }
0x7e80   :  { %8421 = vmatprep.mubr.msk.bf16.mxu1 %vm8964_vm4, %v8963_v33 }
0x7e9a   :  { %v6885_v26 = vpop.f32.mrb[164].mxu0 }
0x7e9b   :  { %v8417_v28 = vpop.f32.mrb[165].mxu0  ;;  %v6892_v60 = vsel %vm390_vm5, %v6885_v26, -inf }
0x7e9c   :  { %6893 = vmax.xlane.f32.xlu0 %v6892_v60  ;;  %v6888_v52 = vpop.f32.mrb[166].mxu0 }
0x7e9d   :  { %v8418_v42 = vpop.f32.mrb[167].mxu0  ;;  %v6895_v12 = vsel %vm390_vm5, %v6888_v52, -inf }
0x7ea0   :  { %6896 = vmax.xlane.f32.xlu0 %v6895_v12 }
0x7f29   :  { %v6894_v45 = vpop.xlane.xlu0 %6893 }
0x7f2a   :  { %v6898_v48 = vsub.f32 %v6885_v26, %v6894_v45 }
0x7f2c   :  { %v6900_v59 = vmul.f32 1.442695, %v6898_v48 }
0x7f2d   :  { %v6897_v50 = vpop.xlane.xlu0 %6896 }
0x7f2e   :  { %8881 = vpow2.f32 %v6900_v59  ;;  %v6899_v11 = vsub.f32 %v6888_v52, %v6897_v50 }
0x7f30   :  { %v6902_v19 = vmul.f32 1.442695, %v6899_v11 }
0x7f32   :  { %8883 = vpow2.f32 %v6902_v19 }
0x7f38   :  { %v8882_v58 = vpop.eup %8881 }
0x7f39   :  { %v6904_v46 = vsel %vm390_vm5, %v8882_v58, 0.0 }
0x7f3a   :  { %6905 = vadd.xlane.f32.xlu1 %v6904_v46 }
0x7f3c   :  { %v8884_v54 = vpop.eup %8883 }
0x7f3d   :  { %v6907_v62 = vsel %vm390_vm5, %v8884_v54, 0.0 }
0x7f3e   :  { %7030 = vadd.xlane.f32.xlu1 %v7029_v49  ;;  %6908 = vadd.xlane.f32.xlu0 %v6907_v62  ;;  %v7556_v62 = vld [vmem:[%s10552_s23] ss:$0 sm:$0xff] }
0x7f52   :  { %v6795_v37 = vpop.f32.mrb[172].mxu1 }
0x7f53   :  { %v6802_v61 = vadd.f32 %v6795_v37, %v10410_v2  ;;  %v8411_v18 = vpop.f32.mrb[173].mxu1 }
0x7f54   :  { %6915 = vrot.lane.b32.xlu0 %v10369_v35, %s8976_s30  ;;  %v6798_v9 = vpop.f32.mrb[174].mxu1 }
0x7f55   :  { %v6803_v8 = vadd.f32 %v6798_v9, %v10412_v56  ;;  %v8412_v38 = vpop.f32.mrb[175].mxu1  ;;  %v7557_v9 = vld [vmem:[%s10552_s23 + $0x1] ss:$0 sm:$0xff] }
0x7f73   :  { %7027 = vadd.xlane.f32.xlu0 %v7026_v3  ;;  %v7098_v3 = vld [vmem:[%s10553_s26] sm:$0xff] }
0x7fc7   :  { %v6906_v30 = vpop.xlane.xlu1 %6905 }
0x7fc8   :  { %8885 = vrcp.f32 %v6906_v30  ;;  %v7099_v30 = vld [vmem:[%s10553_s26 + $0x8] sm:$0xff] }
0x7fcb   :  { %v6909_v44 = vpop.xlane.xlu0 %6908  ;;  %v7031_v22 = vpop.xlane.xlu1 %7030 }
0x7fcc   :  { %8887 = vrcp.f32 %v6909_v44  ;;  %v7039_v29 = vmul.f32 0.03125, %v7031_v22  ;;  %v7104_v44 = vpack.c.bf16 %v7099_v30, %v7098_v3 }
0x7fce   :  { %v7043_v4 = vsub.f32 %v7023_v5, %v7039_v29 }
0x7fcf   :  { %v6916_v2 = vpop.permute.xlu0 %6915 }
0x7fd0   :  { %8420 = vmatpush3.bf16.msra.mxu1 %v6916_v2  ;;  %v7047_v28 = vmul.f32 %v7043_v4, %v7043_v4  ;;  %v7100_v2 = vld [vmem:[%s10553_s26 + $0x10] sm:$0xff] }
0x7fd1   :  { %8431 = vmatprep.subr.bf16.mxu1 %v7104_v44 }
0x7fd2   :  { %v8886_v36 = vpop.eup %8885  ;;  %v7053_v60 = vsel %vm3240_vm11, %v7047_v28, 0.0 }
0x7fd3   :  { %v6911_v35 = vmul.f32 %v8886_v36, %v8882_v58  ;;  %v7101_v36 = vld [vmem:[%s10553_s26 + $0x18] sm:$0xff] }
0x7fd6   :  { %v8888_v31 = vpop.eup %8887 }
0x7fd7   :  { %v6913_v13 = vmul.f32 %v8888_v31, %v8884_v54  ;;  %v7105_v31 = vpack.c.bf16 %v7101_v36, %v7100_v2 }
0x7fd9   :  { %v6914_v6 = vpack.c.bf16 %v6913_v13, %v6911_v35  ;;  %v7172_v35 = vld [vmem:[%s10554_s0] sm:$0xff]  ;;  %v7173_v13 = vld [vmem:[%s10554_s0 + $0x8] sm:$0xff] }
0x7fdb   :  { %8422 = vmatmul.mubr.msk.bf16.vlgmr.msra.gmra.mrb[176].mxu1 %vm390_vm5, %v6914_v6  ;;  %v7174_v6 = vld [vmem:[%s10554_s0 + $0x10] sm:$0xff] }
0x7fdc   :  { %8432 = vmatpush3.bf16.msra.mxu1 %v7104_v44 }
0x7fdd   :  { %8433 = vmatprep.subr.bf16.mxu1 %v7105_v31 }
0x7fe0   :  { %8434 = vmatpush3.bf16.msra.mxu1 %v7105_v31 }
0x7fe1   :  { %8451 = vmatprep.subr.bf16.mxu1 %v8963_v33 }
0x8000   :  { %v7028_v7 = vpop.xlane.xlu0 %7027 }
0x8001   :  { %v7038_v16 = vmul.f32 0.03125, %v7028_v7 }
0x8003   :  { %v7042_v41 = vsub.f32 %v7022_v32, %v7038_v16 }
0x8005   :  { %v7046_v23 = vmul.f32 %v7042_v41, %v7042_v41 }
0x8007   :  { %v7050_v26 = vsel %vm3240_vm11, %v7046_v23, 0.0 }
0x80ae   :  { %v6955_v56 = vpop.f32.mrb[176].mxu1 }
0x80af   :  { %v8423_v47 = vpop.f32.mrb[177].mxu1 }
0x80b0   :  { %v6958_v43 = vpop.f32.mrb[178].mxu1  ;;  %v7175_v47 = vld [vmem:[%s10554_s0 + $0x18] sm:$0xff] }
0x80b1   :  { %v6962_v51 = vpack.c.bf16 %v6958_v43, %v6955_v56  ;;  %v8424_v39 = vpop.f32.mrb[179].mxu1  ;;  %v7182_v56 = vpack.c.bf16 %v7173_v13, %v7172_v35  ;;  %v7183_v43 = vpack.c.bf16 %v7175_v47, %v7174_v6  ;;  %v7299_v35 = vld [vmem:[%s9156_s6] sm:$0xff]  ;;  %v7300_v13 = vld [vmem:[%s9156_s6 + $0x8] sm:$0xff]  ;;  %v7302_v47 = vld [vmem:[%s9156_s6 + $0x18] sm:$0xff] }
0x80b2   :  { %v7304_v6 = vpack.c.bf16 %v7300_v13, %v7299_v35 }
0x80b3   :  { %8428 = vmatmul.mubr.msk.bf16.vlgmr.msra.gmra.mrb[168].mxu0 %vm174_vm2, %v6962_v51  ;;  %8439 = vmatprep.subr.bf16.mxu0 %v7182_v56 }
0x80b4   :  { %8440 = vmatpush3.bf16.msra.mxu0 %v7182_v56  ;;  %v7301_v56 = vld [vmem:[%s9156_s6 + $0x10] sm:$0xff]  ;;  %s8977_s6 = smov [#allocation2]  }
0x80b5   :  { %8441 = vmatprep.subr.bf16.mxu0 %v7183_v43  ;;  %s7364_s13 = sshll.u32 %s8977_s6, 4  ;;  %s7365_s13 = int_to_ptr.vmem [resolvable:$true] %s7364_s13 }
0x80b6   :  { %p8908_p1 = scmp.lt.s32.totalorder %s7365_s13, %s7365_s13 }
0x80b8   :  { %8442 = vmatpush3.bf16.msra.mxu0 %v7183_v43  ;;  %v7305_v43 = vpack.c.bf16 %v7302_v47, %v7301_v56 }
0x8186   :  { %v7000_v14 = vpop.f32.mrb[168].mxu0 }
0x8187   :  { %v7007_v1 = vadd.f32 %v7000_v14, %v6802_v61  ;;  %v8429_v24 = vpop.f32.mrb[169].mxu0 }
0x8188   :  { %v7003_v15 = vpop.f32.mrb[170].mxu0 }
0x8189   :  { %v7018_v27 = vadd.f32 %v7555_v21, %v7007_v1  ;;  %v7008_v20 = vadd.f32 %v7003_v15, %v6803_v8  ;;  %v8430_v17 = vpop.f32.mrb[171].mxu0 }
0x818b   :  { %v7019_v40 = vadd.f32 %v7555_v21, %v7008_v20  ;;  %v7024_v34 = vadd.f32 %v7018_v27, %v10176_v53 }
0x818d   :  { %v7032_v10 = vsel %vm3240_vm11, %v7024_v34, 0.0  ;;  %v7025_v25 = vadd.f32 %v7019_v40, %v10178_v63 }
0x818e   :  { %7033 = vadd.xlane.f32.xlu1 %v7032_v10  ;;  %v7177_v10 = vld [vmem:[%s10554_s0 + $0x28] sm:$0xff] }
0x818f   :  { %v7035_v55 = vsel %vm3240_vm11, %v7025_v25, 0.0 }
0x8192   :  { %7036 = vadd.xlane.f32.xlu1 %v7035_v55  ;;  %v7179_v55 = vld [vmem:[%s10554_s0 + $0x38] sm:$0xff] }
0x8196   :  { %7051 = vadd.xlane.f32.xlu1 %v7050_v26  ;;  %v7558_v26 = vld [vmem:[%s10555_s5] ss:$0 sm:$0xff] }
0x819a   :  { %7054 = vadd.xlane.f32.xlu1 %v7053_v60 }
0x821b   :  { %v7034_v53 = vpop.xlane.xlu1 %7033 }
0x821c   :  { %v7040_v52 = vmul.f32 0.03125, %v7034_v53 }
0x821e   :  { %v7044_v42 = vsub.f32 %v7024_v34, %v7040_v52 }
0x821f   :  { %v7037_v12 = vpop.xlane.xlu1 %7036 }
0x8220   :  { %v7041_v45 = vmul.f32 0.03125, %v7037_v12  ;;  %v7048_v48 = vmul.f32 %v7044_v42, %v7044_v42 }
0x8222   :  { %v7045_v63 = vsub.f32 %v7025_v25, %v7041_v45  ;;  %v7056_v59 = vsel %vm3240_vm11, %v7048_v48, 0.0 }
0x8223   :  { %7057 = vadd.xlane.f32.xlu0 %v7056_v59  ;;  %v7052_v50 = vpop.xlane.xlu1 %7051 }
0x8224   :  { %v7062_v11 = vmul.f32 0.03125, %v7052_v50  ;;  %v7049_v19 = vmul.f32 %v7045_v63, %v7045_v63 }
0x8226   :  { %v7066_v21 = vadd.f32 1e-05, %v7062_v11  ;;  %v7059_v0 = vsel %vm3240_vm11, %v7049_v19, 0.0 }
0x8227   :  { %7060 = vadd.xlane.f32.xlu1 %v7059_v0  ;;  %v7055_v58 = vpop.xlane.xlu1 %7054 }
0x8228   :  { %8889 = vrsqrt.f32 %v7066_v21  ;;  %v7063_v46 = vmul.f32 0.03125, %v7055_v58  ;;  %v7561_v58 = vld [vmem:[%s10556_s9] ss:$0 sm:$0xff] }
0x822a   :  { %v7067_v5 = vadd.f32 1e-05, %v7063_v46 }
0x822c   :  { %8891 = vrsqrt.f32 %v7067_v5 }
0x8232   :  { %v8890_v54 = vpop.eup %8889 }
0x8233   :  { %v7074_v49 = vmul.f32 %v8890_v54, %v7042_v41  ;;  %v7176_v41 = vld [vmem:[%s10554_s0 + $0x20] sm:$0xff] }
0x8234   :  { %v7184_v25 = vpack.c.bf16 %v7177_v10, %v7176_v41 }
0x8235   :  { %v7084_v18 = vmul.f32 %v7556_v62, %v7074_v49 }
0x8236   :  { %v8892_v37 = vpop.eup %8891  ;;  %8443 = vmatprep.subr.bf16.mxu0 %v7184_v25 }
0x8237   :  { %v7075_v61 = vmul.f32 %v8892_v37, %v7043_v4  ;;  %v7094_v38 = vadd.f32 %v7557_v9, %v7084_v18  ;;  %8444 = vmatpush3.bf16.msra.mxu0 %v7184_v25  ;;  %v7178_v4 = vld [vmem:[%s10554_s0 + $0x30] sm:$0xff] }
0x8238   :  { %v7185_v23 = vpack.c.bf16 %v7179_v55, %v7178_v4  ;;  %v7566_v55 = vld [vmem:[%s9161_s20] ss:$0 sm:$0xff] }
0x8239   :  { %v7085_v8 = vmul.f32 %v7556_v62, %v7075_v61 }
0x823a   :  { %8445 = vmatprep.subr.bf16.mxu0 %v7185_v23 }
0x823b   :  { %v10464_v57 = vadd.f32 %v7557_v9, %v7085_v8  ;;  %8446 = vmatpush3.bf16.msra.mxu0 %v7185_v23 }
0x823d   :  { %v7102_v32 = vpack.c.bf16 %v10464_v57, %v7094_v38 }
0x823f   :  { %8435 = vmatprep.mubr.msk.bf16.mxu1 %vm3240_vm11, %v7102_v32 }
0x82b0   :  { %v7058_v51 = vpop.xlane.xlu0 %7057 }
0x82b1   :  { %v7064_v39 = vmul.f32 0.03125, %v7058_v51 }
0x82b3   :  { %v7068_v7 = vadd.f32 1e-05, %v7064_v39 }
0x82b4   :  { %v7061_v14 = vpop.xlane.xlu1 %7060 }
0x82b5   :  { %8893 = vrsqrt.f32 %v7068_v7  ;;  %v7065_v1 = vmul.f32 0.03125, %v7061_v14 }
0x82b7   :  { %v7069_v24 = vadd.f32 1e-05, %v7065_v1 }
0x82b9   :  { %8895 = vrsqrt.f32 %v7069_v24 }
0x82bf   :  { %v8894_v15 = vpop.eup %8893 }
0x82c0   :  { %v7076_v16 = vmul.f32 %v8894_v15, %v7044_v42 }
0x82c2   :  { %v7086_v20 = vmul.f32 %v7556_v62, %v7076_v16  ;;  %v7564_v16 = vld [vmem:[%s9151_s4] ss:$0 sm:$0xff] }
0x82c3   :  { %v8896_v27 = vpop.eup %8895 }
0x82c4   :  { %v7077_v17 = vmul.f32 %v8896_v27, %v7045_v63  ;;  %v7096_v40 = vadd.f32 %v7557_v9, %v7086_v20 }
0x82c6   :  { %v7087_v22 = vmul.f32 %v7556_v62, %v7077_v17  ;;  %v7565_v17 = vld [vmem:[%s9151_s4 + $0x1] ss:$0 sm:$0xff]  ;;  %s8903_s4 = scalar_lea.vmem %s7365_s13, 32 }
0x82c7   :  { %p8904_p0 = scmp.ne.s32.totalorder %s7365_s13, %s8903_s4  ;;  %p8909_p2 = scmp.lt.s32.totalorder %s8903_s4, %s8903_s4 }
0x82c8   :  { %v7097_v34 = vadd.f32 %v7557_v9, %v7087_v22 }
0x82c9   :  { %p8910_p3 = por %p8909_p2, %p8908_p1 }
0x82ca   :  { %v7103_v29 = vpack.c.bf16 %v7097_v34, %v7096_v40 }
0x82cb   :  { %p8911_p4 = pnand %p8910_p3, %p8904_p0 }
0x82cc   :  { %8436 = vmatmul.mubr.msk.bf16.vlgmr.msra.gmra.mrb[180].mxu1 %vm3240_vm11, %v7103_v29 }
0x82cd   :  { %8455 = vmatprep.mubr.msk.bf16.mxu1 %vm8964_vm4, %v8963_v33  ;;  %8452 = vmatpush3.bf16.msra.mxu1 %v7304_v6 }
0x82ce   :  { %8453 = vmatprep.subr.bf16.mxu1 %v8963_v33 }
0x82d1   :  { %8454 = vmatpush3.bf16.msra.mxu1 %v7305_v43 }
0x839f   :  { %v8437_v28 = vpop.f32.mrb[180].mxu1 }
0x83a0   :  { %v7162_v60 = vadd.f32 %v8437_v28, %v7558_v26  ;;  %v7153_v53 = vpop.f32.mrb[181].mxu1 }
0x83a1   :  { %v7154_v52 = vadd.f32 %v7558_v26, %v7153_v53  ;;  %v8438_v42 = vpop.f32.mrb[182].mxu1 }
0x83a2   :  { %v7165_v12 = vadd.f32 %v8438_v42, %v7558_v26  ;;  %v7156_v45 = vpop.f32.mrb[183].mxu1  ;;  %v7170_v63 = vmax.f32 %v7162_v60, 0.0 }
0x83a3   :  { %v7157_v48 = vadd.f32 %v7558_v26, %v7156_v45  ;;  %v7168_v50 = vmax.f32 %v7154_v52, 0.0 }
0x83a4   :  { %v7171_v59 = vmax.f32 %v7165_v12, 0.0 }
0x83a5   :  { %v7169_v11 = vmax.f32 %v7157_v48, 0.0 }
0x83a6   :  { %v7181_v19 = vpack.c.bf16 %v7171_v59, %v7170_v63 }
0x83a7   :  { %v7180_v21 = vpack.c.bf16 %v7169_v11, %v7168_v50 }
0x83a9   :  { %8447 = vmatprep.mubr.msk.bf16.mxu0 %vm5141_vm12, %v7180_v21 }
0x83aa   :  { %8448 = vmatmul.mubr.msk.bf16.vlgmr.msra.gmra.mrb[172].mxu0 %vm5141_vm12, %v7181_v19 }
0x847d   :  { %v8449_v0 = vpop.f32.mrb[172].mxu0 }
0x847e   :  { %v7233_v46 = vpop.f32.mrb[173].mxu0 }
0x847f   :  { %v8450_v5 = vpop.f32.mrb[174].mxu0 }
0x8480   :  { %v7243_v54 = vadd.f32 %v8450_v5, %v7561_v58  ;;  %v7235_v49 = vpop.f32.mrb[175].mxu0 }
0x8481   :  { %v7236_v62 = vadd.f32 %v7561_v58, %v7235_v49 }
0x8482   :  { %v7249_v37 = vadd.f32 %v7243_v54, %v7097_v34 }
0x8483   :  { %v7248_v61 = vadd.f32 %v7236_v62, %v10464_v57 }
0x8484   :  { %v7253_v18 = vsel %vm3240_vm11, %v7249_v37, 0.0 }
0x8485   :  { %7254 = vadd.xlane.f32.xlu1 %v7253_v18  ;;  %v7250_v9 = vsel %vm3240_vm11, %v7248_v61, 0.0 }
0x8486   :  { %7251 = vadd.xlane.f32.xlu0 %v7250_v9 }
0x8512   :  { %v7255_v8 = vpop.xlane.xlu1 %7254 }
0x8513   :  { %v7257_v38 = vmul.f32 0.03125, %v7255_v8  ;;  %v7252_v32 = vpop.xlane.xlu0 %7251 }
0x8514   :  { %v7256_v3 = vmul.f32 0.03125, %v7252_v32 }
0x8515   :  { %v7259_v30 = vsub.f32 %v7249_v37, %v7257_v38 }
0x8516   :  { %v7258_v44 = vsub.f32 %v7248_v61, %v7256_v3 }
0x8517   :  { %v7261_v2 = vmul.f32 %v7259_v30, %v7259_v30 }
0x8518   :  { %v7260_v36 = vmul.f32 %v7258_v44, %v7258_v44 }
0x8519   :  { %v7265_v57 = vsel %vm3240_vm11, %v7261_v2, 0.0 }
0x851a   :  { %7266 = vadd.xlane.f32.xlu1 %v7265_v57  ;;  %v7262_v31 = vsel %vm3240_vm11, %v7260_v36, 0.0 }
0x851b   :  { %7263 = vadd.xlane.f32.xlu0 %v7262_v31 }
0x85a7   :  { %v7267_v51 = vpop.xlane.xlu1 %7266 }
0x85a8   :  { %v7269_v39 = vmul.f32 0.03125, %v7267_v51  ;;  %v7264_v7 = vpop.xlane.xlu0 %7263 }
0x85a9   :  { %v7268_v14 = vmul.f32 0.03125, %v7264_v7 }
0x85aa   :  { %v7271_v1 = vadd.f32 1e-05, %v7269_v39 }
0x85ab   :  { %v7270_v24 = vadd.f32 1e-05, %v7268_v14 }
0x85ac   :  { %8897 = vrsqrt.f32 %v7271_v1 }
0x85ad   :  { %8899 = vrsqrt.f32 %v7270_v24 }
0x85b6   :  { %v8898_v15 = vpop.eup %8897 }
0x85b7   :  { %v8900_v27 = vpop.eup %8899  ;;  %v7275_v20 = vmul.f32 %v8898_v15, %v7259_v30 }
0x85b8   :  { %v7274_v33 = vmul.f32 %v8900_v27, %v7258_v44 }
0x85b9   :  { %v7283_v22 = vmul.f32 %v7564_v16, %v7275_v20 }
0x85ba   :  { %v7282_v40 = vmul.f32 %v7564_v16, %v7274_v33 }
0x85bb   :  { %v7291_v34 = vadd.f32 %v7565_v17, %v7283_v22 }
0x85bc   :  { %v7290_v29 = vadd.f32 %v7565_v17, %v7282_v40 }
0x85bd   :  { %v7296_v41 = vrot.slane %v7291_v34, 6 }
0x85be   :  { %v7293_v10 = vrot.slane %v7290_v29, 7 }
0x85c0   :  { %v7298_v25 = vsel %vm3079_vm8, %v7293_v10, %v7296_v41 }
0x85c1   :  { %v7303_v4 = vpack.c.bf16 %v7298_v25, %v7298_v25 }
0x85c3   :  { %8456 = vmatmul.mubr.msk.bf16.vlgmr.msra.gmra.mrb[184].mxu1 %vm3240_vm11, %v7303_v4 }
0x8696   :  { %v7350_v23 = vpop.f32.mrb[184].mxu1 }
0x8697   :  { %v7351_v26 = vadd.f32 %v7566_v55, %v7350_v23  ;;  %v8457_v28 = vpop.f32.mrb[185].mxu1 }
0x8698   :  { %v7353_v60 = vpop.f32.mrb[186].mxu1 }
0x8699   :  { %v8458_v53 = vpop.f32.mrb[187].mxu1  ;;  %7357 = vst.msk [vmem:[#allocation2] sm:$0x3] %vm7356_vm13, %v7351_v26 }
0x869a   :  { %8914 = shalt.err (!%p8911_p4)
}
0x869b   :  { %s8915_s20 = scalar_lea.hbm %s9166_s27, 32 }
0x869c   :  { %p8916_p5 = scmp.ne.s32.totalorder %s9166_s27, %s8915_s20  ;;  %p8919_p6 = scmp.lt.u32.totalorder %s8915_s20, %s9166_s27 }
0x869e   :  { %p8921_p7 = pnand %p8919_p6, %p8916_p5 }
0x86a0   :  { %8924 = shalt.err (!%p8921_p7)
}
0x86a1   :  { %7367 = dma.vmem_to_hbm [thread:$0]  %s7365_s13, 32, %s9166_s27, [#allocation3]  }
0x86a2   :  { %8925 = dma.done.wait [#allocation3], 32  }
0x86a3   :  { %8926 = vsyncadd [#allocation3], 4294967264 }
0x86a4   :  { %7371 = vsyncpa [#allocation3], 1 }

</bundles_post_ra>
